<compile_context>
chip_gen: v7x
topology: tpu7x:2x2x1
jax: 0.10.0
libtpu: 0.0.40
codegen_flags: <defaults>
</compile_context>

<pallas_src>
import functools

import numpy as np
import jax
import jax.numpy as jnp
from jax import lax
from jax.experimental import pallas as pl
from jax.experimental.pallas import tpu as pltpu

# ----------------------------- configuration ------------------------------
STEP_COLS = 4
OUT_C = 2
OUT_SCALE = 8
RNN_HIDDEN = 128           # real model uses 512; 128 keeps gate slices lane-aligned
BN_EPS = 1e-5
BACKBONE_CH = (8, 16, 32, 64, 128)   # stem, c1, c2, c3, c4
LANE = 128
VMEM_LIMIT = 32 * 1024 * 1024


def _round_up(v, m):
    return ((v + m - 1) // m) * m


# ==================== Pallas kernel 1: fused matmul + bias ==================
#   y = relu( x @ w + bias )      (relu optional)
# Used for every conv (via NHWC im2col, BN folded into weights/bias), for the
# LSTM input projections, and for the final Linear layer.
# bf16 operands, f32 accumulation, f32 epilogue, lane-dense (N padded to 128).
def _mm_bias_kernel(x_ref, w_ref, b_ref, o_ref, *, relu):
    acc = jnp.dot(x_ref[...], w_ref[...], preferred_element_type=jnp.float32)
    y = acc + b_ref[...]
    if relu:
        y = jnp.maximum(y, 0.0)
    o_ref[...] = y.astype(o_ref.dtype)


def pallas_matmul_bias(x, w, bias, relu=False, tile_m=512, out_dtype=jnp.float32):
    """x: (M, K), w: (K, N), bias: (N,) -> (M, N) out_dtype."""
    M, K = x.shape
    N = w.shape[1]
    n_pad = _round_up(N, LANE)                    # lane-dense output stores
    tile = max(8, min(tile_m, _round_up(M, 8)))

    x_p = x.astype(jnp.bfloat16)
    w_p = w.astype(jnp.bfloat16)
    b_p = bias.astype(jnp.float32)
    if n_pad != N:
        w_p = jnp.pad(w_p, ((0, 0), (0, n_pad - N)))
        b_p = jnp.pad(b_p, (0, n_pad - N))

    # TODO(synk): at production channel counts (ResNet50: K~4.6k, N=512) add
    # K-tiling with a VMEM f32 accumulator and pipeline_mode=pl.Buffered(1) on
    # the grid-invariant w/bias blocks so the resident weights fit v7x's 64 MiB.
    out = pl.pallas_call(
        functools.partial(_mm_bias_kernel, relu=relu),
        out_shape=jax.ShapeDtypeStruct((M, n_pad), out_dtype),
        grid_spec=pltpu.PrefetchScalarGridSpec(
            num_scalar_prefetch=0,
            grid=(pl.cdiv(M, tile),),             # partial last tile, no HBM pad copy
            in_specs=[
                pl.BlockSpec((tile, K), lambda i: (i, 0)),
                pl.BlockSpec((K, n_pad), lambda i: (0, 0)),
                pl.BlockSpec((1, n_pad), lambda i: (0, 0)),
            ],
            out_specs=pl.BlockSpec((tile, n_pad), lambda i: (i, 0)),
        ),
        compiler_params=pltpu.CompilerParams(
            dimension_semantics=("parallel",),
            vmem_limit_bytes=VMEM_LIMIT),
    )(x_p, w_p, b_p.reshape(1, n_pad))
    if n_pad != N:
        # TODO(synk): at production channel counts (multiples of 128) carry the
        # padded channels through to the next layer instead of slicing; at demo
        # channel counts (8..64) that would inflate K by up to 16x, so we slice.
        out = out[:, :N]
    return out


# ================ Pallas kernel 2: fused bi-directional LSTM ================
# Single invocation per layer. The input projection (x @ W_ih + b) for both
# directions is precomputed outside (one big MXU matmul); the kernel only runs
# the recurrence: per step one block-diagonal (B, 2H) x (2H, 8H) matmul drives
# BOTH directions (fwd reads gx[t], bwd reads gx[T-1-t]), halving the number of
# serial timesteps vs. grid=(2,). Output is written interleaved as (T, B, 2H).
# PyTorch gate order inside each direction's 4H block: i, f, g, o.
def _bilstm_fused_kernel(gx_ref, whh_ref, o_ref):
    T, B, G8 = gx_ref.shape
    H4 = G8 // 2
    H = H4 // 4

    def step(t, carry):
        h_f, h_b, c_f, c_b = carry                       # (B, H) f32 each
        h_cat = jnp.concatenate([h_f, h_b], axis=-1).astype(jnp.bfloat16)  # (B,2H)
        gh = jnp.dot(h_cat, whh_ref[...],
                     preferred_element_type=jnp.float32)  # (B, 8H)
        tb = T - 1 - t
        gx_t = gx_ref[t]                                  # (B, 8H) f32
        gx_tb = gx_ref[tb]
        g_f = gh[:, :H4] + gx_t[:, :H4]
        g_b = gh[:, H4:] + gx_tb[:, H4:]

        def upd(g, c):
            i_g = jax.nn.sigmoid(g[:, 0 * H:1 * H])
            f_g = jax.nn.sigmoid(g[:, 1 * H:2 * H])
            g_g = jnp.tanh(g[:, 2 * H:3 * H])
            o_g = jax.nn.sigmoid(g[:, 3 * H:4 * H])
            c_new = f_g * c + i_g * g_g
            return o_g * jnp.tanh(c_new), c_new

        h_f2, c_f2 = upd(g_f, c_f)
        h_b2, c_b2 = upd(g_b, c_b)
        o_ref[t, :, :H] = h_f2.astype(o_ref.dtype)        # fwd -> lanes [0:H]
        o_ref[tb, :, H:] = h_b2.astype(o_ref.dtype)       # bwd -> lanes [H:2H]
        return (h_f2, h_b2, c_f2, c_b2)

    z = jnp.zeros((B, H), jnp.float32)
    lax.fori_loop(0, T, step, (z, z, z, z))


def bi_lstm(x_seq, layer_params):
    """x_seq: (T, B, I).  layer_params: (W_ih_cat (I,8H) bf16,
    W_hh_blockdiag (2H,8H) bf16, b_cat (8H,) f32).
    Returns (T, B, 2H) bf16 with fwd||bwd on the channel axis."""
    w_ih_cat, w_hh_bd, b_cat = layer_params
    T, B, I = x_seq.shape
    G8 = w_ih_cat.shape[1]
    H = G8 // 8

    # Hoisted input projection for all timesteps / both directions.
    gx = pallas_matmul_bias(x_seq.reshape(T * B, I), w_ih_cat, b_cat,
                            relu=False, out_dtype=jnp.float32)
    gx = gx.reshape(T, B, G8)

    # TODO(synk): at production sizes (T=256, H=512) tile gx over T (manual
    # double-buffer or emit_pipeline) instead of keeping the full sequence
    # resident in VMEM, to stay under v7x's 64 MiB.
    out = pl.pallas_call(
        _bilstm_fused_kernel,
        out_shape=jax.ShapeDtypeStruct((T, B, 2 * H), jnp.bfloat16),
        grid_spec=pltpu.PrefetchScalarGridSpec(
            num_scalar_prefetch=0,
            grid=(1,),
            in_specs=[
                pl.BlockSpec((T, B, G8), lambda i: (0, 0, 0)),
                pl.BlockSpec((2 * H, G8), lambda i: (0, 0)),
            ],
            out_specs=pl.BlockSpec((T, B, 2 * H), lambda i: (0, 0, 0)),
        ),
        compiler_params=pltpu.CompilerParams(
            dimension_semantics=("arbitrary",),
            vmem_limit_bytes=VMEM_LIMIT),
    )(gx, w_hh_bd)
    return out


# ============================== glue (JAX) =================================
def im2col_nhwc(x, kh, kw, sh, sw, ph, pw):
    """x: (B, H, W, C) NHWC -> patches (B*Ho*Wo, kh*kw*C); tap-major,
    channel-minor ordering (matches weight flattened as (kh, kw, in_c))."""
    # TODO(synk): fully fusing im2col into the Pallas matmul (shifted-matmul
    # tap reduction) needs strided sublane reads for stride-2 width; left as a
    # follow-up, so the patches tensor is still materialized here.
    B, H, W, C = x.shape
    xp = jnp.pad(x, ((0, 0), (ph, ph), (pw, pw), (0, 0)))
    Ho = (H + 2 * ph - kh) // sh + 1
    Wo = (W + 2 * pw - kw) // sw + 1
    cols = []
    for i in range(kh):
        for j in range(kw):
            cols.append(xp[:, i:i + sh * Ho:sh, j:j + sw * Wo:sw, :][:, :Ho, :Wo, :])
    patches = jnp.concatenate(cols, axis=-1)             # (B, Ho, Wo, kh*kw*C)
    return patches.reshape(B * Ho * Wo, kh * kw * C), Ho, Wo


def conv_bn_relu(x, w, b, stride, relu=True):
    """x NHWC. Conv2d(pad=ks//2, bias) + BatchNorm(eval: gamma=1, beta=0,
    mean=0, var=1) folded into the weights + ReLU. Returns NHWC bf16."""
    out_c, in_c, kh, kw = w.shape
    patches, Ho, Wo = im2col_nhwc(x, kh, kw, stride[0], stride[1], kh // 2, kw // 2)
    bn_scale = np.float32(1.0 / np.sqrt(1.0 + BN_EPS))   # folded, compile-time const
    wmat = w.transpose(2, 3, 1, 0).reshape(kh * kw * in_c, out_c) * bn_scale
    shift = b * bn_scale                                  # beta=0, running_mean=0
    y = pallas_matmul_bias(patches, wmat, shift, relu=relu, out_dtype=jnp.bfloat16)
    return y.reshape(x.shape[0], Ho, Wo, out_c)


def interp_width_nhwc(x, out_w):
    """F.interpolate(mode='bilinear', align_corners=False) along width (NHWC),
    height unchanged."""
    Win = x.shape[2]
    scale = Win / out_w
    dst = jnp.arange(out_w, dtype=jnp.float32)
    src = jnp.maximum((dst + 0.5) * scale - 0.5, 0.0)
    x0 = jnp.floor(src)
    lam = (src - x0)[None, None, :, None].astype(x.dtype)
    x0 = x0.astype(jnp.int32)
    x0c = jnp.clip(x0, 0, Win - 1)
    x1c = jnp.clip(x0 + 1, 0, Win - 1)
    return x[:, :, x0c, :] * (1.0 - lam) + x[:, :, x1c, :] * lam


# ============================ model forward ================================
def horizonnet_forward(x, params):
    # NCHW input (PyTorch convention) -> NHWC bf16 activations internally.
    xh = jnp.transpose(x, (0, 2, 3, 1)).astype(jnp.bfloat16)

    # ---- feature extractor (deterministic ResNet-shaped stand-in) ----
    # TODO(synk): pretrained torchvision encoder unavailable offline; replaced
    # by strided conv-bn-relu blocks producing the same 4-scale pyramid.
    bb = params['backbone']
    h = conv_bn_relu(xh, *bb[0], stride=(2, 2))          # stem  -> H/2
    feats = []
    for (w, b) in bb[1:]:
        h = conv_bn_relu(h, w, b, stride=(2, 2))         # H/4, H/8, H/16, H/32
        feats.append(h)

    # ---- GlobalHeightStage ----
    # TODO(synk): the 16 small ConvCompressH matmuls are launch-overhead bound
    # at demo sizes; fusing each per-scale chain into one pallas_call is a
    # possible follow-up (tile_m already shrinks to a single step per call).
    out_w = x.shape[3] // STEP_COLS
    cat_feats = []
    for f, chain in zip(feats, params['ghc']):
        y = f
        for (w, b) in chain:                             # 4x ConvCompressH, stride (2,1)
            y = conv_bn_relu(y, w, b, stride=(2, 1))
        assert out_w % y.shape[2] == 0
        factor = out_w // y.shape[2]
        y = jnp.concatenate([y[:, :, -1:, :], y, y[:, :, :1, :]], axis=2)
        y = interp_width_nhwc(y, out_w + 2 * factor)
        y = y[:, :, factor:-factor, :]
        # match PyTorch NCHW reshape(bs, -1, out_w): flatten (C, H) in that order
        y = jnp.transpose(y, (0, 3, 1, 2)).reshape(y.shape[0], -1, out_w)
        cat_feats.append(y)
    feature = jnp.concatenate(cat_feats, axis=1)         # (B, c_last, out_w) bf16

    # ---- bi-directional 2-layer LSTM + Linear head ----
    seq = jnp.transpose(feature, (2, 0, 1))              # (T, B, c_last)
    h1 = bi_lstm(seq, params['lstm'][0])                 # (T, B, 2H) bf16
    # TODO(synk): nn.Dropout / LSTM inter-layer dropout treated as identity (inference).
    h2 = bi_lstm(h1, params['lstm'][1])                  # (T, B, 2H) bf16
    T, Bsz, F2 = h2.shape
    lin_w, lin_b = params['linear']                      # (out, in), (out,)
    out = pallas_matmul_bias(h2.reshape(T * Bsz, F2), lin_w.T, lin_b,
                             relu=False, out_dtype=jnp.float32)
    out = out.reshape(T, Bsz, OUT_C, STEP_COLS)
    out = jnp.transpose(out, (1, 2, 0, 3)).reshape(Bsz, OUT_C, -1)
    return out


# ========================= deterministic params ============================
def compute_c_last(H):
    def ceil_div2(v):
        return (v + 1) // 2
    c_last = 0
    h = H
    h = ceil_div2(h)                                     # stem
    for c in BACKBONE_CH[1:]:
        h = ceil_div2(h)
        hh = h
        for _ in range(4):                               # 4x ConvCompressH
            hh = ceil_div2(hh)
        c_last += (c // OUT_SCALE) * hh
    return c_last


def init_params(key, c_last):
    keys = iter(jax.random.split(key, 128))

    def conv(out_c, in_c, ks=3):
        n = ks * ks * out_c
        w = jax.random.normal(next(keys), (out_c, in_c, ks, ks), jnp.float32) * np.sqrt(2.0 / n)
        b = 0.01 * jax.random.normal(next(keys), (out_c,), jnp.float32)
        return (w, b)

    params = {}
    ch = BACKBONE_CH
    params['backbone'] = [conv(ch[0], 3)] + [conv(ch[i + 1], ch[i]) for i in range(4)]

    ghc = []
    for c in ch[1:]:
        ghc.append([conv(c // 2, c), conv(c // 2, c // 2),
                    conv(c // 4, c // 2), conv(c // OUT_SCALE, c // 4)])
    params['ghc'] = ghc

    def lstm_layer(in_size):
        H = RNN_HIDDEN
        k = 1.0 / np.sqrt(H)

        def one_dir():
            w_ih = jax.random.uniform(next(keys), (4 * H, in_size), jnp.float32, -k, k)
            w_hh = jax.random.uniform(next(keys), (4 * H, H), jnp.float32, -k, k)
            b = (jax.random.uniform(next(keys), (4 * H,), jnp.float32, -k, k)
                 + jax.random.uniform(next(keys), (4 * H,), jnp.float32, -k, k))
            return w_ih, w_hh, b

        fwd = one_dir()
        bwd = one_dir()
        # Input projection weights for both directions, pre-transposed and
        # concatenated on N: (I, 8H) bf16; bias (b_ih+b_hh, both dirs): (8H,).
        w_ih_cat = jnp.concatenate([fwd[0].T, bwd[0].T], axis=1).astype(jnp.bfloat16)
        b_cat = jnp.concatenate([fwd[2], bwd[2]], axis=0)
        # Block-diagonal recurrent weights (2H, 8H): one matmul per timestep
        # drives both directions.
        w_hh_bd = jnp.zeros((2 * H, 8 * H), jnp.float32)
        w_hh_bd = w_hh_bd.at[:H, :4 * H].set(fwd[1].T)
        w_hh_bd = w_hh_bd.at[H:, 4 * H:].set(bwd[1].T)
        return (w_ih_cat, w_hh_bd.astype(jnp.bfloat16), b_cat)

    params['lstm'] = [lstm_layer(c_last), lstm_layer(2 * RNN_HIDDEN)]

    lin_in, lin_out = 2 * RNN_HIDDEN, OUT_C * STEP_COLS
    kk = 1.0 / np.sqrt(lin_in)
    lin_w = jax.random.uniform(next(keys), (lin_out, lin_in), jnp.float32, -kk, kk)
    lin_b = jnp.concatenate([jnp.full((STEP_COLS,), -0.5, jnp.float32),
                             jnp.full((STEP_COLS,), 0.5, jnp.float32)])
    params['linear'] = (lin_w, lin_b)
    return params


# ================================= main ====================================
if __name__ == "__main__":
    key = jax.random.PRNGKey(0)
    k_x, k_p = jax.random.split(key)
    B, H, W = 2, 64, 128
    x = jax.random.normal(k_x, (B, 3, H, W), jnp.float32)

    c_last = compute_c_last(H)
    params = init_params(k_p, c_last)

    fwd = jax.jit(horizonnet_forward)
    out = fwd(x, params)
    jax.block_until_ready(out)

    assert out.shape == (B, OUT_C, (W // STEP_COLS) * STEP_COLS), out.shape
    assert out.dtype == jnp.float32
    print("KERNEL_OK")
</pallas_src>

<mosaic_0001>
module attributes {stable_mosaic.version = 11 : i64} {
  func.func @_mm_bias_kernel(%arg0: i32, %arg1: memref<512x27xbf16, #tpu.memory_space<vmem>>, %arg2: memref<27x128xbf16, #tpu.memory_space<vmem>>, %arg3: memref<1x128xf32, #tpu.memory_space<vmem>>, %arg4: memref<512x128xbf16, #tpu.memory_space<vmem>>) attributes {dimension_semantics = [#tpu.dimension_semantics<parallel>], iteration_bounds = array<i64: 8>, scalar_prefetch = 0 : i64, scratch_operands = 0 : i64, tpu.core_type = #tpu.core_type<tc>, window_params = [{transform_indices = @transform_0, window_bounds = array<i64: 512, 27>}, {pipeline_mode = #tpu.pipeline_mode<synchronous>, transform_indices = @transform_1, window_bounds = array<i64: 27, 128>}, {pipeline_mode = #tpu.pipeline_mode<synchronous>, transform_indices = @transform_2, window_bounds = array<i64: 1, 128>}, {transform_indices = @transform_3, window_bounds = array<i64: 512, 128>}]} {
    %c0 = arith.constant 0 : index
    %c0_0 = arith.constant 0 : index
    %0 = vector.load %arg1[%c0, %c0_0] : memref<512x27xbf16, #tpu.memory_space<vmem>>, vector<512x27xbf16>
    %c0_1 = arith.constant 0 : index
    %c0_2 = arith.constant 0 : index
    %1 = vector.load %arg2[%c0_1, %c0_2] : memref<27x128xbf16, #tpu.memory_space<vmem>>, vector<27x128xbf16>
    %cst = arith.constant dense<0.000000e+00> : vector<512x128xf32>
    %2 = tpu.matmul %0, %1, %cst {dimension_numbers = #tpu.dot_dimension_numbers<[1], [0], [0], [1], [0, 0, 1, 1], [], []>} : vector<512x27xbf16>, vector<27x128xbf16>, vector<512x128xf32> -> vector<512x128xf32>
    %c0_3 = arith.constant 0 : index
    %c0_4 = arith.constant 0 : index
    %3 = vector.load %arg3[%c0_3, %c0_4] : memref<1x128xf32, #tpu.memory_space<vmem>>, vector<1x128xf32>
    %4 = vector.broadcast %3 : vector<1x128xf32> to vector<512x128xf32>
    %5 = arith.addf %2, %4 : vector<512x128xf32>
    %cst_5 = arith.constant 0.000000e+00 : f32
    %6 = vector.broadcast %cst_5 : f32 to vector<512x128xf32>
    %7 = arith.maximumf %5, %6 : vector<512x128xf32>
    %8 = arith.truncf %7 : vector<512x128xf32> to vector<512x128xbf16>
    %c0_6 = arith.constant 0 : index
    %c0_7 = arith.constant 0 : index
    %9 = vector.load %arg4[%c0_6, %c0_7] : memref<512x128xbf16, #tpu.memory_space<vmem>>, vector<512x128xbf16>
    tpu.vector_store %arg4[%c0_6, %c0_7], %8 {strides = array<i32>} : memref<512x128xbf16, #tpu.memory_space<vmem>>, vector<512x128xbf16>,
    return
  }
  func.func @transform_0(%arg0: i32) -> (i32, i32) {
    %c0_i32 = arith.constant 0 : i32
    %c0_i32_0 = arith.constant 0 : i32
    return %arg0, %c0_i32 : i32, i32
  }
  func.func @transform_1(%arg0: i32) -> (i32, i32) {
    %c0_i32 = arith.constant 0 : i32
    %c0_i32_0 = arith.constant 0 : i32
    %c0_i32_1 = arith.constant 0 : i32
    return %c0_i32, %c0_i32_0 : i32, i32
  }
  func.func @transform_2(%arg0: i32) -> (i32, i32) {
    %c0_i32 = arith.constant 0 : i32
    %c0_i32_0 = arith.constant 0 : i32
    %c0_i32_1 = arith.constant 0 : i32
    return %c0_i32, %c0_i32_0 : i32, i32
  }
  func.func @transform_3(%arg0: i32) -> (i32, i32) {
    %c0_i32 = arith.constant 0 : i32
    %c0_i32_0 = arith.constant 0 : i32
    return %arg0, %c0_i32 : i32, i32
  }
}

module attributes {stable_mosaic.version = 11 : i64} {
  func.func @_mm_bias_kernel(%arg0: i32, %arg1: memref<512x72xbf16, #tpu.memory_space<vmem>>, %arg2: memref<72x128xbf16, #tpu.memory_space<vmem>>, %arg3: memref<1x128xf32, #tpu.memory_space<vmem>>, %arg4: memref<512x128xbf16, #tpu.memory_space<vmem>>) attributes {dimension_semantics = [#tpu.dimension_semantics<parallel>], iteration_bounds = array<i64: 2>, scalar_prefetch = 0 : i64, scratch_operands = 0 : i64, tpu.core_type = #tpu.core_type<tc>, window_params = [{transform_indices = @transform_0, window_bounds = array<i64: 512, 72>}, {pipeline_mode = #tpu.pipeline_mode<synchronous>, transform_indices = @transform_1, window_bounds = array<i64: 72, 128>}, {pipeline_mode = #tpu.pipeline_mode<synchronous>, transform_indices = @transform_2, window_bounds = array<i64: 1, 128>}, {transform_indices = @transform_3, window_bounds = array<i64: 512, 128>}]} {
    %c0 = arith.constant 0 : index
    %c0_0 = arith.constant 0 : index
    %0 = vector.load %arg1[%c0, %c0_0] : memref<512x72xbf16, #tpu.memory_space<vmem>>, vector<512x72xbf16>
    %c0_1 = arith.constant 0 : index
    %c0_2 = arith.constant 0 : index
    %1 = vector.load %arg2[%c0_1, %c0_2] : memref<72x128xbf16, #tpu.memory_space<vmem>>, vector<72x128xbf16>
    %cst = arith.constant dense<0.000000e+00> : vector<512x128xf32>
    %2 = tpu.matmul %0, %1, %cst {dimension_numbers = #tpu.dot_dimension_numbers<[1], [0], [0], [1], [0, 0, 1, 1], [], []>} : vector<512x72xbf16>, vector<72x128xbf16>, vector<512x128xf32> -> vector<512x128xf32>
    %c0_3 = arith.constant 0 : index
    %c0_4 = arith.constant 0 : index
    %3 = vector.load %arg3[%c0_3, %c0_4] : memref<1x128xf32, #tpu.memory_space<vmem>>, vector<1x128xf32>
    %4 = vector.broadcast %3 : vector<1x128xf32> to vector<512x128xf32>
    %5 = arith.addf %2, %4 : vector<512x128xf32>
    %cst_5 = arith.constant 0.000000e+00 : f32
    %6 = vector.broadcast %cst_5 : f32 to vector<512x128xf32>
    %7 = arith.maximumf %5, %6 : vector<512x128xf32>
    %8 = arith.truncf %7 : vector<512x128xf32> to vector<512x128xbf16>
    %c0_6 = arith.constant 0 : index
    %c0_7 = arith.constant 0 : index
    %9 = vector.load %arg4[%c0_6, %c0_7] : memref<512x128xbf16, #tpu.memory_space<vmem>>, vector<512x128xbf16>
    tpu.vector_store %arg4[%c0_6, %c0_7], %8 {strides = array<i32>} : memref<512x128xbf16, #tpu.memory_space<vmem>>, vector<512x128xbf16>,
    return
  }
  func.func @transform_0(%arg0: i32) -> (i32, i32) {
    %c0_i32 = arith.constant 0 : i32
    %c0_i32_0 = arith.constant 0 : i32
    return %arg0, %c0_i32 : i32, i32
  }
  func.func @transform_1(%arg0: i32) -> (i32, i32) {
    %c0_i32 = arith.constant 0 : i32
    %c0_i32_0 = arith.constant 0 : i32
    %c0_i32_1 = arith.constant 0 : i32
    return %c0_i32, %c0_i32_0 : i32, i32
  }
  func.func @transform_2(%arg0: i32) -> (i32, i32) {
    %c0_i32 = arith.constant 0 : i32
    %c0_i32_0 = arith.constant 0 : i32
    %c0_i32_1 = arith.constant 0 : i32
    return %c0_i32, %c0_i32_0 : i32, i32
  }
  func.func @transform_3(%arg0: i32) -> (i32, i32) {
    %c0_i32 = arith.constant 0 : i32
    %c0_i32_0 = arith.constant 0 : i32
    return %arg0, %c0_i32 : i32, i32
  }
}

module attributes {stable_mosaic.version = 11 : i64} {
  func.func @_mm_bias_kernel(%arg0: i32, %arg1: memref<512x144xbf16, #tpu.memory_space<vmem>>, %arg2: memref<144x128xbf16, #tpu.memory_space<vmem>>, %arg3: memref<1x128xf32, #tpu.memory_space<vmem>>, %arg4: memref<512x128xbf16, #tpu.memory_space<vmem>>) attributes {dimension_semantics = [#tpu.dimension_semantics<parallel>], iteration_bounds = array<i64: 1>, scalar_prefetch = 0 : i64, scratch_operands = 0 : i64, tpu.core_type = #tpu.core_type<tc>, window_params = [{transform_indices = @transform_0, window_bounds = array<i64: 512, 144>}, {pipeline_mode = #tpu.pipeline_mode<synchronous>, transform_indices = @transform_1, window_bounds = array<i64: 144, 128>}, {pipeline_mode = #tpu.pipeline_mode<synchronous>, transform_indices = @transform_2, window_bounds = array<i64: 1, 128>}, {transform_indices = @transform_3, window_bounds = array<i64: 512, 128>}]} {
    %c0 = arith.constant 0 : index
    %c0_0 = arith.constant 0 : index
    %0 = vector.load %arg1[%c0, %c0_0] : memref<512x144xbf16, #tpu.memory_space<vmem>>, vector<512x144xbf16>
    %c0_1 = arith.constant 0 : index
    %c0_2 = arith.constant 0 : index
    %1 = vector.load %arg2[%c0_1, %c0_2] : memref<144x128xbf16, #tpu.memory_space<vmem>>, vector<144x128xbf16>
    %cst = arith.constant dense<0.000000e+00> : vector<512x128xf32>
    %2 = tpu.matmul %0, %1, %cst {dimension_numbers = #tpu.dot_dimension_numbers<[1], [0], [0], [1], [0, 0, 1, 1], [], []>} : vector<512x144xbf16>, vector<144x128xbf16>, vector<512x128xf32> -> vector<512x128xf32>
    %c0_3 = arith.constant 0 : index
    %c0_4 = arith.constant 0 : index
    %3 = vector.load %arg3[%c0_3, %c0_4] : memref<1x128xf32, #tpu.memory_space<vmem>>, vector<1x128xf32>
    %4 = vector.broadcast %3 : vector<1x128xf32> to vector<512x128xf32>
    %5 = arith.addf %2, %4 : vector<512x128xf32>
    %cst_5 = arith.constant 0.000000e+00 : f32
    %6 = vector.broadcast %cst_5 : f32 to vector<512x128xf32>
    %7 = arith.maximumf %5, %6 : vector<512x128xf32>
    %8 = arith.truncf %7 : vector<512x128xf32> to vector<512x128xbf16>
    %c0_6 = arith.constant 0 : index
    %c0_7 = arith.constant 0 : index
    %9 = vector.load %arg4[%c0_6, %c0_7] : memref<512x128xbf16, #tpu.memory_space<vmem>>, vector<512x128xbf16>
    tpu.vector_store %arg4[%c0_6, %c0_7], %8 {strides = array<i32>} : memref<512x128xbf16, #tpu.memory_space<vmem>>, vector<512x128xbf16>,
    return
  }
  func.func @transform_0(%arg0: i32) -> (i32, i32) {
    %c0_i32 = arith.constant 0 : i32
    %c0_i32_0 = arith.constant 0 : i32
    return %arg0, %c0_i32 : i32, i32
  }
  func.func @transform_1(%arg0: i32) -> (i32, i32) {
    %c0_i32 = arith.constant 0 : i32
    %c0_i32_0 = arith.constant 0 : i32
    %c0_i32_1 = arith.constant 0 : i32
    return %c0_i32, %c0_i32_0 : i32, i32
  }
  func.func @transform_2(%arg0: i32) -> (i32, i32) {
    %c0_i32 = arith.constant 0 : i32
    %c0_i32_0 = arith.constant 0 : i32
    %c0_i32_1 = arith.constant 0 : i32
    return %c0_i32, %c0_i32_0 : i32, i32
  }
  func.func @transform_3(%arg0: i32) -> (i32, i32) {
    %c0_i32 = arith.constant 0 : i32
    %c0_i32_0 = arith.constant 0 : i32
    return %arg0, %c0_i32 : i32, i32
  }
}

module attributes {stable_mosaic.version = 11 : i64} {
  func.func @_mm_bias_kernel(%arg0: i32, %arg1: memref<256x72xbf16, #tpu.memory_space<vmem>>, %arg2: memref<72x128xbf16, #tpu.memory_space<vmem>>, %arg3: memref<1x128xf32, #tpu.memory_space<vmem>>, %arg4: memref<256x128xbf16, #tpu.memory_space<vmem>>) attributes {dimension_semantics = [#tpu.dimension_semantics<parallel>], iteration_bounds = array<i64: 1>, scalar_prefetch = 0 : i64, scratch_operands = 0 : i64, tpu.core_type = #tpu.core_type<tc>, window_params = [{transform_indices = @transform_0, window_bounds = array<i64: 256, 72>}, {pipeline_mode = #tpu.pipeline_mode<synchronous>, transform_indices = @transform_1, window_bounds = array<i64: 72, 128>}, {pipeline_mode = #tpu.pipeline_mode<synchronous>, transform_indices = @transform_2, window_bounds = array<i64: 1, 128>}, {transform_indices = @transform_3, window_bounds = array<i64: 256, 128>}]} {
    %c0 = arith.constant 0 : index
    %c0_0 = arith.constant 0 : index
    %0 = vector.load %arg1[%c0, %c0_0] : memref<256x72xbf16, #tpu.memory_space<vmem>>, vector<256x72xbf16>
    %c0_1 = arith.constant 0 : index
    %c0_2 = arith.constant 0 : index
    %1 = vector.load %arg2[%c0_1, %c0_2] : memref<72x128xbf16, #tpu.memory_space<vmem>>, vector<72x128xbf16>
    %cst = arith.constant dense<0.000000e+00> : vector<256x128xf32>
    %2 = tpu.matmul %0, %1, %cst {dimension_numbers = #tpu.dot_dimension_numbers<[1], [0], [0], [1], [0, 0, 1, 1], [], []>} : vector<256x72xbf16>, vector<72x128xbf16>, vector<256x128xf32> -> vector<256x128xf32>
    %c0_3 = arith.constant 0 : index
    %c0_4 = arith.constant 0 : index
    %3 = vector.load %arg3[%c0_3, %c0_4] : memref<1x128xf32, #tpu.memory_space<vmem>>, vector<1x128xf32>
    %4 = vector.broadcast %3 : vector<1x128xf32> to vector<256x128xf32>
    %5 = arith.addf %2, %4 : vector<256x128xf32>
    %cst_5 = arith.constant 0.000000e+00 : f32
    %6 = vector.broadcast %cst_5 : f32 to vector<256x128xf32>
    %7 = arith.maximumf %5, %6 : vector<256x128xf32>
    %8 = arith.truncf %7 : vector<256x128xf32> to vector<256x128xbf16>
    %c0_6 = arith.constant 0 : index
    %c0_7 = arith.constant 0 : index
    %9 = vector.load %arg4[%c0_6, %c0_7] : memref<256x128xbf16, #tpu.memory_space<vmem>>, vector<256x128xbf16>
    tpu.vector_store %arg4[%c0_6, %c0_7], %8 {strides = array<i32>} : memref<256x128xbf16, #tpu.memory_space<vmem>>, vector<256x128xbf16>,
    return
  }
  func.func @transform_0(%arg0: i32) -> (i32, i32) {
    %c0_i32 = arith.constant 0 : i32
    %c0_i32_0 = arith.constant 0 : i32
    return %arg0, %c0_i32 : i32, i32
  }
  func.func @transform_1(%arg0: i32) -> (i32, i32) {
    %c0_i32 = arith.constant 0 : i32
    %c0_i32_0 = arith.constant 0 : i32
    %c0_i32_1 = arith.constant 0 : i32
    return %c0_i32, %c0_i32_0 : i32, i32
  }
  func.func @transform_2(%arg0: i32) -> (i32, i32) {
    %c0_i32 = arith.constant 0 : i32
    %c0_i32_0 = arith.constant 0 : i32
    %c0_i32_1 = arith.constant 0 : i32
    return %c0_i32, %c0_i32_0 : i32, i32
  }
  func.func @transform_3(%arg0: i32) -> (i32, i32) {
    %c0_i32 = arith.constant 0 : i32
    %c0_i32_0 = arith.constant 0 : i32
    return %arg0, %c0_i32 : i32, i32
  }
}

module attributes {stable_mosaic.version = 11 : i64} {
  func.func @_mm_bias_kernel(%arg0: i32, %arg1: memref<128x72xbf16, #tpu.memory_space<vmem>>, %arg2: memref<72x128xbf16, #tpu.memory_space<vmem>>, %arg3: memref<1x128xf32, #tpu.memory_space<vmem>>, %arg4: memref<128x128xbf16, #tpu.memory_space<vmem>>) attributes {dimension_semantics = [#tpu.dimension_semantics<parallel>], iteration_bounds = array<i64: 1>, scalar_prefetch = 0 : i64, scratch_operands = 0 : i64, tpu.core_type = #tpu.core_type<tc>, window_params = [{transform_indices = @transform_0, window_bounds = array<i64: 128, 72>}, {pipeline_mode = #tpu.pipeline_mode<synchronous>, transform_indices = @transform_1, window_bounds = array<i64: 72, 128>}, {pipeline_mode = #tpu.pipeline_mode<synchronous>, transform_indices = @transform_2, window_bounds = array<i64: 1, 128>}, {transform_indices = @transform_3, window_bounds = array<i64: 128, 128>}]} {
    %c0 = arith.constant 0 : index
    %c0_0 = arith.constant 0 : index
    %0 = vector.load %arg1[%c0, %c0_0] : memref<128x72xbf16, #tpu.memory_space<vmem>>, vector<128x72xbf16>
    %c0_1 = arith.constant 0 : index
    %c0_2 = arith.constant 0 : index
    %1 = vector.load %arg2[%c0_1, %c0_2] : memref<72x128xbf16, #tpu.memory_space<vmem>>, vector<72x128xbf16>
    %cst = arith.constant dense<0.000000e+00> : vector<128x128xf32>
    %2 = tpu.matmul %0, %1, %cst {dimension_numbers = #tpu.dot_dimension_numbers<[1], [0], [0], [1], [0, 0, 1, 1], [], []>} : vector<128x72xbf16>, vector<72x128xbf16>, vector<128x128xf32> -> vector<128x128xf32>
    %c0_3 = arith.constant 0 : index
    %c0_4 = arith.constant 0 : index
    %3 = vector.load %arg3[%c0_3, %c0_4] : memref<1x128xf32, #tpu.memory_space<vmem>>, vector<1x128xf32>
    %4 = vector.broadcast %3 : vector<1x128xf32> to vector<128x128xf32>
    %5 = arith.addf %2, %4 : vector<128x128xf32>
    %cst_5 = arith.constant 0.000000e+00 : f32
    %6 = vector.broadcast %cst_5 : f32 to vector<128x128xf32>
    %7 = arith.maximumf %5, %6 : vector<128x128xf32>
    %8 = arith.truncf %7 : vector<128x128xf32> to vector<128x128xbf16>
    %c0_6 = arith.constant 0 : index
    %c0_7 = arith.constant 0 : index
    %9 = vector.load %arg4[%c0_6, %c0_7] : memref<128x128xbf16, #tpu.memory_space<vmem>>, vector<128x128xbf16>
    tpu.vector_store %arg4[%c0_6, %c0_7], %8 {strides = array<i32>} : memref<128x128xbf16, #tpu.memory_space<vmem>>, vector<128x128xbf16>,
    return
  }
  func.func @transform_0(%arg0: i32) -> (i32, i32) {
    %c0_i32 = arith.constant 0 : i32
    %c0_i32_0 = arith.constant 0 : i32
    return %arg0, %c0_i32 : i32, i32
  }
  func.func @transform_1(%arg0: i32) -> (i32, i32) {
    %c0_i32 = arith.constant 0 : i32
    %c0_i32_0 = arith.constant 0 : i32
    %c0_i32_1 = arith.constant 0 : i32
    return %c0_i32, %c0_i32_0 : i32, i32
  }
  func.func @transform_2(%arg0: i32) -> (i32, i32) {
    %c0_i32 = arith.constant 0 : i32
    %c0_i32_0 = arith.constant 0 : i32
    %c0_i32_1 = arith.constant 0 : i32
    return %c0_i32, %c0_i32_0 : i32, i32
  }
  func.func @transform_3(%arg0: i32) -> (i32, i32) {
    %c0_i32 = arith.constant 0 : i32
    %c0_i32_0 = arith.constant 0 : i32
    return %arg0, %c0_i32 : i32, i32
  }
}

module attributes {stable_mosaic.version = 11 : i64} {
  func.func @_mm_bias_kernel(%arg0: i32, %arg1: memref<64x36xbf16, #tpu.memory_space<vmem>>, %arg2: memref<36x128xbf16, #tpu.memory_space<vmem>>, %arg3: memref<1x128xf32, #tpu.memory_space<vmem>>, %arg4: memref<64x128xbf16, #tpu.memory_space<vmem>>) attributes {dimension_semantics = [#tpu.dimension_semantics<parallel>], iteration_bounds = array<i64: 1>, scalar_prefetch = 0 : i64, scratch_operands = 0 : i64, tpu.core_type = #tpu.core_type<tc>, window_params = [{transform_indices = @transform_0, window_bounds = array<i64: 64, 36>}, {pipeline_mode = #tpu.pipeline_mode<synchronous>, transform_indices = @transform_1, window_bounds = array<i64: 36, 128>}, {pipeline_mode = #tpu.pipeline_mode<synchronous>, transform_indices = @transform_2, window_bounds = array<i64: 1, 128>}, {transform_indices = @transform_3, window_bounds = array<i64: 64, 128>}]} {
    %c0 = arith.constant 0 : index
    %c0_0 = arith.constant 0 : index
    %0 = vector.load %arg1[%c0, %c0_0] : memref<64x36xbf16, #tpu.memory_space<vmem>>, vector<64x36xbf16>
    %c0_1 = arith.constant 0 : index
    %c0_2 = arith.constant 0 : index
    %1 = vector.load %arg2[%c0_1, %c0_2] : memref<36x128xbf16, #tpu.memory_space<vmem>>, vector<36x128xbf16>
    %cst = arith.constant dense<0.000000e+00> : vector<64x128xf32>
    %2 = tpu.matmul %0, %1, %cst {dimension_numbers = #tpu.dot_dimension_numbers<[1], [0], [0], [1], [0, 0, 1, 1], [], []>} : vector<64x36xbf16>, vector<36x128xbf16>, vector<64x128xf32> -> vector<64x128xf32>
    %c0_3 = arith.constant 0 : index
    %c0_4 = arith.constant 0 : index
    %3 = vector.load %arg3[%c0_3, %c0_4] : memref<1x128xf32, #tpu.memory_space<vmem>>, vector<1x128xf32>
    %4 = vector.broadcast %3 : vector<1x128xf32> to vector<64x128xf32>
    %5 = arith.addf %2, %4 : vector<64x128xf32>
    %cst_5 = arith.constant 0.000000e+00 : f32
    %6 = vector.broadcast %cst_5 : f32 to vector<64x128xf32>
    %7 = arith.maximumf %5, %6 : vector<64x128xf32>
    %8 = arith.truncf %7 : vector<64x128xf32> to vector<64x128xbf16>
    %c0_6 = arith.constant 0 : index
    %c0_7 = arith.constant 0 : index
    %9 = vector.load %arg4[%c0_6, %c0_7] : memref<64x128xbf16, #tpu.memory_space<vmem>>, vector<64x128xbf16>
    tpu.vector_store %arg4[%c0_6, %c0_7], %8 {strides = array<i32>} : memref<64x128xbf16, #tpu.memory_space<vmem>>, vector<64x128xbf16>,
    return
  }
  func.func @transform_0(%arg0: i32) -> (i32, i32) {
    %c0_i32 = arith.constant 0 : i32
    %c0_i32_0 = arith.constant 0 : i32
    return %arg0, %c0_i32 : i32, i32
  }
  func.func @transform_1(%arg0: i32) -> (i32, i32) {
    %c0_i32 = arith.constant 0 : i32
    %c0_i32_0 = arith.constant 0 : i32
    %c0_i32_1 = arith.constant 0 : i32
    return %c0_i32, %c0_i32_0 : i32, i32
  }
  func.func @transform_2(%arg0: i32) -> (i32, i32) {
    %c0_i32 = arith.constant 0 : i32
    %c0_i32_0 = arith.constant 0 : i32
    %c0_i32_1 = arith.constant 0 : i32
    return %c0_i32, %c0_i32_0 : i32, i32
  }
  func.func @transform_3(%arg0: i32) -> (i32, i32) {
    %c0_i32 = arith.constant 0 : i32
    %c0_i32_0 = arith.constant 0 : i32
    return %arg0, %c0_i32 : i32, i32
  }
}

module attributes {stable_mosaic.version = 11 : i64} {
  func.func @_mm_bias_kernel(%arg0: i32, %arg1: memref<256x144xbf16, #tpu.memory_space<vmem>>, %arg2: memref<144x128xbf16, #tpu.memory_space<vmem>>, %arg3: memref<1x128xf32, #tpu.memory_space<vmem>>, %arg4: memref<256x128xbf16, #tpu.memory_space<vmem>>) attributes {dimension_semantics = [#tpu.dimension_semantics<parallel>], iteration_bounds = array<i64: 1>, scalar_prefetch = 0 : i64, scratch_operands = 0 : i64, tpu.core_type = #tpu.core_type<tc>, window_params = [{transform_indices = @transform_0, window_bounds = array<i64: 256, 144>}, {pipeline_mode = #tpu.pipeline_mode<synchronous>, transform_indices = @transform_1, window_bounds = array<i64: 144, 128>}, {pipeline_mode = #tpu.pipeline_mode<synchronous>, transform_indices = @transform_2, window_bounds = array<i64: 1, 128>}, {transform_indices = @transform_3, window_bounds = array<i64: 256, 128>}]} {
    %c0 = arith.constant 0 : index
    %c0_0 = arith.constant 0 : index
    %0 = vector.load %arg1[%c0, %c0_0] : memref<256x144xbf16, #tpu.memory_space<vmem>>, vector<256x144xbf16>
    %c0_1 = arith.constant 0 : index
    %c0_2 = arith.constant 0 : index
    %1 = vector.load %arg2[%c0_1, %c0_2] : memref<144x128xbf16, #tpu.memory_space<vmem>>, vector<144x128xbf16>
    %cst = arith.constant dense<0.000000e+00> : vector<256x128xf32>
    %2 = tpu.matmul %0, %1, %cst {dimension_numbers = #tpu.dot_dimension_numbers<[1], [0], [0], [1], [0, 0, 1, 1], [], []>} : vector<256x144xbf16>, vector<144x128xbf16>, vector<256x128xf32> -> vector<256x128xf32>
    %c0_3 = arith.constant 0 : index
    %c0_4 = arith.constant 0 : index
    %3 = vector.load %arg3[%c0_3, %c0_4] : memref<1x128xf32, #tpu.memory_space<vmem>>, vector<1x128xf32>
    %4 = vector.broadcast %3 : vector<1x128xf32> to vector<256x128xf32>
    %5 = arith.addf %2, %4 : vector<256x128xf32>
    %cst_5 = arith.constant 0.000000e+00 : f32
    %6 = vector.broadcast %cst_5 : f32 to vector<256x128xf32>
    %7 = arith.maximumf %5, %6 : vector<256x128xf32>
    %8 = arith.truncf %7 : vector<256x128xf32> to vector<256x128xbf16>
    %c0_6 = arith.constant 0 : index
    %c0_7 = arith.constant 0 : index
    %9 = vector.load %arg4[%c0_6, %c0_7] : memref<256x128xbf16, #tpu.memory_space<vmem>>, vector<256x128xbf16>
    tpu.vector_store %arg4[%c0_6, %c0_7], %8 {strides = array<i32>} : memref<256x128xbf16, #tpu.memory_space<vmem>>, vector<256x128xbf16>,
    return
  }
  func.func @transform_0(%arg0: i32) -> (i32, i32) {
    %c0_i32 = arith.constant 0 : i32
    %c0_i32_0 = arith.constant 0 : i32
    return %arg0, %c0_i32 : i32, i32
  }
  func.func @transform_1(%arg0: i32) -> (i32, i32) {
    %c0_i32 = arith.constant 0 : i32
    %c0_i32_0 = arith.constant 0 : i32
    %c0_i32_1 = arith.constant 0 : i32
    return %c0_i32, %c0_i32_0 : i32, i32
  }
  func.func @transform_2(%arg0: i32) -> (i32, i32) {
    %c0_i32 = arith.constant 0 : i32
    %c0_i32_0 = arith.constant 0 : i32
    %c0_i32_1 = arith.constant 0 : i32
    return %c0_i32, %c0_i32_0 : i32, i32
  }
  func.func @transform_3(%arg0: i32) -> (i32, i32) {
    %c0_i32 = arith.constant 0 : i32
    %c0_i32_0 = arith.constant 0 : i32
    return %arg0, %c0_i32 : i32, i32
  }
}

module attributes {stable_mosaic.version = 11 : i64} {
  func.func @_mm_bias_kernel(%arg0: i32, %arg1: memref<128x288xbf16, #tpu.memory_space<vmem>>, %arg2: memref<288x128xbf16, #tpu.memory_space<vmem>>, %arg3: memref<1x128xf32, #tpu.memory_space<vmem>>, %arg4: memref<128x128xbf16, #tpu.memory_space<vmem>>) attributes {dimension_semantics = [#tpu.dimension_semantics<parallel>], iteration_bounds = array<i64: 1>, scalar_prefetch = 0 : i64, scratch_operands = 0 : i64, tpu.core_type = #tpu.core_type<tc>, window_params = [{transform_indices = @transform_0, window_bounds = array<i64: 128, 288>}, {pipeline_mode = #tpu.pipeline_mode<synchronous>, transform_indices = @transform_1, window_bounds = array<i64: 288, 128>}, {pipeline_mode = #tpu.pipeline_mode<synchronous>, transform_indices = @transform_2, window_bounds = array<i64: 1, 128>}, {transform_indices = @transform_3, window_bounds = array<i64: 128, 128>}]} {
    %c0 = arith.constant 0 : index
    %c0_0 = arith.constant 0 : index
    %0 = vector.load %arg1[%c0, %c0_0] : memref<128x288xbf16, #tpu.memory_space<vmem>>, vector<128x288xbf16>
    %c0_1 = arith.constant 0 : index
    %c0_2 = arith.constant 0 : index
    %1 = vector.load %arg2[%c0_1, %c0_2] : memref<288x128xbf16, #tpu.memory_space<vmem>>, vector<288x128xbf16>
    %cst = arith.constant dense<0.000000e+00> : vector<128x128xf32>
    %2 = tpu.matmul %0, %1, %cst {dimension_numbers = #tpu.dot_dimension_numbers<[1], [0], [0], [1], [0, 0, 1, 1], [], []>} : vector<128x288xbf16>, vector<288x128xbf16>, vector<128x128xf32> -> vector<128x128xf32>
    %c0_3 = arith.constant 0 : index
    %c0_4 = arith.constant 0 : index
    %3 = vector.load %arg3[%c0_3, %c0_4] : memref<1x128xf32, #tpu.memory_space<vmem>>, vector<1x128xf32>
    %4 = vector.broadcast %3 : vector<1x128xf32> to vector<128x128xf32>
    %5 = arith.addf %2, %4 : vector<128x128xf32>
    %cst_5 = arith.constant 0.000000e+00 : f32
    %6 = vector.broadcast %cst_5 : f32 to vector<128x128xf32>
    %7 = arith.maximumf %5, %6 : vector<128x128xf32>
    %8 = arith.truncf %7 : vector<128x128xf32> to vector<128x128xbf16>
    %c0_6 = arith.constant 0 : index
    %c0_7 = arith.constant 0 : index
    %9 = vector.load %arg4[%c0_6, %c0_7] : memref<128x128xbf16, #tpu.memory_space<vmem>>, vector<128x128xbf16>
    tpu.vector_store %arg4[%c0_6, %c0_7], %8 {strides = array<i32>} : memref<128x128xbf16, #tpu.memory_space<vmem>>, vector<128x128xbf16>,
    return
  }
  func.func @transform_0(%arg0: i32) -> (i32, i32) {
    %c0_i32 = arith.constant 0 : i32
    %c0_i32_0 = arith.constant 0 : i32
    return %arg0, %c0_i32 : i32, i32
  }
  func.func @transform_1(%arg0: i32) -> (i32, i32) {
    %c0_i32 = arith.constant 0 : i32
    %c0_i32_0 = arith.constant 0 : i32
    %c0_i32_1 = arith.constant 0 : i32
    return %c0_i32, %c0_i32_0 : i32, i32
  }
  func.func @transform_2(%arg0: i32) -> (i32, i32) {
    %c0_i32 = arith.constant 0 : i32
    %c0_i32_0 = arith.constant 0 : i32
    %c0_i32_1 = arith.constant 0 : i32
    return %c0_i32, %c0_i32_0 : i32, i32
  }
  func.func @transform_3(%arg0: i32) -> (i32, i32) {
    %c0_i32 = arith.constant 0 : i32
    %c0_i32_0 = arith.constant 0 : i32
    return %arg0, %c0_i32 : i32, i32
  }
}

module attributes {stable_mosaic.version = 11 : i64} {
  func.func @_mm_bias_kernel(%arg0: i32, %arg1: memref<64x144xbf16, #tpu.memory_space<vmem>>, %arg2: memref<144x128xbf16, #tpu.memory_space<vmem>>, %arg3: memref<1x128xf32, #tpu.memory_space<vmem>>, %arg4: memref<64x128xbf16, #tpu.memory_space<vmem>>) attributes {dimension_semantics = [#tpu.dimension_semantics<parallel>], iteration_bounds = array<i64: 1>, scalar_prefetch = 0 : i64, scratch_operands = 0 : i64, tpu.core_type = #tpu.core_type<tc>, window_params = [{transform_indices = @transform_0, window_bounds = array<i64: 64, 144>}, {pipeline_mode = #tpu.pipeline_mode<synchronous>, transform_indices = @transform_1, window_bounds = array<i64: 144, 128>}, {pipeline_mode = #tpu.pipeline_mode<synchronous>, transform_indices = @transform_2, window_bounds = array<i64: 1, 128>}, {transform_indices = @transform_3, window_bounds = array<i64: 64, 128>}]} {
    %c0 = arith.constant 0 : index
    %c0_0 = arith.constant 0 : index
    %0 = vector.load %arg1[%c0, %c0_0] : memref<64x144xbf16, #tpu.memory_space<vmem>>, vector<64x144xbf16>
    %c0_1 = arith.constant 0 : index
    %c0_2 = arith.constant 0 : index
    %1 = vector.load %arg2[%c0_1, %c0_2] : memref<144x128xbf16, #tpu.memory_space<vmem>>, vector<144x128xbf16>
    %cst = arith.constant dense<0.000000e+00> : vector<64x128xf32>
    %2 = tpu.matmul %0, %1, %cst {dimension_numbers = #tpu.dot_dimension_numbers<[1], [0], [0], [1], [0, 0, 1, 1], [], []>} : vector<64x144xbf16>, vector<144x128xbf16>, vector<64x128xf32> -> vector<64x128xf32>
    %c0_3 = arith.constant 0 : index
    %c0_4 = arith.constant 0 : index
    %3 = vector.load %arg3[%c0_3, %c0_4] : memref<1x128xf32, #tpu.memory_space<vmem>>, vector<1x128xf32>
    %4 = vector.broadcast %3 : vector<1x128xf32> to vector<64x128xf32>
    %5 = arith.addf %2, %4 : vector<64x128xf32>
    %cst_5 = arith.constant 0.000000e+00 : f32
    %6 = vector.broadcast %cst_5 : f32 to vector<64x128xf32>
    %7 = arith.maximumf %5, %6 : vector<64x128xf32>
    %8 = arith.truncf %7 : vector<64x128xf32> to vector<64x128xbf16>
    %c0_6 = arith.constant 0 : index
    %c0_7 = arith.constant 0 : index
    %9 = vector.load %arg4[%c0_6, %c0_7] : memref<64x128xbf16, #tpu.memory_space<vmem>>, vector<64x128xbf16>
    tpu.vector_store %arg4[%c0_6, %c0_7], %8 {strides = array<i32>} : memref<64x128xbf16, #tpu.memory_space<vmem>>, vector<64x128xbf16>,
    return
  }
  func.func @transform_0(%arg0: i32) -> (i32, i32) {
    %c0_i32 = arith.constant 0 : i32
    %c0_i32_0 = arith.constant 0 : i32
    return %arg0, %c0_i32 : i32, i32
  }
  func.func @transform_1(%arg0: i32) -> (i32, i32) {
    %c0_i32 = arith.constant 0 : i32
    %c0_i32_0 = arith.constant 0 : i32
    %c0_i32_1 = arith.constant 0 : i32
    return %c0_i32, %c0_i32_0 : i32, i32
  }
  func.func @transform_2(%arg0: i32) -> (i32, i32) {
    %c0_i32 = arith.constant 0 : i32
    %c0_i32_0 = arith.constant 0 : i32
    %c0_i32_1 = arith.constant 0 : i32
    return %c0_i32, %c0_i32_0 : i32, i32
  }
  func.func @transform_3(%arg0: i32) -> (i32, i32) {
    %c0_i32 = arith.constant 0 : i32
    %c0_i32_0 = arith.constant 0 : i32
    return %arg0, %c0_i32 : i32, i32
  }
}

module attributes {stable_mosaic.version = 11 : i64} {
  func.func @_mm_bias_kernel(%arg0: i32, %arg1: memref<32x144xbf16, #tpu.memory_space<vmem>>, %arg2: memref<144x128xbf16, #tpu.memory_space<vmem>>, %arg3: memref<1x128xf32, #tpu.memory_space<vmem>>, %arg4: memref<32x128xbf16, #tpu.memory_space<vmem>>) attributes {dimension_semantics = [#tpu.dimension_semantics<parallel>], iteration_bounds = array<i64: 1>, scalar_prefetch = 0 : i64, scratch_operands = 0 : i64, tpu.core_type = #tpu.core_type<tc>, window_params = [{transform_indices = @transform_0, window_bounds = array<i64: 32, 144>}, {pipeline_mode = #tpu.pipeline_mode<synchronous>, transform_indices = @transform_1, window_bounds = array<i64: 144, 128>}, {pipeline_mode = #tpu.pipeline_mode<synchronous>, transform_indices = @transform_2, window_bounds = array<i64: 1, 128>}, {transform_indices = @transform_3, window_bounds = array<i64: 32, 128>}]} {
    %c0 = arith.constant 0 : index
    %c0_0 = arith.constant 0 : index
    %0 = vector.load %arg1[%c0, %c0_0] : memref<32x144xbf16, #tpu.memory_space<vmem>>, vector<32x144xbf16>
    %c0_1 = arith.constant 0 : index
    %c0_2 = arith.constant 0 : index
    %1 = vector.load %arg2[%c0_1, %c0_2] : memref<144x128xbf16, #tpu.memory_space<vmem>>, vector<144x128xbf16>
    %cst = arith.constant dense<0.000000e+00> : vector<32x128xf32>
    %2 = tpu.matmul %0, %1, %cst {dimension_numbers = #tpu.dot_dimension_numbers<[1], [0], [0], [1], [0, 0, 1, 1], [], []>} : vector<32x144xbf16>, vector<144x128xbf16>, vector<32x128xf32> -> vector<32x128xf32>
    %c0_3 = arith.constant 0 : index
    %c0_4 = arith.constant 0 : index
    %3 = vector.load %arg3[%c0_3, %c0_4] : memref<1x128xf32, #tpu.memory_space<vmem>>, vector<1x128xf32>
    %4 = vector.broadcast %3 : vector<1x128xf32> to vector<32x128xf32>
    %5 = arith.addf %2, %4 : vector<32x128xf32>
    %cst_5 = arith.constant 0.000000e+00 : f32
    %6 = vector.broadcast %cst_5 : f32 to vector<32x128xf32>
    %7 = arith.maximumf %5, %6 : vector<32x128xf32>
    %8 = arith.truncf %7 : vector<32x128xf32> to vector<32x128xbf16>
    %c0_6 = arith.constant 0 : index
    %c0_7 = arith.constant 0 : index
    %9 = vector.load %arg4[%c0_6, %c0_7] : memref<32x128xbf16, #tpu.memory_space<vmem>>, vector<32x128xbf16>
    tpu.vector_store %arg4[%c0_6, %c0_7], %8 {strides = array<i32>} : memref<32x128xbf16, #tpu.memory_space<vmem>>, vector<32x128xbf16>,
    return
  }
  func.func @transform_0(%arg0: i32) -> (i32, i32) {
    %c0_i32 = arith.constant 0 : i32
    %c0_i32_0 = arith.constant 0 : i32
    return %arg0, %c0_i32 : i32, i32
  }
  func.func @transform_1(%arg0: i32) -> (i32, i32) {
    %c0_i32 = arith.constant 0 : i32
    %c0_i32_0 = arith.constant 0 : i32
    %c0_i32_1 = arith.constant 0 : i32
    return %c0_i32, %c0_i32_0 : i32, i32
  }
  func.func @transform_2(%arg0: i32) -> (i32, i32) {
    %c0_i32 = arith.constant 0 : i32
    %c0_i32_0 = arith.constant 0 : i32
    %c0_i32_1 = arith.constant 0 : i32
    return %c0_i32, %c0_i32_0 : i32, i32
  }
  func.func @transform_3(%arg0: i32) -> (i32, i32) {
    %c0_i32 = arith.constant 0 : i32
    %c0_i32_0 = arith.constant 0 : i32
    return %arg0, %c0_i32 : i32, i32
  }
}

module attributes {stable_mosaic.version = 11 : i64} {
  func.func @_mm_bias_kernel(%arg0: i32, %arg1: memref<32x72xbf16, #tpu.memory_space<vmem>>, %arg2: memref<72x128xbf16, #tpu.memory_space<vmem>>, %arg3: memref<1x128xf32, #tpu.memory_space<vmem>>, %arg4: memref<32x128xbf16, #tpu.memory_space<vmem>>) attributes {dimension_semantics = [#tpu.dimension_semantics<parallel>], iteration_bounds = array<i64: 1>, scalar_prefetch = 0 : i64, scratch_operands = 0 : i64, tpu.core_type = #tpu.core_type<tc>, window_params = [{transform_indices = @transform_0, window_bounds = array<i64: 32, 72>}, {pipeline_mode = #tpu.pipeline_mode<synchronous>, transform_indices = @transform_1, window_bounds = array<i64: 72, 128>}, {pipeline_mode = #tpu.pipeline_mode<synchronous>, transform_indices = @transform_2, window_bounds = array<i64: 1, 128>}, {transform_indices = @transform_3, window_bounds = array<i64: 32, 128>}]} {
    %c0 = arith.constant 0 : index
    %c0_0 = arith.constant 0 : index
    %0 = vector.load %arg1[%c0, %c0_0] : memref<32x72xbf16, #tpu.memory_space<vmem>>, vector<32x72xbf16>
    %c0_1 = arith.constant 0 : index
    %c0_2 = arith.constant 0 : index
    %1 = vector.load %arg2[%c0_1, %c0_2] : memref<72x128xbf16, #tpu.memory_space<vmem>>, vector<72x128xbf16>
    %cst = arith.constant dense<0.000000e+00> : vector<32x128xf32>
    %2 = tpu.matmul %0, %1, %cst {dimension_numbers = #tpu.dot_dimension_numbers<[1], [0], [0], [1], [0, 0, 1, 1], [], []>} : vector<32x72xbf16>, vector<72x128xbf16>, vector<32x128xf32> -> vector<32x128xf32>
    %c0_3 = arith.constant 0 : index
    %c0_4 = arith.constant 0 : index
    %3 = vector.load %arg3[%c0_3, %c0_4] : memref<1x128xf32, #tpu.memory_space<vmem>>, vector<1x128xf32>
    %4 = vector.broadcast %3 : vector<1x128xf32> to vector<32x128xf32>
    %5 = arith.addf %2, %4 : vector<32x128xf32>
    %cst_5 = arith.constant 0.000000e+00 : f32
    %6 = vector.broadcast %cst_5 : f32 to vector<32x128xf32>
    %7 = arith.maximumf %5, %6 : vector<32x128xf32>
    %8 = arith.truncf %7 : vector<32x128xf32> to vector<32x128xbf16>
    %c0_6 = arith.constant 0 : index
    %c0_7 = arith.constant 0 : index
    %9 = vector.load %arg4[%c0_6, %c0_7] : memref<32x128xbf16, #tpu.memory_space<vmem>>, vector<32x128xbf16>
    tpu.vector_store %arg4[%c0_6, %c0_7], %8 {strides = array<i32>} : memref<32x128xbf16, #tpu.memory_space<vmem>>, vector<32x128xbf16>,
    return
  }
  func.func @transform_0(%arg0: i32) -> (i32, i32) {
    %c0_i32 = arith.constant 0 : i32
    %c0_i32_0 = arith.constant 0 : i32
    return %arg0, %c0_i32 : i32, i32
  }
  func.func @transform_1(%arg0: i32) -> (i32, i32) {
    %c0_i32 = arith.constant 0 : i32
    %c0_i32_0 = arith.constant 0 : i32
    %c0_i32_1 = arith.constant 0 : i32
    return %c0_i32, %c0_i32_0 : i32, i32
  }
  func.func @transform_2(%arg0: i32) -> (i32, i32) {
    %c0_i32 = arith.constant 0 : i32
    %c0_i32_0 = arith.constant 0 : i32
    %c0_i32_1 = arith.constant 0 : i32
    return %c0_i32, %c0_i32_0 : i32, i32
  }
  func.func @transform_3(%arg0: i32) -> (i32, i32) {
    %c0_i32 = arith.constant 0 : i32
    %c0_i32_0 = arith.constant 0 : i32
    return %arg0, %c0_i32 : i32, i32
  }
}

module attributes {stable_mosaic.version = 11 : i64} {
  func.func @_mm_bias_kernel(%arg0: i32, %arg1: memref<64x288xbf16, #tpu.memory_space<vmem>>, %arg2: memref<288x128xbf16, #tpu.memory_space<vmem>>, %arg3: memref<1x128xf32, #tpu.memory_space<vmem>>, %arg4: memref<64x128xbf16, #tpu.memory_space<vmem>>) attributes {dimension_semantics = [#tpu.dimension_semantics<parallel>], iteration_bounds = array<i64: 1>, scalar_prefetch = 0 : i64, scratch_operands = 0 : i64, tpu.core_type = #tpu.core_type<tc>, window_params = [{transform_indices = @transform_0, window_bounds = array<i64: 64, 288>}, {pipeline_mode = #tpu.pipeline_mode<synchronous>, transform_indices = @transform_1, window_bounds = array<i64: 288, 128>}, {pipeline_mode = #tpu.pipeline_mode<synchronous>, transform_indices = @transform_2, window_bounds = array<i64: 1, 128>}, {transform_indices = @transform_3, window_bounds = array<i64: 64, 128>}]} {
    %c0 = arith.constant 0 : index
    %c0_0 = arith.constant 0 : index
    %0 = vector.load %arg1[%c0, %c0_0] : memref<64x288xbf16, #tpu.memory_space<vmem>>, vector<64x288xbf16>
    %c0_1 = arith.constant 0 : index
    %c0_2 = arith.constant 0 : index
    %1 = vector.load %arg2[%c0_1, %c0_2] : memref<288x128xbf16, #tpu.memory_space<vmem>>, vector<288x128xbf16>
    %cst = arith.constant dense<0.000000e+00> : vector<64x128xf32>
    %2 = tpu.matmul %0, %1, %cst {dimension_numbers = #tpu.dot_dimension_numbers<[1], [0], [0], [1], [0, 0, 1, 1], [], []>} : vector<64x288xbf16>, vector<288x128xbf16>, vector<64x128xf32> -> vector<64x128xf32>
    %c0_3 = arith.constant 0 : index
    %c0_4 = arith.constant 0 : index
    %3 = vector.load %arg3[%c0_3, %c0_4] : memref<1x128xf32, #tpu.memory_space<vmem>>, vector<1x128xf32>
    %4 = vector.broadcast %3 : vector<1x128xf32> to vector<64x128xf32>
    %5 = arith.addf %2, %4 : vector<64x128xf32>
    %cst_5 = arith.constant 0.000000e+00 : f32
    %6 = vector.broadcast %cst_5 : f32 to vector<64x128xf32>
    %7 = arith.maximumf %5, %6 : vector<64x128xf32>
    %8 = arith.truncf %7 : vector<64x128xf32> to vector<64x128xbf16>
    %c0_6 = arith.constant 0 : index
    %c0_7 = arith.constant 0 : index
    %9 = vector.load %arg4[%c0_6, %c0_7] : memref<64x128xbf16, #tpu.memory_space<vmem>>, vector<64x128xbf16>
    tpu.vector_store %arg4[%c0_6, %c0_7], %8 {strides = array<i32>} : memref<64x128xbf16, #tpu.memory_space<vmem>>, vector<64x128xbf16>,
    return
  }
  func.func @transform_0(%arg0: i32) -> (i32, i32) {
    %c0_i32 = arith.constant 0 : i32
    %c0_i32_0 = arith.constant 0 : i32
    return %arg0, %c0_i32 : i32, i32
  }
  func.func @transform_1(%arg0: i32) -> (i32, i32) {
    %c0_i32 = arith.constant 0 : i32
    %c0_i32_0 = arith.constant 0 : i32
    %c0_i32_1 = arith.constant 0 : i32
    return %c0_i32, %c0_i32_0 : i32, i32
  }
  func.func @transform_2(%arg0: i32) -> (i32, i32) {
    %c0_i32 = arith.constant 0 : i32
    %c0_i32_0 = arith.constant 0 : i32
    %c0_i32_1 = arith.constant 0 : i32
    return %c0_i32, %c0_i32_0 : i32, i32
  }
  func.func @transform_3(%arg0: i32) -> (i32, i32) {
    %c0_i32 = arith.constant 0 : i32
    %c0_i32_0 = arith.constant 0 : i32
    return %arg0, %c0_i32 : i32, i32
  }
}

module attributes {stable_mosaic.version = 11 : i64} {
  func.func @_mm_bias_kernel(%arg0: i32, %arg1: memref<32x576xbf16, #tpu.memory_space<vmem>>, %arg2: memref<576x128xbf16, #tpu.memory_space<vmem>>, %arg3: memref<1x128xf32, #tpu.memory_space<vmem>>, %arg4: memref<32x128xbf16, #tpu.memory_space<vmem>>) attributes {dimension_semantics = [#tpu.dimension_semantics<parallel>], iteration_bounds = array<i64: 1>, scalar_prefetch = 0 : i64, scratch_operands = 0 : i64, tpu.core_type = #tpu.core_type<tc>, window_params = [{transform_indices = @transform_0, window_bounds = array<i64: 32, 576>}, {pipeline_mode = #tpu.pipeline_mode<synchronous>, transform_indices = @transform_1, window_bounds = array<i64: 576, 128>}, {pipeline_mode = #tpu.pipeline_mode<synchronous>, transform_indices = @transform_2, window_bounds = array<i64: 1, 128>}, {transform_indices = @transform_3, window_bounds = array<i64: 32, 128>}]} {
    %c0 = arith.constant 0 : index
    %c0_0 = arith.constant 0 : index
    %0 = vector.load %arg1[%c0, %c0_0] : memref<32x576xbf16, #tpu.memory_space<vmem>>, vector<32x576xbf16>
    %c0_1 = arith.constant 0 : index
    %c0_2 = arith.constant 0 : index
    %1 = vector.load %arg2[%c0_1, %c0_2] : memref<576x128xbf16, #tpu.memory_space<vmem>>, vector<576x128xbf16>
    %cst = arith.constant dense<0.000000e+00> : vector<32x128xf32>
    %2 = tpu.matmul %0, %1, %cst {dimension_numbers = #tpu.dot_dimension_numbers<[1], [0], [0], [1], [0, 0, 1, 1], [], []>} : vector<32x576xbf16>, vector<576x128xbf16>, vector<32x128xf32> -> vector<32x128xf32>
    %c0_3 = arith.constant 0 : index
    %c0_4 = arith.constant 0 : index
    %3 = vector.load %arg3[%c0_3, %c0_4] : memref<1x128xf32, #tpu.memory_space<vmem>>, vector<1x128xf32>
    %4 = vector.broadcast %3 : vector<1x128xf32> to vector<32x128xf32>
    %5 = arith.addf %2, %4 : vector<32x128xf32>
    %cst_5 = arith.constant 0.000000e+00 : f32
    %6 = vector.broadcast %cst_5 : f32 to vector<32x128xf32>
    %7 = arith.maximumf %5, %6 : vector<32x128xf32>
    %8 = arith.truncf %7 : vector<32x128xf32> to vector<32x128xbf16>
    %c0_6 = arith.constant 0 : index
    %c0_7 = arith.constant 0 : index
    %9 = vector.load %arg4[%c0_6, %c0_7] : memref<32x128xbf16, #tpu.memory_space<vmem>>, vector<32x128xbf16>
    tpu.vector_store %arg4[%c0_6, %c0_7], %8 {strides = array<i32>} : memref<32x128xbf16, #tpu.memory_space<vmem>>, vector<32x128xbf16>,
    return
  }
  func.func @transform_0(%arg0: i32) -> (i32, i32) {
    %c0_i32 = arith.constant 0 : i32
    %c0_i32_0 = arith.constant 0 : i32
    return %arg0, %c0_i32 : i32, i32
  }
  func.func @transform_1(%arg0: i32) -> (i32, i32) {
    %c0_i32 = arith.constant 0 : i32
    %c0_i32_0 = arith.constant 0 : i32
    %c0_i32_1 = arith.constant 0 : i32
    return %c0_i32, %c0_i32_0 : i32, i32
  }
  func.func @transform_2(%arg0: i32) -> (i32, i32) {
    %c0_i32 = arith.constant 0 : i32
    %c0_i32_0 = arith.constant 0 : i32
    %c0_i32_1 = arith.constant 0 : i32
    return %c0_i32, %c0_i32_0 : i32, i32
  }
  func.func @transform_3(%arg0: i32) -> (i32, i32) {
    %c0_i32 = arith.constant 0 : i32
    %c0_i32_0 = arith.constant 0 : i32
    return %arg0, %c0_i32 : i32, i32
  }
}

module attributes {stable_mosaic.version = 11 : i64} {
  func.func @_mm_bias_kernel(%arg0: i32, %arg1: memref<16x288xbf16, #tpu.memory_space<vmem>>, %arg2: memref<288x128xbf16, #tpu.memory_space<vmem>>, %arg3: memref<1x128xf32, #tpu.memory_space<vmem>>, %arg4: memref<16x128xbf16, #tpu.memory_space<vmem>>) attributes {dimension_semantics = [#tpu.dimension_semantics<parallel>], iteration_bounds = array<i64: 1>, scalar_prefetch = 0 : i64, scratch_operands = 0 : i64, tpu.core_type = #tpu.core_type<tc>, window_params = [{transform_indices = @transform_0, window_bounds = array<i64: 16, 288>}, {pipeline_mode = #tpu.pipeline_mode<synchronous>, transform_indices = @transform_1, window_bounds = array<i64: 288, 128>}, {pipeline_mode = #tpu.pipeline_mode<synchronous>, transform_indices = @transform_2, window_bounds = array<i64: 1, 128>}, {transform_indices = @transform_3, window_bounds = array<i64: 16, 128>}]} {
    %c0 = arith.constant 0 : index
    %c0_0 = arith.constant 0 : index
    %0 = vector.load %arg1[%c0, %c0_0] : memref<16x288xbf16, #tpu.memory_space<vmem>>, vector<16x288xbf16>
    %c0_1 = arith.constant 0 : index
    %c0_2 = arith.constant 0 : index
    %1 = vector.load %arg2[%c0_1, %c0_2] : memref<288x128xbf16, #tpu.memory_space<vmem>>, vector<288x128xbf16>
    %cst = arith.constant dense<0.000000e+00> : vector<16x128xf32>
    %2 = tpu.matmul %0, %1, %cst {dimension_numbers = #tpu.dot_dimension_numbers<[1], [0], [0], [1], [0, 0, 1, 1], [], []>} : vector<16x288xbf16>, vector<288x128xbf16>, vector<16x128xf32> -> vector<16x128xf32>
    %c0_3 = arith.constant 0 : index
    %c0_4 = arith.constant 0 : index
    %3 = vector.load %arg3[%c0_3, %c0_4] : memref<1x128xf32, #tpu.memory_space<vmem>>, vector<1x128xf32>
    %4 = vector.broadcast %3 : vector<1x128xf32> to vector<16x128xf32>
    %5 = arith.addf %2, %4 : vector<16x128xf32>
    %cst_5 = arith.constant 0.000000e+00 : f32
    %6 = vector.broadcast %cst_5 : f32 to vector<16x128xf32>
    %7 = arith.maximumf %5, %6 : vector<16x128xf32>
    %8 = arith.truncf %7 : vector<16x128xf32> to vector<16x128xbf16>
    %c0_6 = arith.constant 0 : index
    %c0_7 = arith.constant 0 : index
    %9 = vector.load %arg4[%c0_6, %c0_7] : memref<16x128xbf16, #tpu.memory_space<vmem>>, vector<16x128xbf16>
    tpu.vector_store %arg4[%c0_6, %c0_7], %8 {strides = array<i32>} : memref<16x128xbf16, #tpu.memory_space<vmem>>, vector<16x128xbf16>,
    return
  }
  func.func @transform_0(%arg0: i32) -> (i32, i32) {
    %c0_i32 = arith.constant 0 : i32
    %c0_i32_0 = arith.constant 0 : i32
    return %arg0, %c0_i32 : i32, i32
  }
  func.func @transform_1(%arg0: i32) -> (i32, i32) {
    %c0_i32 = arith.constant 0 : i32
    %c0_i32_0 = arith.constant 0 : i32
    %c0_i32_1 = arith.constant 0 : i32
    return %c0_i32, %c0_i32_0 : i32, i32
  }
  func.func @transform_2(%arg0: i32) -> (i32, i32) {
    %c0_i32 = arith.constant 0 : i32
    %c0_i32_0 = arith.constant 0 : i32
    %c0_i32_1 = arith.constant 0 : i32
    return %c0_i32, %c0_i32_0 : i32, i32
  }
  func.func @transform_3(%arg0: i32) -> (i32, i32) {
    %c0_i32 = arith.constant 0 : i32
    %c0_i32_0 = arith.constant 0 : i32
    return %arg0, %c0_i32 : i32, i32
  }
}

module attributes {stable_mosaic.version = 11 : i64} {
  func.func @_mm_bias_kernel(%arg0: i32, %arg1: memref<16x144xbf16, #tpu.memory_space<vmem>>, %arg2: memref<144x128xbf16, #tpu.memory_space<vmem>>, %arg3: memref<1x128xf32, #tpu.memory_space<vmem>>, %arg4: memref<16x128xbf16, #tpu.memory_space<vmem>>) attributes {dimension_semantics = [#tpu.dimension_semantics<parallel>], iteration_bounds = array<i64: 1>, scalar_prefetch = 0 : i64, scratch_operands = 0 : i64, tpu.core_type = #tpu.core_type<tc>, window_params = [{transform_indices = @transform_0, window_bounds = array<i64: 16, 144>}, {pipeline_mode = #tpu.pipeline_mode<synchronous>, transform_indices = @transform_1, window_bounds = array<i64: 144, 128>}, {pipeline_mode = #tpu.pipeline_mode<synchronous>, transform_indices = @transform_2, window_bounds = array<i64: 1, 128>}, {transform_indices = @transform_3, window_bounds = array<i64: 16, 128>}]} {
    %c0 = arith.constant 0 : index
    %c0_0 = arith.constant 0 : index
    %0 = vector.load %arg1[%c0, %c0_0] : memref<16x144xbf16, #tpu.memory_space<vmem>>, vector<16x144xbf16>
    %c0_1 = arith.constant 0 : index
    %c0_2 = arith.constant 0 : index
    %1 = vector.load %arg2[%c0_1, %c0_2] : memref<144x128xbf16, #tpu.memory_space<vmem>>, vector<144x128xbf16>
    %cst = arith.constant dense<0.000000e+00> : vector<16x128xf32>
    %2 = tpu.matmul %0, %1, %cst {dimension_numbers = #tpu.dot_dimension_numbers<[1], [0], [0], [1], [0, 0, 1, 1], [], []>} : vector<16x144xbf16>, vector<144x128xbf16>, vector<16x128xf32> -> vector<16x128xf32>
    %c0_3 = arith.constant 0 : index
    %c0_4 = arith.constant 0 : index
    %3 = vector.load %arg3[%c0_3, %c0_4] : memref<1x128xf32, #tpu.memory_space<vmem>>, vector<1x128xf32>
    %4 = vector.broadcast %3 : vector<1x128xf32> to vector<16x128xf32>
    %5 = arith.addf %2, %4 : vector<16x128xf32>
    %cst_5 = arith.constant 0.000000e+00 : f32
    %6 = vector.broadcast %cst_5 : f32 to vector<16x128xf32>
    %7 = arith.maximumf %5, %6 : vector<16x128xf32>
    %8 = arith.truncf %7 : vector<16x128xf32> to vector<16x128xbf16>
    %c0_6 = arith.constant 0 : index
    %c0_7 = arith.constant 0 : index
    %9 = vector.load %arg4[%c0_6, %c0_7] : memref<16x128xbf16, #tpu.memory_space<vmem>>, vector<16x128xbf16>
    tpu.vector_store %arg4[%c0_6, %c0_7], %8 {strides = array<i32>} : memref<16x128xbf16, #tpu.memory_space<vmem>>, vector<16x128xbf16>,
    return
  }
  func.func @transform_0(%arg0: i32) -> (i32, i32) {
    %c0_i32 = arith.constant 0 : i32
    %c0_i32_0 = arith.constant 0 : i32
    return %arg0, %c0_i32 : i32, i32
  }
  func.func @transform_1(%arg0: i32) -> (i32, i32) {
    %c0_i32 = arith.constant 0 : i32
    %c0_i32_0 = arith.constant 0 : i32
    %c0_i32_1 = arith.constant 0 : i32
    return %c0_i32, %c0_i32_0 : i32, i32
  }
  func.func @transform_2(%arg0: i32) -> (i32, i32) {
    %c0_i32 = arith.constant 0 : i32
    %c0_i32_0 = arith.constant 0 : i32
    %c0_i32_1 = arith.constant 0 : i32
    return %c0_i32, %c0_i32_0 : i32, i32
  }
  func.func @transform_3(%arg0: i32) -> (i32, i32) {
    %c0_i32 = arith.constant 0 : i32
    %c0_i32_0 = arith.constant 0 : i32
    return %arg0, %c0_i32 : i32, i32
  }
}

module attributes {stable_mosaic.version = 11 : i64} {
  func.func @_mm_bias_kernel(%arg0: i32, %arg1: memref<16x576xbf16, #tpu.memory_space<vmem>>, %arg2: memref<576x128xbf16, #tpu.memory_space<vmem>>, %arg3: memref<1x128xf32, #tpu.memory_space<vmem>>, %arg4: memref<16x128xbf16, #tpu.memory_space<vmem>>) attributes {dimension_semantics = [#tpu.dimension_semantics<parallel>], iteration_bounds = array<i64: 1>, scalar_prefetch = 0 : i64, scratch_operands = 0 : i64, tpu.core_type = #tpu.core_type<tc>, window_params = [{transform_indices = @transform_0, window_bounds = array<i64: 16, 576>}, {pipeline_mode = #tpu.pipeline_mode<synchronous>, transform_indices = @transform_1, window_bounds = array<i64: 576, 128>}, {pipeline_mode = #tpu.pipeline_mode<synchronous>, transform_indices = @transform_2, window_bounds = array<i64: 1, 128>}, {transform_indices = @transform_3, window_bounds = array<i64: 16, 128>}]} {
    %c0 = arith.constant 0 : index
    %c0_0 = arith.constant 0 : index
    %0 = vector.load %arg1[%c0, %c0_0] : memref<16x576xbf16, #tpu.memory_space<vmem>>, vector<16x576xbf16>
    %c0_1 = arith.constant 0 : index
    %c0_2 = arith.constant 0 : index
    %1 = vector.load %arg2[%c0_1, %c0_2] : memref<576x128xbf16, #tpu.memory_space<vmem>>, vector<576x128xbf16>
    %cst = arith.constant dense<0.000000e+00> : vector<16x128xf32>
    %2 = tpu.matmul %0, %1, %cst {dimension_numbers = #tpu.dot_dimension_numbers<[1], [0], [0], [1], [0, 0, 1, 1], [], []>} : vector<16x576xbf16>, vector<576x128xbf16>, vector<16x128xf32> -> vector<16x128xf32>
    %c0_3 = arith.constant 0 : index
    %c0_4 = arith.constant 0 : index
    %3 = vector.load %arg3[%c0_3, %c0_4] : memref<1x128xf32, #tpu.memory_space<vmem>>, vector<1x128xf32>
    %4 = vector.broadcast %3 : vector<1x128xf32> to vector<16x128xf32>
    %5 = arith.addf %2, %4 : vector<16x128xf32>
    %cst_5 = arith.constant 0.000000e+00 : f32
    %6 = vector.broadcast %cst_5 : f32 to vector<16x128xf32>
    %7 = arith.maximumf %5, %6 : vector<16x128xf32>
    %8 = arith.truncf %7 : vector<16x128xf32> to vector<16x128xbf16>
    %c0_6 = arith.constant 0 : index
    %c0_7 = arith.constant 0 : index
    %9 = vector.load %arg4[%c0_6, %c0_7] : memref<16x128xbf16, #tpu.memory_space<vmem>>, vector<16x128xbf16>
    tpu.vector_store %arg4[%c0_6, %c0_7], %8 {strides = array<i32>} : memref<16x128xbf16, #tpu.memory_space<vmem>>, vector<16x128xbf16>,
    return
  }
  func.func @transform_0(%arg0: i32) -> (i32, i32) {
    %c0_i32 = arith.constant 0 : i32
    %c0_i32_0 = arith.constant 0 : i32
    return %arg0, %c0_i32 : i32, i32
  }
  func.func @transform_1(%arg0: i32) -> (i32, i32) {
    %c0_i32 = arith.constant 0 : i32
    %c0_i32_0 = arith.constant 0 : i32
    %c0_i32_1 = arith.constant 0 : i32
    return %c0_i32, %c0_i32_0 : i32, i32
  }
  func.func @transform_2(%arg0: i32) -> (i32, i32) {
    %c0_i32 = arith.constant 0 : i32
    %c0_i32_0 = arith.constant 0 : i32
    %c0_i32_1 = arith.constant 0 : i32
    return %c0_i32, %c0_i32_0 : i32, i32
  }
  func.func @transform_3(%arg0: i32) -> (i32, i32) {
    %c0_i32 = arith.constant 0 : i32
    %c0_i32_0 = arith.constant 0 : i32
    return %arg0, %c0_i32 : i32, i32
  }
}

module attributes {stable_mosaic.version = 11 : i64} {
  func.func @_mm_bias_kernel(%arg0: i32, %arg1: memref<8x1152xbf16, #tpu.memory_space<vmem>>, %arg2: memref<1152x128xbf16, #tpu.memory_space<vmem>>, %arg3: memref<1x128xf32, #tpu.memory_space<vmem>>, %arg4: memref<8x128xbf16, #tpu.memory_space<vmem>>) attributes {dimension_semantics = [#tpu.dimension_semantics<parallel>], iteration_bounds = array<i64: 1>, scalar_prefetch = 0 : i64, scratch_operands = 0 : i64, tpu.core_type = #tpu.core_type<tc>, window_params = [{transform_indices = @transform_0, window_bounds = array<i64: 8, 1152>}, {pipeline_mode = #tpu.pipeline_mode<synchronous>, transform_indices = @transform_1, window_bounds = array<i64: 1152, 128>}, {pipeline_mode = #tpu.pipeline_mode<synchronous>, transform_indices = @transform_2, window_bounds = array<i64: 1, 128>}, {transform_indices = @transform_3, window_bounds = array<i64: 8, 128>}]} {
    %c0 = arith.constant 0 : index
    %c0_0 = arith.constant 0 : index
    %0 = vector.load %arg1[%c0, %c0_0] : memref<8x1152xbf16, #tpu.memory_space<vmem>>, vector<8x1152xbf16>
    %c0_1 = arith.constant 0 : index
    %c0_2 = arith.constant 0 : index
    %1 = vector.load %arg2[%c0_1, %c0_2] : memref<1152x128xbf16, #tpu.memory_space<vmem>>, vector<1152x128xbf16>
    %cst = arith.constant dense<0.000000e+00> : vector<8x128xf32>
    %2 = tpu.matmul %0, %1, %cst {dimension_numbers = #tpu.dot_dimension_numbers<[1], [0], [0], [1], [0, 0, 1, 1], [], []>} : vector<8x1152xbf16>, vector<1152x128xbf16>, vector<8x128xf32> -> vector<8x128xf32>
    %c0_3 = arith.constant 0 : index
    %c0_4 = arith.constant 0 : index
    %3 = vector.load %arg3[%c0_3, %c0_4] : memref<1x128xf32, #tpu.memory_space<vmem>>, vector<1x128xf32>
    %4 = vector.broadcast %3 : vector<1x128xf32> to vector<8x128xf32>
    %5 = arith.addf %2, %4 : vector<8x128xf32>
    %cst_5 = arith.constant 0.000000e+00 : f32
    %6 = vector.broadcast %cst_5 : f32 to vector<8x128xf32>
    %7 = arith.maximumf %5, %6 : vector<8x128xf32>
    %8 = arith.truncf %7 : vector<8x128xf32> to vector<8x128xbf16>
    %c0_6 = arith.constant 0 : index
    %c0_7 = arith.constant 0 : index
    %9 = vector.load %arg4[%c0_6, %c0_7] : memref<8x128xbf16, #tpu.memory_space<vmem>>, vector<8x128xbf16>
    tpu.vector_store %arg4[%c0_6, %c0_7], %8 {strides = array<i32>} : memref<8x128xbf16, #tpu.memory_space<vmem>>, vector<8x128xbf16>,
    return
  }
  func.func @transform_0(%arg0: i32) -> (i32, i32) {
    %c0_i32 = arith.constant 0 : i32
    %c0_i32_0 = arith.constant 0 : i32
    return %arg0, %c0_i32 : i32, i32
  }
  func.func @transform_1(%arg0: i32) -> (i32, i32) {
    %c0_i32 = arith.constant 0 : i32
    %c0_i32_0 = arith.constant 0 : i32
    %c0_i32_1 = arith.constant 0 : i32
    return %c0_i32, %c0_i32_0 : i32, i32
  }
  func.func @transform_2(%arg0: i32) -> (i32, i32) {
    %c0_i32 = arith.constant 0 : i32
    %c0_i32_0 = arith.constant 0 : i32
    %c0_i32_1 = arith.constant 0 : i32
    return %c0_i32, %c0_i32_0 : i32, i32
  }
  func.func @transform_3(%arg0: i32) -> (i32, i32) {
    %c0_i32 = arith.constant 0 : i32
    %c0_i32_0 = arith.constant 0 : i32
    return %arg0, %c0_i32 : i32, i32
  }
}

module attributes {stable_mosaic.version = 11 : i64} {
  func.func @_mm_bias_kernel(%arg0: i32, %arg1: memref<8x576xbf16, #tpu.memory_space<vmem>>, %arg2: memref<576x128xbf16, #tpu.memory_space<vmem>>, %arg3: memref<1x128xf32, #tpu.memory_space<vmem>>, %arg4: memref<8x128xbf16, #tpu.memory_space<vmem>>) attributes {dimension_semantics = [#tpu.dimension_semantics<parallel>], iteration_bounds = array<i64: 1>, scalar_prefetch = 0 : i64, scratch_operands = 0 : i64, tpu.core_type = #tpu.core_type<tc>, window_params = [{transform_indices = @transform_0, window_bounds = array<i64: 8, 576>}, {pipeline_mode = #tpu.pipeline_mode<synchronous>, transform_indices = @transform_1, window_bounds = array<i64: 576, 128>}, {pipeline_mode = #tpu.pipeline_mode<synchronous>, transform_indices = @transform_2, window_bounds = array<i64: 1, 128>}, {transform_indices = @transform_3, window_bounds = array<i64: 8, 128>}]} {
    %c0 = arith.constant 0 : index
    %c0_0 = arith.constant 0 : index
    %0 = vector.load %arg1[%c0, %c0_0] : memref<8x576xbf16, #tpu.memory_space<vmem>>, vector<8x576xbf16>
    %c0_1 = arith.constant 0 : index
    %c0_2 = arith.constant 0 : index
    %1 = vector.load %arg2[%c0_1, %c0_2] : memref<576x128xbf16, #tpu.memory_space<vmem>>, vector<576x128xbf16>
    %cst = arith.constant dense<0.000000e+00> : vector<8x128xf32>
    %2 = tpu.matmul %0, %1, %cst {dimension_numbers = #tpu.dot_dimension_numbers<[1], [0], [0], [1], [0, 0, 1, 1], [], []>} : vector<8x576xbf16>, vector<576x128xbf16>, vector<8x128xf32> -> vector<8x128xf32>
    %c0_3 = arith.constant 0 : index
    %c0_4 = arith.constant 0 : index
    %3 = vector.load %arg3[%c0_3, %c0_4] : memref<1x128xf32, #tpu.memory_space<vmem>>, vector<1x128xf32>
    %4 = vector.broadcast %3 : vector<1x128xf32> to vector<8x128xf32>
    %5 = arith.addf %2, %4 : vector<8x128xf32>
    %cst_5 = arith.constant 0.000000e+00 : f32
    %6 = vector.broadcast %cst_5 : f32 to vector<8x128xf32>
    %7 = arith.maximumf %5, %6 : vector<8x128xf32>
    %8 = arith.truncf %7 : vector<8x128xf32> to vector<8x128xbf16>
    %c0_6 = arith.constant 0 : index
    %c0_7 = arith.constant 0 : index
    %9 = vector.load %arg4[%c0_6, %c0_7] : memref<8x128xbf16, #tpu.memory_space<vmem>>, vector<8x128xbf16>
    tpu.vector_store %arg4[%c0_6, %c0_7], %8 {strides = array<i32>} : memref<8x128xbf16, #tpu.memory_space<vmem>>, vector<8x128xbf16>,
    return
  }
  func.func @transform_0(%arg0: i32) -> (i32, i32) {
    %c0_i32 = arith.constant 0 : i32
    %c0_i32_0 = arith.constant 0 : i32
    return %arg0, %c0_i32 : i32, i32
  }
  func.func @transform_1(%arg0: i32) -> (i32, i32) {
    %c0_i32 = arith.constant 0 : i32
    %c0_i32_0 = arith.constant 0 : i32
    %c0_i32_1 = arith.constant 0 : i32
    return %c0_i32, %c0_i32_0 : i32, i32
  }
  func.func @transform_2(%arg0: i32) -> (i32, i32) {
    %c0_i32 = arith.constant 0 : i32
    %c0_i32_0 = arith.constant 0 : i32
    %c0_i32_1 = arith.constant 0 : i32
    return %c0_i32, %c0_i32_0 : i32, i32
  }
  func.func @transform_3(%arg0: i32) -> (i32, i32) {
    %c0_i32 = arith.constant 0 : i32
    %c0_i32_0 = arith.constant 0 : i32
    return %arg0, %c0_i32 : i32, i32
  }
}

module attributes {stable_mosaic.version = 11 : i64} {
  func.func @_mm_bias_kernel(%arg0: i32, %arg1: memref<8x288xbf16, #tpu.memory_space<vmem>>, %arg2: memref<288x128xbf16, #tpu.memory_space<vmem>>, %arg3: memref<1x128xf32, #tpu.memory_space<vmem>>, %arg4: memref<8x128xbf16, #tpu.memory_space<vmem>>) attributes {dimension_semantics = [#tpu.dimension_semantics<parallel>], iteration_bounds = array<i64: 1>, scalar_prefetch = 0 : i64, scratch_operands = 0 : i64, tpu.core_type = #tpu.core_type<tc>, window_params = [{transform_indices = @transform_0, window_bounds = array<i64: 8, 288>}, {pipeline_mode = #tpu.pipeline_mode<synchronous>, transform_indices = @transform_1, window_bounds = array<i64: 288, 128>}, {pipeline_mode = #tpu.pipeline_mode<synchronous>, transform_indices = @transform_2, window_bounds = array<i64: 1, 128>}, {transform_indices = @transform_3, window_bounds = array<i64: 8, 128>}]} {
    %c0 = arith.constant 0 : index
    %c0_0 = arith.constant 0 : index
    %0 = vector.load %arg1[%c0, %c0_0] : memref<8x288xbf16, #tpu.memory_space<vmem>>, vector<8x288xbf16>
    %c0_1 = arith.constant 0 : index
    %c0_2 = arith.constant 0 : index
    %1 = vector.load %arg2[%c0_1, %c0_2] : memref<288x128xbf16, #tpu.memory_space<vmem>>, vector<288x128xbf16>
    %cst = arith.constant dense<0.000000e+00> : vector<8x128xf32>
    %2 = tpu.matmul %0, %1, %cst {dimension_numbers = #tpu.dot_dimension_numbers<[1], [0], [0], [1], [0, 0, 1, 1], [], []>} : vector<8x288xbf16>, vector<288x128xbf16>, vector<8x128xf32> -> vector<8x128xf32>
    %c0_3 = arith.constant 0 : index
    %c0_4 = arith.constant 0 : index
    %3 = vector.load %arg3[%c0_3, %c0_4] : memref<1x128xf32, #tpu.memory_space<vmem>>, vector<1x128xf32>
    %4 = vector.broadcast %3 : vector<1x128xf32> to vector<8x128xf32>
    %5 = arith.addf %2, %4 : vector<8x128xf32>
    %cst_5 = arith.constant 0.000000e+00 : f32
    %6 = vector.broadcast %cst_5 : f32 to vector<8x128xf32>
    %7 = arith.maximumf %5, %6 : vector<8x128xf32>
    %8 = arith.truncf %7 : vector<8x128xf32> to vector<8x128xbf16>
    %c0_6 = arith.constant 0 : index
    %c0_7 = arith.constant 0 : index
    %9 = vector.load %arg4[%c0_6, %c0_7] : memref<8x128xbf16, #tpu.memory_space<vmem>>, vector<8x128xbf16>
    tpu.vector_store %arg4[%c0_6, %c0_7], %8 {strides = array<i32>} : memref<8x128xbf16, #tpu.memory_space<vmem>>, vector<8x128xbf16>,
    return
  }
  func.func @transform_0(%arg0: i32) -> (i32, i32) {
    %c0_i32 = arith.constant 0 : i32
    %c0_i32_0 = arith.constant 0 : i32
    return %arg0, %c0_i32 : i32, i32
  }
  func.func @transform_1(%arg0: i32) -> (i32, i32) {
    %c0_i32 = arith.constant 0 : i32
    %c0_i32_0 = arith.constant 0 : i32
    %c0_i32_1 = arith.constant 0 : i32
    return %c0_i32, %c0_i32_0 : i32, i32
  }
  func.func @transform_2(%arg0: i32) -> (i32, i32) {
    %c0_i32 = arith.constant 0 : i32
    %c0_i32_0 = arith.constant 0 : i32
    %c0_i32_1 = arith.constant 0 : i32
    return %c0_i32, %c0_i32_0 : i32, i32
  }
  func.func @transform_3(%arg0: i32) -> (i32, i32) {
    %c0_i32 = arith.constant 0 : i32
    %c0_i32_0 = arith.constant 0 : i32
    return %arg0, %c0_i32 : i32, i32
  }
}

module attributes {stable_mosaic.version = 11 : i64} {
  func.func @_mm_bias_kernel(%arg0: i32, %arg1: memref<64x30xbf16, #tpu.memory_space<vmem>>, %arg2: memref<30x1024xbf16, #tpu.memory_space<vmem>>, %arg3: memref<1x1024xf32, #tpu.memory_space<vmem>>, %arg4: memref<64x1024xf32, #tpu.memory_space<vmem>>) attributes {dimension_semantics = [#tpu.dimension_semantics<parallel>], iteration_bounds = array<i64: 1>, scalar_prefetch = 0 : i64, scratch_operands = 0 : i64, tpu.core_type = #tpu.core_type<tc>, window_params = [{transform_indices = @transform_0, window_bounds = array<i64: 64, 30>}, {pipeline_mode = #tpu.pipeline_mode<synchronous>, transform_indices = @transform_1, window_bounds = array<i64: 30, 1024>}, {pipeline_mode = #tpu.pipeline_mode<synchronous>, transform_indices = @transform_2, window_bounds = array<i64: 1, 1024>}, {transform_indices = @transform_3, window_bounds = array<i64: 64, 1024>}]} {
    %c0 = arith.constant 0 : index
    %c0_0 = arith.constant 0 : index
    %0 = vector.load %arg1[%c0, %c0_0] : memref<64x30xbf16, #tpu.memory_space<vmem>>, vector<64x30xbf16>
    %c0_1 = arith.constant 0 : index
    %c0_2 = arith.constant 0 : index
    %1 = vector.load %arg2[%c0_1, %c0_2] : memref<30x1024xbf16, #tpu.memory_space<vmem>>, vector<30x1024xbf16>
    %cst = arith.constant dense<0.000000e+00> : vector<64x1024xf32>
    %2 = tpu.matmul %0, %1, %cst {dimension_numbers = #tpu.dot_dimension_numbers<[1], [0], [0], [1], [0, 0, 1, 1], [], []>} : vector<64x30xbf16>, vector<30x1024xbf16>, vector<64x1024xf32> -> vector<64x1024xf32>
    %c0_3 = arith.constant 0 : index
    %c0_4 = arith.constant 0 : index
    %3 = vector.load %arg3[%c0_3, %c0_4] : memref<1x1024xf32, #tpu.memory_space<vmem>>, vector<1x1024xf32>
    %4 = vector.broadcast %3 : vector<1x1024xf32> to vector<64x1024xf32>
    %5 = arith.addf %2, %4 : vector<64x1024xf32>
    %c0_5 = arith.constant 0 : index
    %c0_6 = arith.constant 0 : index
    %6 = vector.load %arg4[%c0_5, %c0_6] : memref<64x1024xf32, #tpu.memory_space<vmem>>, vector<64x1024xf32>
    tpu.vector_store %arg4[%c0_5, %c0_6], %5 {strides = array<i32>} : memref<64x1024xf32, #tpu.memory_space<vmem>>, vector<64x1024xf32>,
    return
  }
  func.func @transform_0(%arg0: i32) -> (i32, i32) {
    %c0_i32 = arith.constant 0 : i32
    %c0_i32_0 = arith.constant 0 : i32
    return %arg0, %c0_i32 : i32, i32
  }
  func.func @transform_1(%arg0: i32) -> (i32, i32) {
    %c0_i32 = arith.constant 0 : i32
    %c0_i32_0 = arith.constant 0 : i32
    %c0_i32_1 = arith.constant 0 : i32
    return %c0_i32, %c0_i32_0 : i32, i32
  }
  func.func @transform_2(%arg0: i32) -> (i32, i32) {
    %c0_i32 = arith.constant 0 : i32
    %c0_i32_0 = arith.constant 0 : i32
    %c0_i32_1 = arith.constant 0 : i32
    return %c0_i32, %c0_i32_0 : i32, i32
  }
  func.func @transform_3(%arg0: i32) -> (i32, i32) {
    %c0_i32 = arith.constant 0 : i32
    %c0_i32_0 = arith.constant 0 : i32
    return %arg0, %c0_i32 : i32, i32
  }
}

module attributes {stable_mosaic.version = 11 : i64} {
  func.func @_bilstm_fused_kernel(%arg0: i32, %arg1: memref<32x2x1024xf32, #tpu.memory_space<vmem>>, %arg2: memref<256x1024xbf16, #tpu.memory_space<vmem>>, %arg3: memref<32x2x256xbf16, #tpu.memory_space<vmem>>) attributes {dimension_semantics = [#tpu.dimension_semantics<arbitrary>], iteration_bounds = array<i64: 1>, scalar_prefetch = 0 : i64, scratch_operands = 0 : i64, tpu.core_type = #tpu.core_type<tc>, window_params = [{pipeline_mode = #tpu.pipeline_mode<synchronous>, transform_indices = @transform_0, window_bounds = array<i64: 32, 2, 1024>}, {pipeline_mode = #tpu.pipeline_mode<synchronous>, transform_indices = @transform_1, window_bounds = array<i64: 256, 1024>}, {pipeline_mode = #tpu.pipeline_mode<synchronous>, transform_indices = @transform_2, window_bounds = array<i64: 32, 2, 256>}]} {
    %cst = arith.constant 0.000000e+00 : f32
    %0 = vector.broadcast %cst : f32 to vector<2x128xf32>
    %c0_i32 = arith.constant 0 : i32
    %c32_i32 = arith.constant 32 : i32
    %1 = arith.addi %c0_i32, %c32_i32 : i32
    %c1_i32 = arith.constant 1 : i32
    %2:4 = scf.for %arg4 = %c0_i32 to %1 step %c1_i32 iter_args(%arg5 = %0, %arg6 = %0, %arg7 = %0, %arg8 = %0) -> (vector<2x128xf32>, vector<2x128xf32>, vector<2x128xf32>, vector<2x128xf32>)  : i32 {
      %3 = tpu.concatenate %arg5, %arg6 in 1 : vector<2x128xf32>, vector<2x128xf32> -> vector<2x256xf32>
      %4 = arith.truncf %3 : vector<2x256xf32> to vector<2x256xbf16>
      %c0 = arith.constant 0 : index
      %c0_1 = arith.constant 0 : index
      %5 = vector.load %arg2[%c0, %c0_1] : memref<256x1024xbf16, #tpu.memory_space<vmem>>, vector<256x1024xbf16>
      %cst_2 = arith.constant dense<0.000000e+00> : vector<2x1024xf32>
      %6 = tpu.matmul %4, %5, %cst_2 {dimension_numbers = #tpu.dot_dimension_numbers<[1], [0], [0], [1], [0, 0, 1, 1], [], []>} : vector<2x256xbf16>, vector<256x1024xbf16>, vector<2x1024xf32> -> vector<2x1024xf32>
      %c31_i32 = arith.constant 31 : i32
      %7 = arith.subi %c31_i32, %arg4 : i32
      %8 = arith.index_cast %arg4 : i32 to index
      %c0_3 = arith.constant 0 : index
      %c0_4 = arith.constant 0 : index
      %9 = vector.load %arg1[%8, %c0_3, %c0_4] : memref<32x2x1024xf32, #tpu.memory_space<vmem>>, vector<1x2x1024xf32>
      %10 = vector.shape_cast %9 : vector<1x2x1024xf32> to vector<2x1024xf32>
      %11 = arith.index_cast %7 : i32 to index
      %c0_5 = arith.constant 0 : index
      %c0_6 = arith.constant 0 : index
      %12 = vector.load %arg1[%11, %c0_5, %c0_6] : memref<32x2x1024xf32, #tpu.memory_space<vmem>>, vector<1x2x1024xf32>
      %13 = vector.shape_cast %12 : vector<1x2x1024xf32> to vector<2x1024xf32>
      %14 = vector.extract_strided_slice %6 {offsets = [0, 0], sizes = [2, 512], strides = [1, 1]} : vector<2x1024xf32> to vector<2x512xf32>
      %15 = vector.extract_strided_slice %10 {offsets = [0, 0], sizes = [2, 512], strides = [1, 1]} : vector<2x1024xf32> to vector<2x512xf32>
      %16 = arith.addf %14, %15 : vector<2x512xf32>
      %17 = vector.extract_strided_slice %6 {offsets = [0, 512], sizes = [2, 512], strides = [1, 1]} : vector<2x1024xf32> to vector<2x512xf32>
      %18 = vector.extract_strided_slice %13 {offsets = [0, 512], sizes = [2, 512], strides = [1, 1]} : vector<2x1024xf32> to vector<2x512xf32>
      %19 = arith.addf %17, %18 : vector<2x512xf32>
      %20 = vector.extract_strided_slice %16 {offsets = [0, 0], sizes = [2, 128], strides = [1, 1]} : vector<2x512xf32> to vector<2x128xf32>
      %21 = arith.negf %20 : vector<2x128xf32>
      %22 = math.exp %21 : vector<2x128xf32>
      %cst_7 = arith.constant 1.000000e+00 : f32
      %23 = vector.broadcast %cst_7 : f32 to vector<2x128xf32>
      %24 = arith.addf %23, %22 : vector<2x128xf32>
      %25 = arith.divf %23, %24 : vector<2x128xf32>
      %26 = vector.extract_strided_slice %16 {offsets = [0, 128], sizes = [2, 128], strides = [1, 1]} : vector<2x512xf32> to vector<2x128xf32>
      %27 = arith.negf %26 : vector<2x128xf32>
      %28 = math.exp %27 : vector<2x128xf32>
      %cst_8 = arith.constant 1.000000e+00 : f32
      %29 = vector.broadcast %cst_8 : f32 to vector<2x128xf32>
      %30 = arith.addf %29, %28 : vector<2x128xf32>
      %31 = arith.divf %29, %30 : vector<2x128xf32>
      %32 = vector.extract_strided_slice %16 {offsets = [0, 256], sizes = [2, 128], strides = [1, 1]} : vector<2x512xf32> to vector<2x128xf32>
      %33 = math.tanh %32 : vector<2x128xf32>
      %34 = vector.extract_strided_slice %16 {offsets = [0, 384], sizes = [2, 128], strides = [1, 1]} : vector<2x512xf32> to vector<2x128xf32>
      %35 = arith.negf %34 : vector<2x128xf32>
      %36 = math.exp %35 : vector<2x128xf32>
      %cst_9 = arith.constant 1.000000e+00 : f32
      %37 = vector.broadcast %cst_9 : f32 to vector<2x128xf32>
      %38 = arith.addf %37, %36 : vector<2x128xf32>
      %39 = arith.divf %37, %38 : vector<2x128xf32>
      %40 = arith.mulf %31, %arg7 : vector<2x128xf32>
      %41 = arith.mulf %25, %33 : vector<2x128xf32>
      %42 = arith.addf %40, %41 : vector<2x128xf32>
      %43 = math.tanh %42 : vector<2x128xf32>
      %44 = arith.mulf %39, %43 : vector<2x128xf32>
      %45 = vector.extract_strided_slice %19 {offsets = [0, 0], sizes = [2, 128], strides = [1, 1]} : vector<2x512xf32> to vector<2x128xf32>
      %46 = arith.negf %45 : vector<2x128xf32>
      %47 = math.exp %46 : vector<2x128xf32>
      %cst_10 = arith.constant 1.000000e+00 : f32
      %48 = vector.broadcast %cst_10 : f32 to vector<2x128xf32>
      %49 = arith.addf %48, %47 : vector<2x128xf32>
      %50 = arith.divf %48, %49 : vector<2x128xf32>
      %51 = vector.extract_strided_slice %19 {offsets = [0, 128], sizes = [2, 128], strides = [1, 1]} : vector<2x512xf32> to vector<2x128xf32>
      %52 = arith.negf %51 : vector<2x128xf32>
      %53 = math.exp %52 : vector<2x128xf32>
      %cst_11 = arith.constant 1.000000e+00 : f32
      %54 = vector.broadcast %cst_11 : f32 to vector<2x128xf32>
      %55 = arith.addf %54, %53 : vector<2x128xf32>
      %56 = arith.divf %54, %55 : vector<2x128xf32>
      %57 = vector.extract_strided_slice %19 {offsets = [0, 256], sizes = [2, 128], strides = [1, 1]} : vector<2x512xf32> to vector<2x128xf32>
      %58 = math.tanh %57 : vector<2x128xf32>
      %59 = vector.extract_strided_slice %19 {offsets = [0, 384], sizes = [2, 128], strides = [1, 1]} : vector<2x512xf32> to vector<2x128xf32>
      %60 = arith.negf %59 : vector<2x128xf32>
      %61 = math.exp %60 : vector<2x128xf32>
      %cst_12 = arith.constant 1.000000e+00 : f32
      %62 = vector.broadcast %cst_12 : f32 to vector<2x128xf32>
      %63 = arith.addf %62, %61 : vector<2x128xf32>
      %64 = arith.divf %62, %63 : vector<2x128xf32>
      %65 = arith.mulf %56, %arg8 : vector<2x128xf32>
      %66 = arith.mulf %50, %58 : vector<2x128xf32>
      %67 = arith.addf %65, %66 : vector<2x128xf32>
      %68 = math.tanh %67 : vector<2x128xf32>
      %69 = arith.mulf %64, %68 : vector<2x128xf32>
      %70 = arith.truncf %44 : vector<2x128xf32> to vector<2x128xbf16>
      %71 = arith.index_cast %arg4 : i32 to index
      %c0_13 = arith.constant 0 : index
      %c0_14 = arith.constant 0 : index
      %72 = vector.load %arg3[%71, %c0_13, %c0_14] : memref<32x2x256xbf16, #tpu.memory_space<vmem>>, vector<1x2x128xbf16>
      %73 = vector.shape_cast %72 : vector<1x2x128xbf16> to vector<2x128xbf16>
      %74 = vector.shape_cast %70 : vector<2x128xbf16> to vector<1x2x128xbf16>
      tpu.vector_store %arg3[%71, %c0_13, %c0_14], %74 {strides = array<i32>} : memref<32x2x256xbf16, #tpu.memory_space<vmem>>, vector<1x2x128xbf16>,
      %75 = arith.truncf %69 : vector<2x128xf32> to vector<2x128xbf16>
      %76 = arith.index_cast %7 : i32 to index
      %c0_15 = arith.constant 0 : index
      %c128 = arith.constant 128 : index
      %77 = vector.load %arg3[%76, %c0_15, %c128] : memref<32x2x256xbf16, #tpu.memory_space<vmem>>, vector<1x2x128xbf16>
      %78 = vector.shape_cast %77 : vector<1x2x128xbf16> to vector<2x128xbf16>
      %79 = vector.shape_cast %75 : vector<2x128xbf16> to vector<1x2x128xbf16>
      tpu.vector_store %arg3[%76, %c0_15, %c128], %79 {strides = array<i32>} : memref<32x2x256xbf16, #tpu.memory_space<vmem>>, vector<1x2x128xbf16>,
      scf.yield %44, %69, %42, %67 : vector<2x128xf32>, vector<2x128xf32>, vector<2x128xf32>, vector<2x128xf32>
    }
    %c32_i32_0 = arith.constant 32 : i32
    return
  }
  func.func @transform_0(%arg0: i32) -> (i32, i32, i32) {
    %c0_i32 = arith.constant 0 : i32
    %c0_i32_0 = arith.constant 0 : i32
    %c0_i32_1 = arith.constant 0 : i32
    %c0_i32_2 = arith.constant 0 : i32
    return %c0_i32, %c0_i32_0, %c0_i32_1 : i32, i32, i32
  }
  func.func @transform_1(%arg0: i32) -> (i32, i32) {
    %c0_i32 = arith.constant 0 : i32
    %c0_i32_0 = arith.constant 0 : i32
    %c0_i32_1 = arith.constant 0 : i32
    return %c0_i32, %c0_i32_0 : i32, i32
  }
  func.func @transform_2(%arg0: i32) -> (i32, i32, i32) {
    %c0_i32 = arith.constant 0 : i32
    %c0_i32_0 = arith.constant 0 : i32
    %c0_i32_1 = arith.constant 0 : i32
    %c0_i32_2 = arith.constant 0 : i32
    return %c0_i32, %c0_i32_0, %c0_i32_1 : i32, i32, i32
  }
}

module attributes {stable_mosaic.version = 11 : i64} {
  func.func @_mm_bias_kernel(%arg0: i32, %arg1: memref<64x256xbf16, #tpu.memory_space<vmem>>, %arg2: memref<256x1024xbf16, #tpu.memory_space<vmem>>, %arg3: memref<1x1024xf32, #tpu.memory_space<vmem>>, %arg4: memref<64x1024xf32, #tpu.memory_space<vmem>>) attributes {dimension_semantics = [#tpu.dimension_semantics<parallel>], iteration_bounds = array<i64: 1>, scalar_prefetch = 0 : i64, scratch_operands = 0 : i64, tpu.core_type = #tpu.core_type<tc>, window_params = [{transform_indices = @transform_0, window_bounds = array<i64: 64, 256>}, {pipeline_mode = #tpu.pipeline_mode<synchronous>, transform_indices = @transform_1, window_bounds = array<i64: 256, 1024>}, {pipeline_mode = #tpu.pipeline_mode<synchronous>, transform_indices = @transform_2, window_bounds = array<i64: 1, 1024>}, {transform_indices = @transform_3, window_bounds = array<i64: 64, 1024>}]} {
    %c0 = arith.constant 0 : index
    %c0_0 = arith.constant 0 : index
    %0 = vector.load %arg1[%c0, %c0_0] : memref<64x256xbf16, #tpu.memory_space<vmem>>, vector<64x256xbf16>
    %c0_1 = arith.constant 0 : index
    %c0_2 = arith.constant 0 : index
    %1 = vector.load %arg2[%c0_1, %c0_2] : memref<256x1024xbf16, #tpu.memory_space<vmem>>, vector<256x1024xbf16>
    %cst = arith.constant dense<0.000000e+00> : vector<64x1024xf32>
    %2 = tpu.matmul %0, %1, %cst {dimension_numbers = #tpu.dot_dimension_numbers<[1], [0], [0], [1], [0, 0, 1, 1], [], []>} : vector<64x256xbf16>, vector<256x1024xbf16>, vector<64x1024xf32> -> vector<64x1024xf32>
    %c0_3 = arith.constant 0 : index
    %c0_4 = arith.constant 0 : index
    %3 = vector.load %arg3[%c0_3, %c0_4] : memref<1x1024xf32, #tpu.memory_space<vmem>>, vector<1x1024xf32>
    %4 = vector.broadcast %3 : vector<1x1024xf32> to vector<64x1024xf32>
    %5 = arith.addf %2, %4 : vector<64x1024xf32>
    %c0_5 = arith.constant 0 : index
    %c0_6 = arith.constant 0 : index
    %6 = vector.load %arg4[%c0_5, %c0_6] : memref<64x1024xf32, #tpu.memory_space<vmem>>, vector<64x1024xf32>
    tpu.vector_store %arg4[%c0_5, %c0_6], %5 {strides = array<i32>} : memref<64x1024xf32, #tpu.memory_space<vmem>>, vector<64x1024xf32>,
    return
  }
  func.func @transform_0(%arg0: i32) -> (i32, i32) {
    %c0_i32 = arith.constant 0 : i32
    %c0_i32_0 = arith.constant 0 : i32
    return %arg0, %c0_i32 : i32, i32
  }
  func.func @transform_1(%arg0: i32) -> (i32, i32) {
    %c0_i32 = arith.constant 0 : i32
    %c0_i32_0 = arith.constant 0 : i32
    %c0_i32_1 = arith.constant 0 : i32
    return %c0_i32, %c0_i32_0 : i32, i32
  }
  func.func @transform_2(%arg0: i32) -> (i32, i32) {
    %c0_i32 = arith.constant 0 : i32
    %c0_i32_0 = arith.constant 0 : i32
    %c0_i32_1 = arith.constant 0 : i32
    return %c0_i32, %c0_i32_0 : i32, i32
  }
  func.func @transform_3(%arg0: i32) -> (i32, i32) {
    %c0_i32 = arith.constant 0 : i32
    %c0_i32_0 = arith.constant 0 : i32
    return %arg0, %c0_i32 : i32, i32
  }
}

module attributes {stable_mosaic.version = 11 : i64} {
  func.func @_mm_bias_kernel(%arg0: i32, %arg1: memref<64x256xbf16, #tpu.memory_space<vmem>>, %arg2: memref<256x128xbf16, #tpu.memory_space<vmem>>, %arg3: memref<1x128xf32, #tpu.memory_space<vmem>>, %arg4: memref<64x128xf32, #tpu.memory_space<vmem>>) attributes {dimension_semantics = [#tpu.dimension_semantics<parallel>], iteration_bounds = array<i64: 1>, scalar_prefetch = 0 : i64, scratch_operands = 0 : i64, tpu.core_type = #tpu.core_type<tc>, window_params = [{transform_indices = @transform_0, window_bounds = array<i64: 64, 256>}, {pipeline_mode = #tpu.pipeline_mode<synchronous>, transform_indices = @transform_1, window_bounds = array<i64: 256, 128>}, {pipeline_mode = #tpu.pipeline_mode<synchronous>, transform_indices = @transform_2, window_bounds = array<i64: 1, 128>}, {transform_indices = @transform_3, window_bounds = array<i64: 64, 128>}]} {
    %c0 = arith.constant 0 : index
    %c0_0 = arith.constant 0 : index
    %0 = vector.load %arg1[%c0, %c0_0] : memref<64x256xbf16, #tpu.memory_space<vmem>>, vector<64x256xbf16>
    %c0_1 = arith.constant 0 : index
    %c0_2 = arith.constant 0 : index
    %1 = vector.load %arg2[%c0_1, %c0_2] : memref<256x128xbf16, #tpu.memory_space<vmem>>, vector<256x128xbf16>
    %cst = arith.constant dense<0.000000e+00> : vector<64x128xf32>
    %2 = tpu.matmul %0, %1, %cst {dimension_numbers = #tpu.dot_dimension_numbers<[1], [0], [0], [1], [0, 0, 1, 1], [], []>} : vector<64x256xbf16>, vector<256x128xbf16>, vector<64x128xf32> -> vector<64x128xf32>
    %c0_3 = arith.constant 0 : index
    %c0_4 = arith.constant 0 : index
    %3 = vector.load %arg3[%c0_3, %c0_4] : memref<1x128xf32, #tpu.memory_space<vmem>>, vector<1x128xf32>
    %4 = vector.broadcast %3 : vector<1x128xf32> to vector<64x128xf32>
    %5 = arith.addf %2, %4 : vector<64x128xf32>
    %c0_5 = arith.constant 0 : index
    %c0_6 = arith.constant 0 : index
    %6 = vector.load %arg4[%c0_5, %c0_6] : memref<64x128xf32, #tpu.memory_space<vmem>>, vector<64x128xf32>
    tpu.vector_store %arg4[%c0_5, %c0_6], %5 {strides = array<i32>} : memref<64x128xf32, #tpu.memory_space<vmem>>, vector<64x128xf32>,
    return
  }
  func.func @transform_0(%arg0: i32) -> (i32, i32) {
    %c0_i32 = arith.constant 0 : i32
    %c0_i32_0 = arith.constant 0 : i32
    return %arg0, %c0_i32 : i32, i32
  }
  func.func @transform_1(%arg0: i32) -> (i32, i32) {
    %c0_i32 = arith.constant 0 : i32
    %c0_i32_0 = arith.constant 0 : i32
    %c0_i32_1 = arith.constant 0 : i32
    return %c0_i32, %c0_i32_0 : i32, i32
  }
  func.func @transform_2(%arg0: i32) -> (i32, i32) {
    %c0_i32 = arith.constant 0 : i32
    %c0_i32_0 = arith.constant 0 : i32
    %c0_i32_1 = arith.constant 0 : i32
    return %c0_i32, %c0_i32_0 : i32, i32
  }
  func.func @transform_3(%arg0: i32) -> (i32, i32) {
    %c0_i32 = arith.constant 0 : i32
    %c0_i32_0 = arith.constant 0 : i32
    return %arg0, %c0_i32 : i32, i32
  }
}

</mosaic_0001>

<bundles_post_ra>
// kernel: horizonnet_forward.26
= control target key start
LH: loop header
LB: loop body
LE: loop exit
PB: predicated region body
PF: predicated region fallthrough
CT: control target
= control target key end

     0   :  { %s1829_s12 = smov 0   ;;  %s2028_s0 = inlined_call_operand.vmem [shape: bf16[4096,27], index: 0, kind: input, shape index: {}]   ;;  %s2029_s1 = inlined_call_operand.vmem [shape: bf16[27,128], index: 1, kind: input, shape index: {}]   ;;  %s2030_s2 = inlined_call_operand.vmem [shape: f32[1,128], index: 2, kind: input, shape index: {}]   ;;  %s2031_s3 = inlined_call_operand.vmem [shape: bf16[4096,128], index: 3, kind: output, shape index: {}]  }
   0x1 LB: > { %s1254_s13 = sadd.s32 4294967295, %s1806_s12   ;;  %p1258_p0 = scmp.ge.s32.totalorder %s1806_s12, 1  ;;  %s1806_s12 = sphi %s1829_s12, %s13_s12  }
   0x2   : > { %p138_p1 = scmp.lt.s32.totalorder %s1806_s12, 9 }
   0x4   : > { %p139_p2 = pnand %p1258_p0, %p138_p1 }
   0x5   : > { %v1766_v0 = vld [vmem:[%s2029_s1] sm:$0xff] (!%p139_p2)   ;;  %vm518_vm0 = vcmask (!%p139_p2), 1044480   ;;  %v1767_v1 = vld [vmem:[%s2029_s1 + $0x8] sm:$0x3f] (!%p139_p2)   ;;  %vm519_vm1 = vcmask (!%p139_p2), 1045504   ;;  %s1259_s18 = sshll.u32 (!%p139_p2), %s1254_s13, 6 }
   0x6   : > { %142 = sbr.rel (%p139_p2) target bundleno = 297 (0x129), region = 32  ;;  %1685 = vmatprep.subr.bf16.mxu0 (!%p139_p2), %v1766_v0  ;;  %1753 = vmatprep.subr.bf16.mxu1 (!%p139_p2), %v1766_v0  ;;  %v1808_v2 = vmov (!%p139_p2), 65535   ;;  %p163_p3 = scmp.lt.s32.totalorder (!%p139_p2), %s1259_s18, 511  ;;  %vm421_vm2 = vcmask (!%p139_p2), 220160   ;;  %v1920_v38 = vld [vmem:[%s2030_s2] ss:$0 sm:$0xff] (!%p139_p2) }
   0x7   : > { %1686 = vmatpush3.bf16.msra.mxu0 (!%p139_p2), %v1766_v0  ;;  %1755 = vmatpush3.bf16.msra.mxu1 (!%p139_p2), %v1766_v0  ;;  %v520_v3 = vsel (!%p139_p2), %vm518_vm0, 4294967295, %v1808_v2 }
   0x8   : > { %v521_v4 = vsel (!%p139_p2), %vm519_vm1, %v520_v3, 0 }
   0x9   : > { %v523_v5 = vand.u32 (!%p139_p2), %v1767_v1, %v521_v4 }
   0xb   : > { %1687 = vmatprep.subr.bf16.mxu0 (!%p139_p2), %v523_v5  ;;  %1754 = vmatprep.subr.bf16.mxu1 (!%p139_p2), %v523_v5 }
   0xc   : > { %1688 = vmatpush3.bf16.msra.mxu0 (!%p139_p2), %v523_v5  ;;  %1756 = vmatpush3.bf16.msra.mxu1 (!%p139_p2), %v523_v5 }
   0xd   : > { %s2033_s18 = smov (!%p163_p3, %s1259_s18), 511 }
   0xe   : > { %s1260_s19 = sshll.u32 %s2033_s18, 2 }
   0xf   : > { %s1851_s22 = scalar_lea.vmem %s2028_s0, %s1260_s19  ;;  %s1935_s27 = scalar_lea.vmem %s2031_s3, %s1260_s19 }
  0x10   : > { %v1768_v6 = vld [vmem:[%s1851_s22] sm:$0xff]   ;;  %v1770_v8 = vld [vmem:[%s1851_s22 + $0x8] sm:$0xff]   ;;  %v1772_v10 = vld [vmem:[%s1851_s22 + $0x10] sm:$0xff]  }
  0x11   : > { %v1769_v7 = vld [vmem:[%s1851_s22 + $0x80] sm:$0xff]   ;;  %1689 = vmatprep.mubr.msk.bf16.mxu0 %vm421_vm2, %v1768_v6  ;;  %v1771_v9 = vld [vmem:[%s1851_s22 + $0x88] sm:$0xff]   ;;  %v1773_v11 = vld [vmem:[%s1851_s22 + $0x90] sm:$0xff]  }
  0x12   : > { %1721 = vmatprep.mubr.msk.bf16.mxu1 %vm421_vm2, %v1769_v7  ;;  %1690 = vmatmul.mubr.msk.bf16.vlgmr.msra.gmra.mrb[0].mxu0 %vm421_vm2, %v1770_v8  ;;  %v1774_v12 = vld [vmem:[%s1851_s22 + $0x18] sm:$0xff]   ;;  %v1776_v14 = vld [vmem:[%s1851_s22 + $0x20] sm:$0xff]   ;;  %v1778_v16 = vld [vmem:[%s1851_s22 + $0x28] sm:$0xff]  }
  0x13   : > { %1722 = vmatmul.mubr.msk.bf16.vlgmr.msra.gmra.mrb[0].mxu1 %vm421_vm2, %v1771_v9  ;;  %1693 = vmatprep.mubr.msk.bf16.mxu0 %vm421_vm2, %v1772_v10  ;;  %v1775_v13 = vld [vmem:[%s1851_s22 + $0x98] sm:$0xff]   ;;  %v1777_v15 = vld [vmem:[%s1851_s22 + $0xa0] sm:$0xff]   ;;  %v1779_v17 = vld [vmem:[%s1851_s22 + $0xa8] sm:$0xff]  }
  0x14   : > { %1725 = vmatprep.mubr.msk.bf16.mxu1 %vm421_vm2, %v1773_v11  ;;  %v1780_v18 = vld [vmem:[%s1851_s22 + $0x30] sm:$0xff]   ;;  %v1782_v20 = vld [vmem:[%s1851_s22 + $0x38] sm:$0xff]   ;;  %v1784_v22 = vld [vmem:[%s1851_s22 + $0x40] sm:$0xff]  }
  0x15   : > { %v1781_v19 = vld [vmem:[%s1851_s22 + $0xb0] sm:$0xff]   ;;  %v1783_v21 = vld [vmem:[%s1851_s22 + $0xb8] sm:$0xff]   ;;  %v1785_v23 = vld [vmem:[%s1851_s22 + $0xc0] sm:$0xff]  }
  0x16   : > { %v1786_v24 = vld [vmem:[%s1851_s22 + $0x48] sm:$0xff]   ;;  %v1788_v26 = vld [vmem:[%s1851_s22 + $0x50] sm:$0xff]   ;;  %v1790_v28 = vld [vmem:[%s1851_s22 + $0x58] sm:$0xff]  }
  0x17   : > { %v1787_v25 = vld [vmem:[%s1851_s22 + $0xc8] sm:$0xff]   ;;  %v1789_v27 = vld [vmem:[%s1851_s22 + $0xd0] sm:$0xff]   ;;  %v1791_v29 = vld [vmem:[%s1851_s22 + $0xd8] sm:$0xff]  }
  0x18   : > { %v1792_v30 = vld [vmem:[%s1851_s22 + $0x60] sm:$0xff]   ;;  %v1794_v32 = vld [vmem:[%s1851_s22 + $0x68] sm:$0xff]   ;;  %v1796_v34 = vld [vmem:[%s1851_s22 + $0x70] sm:$0xff]  }
  0x19   : > { %v1793_v31 = vld [vmem:[%s1851_s22 + $0xe0] sm:$0xff]   ;;  %v1795_v33 = vld [vmem:[%s1851_s22 + $0xe8] sm:$0xff]   ;;  %v1797_v35 = vld [vmem:[%s1851_s22 + $0xf0] sm:$0xff]  }
  0x1a   : > { %1694 = vmatmul.mubr.msk.bf16.gmra.mrb[4].mxu0 %vm421_vm2, %v1774_v12  ;;  %v1798_v36 = vld [vmem:[%s1851_s22 + $0x78] sm:$0xff]  }
  0x1b   : > { %1726 = vmatmul.mubr.msk.bf16.gmra.mrb[4].mxu1 %vm421_vm2, %v1775_v13  ;;  %1697 = vmatprep.mubr.msk.bf16.mxu0 %vm421_vm2, %v1776_v14  ;;  %v1799_v37 = vld [vmem:[%s1851_s22 + $0xf8] sm:$0xff]  }
  0x1c   : > { %1729 = vmatprep.mubr.msk.bf16.mxu1 %vm421_vm2, %v1777_v15 }
  0x22   : > { %1698 = vmatmul.mubr.msk.bf16.gmra.mrb[8].mxu0 %vm421_vm2, %v1778_v16 }
  0x23   : > { %1730 = vmatmul.mubr.msk.bf16.gmra.mrb[8].mxu1 %vm421_vm2, %v1779_v17  ;;  %1701 = vmatprep.mubr.msk.bf16.mxu0 %vm421_vm2, %v1780_v18 }
  0x24   : > { %1733 = vmatprep.mubr.msk.bf16.mxu1 %vm421_vm2, %v1781_v19 }
  0x2a   : > { %1702 = vmatmul.mubr.msk.bf16.gmra.mrb[12].mxu0 %vm421_vm2, %v1782_v20 }
  0x2b   : > { %1734 = vmatmul.mubr.msk.bf16.gmra.mrb[12].mxu1 %vm421_vm2, %v1783_v21  ;;  %1705 = vmatprep.mubr.msk.bf16.mxu0 %vm421_vm2, %v1784_v22 }
  0x2c   : > { %1737 = vmatprep.mubr.msk.bf16.mxu1 %vm421_vm2, %v1785_v23 }
  0x32   : > { %1706 = vmatmul.mubr.msk.bf16.gmra.mrb[16].mxu0 %vm421_vm2, %v1786_v24 }
  0x33   : > { %1738 = vmatmul.mubr.msk.bf16.gmra.mrb[16].mxu1 %vm421_vm2, %v1787_v25  ;;  %1709 = vmatprep.mubr.msk.bf16.mxu0 %vm421_vm2, %v1788_v26 }
  0x34   : > { %1741 = vmatprep.mubr.msk.bf16.mxu1 %vm421_vm2, %v1789_v27 }
  0x3a   : > { %1710 = vmatmul.mubr.msk.bf16.gmra.mrb[20].mxu0 %vm421_vm2, %v1790_v28 }
  0x3b   : > { %1742 = vmatmul.mubr.msk.bf16.gmra.mrb[20].mxu1 %vm421_vm2, %v1791_v29  ;;  %1713 = vmatprep.mubr.msk.bf16.mxu0 %vm421_vm2, %v1792_v30 }
  0x3c   : > { %1745 = vmatprep.mubr.msk.bf16.mxu1 %vm421_vm2, %v1793_v31 }
  0x42   : > { %1714 = vmatmul.mubr.msk.bf16.gmra.mrb[24].mxu0 %vm421_vm2, %v1794_v32 }
  0x43   : > { %1746 = vmatmul.mubr.msk.bf16.gmra.mrb[24].mxu1 %vm421_vm2, %v1795_v33  ;;  %1717 = vmatprep.mubr.msk.bf16.mxu0 %vm421_vm2, %v1796_v34 }
  0x44   : > { %1749 = vmatprep.mubr.msk.bf16.mxu1 %vm421_vm2, %v1797_v35 }
  0x4a   : > { %1718 = vmatmul.mubr.msk.bf16.gmra.mrb[28].mxu0 %vm421_vm2, %v1798_v36 }
  0x4b   : > { %1750 = vmatmul.mubr.msk.bf16.gmra.mrb[28].mxu1 %vm421_vm2, %v1799_v37 }
  0xe5   : > { %v1691_v39 = vpop.f32.mrb[0].mxu0 }
  0xe6   : > { %v568_v40 = vadd.f32 %v1691_v39, %v1920_v38  ;;  %v1723_v41 = vpop.f32.mrb[0].mxu1  ;;  %v559_v42 = vpop.f32.mrb[1].mxu0 }
  0xe7   : > { %v696_v43 = vadd.f32 %v1723_v41, %v1920_v38  ;;  %v560_v44 = vadd.f32 %v1920_v38, %v559_v42  ;;  %v687_v45 = vpop.f32.mrb[1].mxu1  ;;  %v1692_v46 = vpop.f32.mrb[2].mxu0 }
  0xe8   : > { %v688_v47 = vadd.f32 %v1920_v38, %v687_v45  ;;  %v571_v48 = vadd.f32 %v1692_v46, %v1920_v38  ;;  %v1724_v49 = vpop.f32.mrb[2].mxu1  ;;  %v562_v50 = vpop.f32.mrb[3].mxu0  ;;  %v816_v54 = vmax.f32 %v568_v40, 0.0 }
  0xe9   : > { %v699_v51 = vadd.f32 %v1724_v49, %v1920_v38  ;;  %v563_v52 = vadd.f32 %v1920_v38, %v562_v50  ;;  %v690_v53 = vpop.f32.mrb[3].mxu1  ;;  %v848_v57 = vmax.f32 %v696_v43, 0.0  ;;  %v814_v58 = vmax.f32 %v560_v44, 0.0 }
  0xea   : > { %v817_v55 = vmax.f32 %v571_v48, 0.0  ;;  %v691_v56 = vadd.f32 %v1920_v38, %v690_v53  ;;  %v846_v61 = vmax.f32 %v688_v47, 0.0 }
  0xeb   : > { %v849_v59 = vmax.f32 %v699_v51, 0.0  ;;  %v815_v60 = vmax.f32 %v563_v52, 0.0 }
  0xec   : > { %v1468_v62 = vpack.c.bf16 %v817_v55, %v816_v54  ;;  %v847_v63 = vmax.f32 %v691_v56, 0.0 }
  0xed   : > { %v1548_v0 = vpack.c.bf16 %v849_v59, %v848_v57  ;;  %v1463_v1 = vpack.c.bf16 %v815_v60, %v814_v58  ;;  %v1695_v2 = vpop.f32.mrb[4].mxu0 }
  0xee   : > { %1620 = vst [vmem:[%s1935_s27 + $0x8] sm:$0xff] %v1468_v62   ;;  %v1543_v3 = vpack.c.bf16 %v847_v63, %v846_v61  ;;  %v584_v4 = vadd.f32 %v1695_v2, %v1920_v38  ;;  %v1727_v5 = vpop.f32.mrb[4].mxu1  ;;  %v575_v6 = vpop.f32.mrb[5].mxu0 }
  0xef   : > { %1636 = vst [vmem:[%s1935_s27 + $0x88] sm:$0xff] %v1548_v0   ;;  %1464 = vst [vmem:[%s1935_s27] sm:$0xff] %v1463_v1   ;;  %v712_v7 = vadd.f32 %v1727_v5, %v1920_v38  ;;  %v576_v8 = vadd.f32 %v1920_v38, %v575_v6  ;;  %v703_v9 = vpop.f32.mrb[5].mxu1  ;;  %v1696_v10 = vpop.f32.mrb[6].mxu0 }
  0xf0   : > { %1635 = vst [vmem:[%s1935_s27 + $0x80] sm:$0xff] %v1543_v3   ;;  %v704_v11 = vadd.f32 %v1920_v38, %v703_v9  ;;  %v587_v12 = vadd.f32 %v1696_v10, %v1920_v38  ;;  %v1728_v13 = vpop.f32.mrb[6].mxu1  ;;  %v578_v14 = vpop.f32.mrb[7].mxu0  ;;  %v820_v18 = vmax.f32 %v584_v4, 0.0 }
  0xf1   : > { %v715_v15 = vadd.f32 %v1728_v13, %v1920_v38  ;;  %v579_v16 = vadd.f32 %v1920_v38, %v578_v14  ;;  %v706_v17 = vpop.f32.mrb[7].mxu1  ;;  %v852_v21 = vmax.f32 %v712_v7, 0.0  ;;  %v818_v22 = vmax.f32 %v576_v8, 0.0 }
  0xf2   : > { %v821_v19 = vmax.f32 %v587_v12, 0.0  ;;  %v707_v20 = vadd.f32 %v1920_v38, %v706_v17  ;;  %v850_v25 = vmax.f32 %v704_v11, 0.0 }
  0xf3   : > { %v853_v23 = vmax.f32 %v715_v15, 0.0  ;;  %v819_v24 = vmax.f32 %v579_v16, 0.0 }
  0xf4   : > { %v1478_v26 = vpack.c.bf16 %v821_v19, %v820_v18  ;;  %v851_v27 = vmax.f32 %v707_v20, 0.0 }
  0xf5   : > { %v1558_v28 = vpack.c.bf16 %v853_v23, %v852_v21  ;;  %v1473_v29 = vpack.c.bf16 %v819_v24, %v818_v22  ;;  %v1699_v30 = vpop.f32.mrb[8].mxu0 }
  0xf6   : > { %1622 = vst [vmem:[%s1935_s27 + $0x18] sm:$0xff] %v1478_v26   ;;  %v1553_v31 = vpack.c.bf16 %v851_v27, %v850_v25  ;;  %v600_v32 = vadd.f32 %v1699_v30, %v1920_v38  ;;  %v1731_v33 = vpop.f32.mrb[8].mxu1  ;;  %v591_v34 = vpop.f32.mrb[9].mxu0 }
  0xf7   : > { %1638 = vst [vmem:[%s1935_s27 + $0x98] sm:$0xff] %v1558_v28   ;;  %1621 = vst [vmem:[%s1935_s27 + $0x10] sm:$0xff] %v1473_v29   ;;  %v728_v35 = vadd.f32 %v1731_v33, %v1920_v38  ;;  %v592_v36 = vadd.f32 %v1920_v38, %v591_v34  ;;  %v719_v37 = vpop.f32.mrb[9].mxu1  ;;  %v1700_v39 = vpop.f32.mrb[10].mxu0 }
  0xf8   : > { %1637 = vst [vmem:[%s1935_s27 + $0x90] sm:$0xff] %v1553_v31   ;;  %v720_v40 = vadd.f32 %v1920_v38, %v719_v37  ;;  %v603_v41 = vadd.f32 %v1700_v39, %v1920_v38  ;;  %v1732_v42 = vpop.f32.mrb[10].mxu1  ;;  %v594_v43 = vpop.f32.mrb[11].mxu0  ;;  %v824_v47 = vmax.f32 %v600_v32, 0.0 }
  0xf9   : > { %v731_v44 = vadd.f32 %v1732_v42, %v1920_v38  ;;  %v595_v45 = vadd.f32 %v1920_v38, %v594_v43  ;;  %v722_v46 = vpop.f32.mrb[11].mxu1  ;;  %v856_v50 = vmax.f32 %v728_v35, 0.0  ;;  %v822_v51 = vmax.f32 %v592_v36, 0.0 }
  0xfa   : > { %v825_v48 = vmax.f32 %v603_v41, 0.0  ;;  %v723_v49 = vadd.f32 %v1920_v38, %v722_v46  ;;  %v854_v54 = vmax.f32 %v720_v40, 0.0 }
  0xfb   : > { %v857_v52 = vmax.f32 %v731_v44, 0.0  ;;  %v823_v53 = vmax.f32 %v595_v45, 0.0 }
  0xfc   : > { %v1488_v55 = vpack.c.bf16 %v825_v48, %v824_v47  ;;  %v855_v56 = vmax.f32 %v723_v49, 0.0 }
  0xfd   : > { %v1568_v57 = vpack.c.bf16 %v857_v52, %v856_v50  ;;  %v1483_v58 = vpack.c.bf16 %v823_v53, %v822_v51  ;;  %v1703_v59 = vpop.f32.mrb[12].mxu0 }
  0xfe   : > { %1624 = vst [vmem:[%s1935_s27 + $0x28] sm:$0xff] %v1488_v55   ;;  %v1563_v60 = vpack.c.bf16 %v855_v56, %v854_v54  ;;  %v616_v61 = vadd.f32 %v1703_v59, %v1920_v38  ;;  %v1735_v62 = vpop.f32.mrb[12].mxu1  ;;  %v607_v63 = vpop.f32.mrb[13].mxu0 }
  0xff   : > { %1640 = vst [vmem:[%s1935_s27 + $0xa8] sm:$0xff] %v1568_v57   ;;  %1623 = vst [vmem:[%s1935_s27 + $0x20] sm:$0xff] %v1483_v58   ;;  %v744_v0 = vadd.f32 %v1735_v62, %v1920_v38  ;;  %v608_v1 = vadd.f32 %v1920_v38, %v607_v63  ;;  %v735_v2 = vpop.f32.mrb[13].mxu1  ;;  %v1704_v3 = vpop.f32.mrb[14].mxu0 }
 0x100   : > { %1639 = vst [vmem:[%s1935_s27 + $0xa0] sm:$0xff] %v1563_v60   ;;  %v736_v4 = vadd.f32 %v1920_v38, %v735_v2  ;;  %v619_v5 = vadd.f32 %v1704_v3, %v1920_v38  ;;  %v1736_v6 = vpop.f32.mrb[14].mxu1  ;;  %v610_v7 = vpop.f32.mrb[15].mxu0  ;;  %v828_v11 = vmax.f32 %v616_v61, 0.0 }
 0x101   : > { %v747_v8 = vadd.f32 %v1736_v6, %v1920_v38  ;;  %v611_v9 = vadd.f32 %v1920_v38, %v610_v7  ;;  %v738_v10 = vpop.f32.mrb[15].mxu1  ;;  %v860_v14 = vmax.f32 %v744_v0, 0.0  ;;  %v826_v15 = vmax.f32 %v608_v1, 0.0 }
 0x102   : > { %v829_v12 = vmax.f32 %v619_v5, 0.0  ;;  %v739_v13 = vadd.f32 %v1920_v38, %v738_v10  ;;  %v858_v18 = vmax.f32 %v736_v4, 0.0 }
 0x103   : > { %v861_v16 = vmax.f32 %v747_v8, 0.0  ;;  %v827_v17 = vmax.f32 %v611_v9, 0.0 }
 0x104   : > { %v1498_v19 = vpack.c.bf16 %v829_v12, %v828_v11  ;;  %v859_v20 = vmax.f32 %v739_v13, 0.0 }
 0x105   : > { %v1578_v21 = vpack.c.bf16 %v861_v16, %v860_v14  ;;  %v1493_v22 = vpack.c.bf16 %v827_v17, %v826_v15  ;;  %v1707_v23 = vpop.f32.mrb[16].mxu0 }
 0x106   : > { %1626 = vst [vmem:[%s1935_s27 + $0x38] sm:$0xff] %v1498_v19   ;;  %v1573_v24 = vpack.c.bf16 %v859_v20, %v858_v18  ;;  %v632_v25 = vadd.f32 %v1707_v23, %v1920_v38  ;;  %v1739_v26 = vpop.f32.mrb[16].mxu1  ;;  %v623_v27 = vpop.f32.mrb[17].mxu0 }
 0x107   : > { %1642 = vst [vmem:[%s1935_s27 + $0xb8] sm:$0xff] %v1578_v21   ;;  %1625 = vst [vmem:[%s1935_s27 + $0x30] sm:$0xff] %v1493_v22   ;;  %v760_v28 = vadd.f32 %v1739_v26, %v1920_v38  ;;  %v624_v29 = vadd.f32 %v1920_v38, %v623_v27  ;;  %v751_v30 = vpop.f32.mrb[17].mxu1  ;;  %v1708_v31 = vpop.f32.mrb[18].mxu0 }
 0x108   : > { %1641 = vst [vmem:[%s1935_s27 + $0xb0] sm:$0xff] %v1573_v24   ;;  %v752_v32 = vadd.f32 %v1920_v38, %v751_v30  ;;  %v635_v33 = vadd.f32 %v1708_v31, %v1920_v38  ;;  %v1740_v34 = vpop.f32.mrb[18].mxu1  ;;  %v626_v35 = vpop.f32.mrb[19].mxu0  ;;  %v832_v40 = vmax.f32 %v632_v25, 0.0 }
 0x109   : > { %v763_v36 = vadd.f32 %v1740_v34, %v1920_v38  ;;  %v627_v37 = vadd.f32 %v1920_v38, %v626_v35  ;;  %v754_v39 = vpop.f32.mrb[19].mxu1  ;;  %v864_v43 = vmax.f32 %v760_v28, 0.0  ;;  %v830_v44 = vmax.f32 %v624_v29, 0.0 }
 0x10a   : > { %v833_v41 = vmax.f32 %v635_v33, 0.0  ;;  %v755_v42 = vadd.f32 %v1920_v38, %v754_v39  ;;  %v862_v47 = vmax.f32 %v752_v32, 0.0 }
 0x10b   : > { %v865_v45 = vmax.f32 %v763_v36, 0.0  ;;  %v831_v46 = vmax.f32 %v627_v37, 0.0 }
 0x10c   : > { %v1508_v48 = vpack.c.bf16 %v833_v41, %v832_v40  ;;  %v863_v49 = vmax.f32 %v755_v42, 0.0 }
 0x10d   : > { %v1588_v50 = vpack.c.bf16 %v865_v45, %v864_v43  ;;  %v1503_v51 = vpack.c.bf16 %v831_v46, %v830_v44  ;;  %v1711_v52 = vpop.f32.mrb[20].mxu0 }
 0x10e   : > { %1628 = vst [vmem:[%s1935_s27 + $0x48] sm:$0xff] %v1508_v48   ;;  %v1583_v53 = vpack.c.bf16 %v863_v49, %v862_v47  ;;  %v648_v54 = vadd.f32 %v1711_v52, %v1920_v38  ;;  %v1743_v55 = vpop.f32.mrb[20].mxu1  ;;  %v639_v56 = vpop.f32.mrb[21].mxu0 }
 0x10f   : > { %1644 = vst [vmem:[%s1935_s27 + $0xc8] sm:$0xff] %v1588_v50   ;;  %1627 = vst [vmem:[%s1935_s27 + $0x40] sm:$0xff] %v1503_v51   ;;  %v776_v57 = vadd.f32 %v1743_v55, %v1920_v38  ;;  %v640_v58 = vadd.f32 %v1920_v38, %v639_v56  ;;  %v767_v59 = vpop.f32.mrb[21].mxu1  ;;  %v1712_v60 = vpop.f32.mrb[22].mxu0 }
 0x110   : > { %1643 = vst [vmem:[%s1935_s27 + $0xc0] sm:$0xff] %v1583_v53   ;;  %v768_v61 = vadd.f32 %v1920_v38, %v767_v59  ;;  %v651_v62 = vadd.f32 %v1712_v60, %v1920_v38  ;;  %v1744_v63 = vpop.f32.mrb[22].mxu1  ;;  %v642_v0 = vpop.f32.mrb[23].mxu0  ;;  %v836_v4 = vmax.f32 %v648_v54, 0.0 }
 0x111   : > { %v779_v1 = vadd.f32 %v1744_v63, %v1920_v38  ;;  %v643_v2 = vadd.f32 %v1920_v38, %v642_v0  ;;  %v770_v3 = vpop.f32.mrb[23].mxu1  ;;  %v868_v7 = vmax.f32 %v776_v57, 0.0  ;;  %v834_v8 = vmax.f32 %v640_v58, 0.0 }
 0x112   : > { %v837_v5 = vmax.f32 %v651_v62, 0.0  ;;  %v771_v6 = vadd.f32 %v1920_v38, %v770_v3  ;;  %v866_v11 = vmax.f32 %v768_v61, 0.0 }
 0x113   : > { %v869_v9 = vmax.f32 %v779_v1, 0.0  ;;  %v835_v10 = vmax.f32 %v643_v2, 0.0 }
 0x114   : > { %v1518_v12 = vpack.c.bf16 %v837_v5, %v836_v4  ;;  %v867_v13 = vmax.f32 %v771_v6, 0.0 }
 0x115   : > { %v1598_v14 = vpack.c.bf16 %v869_v9, %v868_v7  ;;  %v1513_v15 = vpack.c.bf16 %v835_v10, %v834_v8  ;;  %v1715_v16 = vpop.f32.mrb[24].mxu0 }
 0x116   : > { %1630 = vst [vmem:[%s1935_s27 + $0x58] sm:$0xff] %v1518_v12   ;;  %v1593_v17 = vpack.c.bf16 %v867_v13, %v866_v11  ;;  %v664_v18 = vadd.f32 %v1715_v16, %v1920_v38  ;;  %v1747_v19 = vpop.f32.mrb[24].mxu1  ;;  %v655_v20 = vpop.f32.mrb[25].mxu0 }
 0x117   : > { %1646 = vst [vmem:[%s1935_s27 + $0xd8] sm:$0xff] %v1598_v14   ;;  %1629 = vst [vmem:[%s1935_s27 + $0x50] sm:$0xff] %v1513_v15   ;;  %v792_v21 = vadd.f32 %v1747_v19, %v1920_v38  ;;  %v656_v22 = vadd.f32 %v1920_v38, %v655_v20  ;;  %v783_v23 = vpop.f32.mrb[25].mxu1  ;;  %v1716_v24 = vpop.f32.mrb[26].mxu0 }
 0x118   : > { %1645 = vst [vmem:[%s1935_s27 + $0xd0] sm:$0xff] %v1593_v17   ;;  %v784_v25 = vadd.f32 %v1920_v38, %v783_v23  ;;  %v667_v26 = vadd.f32 %v1716_v24, %v1920_v38  ;;  %v1748_v27 = vpop.f32.mrb[26].mxu1  ;;  %v658_v28 = vpop.f32.mrb[27].mxu0  ;;  %v840_v32 = vmax.f32 %v664_v18, 0.0 }
 0x119   : > { %v795_v29 = vadd.f32 %v1748_v27, %v1920_v38  ;;  %v659_v30 = vadd.f32 %v1920_v38, %v658_v28  ;;  %v786_v31 = vpop.f32.mrb[27].mxu1  ;;  %v872_v35 = vmax.f32 %v792_v21, 0.0  ;;  %v838_v36 = vmax.f32 %v656_v22, 0.0 }
 0x11a   : > { %v841_v33 = vmax.f32 %v667_v26, 0.0  ;;  %v787_v34 = vadd.f32 %v1920_v38, %v786_v31  ;;  %v870_v40 = vmax.f32 %v784_v25, 0.0 }
 0x11b   : > { %v873_v37 = vmax.f32 %v795_v29, 0.0  ;;  %v839_v39 = vmax.f32 %v659_v30, 0.0 }
 0x11c   : > { %v1528_v41 = vpack.c.bf16 %v841_v33, %v840_v32  ;;  %v871_v42 = vmax.f32 %v787_v34, 0.0 }
 0x11d   : > { %v1608_v43 = vpack.c.bf16 %v873_v37, %v872_v35  ;;  %v1523_v44 = vpack.c.bf16 %v839_v39, %v838_v36  ;;  %v1719_v45 = vpop.f32.mrb[28].mxu0 }
 0x11e   : > { %1632 = vst [vmem:[%s1935_s27 + $0x68] sm:$0xff] %v1528_v41   ;;  %v1603_v46 = vpack.c.bf16 %v871_v42, %v870_v40  ;;  %v680_v47 = vadd.f32 %v1719_v45, %v1920_v38  ;;  %v1751_v48 = vpop.f32.mrb[28].mxu1  ;;  %v671_v49 = vpop.f32.mrb[29].mxu0 }
 0x11f   : > { %1648 = vst [vmem:[%s1935_s27 + $0xe8] sm:$0xff] %v1608_v43   ;;  %1631 = vst [vmem:[%s1935_s27 + $0x60] sm:$0xff] %v1523_v44   ;;  %v808_v50 = vadd.f32 %v1751_v48, %v1920_v38  ;;  %v672_v51 = vadd.f32 %v1920_v38, %v671_v49  ;;  %v799_v52 = vpop.f32.mrb[29].mxu1  ;;  %v1720_v53 = vpop.f32.mrb[30].mxu0 }
 0x120   : > { %1647 = vst [vmem:[%s1935_s27 + $0xe0] sm:$0xff] %v1603_v46   ;;  %v800_v54 = vadd.f32 %v1920_v38, %v799_v52  ;;  %v683_v55 = vadd.f32 %v1720_v53, %v1920_v38  ;;  %v1752_v56 = vpop.f32.mrb[30].mxu1  ;;  %v674_v57 = vpop.f32.mrb[31].mxu0  ;;  %v844_v61 = vmax.f32 %v680_v47, 0.0 }
 0x121   : > { %v811_v58 = vadd.f32 %v1752_v56, %v1920_v38  ;;  %v675_v59 = vadd.f32 %v1920_v38, %v674_v57  ;;  %v802_v60 = vpop.f32.mrb[31].mxu1  ;;  %v876_v0 = vmax.f32 %v808_v50, 0.0  ;;  %v842_v1 = vmax.f32 %v672_v51, 0.0 }
 0x122   : > { %v845_v62 = vmax.f32 %v683_v55, 0.0  ;;  %v803_v63 = vadd.f32 %v1920_v38, %v802_v60  ;;  %v874_v4 = vmax.f32 %v800_v54, 0.0 }
 0x123   : > { %v877_v2 = vmax.f32 %v811_v58, 0.0  ;;  %v843_v3 = vmax.f32 %v675_v59, 0.0 }
 0x124   : > { %v1538_v5 = vpack.c.bf16 %v845_v62, %v844_v61  ;;  %v875_v6 = vmax.f32 %v803_v63, 0.0 }
 0x125   : > { %v1618_v7 = vpack.c.bf16 %v877_v2, %v876_v0  ;;  %v1533_v8 = vpack.c.bf16 %v843_v3, %v842_v1 }
 0x126   : > { %1634 = vst [vmem:[%s1935_s27 + $0x78] sm:$0xff] %v1538_v5   ;;  %v1613_v9 = vpack.c.bf16 %v875_v6, %v874_v4 }
 0x127   : > { %1650 = vst [vmem:[%s1935_s27 + $0xf8] sm:$0xff] %v1618_v7   ;;  %1633 = vst [vmem:[%s1935_s27 + $0x70] sm:$0xff] %v1533_v8  }
 0x128   : > { %1649 = vst [vmem:[%s1935_s27 + $0xf0] sm:$0xff] %v1613_v9  }
 0x129 PF: > { %s13_s12 = sadd.s32 1, %s1806_s12  }
 0x12a   : > { %p10_p4 = scmp.ge.s32.totalorder %s13_s12, 10  }
 0x12c   :  { %12 = sbr.rel (!%p10_p4) target bundleno = 1 (0x1), region = 62 }

// kernel: horizonnet_forward.27
= control target key start
LH: loop header
LB: loop body
LE: loop exit
PB: predicated region body
PF: predicated region fallthrough
CT: control target
= control target key end

     0   :  { %s1868_s12 = smov 0   ;;  %s2076_s0 = inlined_call_operand.vmem [shape: bf16[1024,72], index: 0, kind: input, shape index: {}]   ;;  %s2077_s1 = inlined_call_operand.vmem [shape: bf16[72,128], index: 1, kind: input, shape index: {}]   ;;  %s2078_s2 = inlined_call_operand.vmem [shape: f32[1,128], index: 2, kind: input, shape index: {}]   ;;  %s2079_s3 = inlined_call_operand.vmem [shape: bf16[1024,128], index: 3, kind: output, shape index: {}]  }
   0x1 LB: > { %s1272_s13 = sadd.s32 4294967295, %s1846_s12   ;;  %p1276_p0 = scmp.ge.s32.totalorder %s1846_s12, 1  ;;  %s1846_s12 = sphi %s1868_s12, %s13_s12  }
   0x2   : > { %p138_p1 = scmp.lt.s32.totalorder %s1846_s12, 3 }
   0x4   : > { %p139_p2 = pnand %p1276_p0, %p138_p1 }
   0x5   : > { %v1803_v0 = vld [vmem:[%s2077_s1] sm:$0xff] (!%p139_p2)   ;;  %v1804_v1 = vld [vmem:[%s2077_s1 + $0x8] sm:$0xff] (!%p139_p2)   ;;  %s1277_s18 = sshll.u32 (!%p139_p2), %s1272_s13, 6  ;;  %v1805_v2 = vld [vmem:[%s2077_s1 + $0x10] sm:$0xff] (!%p139_p2)   ;;  %vm442_vm0 = vcmask (!%p139_p2), 588800   ;;  %vm539_vm1 = vcmask (!%p139_p2), 1043456  }
   0x6   : > { %142 = sbr.rel (%p139_p2) target bundleno = 304 (0x130), region = 32  ;;  %1709 = vmatprep.subr.bf16.mxu0 (!%p139_p2), %v1803_v0  ;;  %1783 = vmatprep.subr.bf16.mxu1 (!%p139_p2), %v1803_v0  ;;  %p163_p3 = scmp.lt.s32.totalorder (!%p139_p2), %s1277_s18, 127  ;;  %v1806_v3 = vld [vmem:[%s2077_s1 + $0x18] sm:$0xff] (!%p139_p2)   ;;  %v1807_v6 = vld [vmem:[%s2077_s1 + $0x20] ss:$0 sps:$4 sm:$0xff] (!%p139_p2)  }
   0x7   : > { %1710 = vmatpush3.bf16.msra.mxu0 (!%p139_p2), %v1803_v0  ;;  %1788 = vmatpush3.bf16.msra.mxu1 (!%p139_p2), %v1803_v0  ;;  %v541_v7 = vsel (!%p139_p2), %vm539_vm1, %v1807_v6, 0  ;;  %v1968_v38 = vld [vmem:[%s2078_s2] ss:$0 sm:$0xff] (!%p139_p2) }
   0x8   : > { %1711 = vmatprep.subr.bf16.mxu0 (!%p139_p2), %v1804_v1  ;;  %1784 = vmatprep.subr.bf16.mxu1 (!%p139_p2), %v1804_v1 }
   0xb   : > { %1712 = vmatpush3.bf16.msra.mxu0 (!%p139_p2), %v1804_v1  ;;  %1789 = vmatpush3.bf16.msra.mxu1 (!%p139_p2), %v1804_v1 }
   0xc   : > { %1713 = vmatprep.subr.bf16.mxu0 (!%p139_p2), %v1805_v2  ;;  %1785 = vmatprep.subr.bf16.mxu1 (!%p139_p2), %v1805_v2 }
   0xd   : > { %s2081_s18 = smov (!%p163_p3, %s1277_s18), 127 }
   0xe   : > { %s1278_s21 = sshll.u32 %s2081_s18, 2 }
   0xf   : > { %s1896_s26 = scalar_lea.vmem %s2076_s0, %s1278_s21  ;;  %1714 = vmatpush3.bf16.msra.mxu0 %v1805_v2  ;;  %1790 = vmatpush3.bf16.msra.mxu1 %v1805_v2  ;;  %s1983_s6 = scalar_lea.vmem %s2079_s3, %s1278_s21 }
  0x10   : > { %v1808_v4 = vld [vmem:[%s1896_s26] sm:$0xff]   ;;  %1715 = vmatprep.subr.bf16.mxu0 %v1806_v3  ;;  %1786 = vmatprep.subr.bf16.mxu1 %v1806_v3  ;;  %v1810_v8 = vld [vmem:[%s1896_s26 + $0x8] sm:$0xff]   ;;  %v1812_v10 = vld [vmem:[%s1896_s26 + $0x10] sm:$0xff]  }
  0x11   : > { %v1809_v5 = vld [vmem:[%s1896_s26 + $0x80] sm:$0xff]   ;;  %1719 = vmatprep.mubr.msk.bf16.mxu0 %vm442_vm0, %v1808_v4  ;;  %v1811_v9 = vld [vmem:[%s1896_s26 + $0x88] sm:$0xff]   ;;  %v1813_v11 = vld [vmem:[%s1896_s26 + $0x90] sm:$0xff]  }
  0x12   : > { %1751 = vmatprep.mubr.msk.bf16.mxu1 %vm442_vm0, %v1809_v5  ;;  %v1814_v12 = vld [vmem:[%s1896_s26 + $0x18] sm:$0xff]   ;;  %v1816_v14 = vld [vmem:[%s1896_s26 + $0x20] sm:$0xff]   ;;  %v1818_v16 = vld [vmem:[%s1896_s26 + $0x28] sm:$0xff]  }
  0x13   : > { %1716 = vmatpush3.bf16.msra.mxu0 %v1806_v3  ;;  %1791 = vmatpush3.bf16.msra.mxu1 %v1806_v3  ;;  %v1815_v13 = vld [vmem:[%s1896_s26 + $0x98] sm:$0xff]   ;;  %v1817_v15 = vld [vmem:[%s1896_s26 + $0xa0] sm:$0xff]   ;;  %v1819_v17 = vld [vmem:[%s1896_s26 + $0xa8] sm:$0xff]  }
  0x14   : > { %1793 = vmatprep.subr.msk.bf16.mxu0 %vm539_vm1, %v1807_v6  ;;  %1794 = vmatprep.subr.msk.bf16.mxu1 %vm539_vm1, %v1807_v6  ;;  %v1820_v18 = vld [vmem:[%s1896_s26 + $0x30] sm:$0xff]   ;;  %v1822_v20 = vld [vmem:[%s1896_s26 + $0x38] sm:$0xff]   ;;  %v1824_v22 = vld [vmem:[%s1896_s26 + $0x40] sm:$0xff]  }
  0x15   : > { %v1821_v19 = vld [vmem:[%s1896_s26 + $0xb0] sm:$0xff]   ;;  %v1823_v21 = vld [vmem:[%s1896_s26 + $0xb8] sm:$0xff]   ;;  %v1825_v23 = vld [vmem:[%s1896_s26 + $0xc0] sm:$0xff]  }
  0x16   : > { %v1826_v24 = vld [vmem:[%s1896_s26 + $0x48] sm:$0xff]   ;;  %v1828_v26 = vld [vmem:[%s1896_s26 + $0x50] sm:$0xff]   ;;  %v1830_v28 = vld [vmem:[%s1896_s26 + $0x58] sm:$0xff]  }
  0x17   : > { %1718 = vmatpush3.bf16.msra.mxu0 %v541_v7  ;;  %1792 = vmatpush3.bf16.msra.mxu1 %v541_v7  ;;  %v1827_v25 = vld [vmem:[%s1896_s26 + $0xc8] sm:$0xff]   ;;  %v1829_v27 = vld [vmem:[%s1896_s26 + $0xd0] sm:$0xff]   ;;  %v1831_v29 = vld [vmem:[%s1896_s26 + $0xd8] sm:$0xff]  }
  0x18   : > { %v1832_v30 = vld [vmem:[%s1896_s26 + $0x60] sm:$0xff]   ;;  %v1834_v32 = vld [vmem:[%s1896_s26 + $0x68] sm:$0xff]   ;;  %v1836_v34 = vld [vmem:[%s1896_s26 + $0x70] sm:$0xff]  }
  0x19   : > { %v1833_v31 = vld [vmem:[%s1896_s26 + $0xe0] sm:$0xff]   ;;  %v1835_v33 = vld [vmem:[%s1896_s26 + $0xe8] sm:$0xff]   ;;  %v1837_v35 = vld [vmem:[%s1896_s26 + $0xf0] sm:$0xff]  }
  0x1a   : > { %1720 = vmatmul.mubr.msk.bf16.vlgmr.msra.gmra.mrb[0].mxu0 %vm442_vm0, %v1810_v8  ;;  %1752 = vmatmul.mubr.msk.bf16.vlgmr.msra.gmra.mrb[0].mxu1 %vm442_vm0, %v1811_v9  ;;  %v1838_v36 = vld [vmem:[%s1896_s26 + $0x78] sm:$0xff]  }
  0x1b   : > { %1723 = vmatprep.mubr.msk.bf16.mxu0 %vm442_vm0, %v1812_v10  ;;  %1755 = vmatprep.mubr.msk.bf16.mxu1 %vm442_vm0, %v1813_v11  ;;  %v1839_v37 = vld [vmem:[%s1896_s26 + $0xf8] sm:$0xff]  }
  0x22   : > { %1724 = vmatmul.mubr.msk.bf16.gmra.mrb[4].mxu0 %vm442_vm0, %v1814_v12  ;;  %1756 = vmatmul.mubr.msk.bf16.gmra.mrb[4].mxu1 %vm442_vm0, %v1815_v13 }
  0x23   : > { %1727 = vmatprep.mubr.msk.bf16.mxu0 %vm442_vm0, %v1816_v14  ;;  %1759 = vmatprep.mubr.msk.bf16.mxu1 %vm442_vm0, %v1817_v15 }
  0x2a   : > { %1728 = vmatmul.mubr.msk.bf16.gmra.mrb[8].mxu0 %vm442_vm0, %v1818_v16  ;;  %1760 = vmatmul.mubr.msk.bf16.gmra.mrb[8].mxu1 %vm442_vm0, %v1819_v17 }
  0x2b   : > { %1731 = vmatprep.mubr.msk.bf16.mxu0 %vm442_vm0, %v1820_v18  ;;  %1763 = vmatprep.mubr.msk.bf16.mxu1 %vm442_vm0, %v1821_v19 }
  0x32   : > { %1732 = vmatmul.mubr.msk.bf16.gmra.mrb[12].mxu0 %vm442_vm0, %v1822_v20  ;;  %1764 = vmatmul.mubr.msk.bf16.gmra.mrb[12].mxu1 %vm442_vm0, %v1823_v21 }
  0x33   : > { %1735 = vmatprep.mubr.msk.bf16.mxu0 %vm442_vm0, %v1824_v22  ;;  %1767 = vmatprep.mubr.msk.bf16.mxu1 %vm442_vm0, %v1825_v23 }
  0x3a   : > { %1736 = vmatmul.mubr.msk.bf16.gmra.mrb[16].mxu0 %vm442_vm0, %v1826_v24  ;;  %1768 = vmatmul.mubr.msk.bf16.gmra.mrb[16].mxu1 %vm442_vm0, %v1827_v25 }
  0x3b   : > { %1739 = vmatprep.mubr.msk.bf16.mxu0 %vm442_vm0, %v1828_v26  ;;  %1771 = vmatprep.mubr.msk.bf16.mxu1 %vm442_vm0, %v1829_v27 }
  0x42   : > { %1740 = vmatmul.mubr.msk.bf16.gmra.mrb[20].mxu0 %vm442_vm0, %v1830_v28  ;;  %1772 = vmatmul.mubr.msk.bf16.gmra.mrb[20].mxu1 %vm442_vm0, %v1831_v29 }
  0x43   : > { %1743 = vmatprep.mubr.msk.bf16.mxu0 %vm442_vm0, %v1832_v30  ;;  %1775 = vmatprep.mubr.msk.bf16.mxu1 %vm442_vm0, %v1833_v31 }
  0x4a   : > { %1744 = vmatmul.mubr.msk.bf16.gmra.mrb[24].mxu0 %vm442_vm0, %v1834_v32  ;;  %1776 = vmatmul.mubr.msk.bf16.gmra.mrb[24].mxu1 %vm442_vm0, %v1835_v33 }
  0x4b   : > { %1747 = vmatprep.mubr.msk.bf16.mxu0 %vm442_vm0, %v1836_v34  ;;  %1779 = vmatprep.mubr.msk.bf16.mxu1 %vm442_vm0, %v1837_v35 }
  0x52   : > { %1748 = vmatmul.mubr.msk.bf16.gmra.mrb[28].mxu0 %vm442_vm0, %v1838_v36  ;;  %1780 = vmatmul.mubr.msk.bf16.gmra.mrb[28].mxu1 %vm442_vm0, %v1839_v37 }
  0xed   : > { %v1721_v39 = vpop.f32.mrb[0].mxu0  ;;  %v1753_v40 = vpop.f32.mrb[0].mxu1 }
  0xee   : > { %v586_v41 = vadd.f32 %v1721_v39, %v1968_v38  ;;  %v714_v42 = vadd.f32 %v1753_v40, %v1968_v38  ;;  %v577_v43 = vpop.f32.mrb[1].mxu0  ;;  %v705_v44 = vpop.f32.mrb[1].mxu1 }
  0xef   : > { %v578_v45 = vadd.f32 %v1968_v38, %v577_v43  ;;  %v706_v46 = vadd.f32 %v1968_v38, %v705_v44  ;;  %v1722_v47 = vpop.f32.mrb[2].mxu0  ;;  %v1754_v48 = vpop.f32.mrb[2].mxu1 }
  0xf0   : > { %v589_v49 = vadd.f32 %v1722_v47, %v1968_v38  ;;  %v717_v50 = vadd.f32 %v1754_v48, %v1968_v38  ;;  %v580_v51 = vpop.f32.mrb[3].mxu0  ;;  %v708_v52 = vpop.f32.mrb[3].mxu1  ;;  %v834_v55 = vmax.f32 %v586_v41, 0.0  ;;  %v866_v56 = vmax.f32 %v714_v42, 0.0 }
  0xf1   : > { %v581_v53 = vadd.f32 %v1968_v38, %v580_v51  ;;  %v709_v54 = vadd.f32 %v1968_v38, %v708_v52  ;;  %v832_v59 = vmax.f32 %v578_v45, 0.0  ;;  %v864_v60 = vmax.f32 %v706_v46, 0.0 }
  0xf2   : > { %v835_v57 = vmax.f32 %v589_v49, 0.0  ;;  %v867_v58 = vmax.f32 %v717_v50, 0.0 }
  0xf3   : > { %v833_v61 = vmax.f32 %v581_v53, 0.0  ;;  %v865_v62 = vmax.f32 %v709_v54, 0.0 }
  0xf4   : > { %v1489_v63 = vpack.c.bf16 %v835_v57, %v834_v55  ;;  %v1569_v0 = vpack.c.bf16 %v867_v58, %v866_v56 }
  0xf5   : > { %v1484_v1 = vpack.c.bf16 %v833_v61, %v832_v59  ;;  %v1564_v2 = vpack.c.bf16 %v865_v62, %v864_v60  ;;  %v1725_v3 = vpop.f32.mrb[4].mxu0  ;;  %v1757_v4 = vpop.f32.mrb[4].mxu1 }
  0xf6   : > { %1641 = vst [vmem:[%s1983_s6 + $0x8] sm:$0xff] %v1489_v63   ;;  %1657 = vst [vmem:[%s1983_s6 + $0x88] sm:$0xff] %v1569_v0   ;;  %v602_v5 = vadd.f32 %v1725_v3, %v1968_v38  ;;  %v730_v6 = vadd.f32 %v1757_v4, %v1968_v38  ;;  %v593_v7 = vpop.f32.mrb[5].mxu0  ;;  %v721_v8 = vpop.f32.mrb[5].mxu1 }
  0xf7   : > { %1485 = vst [vmem:[%s1983_s6] sm:$0xff] %v1484_v1   ;;  %1656 = vst [vmem:[%s1983_s6 + $0x80] sm:$0xff] %v1564_v2   ;;  %v594_v9 = vadd.f32 %v1968_v38, %v593_v7  ;;  %v722_v10 = vadd.f32 %v1968_v38, %v721_v8  ;;  %v1726_v11 = vpop.f32.mrb[6].mxu0  ;;  %v1758_v12 = vpop.f32.mrb[6].mxu1 }
  0xf8   : > { %v605_v13 = vadd.f32 %v1726_v11, %v1968_v38  ;;  %v733_v14 = vadd.f32 %v1758_v12, %v1968_v38  ;;  %v596_v15 = vpop.f32.mrb[7].mxu0  ;;  %v724_v16 = vpop.f32.mrb[7].mxu1  ;;  %v838_v19 = vmax.f32 %v602_v5, 0.0  ;;  %v870_v20 = vmax.f32 %v730_v6, 0.0 }
  0xf9   : > { %v597_v17 = vadd.f32 %v1968_v38, %v596_v15  ;;  %v725_v18 = vadd.f32 %v1968_v38, %v724_v16  ;;  %v836_v23 = vmax.f32 %v594_v9, 0.0  ;;  %v868_v24 = vmax.f32 %v722_v10, 0.0 }
  0xfa   : > { %v839_v21 = vmax.f32 %v605_v13, 0.0  ;;  %v871_v22 = vmax.f32 %v733_v14, 0.0 }
  0xfb   : > { %v837_v25 = vmax.f32 %v597_v17, 0.0  ;;  %v869_v26 = vmax.f32 %v725_v18, 0.0 }
  0xfc   : > { %v1499_v27 = vpack.c.bf16 %v839_v21, %v838_v19  ;;  %v1579_v28 = vpack.c.bf16 %v871_v22, %v870_v20 }
  0xfd   : > { %v1494_v29 = vpack.c.bf16 %v837_v25, %v836_v23  ;;  %v1574_v30 = vpack.c.bf16 %v869_v26, %v868_v24  ;;  %v1729_v31 = vpop.f32.mrb[8].mxu0  ;;  %v1761_v32 = vpop.f32.mrb[8].mxu1 }
  0xfe   : > { %1643 = vst [vmem:[%s1983_s6 + $0x18] sm:$0xff] %v1499_v27   ;;  %1659 = vst [vmem:[%s1983_s6 + $0x98] sm:$0xff] %v1579_v28   ;;  %v618_v33 = vadd.f32 %v1729_v31, %v1968_v38  ;;  %v746_v34 = vadd.f32 %v1761_v32, %v1968_v38  ;;  %v609_v35 = vpop.f32.mrb[9].mxu0  ;;  %v737_v36 = vpop.f32.mrb[9].mxu1 }
  0xff   : > { %1642 = vst [vmem:[%s1983_s6 + $0x10] sm:$0xff] %v1494_v29   ;;  %1658 = vst [vmem:[%s1983_s6 + $0x90] sm:$0xff] %v1574_v30   ;;  %v610_v37 = vadd.f32 %v1968_v38, %v609_v35  ;;  %v738_v39 = vadd.f32 %v1968_v38, %v737_v36  ;;  %v1730_v40 = vpop.f32.mrb[10].mxu0  ;;  %v1762_v41 = vpop.f32.mrb[10].mxu1 }
 0x100   : > { %v621_v42 = vadd.f32 %v1730_v40, %v1968_v38  ;;  %v749_v43 = vadd.f32 %v1762_v41, %v1968_v38  ;;  %v612_v44 = vpop.f32.mrb[11].mxu0  ;;  %v740_v45 = vpop.f32.mrb[11].mxu1  ;;  %v842_v48 = vmax.f32 %v618_v33, 0.0  ;;  %v874_v49 = vmax.f32 %v746_v34, 0.0 }
 0x101   : > { %v613_v46 = vadd.f32 %v1968_v38, %v612_v44  ;;  %v741_v47 = vadd.f32 %v1968_v38, %v740_v45  ;;  %v840_v52 = vmax.f32 %v610_v37, 0.0  ;;  %v872_v53 = vmax.f32 %v738_v39, 0.0 }
 0x102   : > { %v843_v50 = vmax.f32 %v621_v42, 0.0  ;;  %v875_v51 = vmax.f32 %v749_v43, 0.0 }
 0x103   : > { %v841_v54 = vmax.f32 %v613_v46, 0.0  ;;  %v873_v55 = vmax.f32 %v741_v47, 0.0 }
 0x104   : > { %v1509_v56 = vpack.c.bf16 %v843_v50, %v842_v48  ;;  %v1589_v57 = vpack.c.bf16 %v875_v51, %v874_v49 }
 0x105   : > { %v1504_v58 = vpack.c.bf16 %v841_v54, %v840_v52  ;;  %v1584_v59 = vpack.c.bf16 %v873_v55, %v872_v53  ;;  %v1733_v60 = vpop.f32.mrb[12].mxu0  ;;  %v1765_v61 = vpop.f32.mrb[12].mxu1 }
 0x106   : > { %1645 = vst [vmem:[%s1983_s6 + $0x28] sm:$0xff] %v1509_v56   ;;  %1661 = vst [vmem:[%s1983_s6 + $0xa8] sm:$0xff] %v1589_v57   ;;  %v634_v62 = vadd.f32 %v1733_v60, %v1968_v38  ;;  %v762_v63 = vadd.f32 %v1765_v61, %v1968_v38  ;;  %v625_v0 = vpop.f32.mrb[13].mxu0  ;;  %v753_v1 = vpop.f32.mrb[13].mxu1 }
 0x107   : > { %1644 = vst [vmem:[%s1983_s6 + $0x20] sm:$0xff] %v1504_v58   ;;  %1660 = vst [vmem:[%s1983_s6 + $0xa0] sm:$0xff] %v1584_v59   ;;  %v626_v2 = vadd.f32 %v1968_v38, %v625_v0  ;;  %v754_v3 = vadd.f32 %v1968_v38, %v753_v1  ;;  %v1734_v4 = vpop.f32.mrb[14].mxu0  ;;  %v1766_v5 = vpop.f32.mrb[14].mxu1 }
 0x108   : > { %v637_v6 = vadd.f32 %v1734_v4, %v1968_v38  ;;  %v765_v7 = vadd.f32 %v1766_v5, %v1968_v38  ;;  %v628_v8 = vpop.f32.mrb[15].mxu0  ;;  %v756_v9 = vpop.f32.mrb[15].mxu1  ;;  %v846_v12 = vmax.f32 %v634_v62, 0.0  ;;  %v878_v13 = vmax.f32 %v762_v63, 0.0 }
 0x109   : > { %v629_v10 = vadd.f32 %v1968_v38, %v628_v8  ;;  %v757_v11 = vadd.f32 %v1968_v38, %v756_v9  ;;  %v844_v16 = vmax.f32 %v626_v2, 0.0  ;;  %v876_v17 = vmax.f32 %v754_v3, 0.0 }
 0x10a   : > { %v847_v14 = vmax.f32 %v637_v6, 0.0  ;;  %v879_v15 = vmax.f32 %v765_v7, 0.0 }
 0x10b   : > { %v845_v18 = vmax.f32 %v629_v10, 0.0  ;;  %v877_v19 = vmax.f32 %v757_v11, 0.0 }
 0x10c   : > { %v1519_v20 = vpack.c.bf16 %v847_v14, %v846_v12  ;;  %v1599_v21 = vpack.c.bf16 %v879_v15, %v878_v13 }
 0x10d   : > { %v1514_v22 = vpack.c.bf16 %v845_v18, %v844_v16  ;;  %v1594_v23 = vpack.c.bf16 %v877_v19, %v876_v17  ;;  %v1737_v24 = vpop.f32.mrb[16].mxu0  ;;  %v1769_v25 = vpop.f32.mrb[16].mxu1 }
 0x10e   : > { %1647 = vst [vmem:[%s1983_s6 + $0x38] sm:$0xff] %v1519_v20   ;;  %1663 = vst [vmem:[%s1983_s6 + $0xb8] sm:$0xff] %v1599_v21   ;;  %v650_v26 = vadd.f32 %v1737_v24, %v1968_v38  ;;  %v778_v27 = vadd.f32 %v1769_v25, %v1968_v38  ;;  %v641_v28 = vpop.f32.mrb[17].mxu0  ;;  %v769_v29 = vpop.f32.mrb[17].mxu1 }
 0x10f   : > { %1646 = vst [vmem:[%s1983_s6 + $0x30] sm:$0xff] %v1514_v22   ;;  %1662 = vst [vmem:[%s1983_s6 + $0xb0] sm:$0xff] %v1594_v23   ;;  %v642_v30 = vadd.f32 %v1968_v38, %v641_v28  ;;  %v770_v31 = vadd.f32 %v1968_v38, %v769_v29  ;;  %v1738_v32 = vpop.f32.mrb[18].mxu0  ;;  %v1770_v33 = vpop.f32.mrb[18].mxu1 }
 0x110   : > { %v653_v34 = vadd.f32 %v1738_v32, %v1968_v38  ;;  %v781_v35 = vadd.f32 %v1770_v33, %v1968_v38  ;;  %v644_v36 = vpop.f32.mrb[19].mxu0  ;;  %v772_v37 = vpop.f32.mrb[19].mxu1  ;;  %v850_v41 = vmax.f32 %v650_v26, 0.0  ;;  %v882_v42 = vmax.f32 %v778_v27, 0.0 }
 0x111   : > { %v645_v39 = vadd.f32 %v1968_v38, %v644_v36  ;;  %v773_v40 = vadd.f32 %v1968_v38, %v772_v37  ;;  %v848_v45 = vmax.f32 %v642_v30, 0.0  ;;  %v880_v46 = vmax.f32 %v770_v31, 0.0 }
 0x112   : > { %v851_v43 = vmax.f32 %v653_v34, 0.0  ;;  %v883_v44 = vmax.f32 %v781_v35, 0.0 }
 0x113   : > { %v849_v47 = vmax.f32 %v645_v39, 0.0  ;;  %v881_v48 = vmax.f32 %v773_v40, 0.0 }
 0x114   : > { %v1529_v49 = vpack.c.bf16 %v851_v43, %v850_v41  ;;  %v1609_v50 = vpack.c.bf16 %v883_v44, %v882_v42 }
 0x115   : > { %v1524_v51 = vpack.c.bf16 %v849_v47, %v848_v45  ;;  %v1604_v52 = vpack.c.bf16 %v881_v48, %v880_v46  ;;  %v1741_v53 = vpop.f32.mrb[20].mxu0  ;;  %v1773_v54 = vpop.f32.mrb[20].mxu1 }
 0x116   : > { %1649 = vst [vmem:[%s1983_s6 + $0x48] sm:$0xff] %v1529_v49   ;;  %1665 = vst [vmem:[%s1983_s6 + $0xc8] sm:$0xff] %v1609_v50   ;;  %v666_v55 = vadd.f32 %v1741_v53, %v1968_v38  ;;  %v794_v56 = vadd.f32 %v1773_v54, %v1968_v38  ;;  %v657_v57 = vpop.f32.mrb[21].mxu0  ;;  %v785_v58 = vpop.f32.mrb[21].mxu1 }
 0x117   : > { %1648 = vst [vmem:[%s1983_s6 + $0x40] sm:$0xff] %v1524_v51   ;;  %1664 = vst [vmem:[%s1983_s6 + $0xc0] sm:$0xff] %v1604_v52   ;;  %v658_v59 = vadd.f32 %v1968_v38, %v657_v57  ;;  %v786_v60 = vadd.f32 %v1968_v38, %v785_v58  ;;  %v1742_v61 = vpop.f32.mrb[22].mxu0  ;;  %v1774_v62 = vpop.f32.mrb[22].mxu1 }
 0x118   : > { %v669_v63 = vadd.f32 %v1742_v61, %v1968_v38  ;;  %v797_v0 = vadd.f32 %v1774_v62, %v1968_v38  ;;  %v660_v1 = vpop.f32.mrb[23].mxu0  ;;  %v788_v2 = vpop.f32.mrb[23].mxu1  ;;  %v854_v5 = vmax.f32 %v666_v55, 0.0  ;;  %v886_v6 = vmax.f32 %v794_v56, 0.0 }
 0x119   : > { %v661_v3 = vadd.f32 %v1968_v38, %v660_v1  ;;  %v789_v4 = vadd.f32 %v1968_v38, %v788_v2  ;;  %v852_v9 = vmax.f32 %v658_v59, 0.0  ;;  %v884_v10 = vmax.f32 %v786_v60, 0.0 }
 0x11a   : > { %v855_v7 = vmax.f32 %v669_v63, 0.0  ;;  %v887_v8 = vmax.f32 %v797_v0, 0.0 }
 0x11b   : > { %v853_v11 = vmax.f32 %v661_v3, 0.0  ;;  %v885_v12 = vmax.f32 %v789_v4, 0.0 }
 0x11c   : > { %v1539_v13 = vpack.c.bf16 %v855_v7, %v854_v5  ;;  %v1619_v14 = vpack.c.bf16 %v887_v8, %v886_v6 }
 0x11d   : > { %v1534_v15 = vpack.c.bf16 %v853_v11, %v852_v9  ;;  %v1614_v16 = vpack.c.bf16 %v885_v12, %v884_v10  ;;  %v1745_v17 = vpop.f32.mrb[24].mxu0  ;;  %v1777_v18 = vpop.f32.mrb[24].mxu1 }
 0x11e   : > { %1651 = vst [vmem:[%s1983_s6 + $0x58] sm:$0xff] %v1539_v13   ;;  %1667 = vst [vmem:[%s1983_s6 + $0xd8] sm:$0xff] %v1619_v14   ;;  %v682_v19 = vadd.f32 %v1745_v17, %v1968_v38  ;;  %v810_v20 = vadd.f32 %v1777_v18, %v1968_v38  ;;  %v673_v21 = vpop.f32.mrb[25].mxu0  ;;  %v801_v22 = vpop.f32.mrb[25].mxu1 }
 0x11f   : > { %1650 = vst [vmem:[%s1983_s6 + $0x50] sm:$0xff] %v1534_v15   ;;  %1666 = vst [vmem:[%s1983_s6 + $0xd0] sm:$0xff] %v1614_v16   ;;  %v674_v23 = vadd.f32 %v1968_v38, %v673_v21  ;;  %v802_v24 = vadd.f32 %v1968_v38, %v801_v22  ;;  %v1746_v25 = vpop.f32.mrb[26].mxu0  ;;  %v1778_v26 = vpop.f32.mrb[26].mxu1 }
 0x120   : > { %v685_v27 = vadd.f32 %v1746_v25, %v1968_v38  ;;  %v813_v28 = vadd.f32 %v1778_v26, %v1968_v38  ;;  %v676_v29 = vpop.f32.mrb[27].mxu0  ;;  %v804_v30 = vpop.f32.mrb[27].mxu1  ;;  %v858_v33 = vmax.f32 %v682_v19, 0.0  ;;  %v890_v34 = vmax.f32 %v810_v20, 0.0 }
 0x121   : > { %v677_v31 = vadd.f32 %v1968_v38, %v676_v29  ;;  %v805_v32 = vadd.f32 %v1968_v38, %v804_v30  ;;  %v856_v37 = vmax.f32 %v674_v23, 0.0  ;;  %v888_v39 = vmax.f32 %v802_v24, 0.0 }
 0x122   : > { %v859_v35 = vmax.f32 %v685_v27, 0.0  ;;  %v891_v36 = vmax.f32 %v813_v28, 0.0 }
 0x123   : > { %v857_v40 = vmax.f32 %v677_v31, 0.0  ;;  %v889_v41 = vmax.f32 %v805_v32, 0.0 }
 0x124   : > { %v1549_v42 = vpack.c.bf16 %v859_v35, %v858_v33  ;;  %v1629_v43 = vpack.c.bf16 %v891_v36, %v890_v34 }
 0x125   : > { %v1544_v44 = vpack.c.bf16 %v857_v40, %v856_v37  ;;  %v1624_v45 = vpack.c.bf16 %v889_v41, %v888_v39  ;;  %v1749_v46 = vpop.f32.mrb[28].mxu0  ;;  %v1781_v47 = vpop.f32.mrb[28].mxu1 }
 0x126   : > { %1653 = vst [vmem:[%s1983_s6 + $0x68] sm:$0xff] %v1549_v42   ;;  %1669 = vst [vmem:[%s1983_s6 + $0xe8] sm:$0xff] %v1629_v43   ;;  %v698_v48 = vadd.f32 %v1749_v46, %v1968_v38  ;;  %v826_v49 = vadd.f32 %v1781_v47, %v1968_v38  ;;  %v689_v50 = vpop.f32.mrb[29].mxu0  ;;  %v817_v51 = vpop.f32.mrb[29].mxu1 }
 0x127   : > { %1652 = vst [vmem:[%s1983_s6 + $0x60] sm:$0xff] %v1544_v44   ;;  %1668 = vst [vmem:[%s1983_s6 + $0xe0] sm:$0xff] %v1624_v45   ;;  %v690_v52 = vadd.f32 %v1968_v38, %v689_v50  ;;  %v818_v53 = vadd.f32 %v1968_v38, %v817_v51  ;;  %v1750_v54 = vpop.f32.mrb[30].mxu0  ;;  %v1782_v55 = vpop.f32.mrb[30].mxu1 }
 0x128   : > { %v701_v56 = vadd.f32 %v1750_v54, %v1968_v38  ;;  %v829_v57 = vadd.f32 %v1782_v55, %v1968_v38  ;;  %v692_v58 = vpop.f32.mrb[31].mxu0  ;;  %v820_v59 = vpop.f32.mrb[31].mxu1  ;;  %v862_v62 = vmax.f32 %v698_v48, 0.0  ;;  %v894_v63 = vmax.f32 %v826_v49, 0.0 }
 0x129   : > { %v693_v60 = vadd.f32 %v1968_v38, %v692_v58  ;;  %v821_v61 = vadd.f32 %v1968_v38, %v820_v59  ;;  %v860_v2 = vmax.f32 %v690_v52, 0.0  ;;  %v892_v3 = vmax.f32 %v818_v53, 0.0 }
 0x12a   : > { %v863_v0 = vmax.f32 %v701_v56, 0.0  ;;  %v895_v1 = vmax.f32 %v829_v57, 0.0 }
 0x12b   : > { %v861_v4 = vmax.f32 %v693_v60, 0.0  ;;  %v893_v5 = vmax.f32 %v821_v61, 0.0 }
 0x12c   : > { %v1559_v6 = vpack.c.bf16 %v863_v0, %v862_v62  ;;  %v1639_v7 = vpack.c.bf16 %v895_v1, %v894_v63 }
 0x12d   : > { %v1554_v8 = vpack.c.bf16 %v861_v4, %v860_v2  ;;  %v1634_v9 = vpack.c.bf16 %v893_v5, %v892_v3 }
 0x12e   : > { %1655 = vst [vmem:[%s1983_s6 + $0x78] sm:$0xff] %v1559_v6   ;;  %1671 = vst [vmem:[%s1983_s6 + $0xf8] sm:$0xff] %v1639_v7  }
 0x12f   : > { %1654 = vst [vmem:[%s1983_s6 + $0x70] sm:$0xff] %v1554_v8   ;;  %1670 = vst [vmem:[%s1983_s6 + $0xf0] sm:$0xff] %v1634_v9  }
 0x130 PF: > { %s13_s12 = sadd.s32 1, %s1846_s12  }
 0x131   : > { %p10_p4 = scmp.ge.s32.totalorder %s13_s12, 4  }
 0x133   :  { %12 = sbr.rel (!%p10_p4) target bundleno = 1 (0x1), region = 62 }

// kernel: horizonnet_forward.31
= control target key start
LH: loop header
LB: loop body
LE: loop exit
PB: predicated region body
PF: predicated region fallthrough
CT: control target
= control target key end

     0   :  { %v1769_v0 = vmov 0   ;;  %vm446_vm0 = vcmask 130048   ;;  %s2206_s1 = inlined_call_operand.vmem [shape: bf16[144,128], index: 1, kind: input, shape index: {}]   ;;  %s2207_s0 = inlined_call_operand.vmem [shape: bf16[512,144], index: 0, kind: input, shape index: {}]   ;;  %s2208_s2 = inlined_call_operand.vmem [shape: f32[1,128], index: 2, kind: input, shape index: {}]   ;;  %s2209_s3 = inlined_call_operand.vmem [shape: bf16[512,128], index: 3, kind: output, shape index: {}]  }
   0x1   :  { %543 = vmatprep.subr.bf16.mxu0 %v1769_v0  ;;  %1645 = vmatprep.subr.bf16.mxu1 %v1769_v0  ;;  %v1664_v1 = vld [vmem:[%s2206_s1] sm:$0xff]   ;;  %v1665_v2 = vld [vmem:[%s2206_s1 + $0x8] sm:$0xff]   ;;  %v1666_v3 = vld [vmem:[%s2206_s1 + $0x10] sm:$0xff]  }
   0x2   :  { %544 = vmatpush1.bf16.msra.mxu0 %v1664_v1  ;;  %1654 = vmatpush1.bf16.msra.mxu1 %v1664_v1  ;;  %v1667_v4 = vld [vmem:[%s2206_s1 + $0x18] sm:$0xff]   ;;  %v1675_v5 = vld [vmem:[%s2207_s0 + $0x4] ss:$8 sps:$4 sm:$0xff]   ;;  %v1670_v9 = vld [vmem:[%s2206_s1 + $0x30] sm:$0xff]  }
   0x3   :  { %545 = vmatprep.subr.bf16.mxu0 %v1769_v0  ;;  %1646 = vmatprep.subr.bf16.mxu1 %v1769_v0  ;;  %v1678_v6 = vld [vmem:[%s2207_s0 + $0x104] ss:$8 sps:$4 sm:$0xff]   ;;  %v1671_v10 = vld [vmem:[%s2206_s1 + $0x38] sm:$0xff]   ;;  %v1673_v12 = vld [vmem:[%s2207_s0] ss:$8 sps:$4 sm:$0xff]  }
   0x4   :  { %1294 = vmatprep.mubr.msk.bf16.mxu0 %vm446_vm0, %v1675_v5  ;;  %1310 = vmatprep.mubr.msk.bf16.mxu1 %vm446_vm0, %v1678_v6  ;;  %v1668_v7 = vld [vmem:[%s2206_s1 + $0x20] sm:$0xff]   ;;  %v1669_v8 = vld [vmem:[%s2206_s1 + $0x28] sm:$0xff]   ;;  %v1679_v14 = vld [vmem:[%s2207_s0 + $0x14] ss:$8 sps:$4 sm:$0xff]  }
   0x5   :  { %v1672_v11 = vld [vmem:[%s2206_s1 + $0x40] sm:$0xff]   ;;  %v1681_v15 = vld [vmem:[%s2207_s0 + $0x114] ss:$8 sps:$4 sm:$0xff]   ;;  %v1683_v16 = vld [vmem:[%s2207_s0 + $0x10] ss:$8 sps:$4 sm:$0xff]  }
   0x6   :  { %546 = vmatpush1.bf16.msra.mxu0 %v1665_v2  ;;  %1655 = vmatpush1.bf16.msra.mxu1 %v1665_v2  ;;  %v1676_v13 = vld [vmem:[%s2207_s0 + $0x100] ss:$8 sps:$4 sm:$0xff]   ;;  %v1684_v17 = vld [vmem:[%s2207_s0 + $0x110] ss:$8 sps:$4 sm:$0xff]   ;;  %v1685_v18 = vld [vmem:[%s2207_s0 + $0x24] ss:$8 sps:$4 sm:$0xff]  }
   0x7   :  { %547 = vmatprep.subr.bf16.mxu0 %v1769_v0  ;;  %1647 = vmatprep.subr.bf16.mxu1 %v1769_v0  ;;  %v1687_v19 = vld [vmem:[%s2207_s0 + $0x124] ss:$8 sps:$4 sm:$0xff]   ;;  %v1689_v20 = vld [vmem:[%s2207_s0 + $0x20] ss:$8 sps:$4 sm:$0xff]   ;;  %v1691_v22 = vld [vmem:[%s2207_s0 + $0x34] ss:$8 sps:$4 sm:$0xff]  }
   0x8   :  { %v1690_v21 = vld [vmem:[%s2207_s0 + $0x120] ss:$8 sps:$4 sm:$0xff]   ;;  %v1693_v23 = vld [vmem:[%s2207_s0 + $0x134] ss:$8 sps:$4 sm:$0xff]   ;;  %v1695_v24 = vld [vmem:[%s2207_s0 + $0x30] ss:$8 sps:$4 sm:$0xff]  }
   0x9   :  { %v1696_v25 = vld [vmem:[%s2207_s0 + $0x130] ss:$8 sps:$4 sm:$0xff]   ;;  %v1697_v26 = vld [vmem:[%s2207_s0 + $0x44] ss:$8 sps:$4 sm:$0xff]   ;;  %v1701_v28 = vld [vmem:[%s2207_s0 + $0x40] ss:$8 sps:$4 sm:$0xff]  }
   0xa   :  { %548 = vmatpush1.bf16.msra.mxu0 %v1666_v3  ;;  %1656 = vmatpush1.bf16.msra.mxu1 %v1666_v3  ;;  %v1699_v27 = vld [vmem:[%s2207_s0 + $0x144] ss:$8 sps:$4 sm:$0xff]   ;;  %v1702_v29 = vld [vmem:[%s2207_s0 + $0x140] ss:$8 sps:$4 sm:$0xff]   ;;  %v1703_v30 = vld [vmem:[%s2207_s0 + $0x54] ss:$8 sps:$4 sm:$0xff]  }
   0xb   :  { %549 = vmatprep.subr.bf16.mxu0 %v1769_v0  ;;  %1648 = vmatprep.subr.bf16.mxu1 %v1769_v0  ;;  %v1705_v31 = vld [vmem:[%s2207_s0 + $0x154] ss:$8 sps:$4 sm:$0xff]   ;;  %v1707_v32 = vld [vmem:[%s2207_s0 + $0x50] ss:$8 sps:$4 sm:$0xff]   ;;  %v1709_v34 = vld [vmem:[%s2207_s0 + $0x64] ss:$8 sps:$4 sm:$0xff]  }
   0xc   :  { %v1708_v33 = vld [vmem:[%s2207_s0 + $0x150] ss:$8 sps:$4 sm:$0xff]   ;;  %v1711_v35 = vld [vmem:[%s2207_s0 + $0x164] ss:$8 sps:$4 sm:$0xff]   ;;  %v1713_v36 = vld [vmem:[%s2207_s0 + $0x60] ss:$8 sps:$4 sm:$0xff]  }
   0xd   :  { %v1714_v37 = vld [vmem:[%s2207_s0 + $0x160] ss:$8 sps:$4 sm:$0xff]   ;;  %v1715_v38 = vld [vmem:[%s2207_s0 + $0x74] ss:$8 sps:$4 sm:$0xff]   ;;  %v1719_v40 = vld [vmem:[%s2207_s0 + $0x70] ss:$8 sps:$4 sm:$0xff]  }
   0xe   :  { %550 = vmatpush1.bf16.msra.mxu0 %v1667_v4  ;;  %1657 = vmatpush1.bf16.msra.mxu1 %v1667_v4  ;;  %v1717_v39 = vld [vmem:[%s2207_s0 + $0x174] ss:$8 sps:$4 sm:$0xff]   ;;  %v1720_v41 = vld [vmem:[%s2207_s0 + $0x170] ss:$8 sps:$4 sm:$0xff]   ;;  %v1721_v42 = vld [vmem:[%s2207_s0 + $0x84] ss:$8 sps:$4 sm:$0xff]  }
   0xf   :  { %551 = vmatprep.subr.bf16.mxu0 %v1769_v0  ;;  %1649 = vmatprep.subr.bf16.mxu1 %v1769_v0  ;;  %v1723_v43 = vld [vmem:[%s2207_s0 + $0x184] ss:$8 sps:$4 sm:$0xff]   ;;  %v1725_v44 = vld [vmem:[%s2207_s0 + $0x80] ss:$8 sps:$4 sm:$0xff]   ;;  %v1727_v46 = vld [vmem:[%s2207_s0 + $0x94] ss:$8 sps:$4 sm:$0xff]  }
  0x10   :  { %v1726_v45 = vld [vmem:[%s2207_s0 + $0x180] ss:$8 sps:$4 sm:$0xff]   ;;  %v1729_v47 = vld [vmem:[%s2207_s0 + $0x194] ss:$8 sps:$4 sm:$0xff]   ;;  %v1731_v48 = vld [vmem:[%s2207_s0 + $0x90] ss:$8 sps:$4 sm:$0xff]  }
  0x11   :  { %v1732_v49 = vld [vmem:[%s2207_s0 + $0x190] ss:$8 sps:$4 sm:$0xff]   ;;  %v1733_v50 = vld [vmem:[%s2207_s0 + $0xa4] ss:$8 sps:$4 sm:$0xff]   ;;  %v1737_v52 = vld [vmem:[%s2207_s0 + $0xa0] ss:$8 sps:$4 sm:$0xff]  }
  0x12   :  { %552 = vmatpush1.bf16.msra.mxu0 %v1668_v7  ;;  %1658 = vmatpush1.bf16.msra.mxu1 %v1668_v7  ;;  %v1735_v51 = vld [vmem:[%s2207_s0 + $0x1a4] ss:$8 sps:$4 sm:$0xff]   ;;  %v1738_v53 = vld [vmem:[%s2207_s0 + $0x1a0] ss:$8 sps:$4 sm:$0xff]   ;;  %v1739_v54 = vld [vmem:[%s2207_s0 + $0xb4] ss:$8 sps:$4 sm:$0xff]  }
  0x13   :  { %553 = vmatprep.subr.bf16.mxu0 %v1769_v0  ;;  %1650 = vmatprep.subr.bf16.mxu1 %v1769_v0  ;;  %v1741_v55 = vld [vmem:[%s2207_s0 + $0x1b4] ss:$8 sps:$4 sm:$0xff]   ;;  %v1743_v56 = vld [vmem:[%s2207_s0 + $0xb0] ss:$8 sps:$4 sm:$0xff]   ;;  %v1745_v58 = vld [vmem:[%s2207_s0 + $0xc4] ss:$8 sps:$4 sm:$0xff]  }
  0x14   :  { %v1744_v57 = vld [vmem:[%s2207_s0 + $0x1b0] ss:$8 sps:$4 sm:$0xff]   ;;  %v1747_v59 = vld [vmem:[%s2207_s0 + $0x1c4] ss:$8 sps:$4 sm:$0xff]   ;;  %v1749_v60 = vld [vmem:[%s2207_s0 + $0xc0] ss:$8 sps:$4 sm:$0xff]  }
  0x15   :  { %v1750_v61 = vld [vmem:[%s2207_s0 + $0x1c0] ss:$8 sps:$4 sm:$0xff]   ;;  %v1751_v62 = vld [vmem:[%s2207_s0 + $0xd4] ss:$8 sps:$4 sm:$0xff]   ;;  %v1756_v1 = vld [vmem:[%s2207_s0 + $0x1d0] ss:$8 sps:$4 sm:$0xff]  }
  0x16   :  { %554 = vmatpush1.bf16.msra.mxu0 %v1669_v8  ;;  %1659 = vmatpush1.bf16.msra.mxu1 %v1669_v8  ;;  %v1753_v63 = vld [vmem:[%s2207_s0 + $0x1d4] ss:$8 sps:$4 sm:$0xff]   ;;  %v1757_v2 = vld [vmem:[%s2207_s0 + $0xe4] ss:$8 sps:$4 sm:$0xff]   ;;  %v1761_v4 = vld [vmem:[%s2207_s0 + $0xe0] ss:$8 sps:$4 sm:$0xff]  }
  0x17   :  { %555 = vmatprep.subr.bf16.mxu0 %v1769_v0  ;;  %1651 = vmatprep.subr.bf16.mxu1 %v1769_v0  ;;  %v1759_v3 = vld [vmem:[%s2207_s0 + $0x1e4] ss:$8 sps:$4 sm:$0xff]   ;;  %v1762_v5 = vld [vmem:[%s2207_s0 + $0x1e0] ss:$8 sps:$4 sm:$0xff]   ;;  %v1763_v6 = vld [vmem:[%s2207_s0 + $0xf4] ss:$8 sps:$4 sm:$0xff]  }
  0x18   :  { %v1765_v7 = vld [vmem:[%s2207_s0 + $0x1f4] ss:$8 sps:$4 sm:$0xff]   ;;  %v1767_v8 = vld [vmem:[%s2207_s0 + $0xf0] ss:$8 sps:$4 sm:$0xff]  }
  0x1a   :  { %556 = vmatpush1.bf16.msra.mxu0 %v1670_v9  ;;  %1660 = vmatpush1.bf16.msra.mxu1 %v1670_v9  ;;  %v1768_v9 = vld [vmem:[%s2207_s0 + $0x1f0] ss:$8 sps:$4 sm:$0xff]  }
  0x1b   :  { %557 = vmatprep.subr.bf16.mxu0 %v1769_v0  ;;  %1652 = vmatprep.subr.bf16.mxu1 %v1769_v0 }
  0x1e   :  { %558 = vmatpush1.bf16.msra.mxu0 %v1671_v10  ;;  %1661 = vmatpush1.bf16.msra.mxu1 %v1671_v10  ;;  %v2044_v10 = vld [vmem:[%s2208_s2] ss:$0 sm:$0xff] }
  0x1f   :  { %559 = vmatprep.subr.bf16.mxu0 %v1769_v0  ;;  %1653 = vmatprep.subr.bf16.mxu1 %v1769_v0  ;;  %v1755_v0 = vld [vmem:[%s2207_s0 + $0xd0] ss:$8 sps:$4 sm:$0xff]  }
  0x22   :  { %560 = vmatpush1.bf16.msra.mxu0 %v1672_v11  ;;  %1662 = vmatpush1.bf16.msra.mxu1 %v1672_v11 }
  0x25   :  { %576 = vmatmul.mubr.bf16.vlgmr.msra.gmra.mrb[0].mxu0 %v1673_v12  ;;  %704 = vmatmul.mubr.bf16.vlgmr.msra.gmra.mrb[0].mxu1 %v1676_v13 }
  0x26   :  { %1295 = vmatprep.mubr.msk.bf16.mxu0 %vm446_vm0, %v1679_v14  ;;  %1311 = vmatprep.mubr.msk.bf16.mxu1 %vm446_vm0, %v1681_v15 }
  0x2d   :  { %584 = vmatmul.mubr.bf16.gmra.mrb[4].mxu0 %v1683_v16  ;;  %712 = vmatmul.mubr.bf16.gmra.mrb[4].mxu1 %v1684_v17 }
  0x2e   :  { %1296 = vmatprep.mubr.msk.bf16.mxu0 %vm446_vm0, %v1685_v18  ;;  %1312 = vmatprep.mubr.msk.bf16.mxu1 %vm446_vm0, %v1687_v19 }
  0x35   :  { %592 = vmatmul.mubr.bf16.gmra.mrb[8].mxu0 %v1689_v20  ;;  %720 = vmatmul.mubr.bf16.gmra.mrb[8].mxu1 %v1690_v21 }
  0x36   :  { %1297 = vmatprep.mubr.msk.bf16.mxu0 %vm446_vm0, %v1691_v22  ;;  %1313 = vmatprep.mubr.msk.bf16.mxu1 %vm446_vm0, %v1693_v23 }
  0x3d   :  { %600 = vmatmul.mubr.bf16.gmra.mrb[12].mxu0 %v1695_v24  ;;  %728 = vmatmul.mubr.bf16.gmra.mrb[12].mxu1 %v1696_v25 }
  0x3e   :  { %1298 = vmatprep.mubr.msk.bf16.mxu0 %vm446_vm0, %v1697_v26  ;;  %1314 = vmatprep.mubr.msk.bf16.mxu1 %vm446_vm0, %v1699_v27 }
  0x45   :  { %608 = vmatmul.mubr.bf16.gmra.mrb[16].mxu0 %v1701_v28  ;;  %736 = vmatmul.mubr.bf16.gmra.mrb[16].mxu1 %v1702_v29 }
  0x46   :  { %1299 = vmatprep.mubr.msk.bf16.mxu0 %vm446_vm0, %v1703_v30  ;;  %1315 = vmatprep.mubr.msk.bf16.mxu1 %vm446_vm0, %v1705_v31 }
  0x4d   :  { %616 = vmatmul.mubr.bf16.gmra.mrb[20].mxu0 %v1707_v32  ;;  %744 = vmatmul.mubr.bf16.gmra.mrb[20].mxu1 %v1708_v33 }
  0x4e   :  { %1300 = vmatprep.mubr.msk.bf16.mxu0 %vm446_vm0, %v1709_v34  ;;  %1316 = vmatprep.mubr.msk.bf16.mxu1 %vm446_vm0, %v1711_v35 }
  0x55   :  { %624 = vmatmul.mubr.bf16.gmra.mrb[24].mxu0 %v1713_v36  ;;  %752 = vmatmul.mubr.bf16.gmra.mrb[24].mxu1 %v1714_v37 }
  0x56   :  { %1301 = vmatprep.mubr.msk.bf16.mxu0 %vm446_vm0, %v1715_v38  ;;  %1317 = vmatprep.mubr.msk.bf16.mxu1 %vm446_vm0, %v1717_v39 }
  0x5d   :  { %632 = vmatmul.mubr.bf16.gmra.mrb[28].mxu0 %v1719_v40  ;;  %760 = vmatmul.mubr.bf16.gmra.mrb[28].mxu1 %v1720_v41 }
  0x5e   :  { %1302 = vmatprep.mubr.msk.bf16.mxu0 %vm446_vm0, %v1721_v42  ;;  %1318 = vmatprep.mubr.msk.bf16.mxu1 %vm446_vm0, %v1723_v43 }
  0x65   :  { %640 = vmatmul.mubr.bf16.gmra.mrb[32].mxu0 %v1725_v44  ;;  %768 = vmatmul.mubr.bf16.gmra.mrb[32].mxu1 %v1726_v45 }
  0x66   :  { %1303 = vmatprep.mubr.msk.bf16.mxu0 %vm446_vm0, %v1727_v46  ;;  %1319 = vmatprep.mubr.msk.bf16.mxu1 %vm446_vm0, %v1729_v47 }
  0x6d   :  { %648 = vmatmul.mubr.bf16.gmra.mrb[36].mxu0 %v1731_v48  ;;  %776 = vmatmul.mubr.bf16.gmra.mrb[36].mxu1 %v1732_v49 }
  0x6e   :  { %1304 = vmatprep.mubr.msk.bf16.mxu0 %vm446_vm0, %v1733_v50  ;;  %1320 = vmatprep.mubr.msk.bf16.mxu1 %vm446_vm0, %v1735_v51 }
  0x75   :  { %656 = vmatmul.mubr.bf16.gmra.mrb[40].mxu0 %v1737_v52  ;;  %784 = vmatmul.mubr.bf16.gmra.mrb[40].mxu1 %v1738_v53 }
  0x76   :  { %1305 = vmatprep.mubr.msk.bf16.mxu0 %vm446_vm0, %v1739_v54  ;;  %1321 = vmatprep.mubr.msk.bf16.mxu1 %vm446_vm0, %v1741_v55 }
  0x7d   :  { %664 = vmatmul.mubr.bf16.gmra.mrb[44].mxu0 %v1743_v56  ;;  %792 = vmatmul.mubr.bf16.gmra.mrb[44].mxu1 %v1744_v57 }
  0x7e   :  { %1306 = vmatprep.mubr.msk.bf16.mxu0 %vm446_vm0, %v1745_v58  ;;  %1322 = vmatprep.mubr.msk.bf16.mxu1 %vm446_vm0, %v1747_v59 }
  0x85   :  { %672 = vmatmul.mubr.bf16.gmra.mrb[48].mxu0 %v1749_v60  ;;  %800 = vmatmul.mubr.bf16.gmra.mrb[48].mxu1 %v1750_v61 }
  0x86   :  { %1307 = vmatprep.mubr.msk.bf16.mxu0 %vm446_vm0, %v1751_v62  ;;  %1323 = vmatprep.mubr.msk.bf16.mxu1 %vm446_vm0, %v1753_v63 }
  0x8d   :  { %680 = vmatmul.mubr.bf16.gmra.mrb[52].mxu0 %v1755_v0  ;;  %808 = vmatmul.mubr.bf16.gmra.mrb[52].mxu1 %v1756_v1 }
  0x8e   :  { %1308 = vmatprep.mubr.msk.bf16.mxu0 %vm446_vm0, %v1757_v2  ;;  %1324 = vmatprep.mubr.msk.bf16.mxu1 %vm446_vm0, %v1759_v3 }
  0x95   :  { %688 = vmatmul.mubr.bf16.gmra.mrb[56].mxu0 %v1761_v4  ;;  %816 = vmatmul.mubr.bf16.gmra.mrb[56].mxu1 %v1762_v5 }
  0x96   :  { %1309 = vmatprep.mubr.msk.bf16.mxu0 %vm446_vm0, %v1763_v6  ;;  %1325 = vmatprep.mubr.msk.bf16.mxu1 %vm446_vm0, %v1765_v7 }
  0x9d   :  { %696 = vmatmul.mubr.bf16.gmra.mrb[60].mxu0 %v1767_v8  ;;  %824 = vmatmul.mubr.bf16.gmra.mrb[60].mxu1 %v1768_v9 }
  0xf8   :  { %v577_v11 = vpop.f32.mrb[0].mxu0  ;;  %v705_v12 = vpop.f32.mrb[0].mxu1 }
  0xf9   :  { %v578_v13 = vadd.f32 %v2044_v10, %v577_v11  ;;  %v706_v14 = vadd.f32 %v2044_v10, %v705_v12  ;;  %v579_v15 = vpop.f32.mrb[1].mxu0  ;;  %v707_v16 = vpop.f32.mrb[1].mxu1 }
  0xfa   :  { %v580_v17 = vpop.f32.mrb[2].mxu0  ;;  %v708_v18 = vpop.f32.mrb[2].mxu1 }
  0xfb   :  { %v581_v19 = vadd.f32 %v2044_v10, %v580_v17  ;;  %v709_v20 = vadd.f32 %v2044_v10, %v708_v18  ;;  %v582_v21 = vpop.f32.mrb[3].mxu0  ;;  %v710_v22 = vpop.f32.mrb[3].mxu1  ;;  %v832_v23 = vmax.f32 %v578_v13, 0.0  ;;  %v864_v24 = vmax.f32 %v706_v14, 0.0 }
  0xfd   :  { %v833_v25 = vmax.f32 %v581_v19, 0.0  ;;  %v865_v26 = vmax.f32 %v709_v20, 0.0 }
  0xff   :  { %v1457_v27 = vpack.c.bf16 %v833_v25, %v832_v23  ;;  %v1537_v28 = vpack.c.bf16 %v865_v26, %v864_v24 }
 0x100   :  { %v585_v29 = vpop.f32.mrb[4].mxu0  ;;  %v713_v30 = vpop.f32.mrb[4].mxu1 }
 0x101   :  { %1458 = vst [vmem:[%s2209_s3] sm:$0xff] %v1457_v27   ;;  %1629 = vst [vmem:[%s2209_s3 + $0x80] sm:$0xff] %v1537_v28   ;;  %v586_v31 = vadd.f32 %v2044_v10, %v585_v29  ;;  %v714_v32 = vadd.f32 %v2044_v10, %v713_v30  ;;  %v587_v33 = vpop.f32.mrb[5].mxu0  ;;  %v715_v34 = vpop.f32.mrb[5].mxu1 }
 0x102   :  { %v588_v35 = vpop.f32.mrb[6].mxu0  ;;  %v716_v36 = vpop.f32.mrb[6].mxu1 }
 0x103   :  { %v589_v37 = vadd.f32 %v2044_v10, %v588_v35  ;;  %v717_v38 = vadd.f32 %v2044_v10, %v716_v36  ;;  %v590_v39 = vpop.f32.mrb[7].mxu0  ;;  %v718_v40 = vpop.f32.mrb[7].mxu1  ;;  %v834_v41 = vmax.f32 %v586_v31, 0.0  ;;  %v866_v42 = vmax.f32 %v714_v32, 0.0 }
 0x105   :  { %v835_v43 = vmax.f32 %v589_v37, 0.0  ;;  %v867_v44 = vmax.f32 %v717_v38, 0.0 }
 0x107   :  { %v1462_v45 = vpack.c.bf16 %v835_v43, %v834_v41  ;;  %v1542_v46 = vpack.c.bf16 %v867_v44, %v866_v42 }
 0x108   :  { %v593_v47 = vpop.f32.mrb[8].mxu0  ;;  %v721_v48 = vpop.f32.mrb[8].mxu1 }
 0x109   :  { %1614 = vst [vmem:[%s2209_s3 + $0x8] sm:$0xff] %v1462_v45   ;;  %1630 = vst [vmem:[%s2209_s3 + $0x88] sm:$0xff] %v1542_v46   ;;  %v594_v49 = vadd.f32 %v2044_v10, %v593_v47  ;;  %v722_v50 = vadd.f32 %v2044_v10, %v721_v48  ;;  %v595_v51 = vpop.f32.mrb[9].mxu0  ;;  %v723_v52 = vpop.f32.mrb[9].mxu1 }
 0x10a   :  { %v596_v53 = vpop.f32.mrb[10].mxu0  ;;  %v724_v54 = vpop.f32.mrb[10].mxu1 }
 0x10b   :  { %v597_v55 = vadd.f32 %v2044_v10, %v596_v53  ;;  %v725_v56 = vadd.f32 %v2044_v10, %v724_v54  ;;  %v598_v57 = vpop.f32.mrb[11].mxu0  ;;  %v726_v58 = vpop.f32.mrb[11].mxu1  ;;  %v836_v59 = vmax.f32 %v594_v49, 0.0  ;;  %v868_v60 = vmax.f32 %v722_v50, 0.0 }
 0x10d   :  { %v837_v61 = vmax.f32 %v597_v55, 0.0  ;;  %v869_v62 = vmax.f32 %v725_v56, 0.0 }
 0x10f   :  { %v1467_v63 = vpack.c.bf16 %v837_v61, %v836_v59  ;;  %v1547_v0 = vpack.c.bf16 %v869_v62, %v868_v60 }
 0x110   :  { %v601_v1 = vpop.f32.mrb[12].mxu0  ;;  %v729_v2 = vpop.f32.mrb[12].mxu1 }
 0x111   :  { %1615 = vst [vmem:[%s2209_s3 + $0x10] sm:$0xff] %v1467_v63   ;;  %1631 = vst [vmem:[%s2209_s3 + $0x90] sm:$0xff] %v1547_v0   ;;  %v602_v3 = vadd.f32 %v2044_v10, %v601_v1  ;;  %v730_v4 = vadd.f32 %v2044_v10, %v729_v2  ;;  %v603_v5 = vpop.f32.mrb[13].mxu0  ;;  %v731_v6 = vpop.f32.mrb[13].mxu1 }
 0x112   :  { %v604_v7 = vpop.f32.mrb[14].mxu0  ;;  %v732_v8 = vpop.f32.mrb[14].mxu1 }
 0x113   :  { %v605_v9 = vadd.f32 %v2044_v10, %v604_v7  ;;  %v733_v11 = vadd.f32 %v2044_v10, %v732_v8  ;;  %v606_v12 = vpop.f32.mrb[15].mxu0  ;;  %v734_v13 = vpop.f32.mrb[15].mxu1  ;;  %v838_v14 = vmax.f32 %v602_v3, 0.0  ;;  %v870_v15 = vmax.f32 %v730_v4, 0.0 }
 0x115   :  { %v839_v16 = vmax.f32 %v605_v9, 0.0  ;;  %v871_v17 = vmax.f32 %v733_v11, 0.0 }
 0x117   :  { %v1472_v18 = vpack.c.bf16 %v839_v16, %v838_v14  ;;  %v1552_v19 = vpack.c.bf16 %v871_v17, %v870_v15 }
 0x118   :  { %v609_v20 = vpop.f32.mrb[16].mxu0  ;;  %v737_v21 = vpop.f32.mrb[16].mxu1 }
 0x119   :  { %1616 = vst [vmem:[%s2209_s3 + $0x18] sm:$0xff] %v1472_v18   ;;  %1632 = vst [vmem:[%s2209_s3 + $0x98] sm:$0xff] %v1552_v19   ;;  %v610_v22 = vadd.f32 %v2044_v10, %v609_v20  ;;  %v738_v23 = vadd.f32 %v2044_v10, %v737_v21  ;;  %v611_v24 = vpop.f32.mrb[17].mxu0  ;;  %v739_v25 = vpop.f32.mrb[17].mxu1 }
 0x11a   :  { %v612_v26 = vpop.f32.mrb[18].mxu0  ;;  %v740_v27 = vpop.f32.mrb[18].mxu1 }
 0x11b   :  { %v613_v28 = vadd.f32 %v2044_v10, %v612_v26  ;;  %v741_v29 = vadd.f32 %v2044_v10, %v740_v27  ;;  %v614_v30 = vpop.f32.mrb[19].mxu0  ;;  %v742_v31 = vpop.f32.mrb[19].mxu1  ;;  %v840_v32 = vmax.f32 %v610_v22, 0.0  ;;  %v872_v33 = vmax.f32 %v738_v23, 0.0 }
 0x11d   :  { %v841_v34 = vmax.f32 %v613_v28, 0.0  ;;  %v873_v35 = vmax.f32 %v741_v29, 0.0 }
 0x11f   :  { %v1477_v36 = vpack.c.bf16 %v841_v34, %v840_v32  ;;  %v1557_v37 = vpack.c.bf16 %v873_v35, %v872_v33 }
 0x120   :  { %v617_v38 = vpop.f32.mrb[20].mxu0  ;;  %v745_v39 = vpop.f32.mrb[20].mxu1 }
 0x121   :  { %1617 = vst [vmem:[%s2209_s3 + $0x20] sm:$0xff] %v1477_v36   ;;  %1633 = vst [vmem:[%s2209_s3 + $0xa0] sm:$0xff] %v1557_v37   ;;  %v618_v40 = vadd.f32 %v2044_v10, %v617_v38  ;;  %v746_v41 = vadd.f32 %v2044_v10, %v745_v39  ;;  %v619_v42 = vpop.f32.mrb[21].mxu0  ;;  %v747_v43 = vpop.f32.mrb[21].mxu1 }
 0x122   :  { %v620_v44 = vpop.f32.mrb[22].mxu0  ;;  %v748_v45 = vpop.f32.mrb[22].mxu1 }
 0x123   :  { %v621_v46 = vadd.f32 %v2044_v10, %v620_v44  ;;  %v749_v47 = vadd.f32 %v2044_v10, %v748_v45  ;;  %v622_v48 = vpop.f32.mrb[23].mxu0  ;;  %v750_v49 = vpop.f32.mrb[23].mxu1  ;;  %v842_v50 = vmax.f32 %v618_v40, 0.0  ;;  %v874_v51 = vmax.f32 %v746_v41, 0.0 }
 0x125   :  { %v843_v52 = vmax.f32 %v621_v46, 0.0  ;;  %v875_v53 = vmax.f32 %v749_v47, 0.0 }
 0x127   :  { %v1482_v54 = vpack.c.bf16 %v843_v52, %v842_v50  ;;  %v1562_v55 = vpack.c.bf16 %v875_v53, %v874_v51 }
 0x128   :  { %v625_v56 = vpop.f32.mrb[24].mxu0  ;;  %v753_v57 = vpop.f32.mrb[24].mxu1 }
 0x129   :  { %1618 = vst [vmem:[%s2209_s3 + $0x28] sm:$0xff] %v1482_v54   ;;  %1634 = vst [vmem:[%s2209_s3 + $0xa8] sm:$0xff] %v1562_v55   ;;  %v626_v58 = vadd.f32 %v2044_v10, %v625_v56  ;;  %v754_v59 = vadd.f32 %v2044_v10, %v753_v57  ;;  %v627_v60 = vpop.f32.mrb[25].mxu0  ;;  %v755_v61 = vpop.f32.mrb[25].mxu1 }
 0x12a   :  { %v628_v62 = vpop.f32.mrb[26].mxu0  ;;  %v756_v63 = vpop.f32.mrb[26].mxu1 }
 0x12b   :  { %v629_v0 = vadd.f32 %v2044_v10, %v628_v62  ;;  %v757_v1 = vadd.f32 %v2044_v10, %v756_v63  ;;  %v630_v2 = vpop.f32.mrb[27].mxu0  ;;  %v758_v3 = vpop.f32.mrb[27].mxu1  ;;  %v844_v4 = vmax.f32 %v626_v58, 0.0  ;;  %v876_v5 = vmax.f32 %v754_v59, 0.0 }
 0x12d   :  { %v845_v6 = vmax.f32 %v629_v0, 0.0  ;;  %v877_v7 = vmax.f32 %v757_v1, 0.0 }
 0x12f   :  { %v1487_v8 = vpack.c.bf16 %v845_v6, %v844_v4  ;;  %v1567_v9 = vpack.c.bf16 %v877_v7, %v876_v5 }
 0x130   :  { %v633_v11 = vpop.f32.mrb[28].mxu0  ;;  %v761_v12 = vpop.f32.mrb[28].mxu1 }
 0x131   :  { %1619 = vst [vmem:[%s2209_s3 + $0x30] sm:$0xff] %v1487_v8   ;;  %1635 = vst [vmem:[%s2209_s3 + $0xb0] sm:$0xff] %v1567_v9   ;;  %v634_v13 = vadd.f32 %v2044_v10, %v633_v11  ;;  %v762_v14 = vadd.f32 %v2044_v10, %v761_v12  ;;  %v635_v15 = vpop.f32.mrb[29].mxu0  ;;  %v763_v16 = vpop.f32.mrb[29].mxu1 }
 0x132   :  { %v636_v17 = vpop.f32.mrb[30].mxu0  ;;  %v764_v18 = vpop.f32.mrb[30].mxu1 }
 0x133   :  { %v637_v19 = vadd.f32 %v2044_v10, %v636_v17  ;;  %v765_v20 = vadd.f32 %v2044_v10, %v764_v18  ;;  %v638_v21 = vpop.f32.mrb[31].mxu0  ;;  %v766_v22 = vpop.f32.mrb[31].mxu1  ;;  %v846_v23 = vmax.f32 %v634_v13, 0.0  ;;  %v878_v24 = vmax.f32 %v762_v14, 0.0 }
 0x135   :  { %v847_v25 = vmax.f32 %v637_v19, 0.0  ;;  %v879_v26 = vmax.f32 %v765_v20, 0.0 }
 0x137   :  { %v1492_v27 = vpack.c.bf16 %v847_v25, %v846_v23  ;;  %v1572_v28 = vpack.c.bf16 %v879_v26, %v878_v24 }
 0x138   :  { %v641_v29 = vpop.f32.mrb[32].mxu0  ;;  %v769_v30 = vpop.f32.mrb[32].mxu1 }
 0x139   :  { %1620 = vst [vmem:[%s2209_s3 + $0x38] sm:$0xff] %v1492_v27   ;;  %1636 = vst [vmem:[%s2209_s3 + $0xb8] sm:$0xff] %v1572_v28   ;;  %v642_v31 = vadd.f32 %v2044_v10, %v641_v29  ;;  %v770_v32 = vadd.f32 %v2044_v10, %v769_v30  ;;  %v643_v33 = vpop.f32.mrb[33].mxu0  ;;  %v771_v34 = vpop.f32.mrb[33].mxu1 }
 0x13a   :  { %v644_v35 = vpop.f32.mrb[34].mxu0  ;;  %v772_v36 = vpop.f32.mrb[34].mxu1 }
 0x13b   :  { %v645_v37 = vadd.f32 %v2044_v10, %v644_v35  ;;  %v773_v38 = vadd.f32 %v2044_v10, %v772_v36  ;;  %v646_v39 = vpop.f32.mrb[35].mxu0  ;;  %v774_v40 = vpop.f32.mrb[35].mxu1  ;;  %v848_v41 = vmax.f32 %v642_v31, 0.0  ;;  %v880_v42 = vmax.f32 %v770_v32, 0.0 }
 0x13d   :  { %v849_v43 = vmax.f32 %v645_v37, 0.0  ;;  %v881_v44 = vmax.f32 %v773_v38, 0.0 }
 0x13f   :  { %v1497_v45 = vpack.c.bf16 %v849_v43, %v848_v41  ;;  %v1577_v46 = vpack.c.bf16 %v881_v44, %v880_v42 }
 0x140   :  { %v649_v47 = vpop.f32.mrb[36].mxu0  ;;  %v777_v48 = vpop.f32.mrb[36].mxu1 }
 0x141   :  { %1621 = vst [vmem:[%s2209_s3 + $0x40] sm:$0xff] %v1497_v45   ;;  %1637 = vst [vmem:[%s2209_s3 + $0xc0] sm:$0xff] %v1577_v46   ;;  %v650_v49 = vadd.f32 %v2044_v10, %v649_v47  ;;  %v778_v50 = vadd.f32 %v2044_v10, %v777_v48  ;;  %v651_v51 = vpop.f32.mrb[37].mxu0  ;;  %v779_v52 = vpop.f32.mrb[37].mxu1 }
 0x142   :  { %v652_v53 = vpop.f32.mrb[38].mxu0  ;;  %v780_v54 = vpop.f32.mrb[38].mxu1 }
 0x143   :  { %v653_v55 = vadd.f32 %v2044_v10, %v652_v53  ;;  %v781_v56 = vadd.f32 %v2044_v10, %v780_v54  ;;  %v654_v57 = vpop.f32.mrb[39].mxu0  ;;  %v782_v58 = vpop.f32.mrb[39].mxu1  ;;  %v850_v59 = vmax.f32 %v650_v49, 0.0  ;;  %v882_v60 = vmax.f32 %v778_v50, 0.0 }
 0x145   :  { %v851_v61 = vmax.f32 %v653_v55, 0.0  ;;  %v883_v62 = vmax.f32 %v781_v56, 0.0 }
 0x147   :  { %v1502_v63 = vpack.c.bf16 %v851_v61, %v850_v59  ;;  %v1582_v0 = vpack.c.bf16 %v883_v62, %v882_v60 }
 0x148   :  { %v657_v1 = vpop.f32.mrb[40].mxu0  ;;  %v785_v2 = vpop.f32.mrb[40].mxu1 }
 0x149   :  { %1622 = vst [vmem:[%s2209_s3 + $0x48] sm:$0xff] %v1502_v63   ;;  %1638 = vst [vmem:[%s2209_s3 + $0xc8] sm:$0xff] %v1582_v0   ;;  %v658_v3 = vadd.f32 %v2044_v10, %v657_v1  ;;  %v786_v4 = vadd.f32 %v2044_v10, %v785_v2  ;;  %v659_v5 = vpop.f32.mrb[41].mxu0  ;;  %v787_v6 = vpop.f32.mrb[41].mxu1 }
 0x14a   :  { %v660_v7 = vpop.f32.mrb[42].mxu0  ;;  %v788_v8 = vpop.f32.mrb[42].mxu1 }
 0x14b   :  { %v661_v9 = vadd.f32 %v2044_v10, %v660_v7  ;;  %v789_v11 = vadd.f32 %v2044_v10, %v788_v8  ;;  %v662_v12 = vpop.f32.mrb[43].mxu0  ;;  %v790_v13 = vpop.f32.mrb[43].mxu1  ;;  %v852_v14 = vmax.f32 %v658_v3, 0.0  ;;  %v884_v15 = vmax.f32 %v786_v4, 0.0 }
 0x14d   :  { %v853_v16 = vmax.f32 %v661_v9, 0.0  ;;  %v885_v17 = vmax.f32 %v789_v11, 0.0 }
 0x14f   :  { %v1507_v18 = vpack.c.bf16 %v853_v16, %v852_v14  ;;  %v1587_v19 = vpack.c.bf16 %v885_v17, %v884_v15 }
 0x150   :  { %v665_v20 = vpop.f32.mrb[44].mxu0  ;;  %v793_v21 = vpop.f32.mrb[44].mxu1 }
 0x151   :  { %1623 = vst [vmem:[%s2209_s3 + $0x50] sm:$0xff] %v1507_v18   ;;  %1639 = vst [vmem:[%s2209_s3 + $0xd0] sm:$0xff] %v1587_v19   ;;  %v666_v22 = vadd.f32 %v2044_v10, %v665_v20  ;;  %v794_v23 = vadd.f32 %v2044_v10, %v793_v21  ;;  %v667_v24 = vpop.f32.mrb[45].mxu0  ;;  %v795_v25 = vpop.f32.mrb[45].mxu1 }
 0x152   :  { %v668_v26 = vpop.f32.mrb[46].mxu0  ;;  %v796_v27 = vpop.f32.mrb[46].mxu1 }
 0x153   :  { %v669_v28 = vadd.f32 %v2044_v10, %v668_v26  ;;  %v797_v29 = vadd.f32 %v2044_v10, %v796_v27  ;;  %v670_v30 = vpop.f32.mrb[47].mxu0  ;;  %v798_v31 = vpop.f32.mrb[47].mxu1  ;;  %v854_v32 = vmax.f32 %v666_v22, 0.0  ;;  %v886_v33 = vmax.f32 %v794_v23, 0.0 }
 0x155   :  { %v855_v34 = vmax.f32 %v669_v28, 0.0  ;;  %v887_v35 = vmax.f32 %v797_v29, 0.0 }
 0x157   :  { %v1512_v36 = vpack.c.bf16 %v855_v34, %v854_v32  ;;  %v1592_v37 = vpack.c.bf16 %v887_v35, %v886_v33 }
 0x158   :  { %v673_v38 = vpop.f32.mrb[48].mxu0  ;;  %v801_v39 = vpop.f32.mrb[48].mxu1 }
 0x159   :  { %1624 = vst [vmem:[%s2209_s3 + $0x58] sm:$0xff] %v1512_v36   ;;  %1640 = vst [vmem:[%s2209_s3 + $0xd8] sm:$0xff] %v1592_v37   ;;  %v674_v40 = vadd.f32 %v2044_v10, %v673_v38  ;;  %v802_v41 = vadd.f32 %v2044_v10, %v801_v39  ;;  %v675_v42 = vpop.f32.mrb[49].mxu0  ;;  %v803_v43 = vpop.f32.mrb[49].mxu1 }
 0x15a   :  { %v676_v44 = vpop.f32.mrb[50].mxu0  ;;  %v804_v45 = vpop.f32.mrb[50].mxu1 }
 0x15b   :  { %v677_v46 = vadd.f32 %v2044_v10, %v676_v44  ;;  %v805_v47 = vadd.f32 %v2044_v10, %v804_v45  ;;  %v678_v48 = vpop.f32.mrb[51].mxu0  ;;  %v806_v49 = vpop.f32.mrb[51].mxu1  ;;  %v856_v50 = vmax.f32 %v674_v40, 0.0  ;;  %v888_v51 = vmax.f32 %v802_v41, 0.0 }
 0x15d   :  { %v857_v52 = vmax.f32 %v677_v46, 0.0  ;;  %v889_v53 = vmax.f32 %v805_v47, 0.0 }
 0x15f   :  { %v1517_v54 = vpack.c.bf16 %v857_v52, %v856_v50  ;;  %v1597_v55 = vpack.c.bf16 %v889_v53, %v888_v51 }
 0x160   :  { %v681_v56 = vpop.f32.mrb[52].mxu0  ;;  %v809_v57 = vpop.f32.mrb[52].mxu1 }
 0x161   :  { %1625 = vst [vmem:[%s2209_s3 + $0x60] sm:$0xff] %v1517_v54   ;;  %1641 = vst [vmem:[%s2209_s3 + $0xe0] sm:$0xff] %v1597_v55   ;;  %v682_v58 = vadd.f32 %v2044_v10, %v681_v56  ;;  %v810_v59 = vadd.f32 %v2044_v10, %v809_v57  ;;  %v683_v60 = vpop.f32.mrb[53].mxu0  ;;  %v811_v61 = vpop.f32.mrb[53].mxu1 }
 0x162   :  { %v684_v62 = vpop.f32.mrb[54].mxu0  ;;  %v812_v63 = vpop.f32.mrb[54].mxu1 }
 0x163   :  { %v685_v0 = vadd.f32 %v2044_v10, %v684_v62  ;;  %v813_v1 = vadd.f32 %v2044_v10, %v812_v63  ;;  %v686_v2 = vpop.f32.mrb[55].mxu0  ;;  %v814_v3 = vpop.f32.mrb[55].mxu1  ;;  %v858_v4 = vmax.f32 %v682_v58, 0.0  ;;  %v890_v5 = vmax.f32 %v810_v59, 0.0 }
 0x165   :  { %v859_v6 = vmax.f32 %v685_v0, 0.0  ;;  %v891_v7 = vmax.f32 %v813_v1, 0.0 }
 0x167   :  { %v1522_v8 = vpack.c.bf16 %v859_v6, %v858_v4  ;;  %v1602_v9 = vpack.c.bf16 %v891_v7, %v890_v5 }
 0x168   :  { %v689_v11 = vpop.f32.mrb[56].mxu0  ;;  %v817_v12 = vpop.f32.mrb[56].mxu1 }
 0x169   :  { %1626 = vst [vmem:[%s2209_s3 + $0x68] sm:$0xff] %v1522_v8   ;;  %1642 = vst [vmem:[%s2209_s3 + $0xe8] sm:$0xff] %v1602_v9   ;;  %v690_v13 = vadd.f32 %v2044_v10, %v689_v11  ;;  %v818_v14 = vadd.f32 %v2044_v10, %v817_v12  ;;  %v691_v15 = vpop.f32.mrb[57].mxu0  ;;  %v819_v16 = vpop.f32.mrb[57].mxu1 }
 0x16a   :  { %v692_v17 = vpop.f32.mrb[58].mxu0  ;;  %v820_v18 = vpop.f32.mrb[58].mxu1 }
 0x16b   :  { %v693_v19 = vadd.f32 %v2044_v10, %v692_v17  ;;  %v821_v20 = vadd.f32 %v2044_v10, %v820_v18  ;;  %v694_v21 = vpop.f32.mrb[59].mxu0  ;;  %v822_v22 = vpop.f32.mrb[59].mxu1  ;;  %v860_v23 = vmax.f32 %v690_v13, 0.0  ;;  %v892_v24 = vmax.f32 %v818_v14, 0.0 }
 0x16d   :  { %v861_v25 = vmax.f32 %v693_v19, 0.0  ;;  %v893_v26 = vmax.f32 %v821_v20, 0.0 }
 0x16f   :  { %v1527_v27 = vpack.c.bf16 %v861_v25, %v860_v23  ;;  %v1607_v28 = vpack.c.bf16 %v893_v26, %v892_v24 }
 0x170   :  { %v697_v29 = vpop.f32.mrb[60].mxu0  ;;  %v825_v30 = vpop.f32.mrb[60].mxu1 }
 0x171   :  { %1627 = vst [vmem:[%s2209_s3 + $0x70] sm:$0xff] %v1527_v27   ;;  %1643 = vst [vmem:[%s2209_s3 + $0xf0] sm:$0xff] %v1607_v28   ;;  %v698_v31 = vadd.f32 %v2044_v10, %v697_v29  ;;  %v826_v32 = vadd.f32 %v2044_v10, %v825_v30  ;;  %v699_v33 = vpop.f32.mrb[61].mxu0  ;;  %v827_v34 = vpop.f32.mrb[61].mxu1 }
 0x172   :  { %v700_v35 = vpop.f32.mrb[62].mxu0  ;;  %v828_v36 = vpop.f32.mrb[62].mxu1 }
 0x173   :  { %v701_v37 = vadd.f32 %v2044_v10, %v700_v35  ;;  %v829_v38 = vadd.f32 %v2044_v10, %v828_v36  ;;  %v702_v39 = vpop.f32.mrb[63].mxu0  ;;  %v830_v40 = vpop.f32.mrb[63].mxu1  ;;  %v862_v41 = vmax.f32 %v698_v31, 0.0  ;;  %v894_v42 = vmax.f32 %v826_v32, 0.0 }
 0x175   :  { %v863_v43 = vmax.f32 %v701_v37, 0.0  ;;  %v895_v44 = vmax.f32 %v829_v38, 0.0 }
 0x177   :  { %v1532_v45 = vpack.c.bf16 %v863_v43, %v862_v41  ;;  %v1612_v46 = vpack.c.bf16 %v895_v44, %v894_v42 }
 0x179   :  { %1628 = vst [vmem:[%s2209_s3 + $0x78] sm:$0xff] %v1532_v45   ;;  %1644 = vst [vmem:[%s2209_s3 + $0xf8] sm:$0xff] %v1612_v46  }

// kernel: horizonnet_forward.32
= control target key start
LH: loop header
LB: loop body
LE: loop exit
PB: predicated region body
PF: predicated region fallthrough
CT: control target
= control target key end

     0   :  { %vm170_vm0 = vcmask 588800   ;;  %vm219_vm1 = vcmask 1043456   ;;  %s1057_s1 = inlined_call_operand.vmem [shape: bf16[72,128], index: 1, kind: input, shape index: {}]   ;;  %s1058_s0 = inlined_call_operand.vmem [shape: bf16[256,72], index: 0, kind: input, shape index: {}]   ;;  %s1059_s2 = inlined_call_operand.vmem [shape: f32[1,128], index: 2, kind: input, shape index: {}]   ;;  %s1060_s3 = inlined_call_operand.vmem [shape: bf16[256,128], index: 3, kind: output, shape index: {}]  }
   0x1   :  { %v852_v0 = vld [vmem:[%s1057_s1] sm:$0xff]   ;;  %v853_v1 = vld [vmem:[%s1057_s1 + $0x8] sm:$0xff]   ;;  %v854_v2 = vld [vmem:[%s1057_s1 + $0x10] sm:$0xff]  }
   0x2   :  { %798 = vmatprep.subr.bf16.mxu0 %v852_v0  ;;  %840 = vmatprep.subr.bf16.mxu1 %v852_v0  ;;  %v857_v3 = vld [vmem:[%s1058_s0] sm:$0xff]   ;;  %v855_v5 = vld [vmem:[%s1057_s1 + $0x18] sm:$0xff]   ;;  %v859_v8 = vld [vmem:[%s1058_s0 + $0x8] sm:$0xff]  }
   0x3   :  { %799 = vmatpush3.bf16.msra.mxu0 %v852_v0  ;;  %845 = vmatpush3.bf16.msra.mxu1 %v852_v0  ;;  %v858_v4 = vld [vmem:[%s1058_s0 + $0x40] sm:$0xff]   ;;  %v860_v9 = vld [vmem:[%s1058_s0 + $0x48] sm:$0xff]   ;;  %v861_v10 = vld [vmem:[%s1058_s0 + $0x10] sm:$0xff]  }
   0x4   :  { %800 = vmatprep.subr.bf16.mxu0 %v853_v1  ;;  %841 = vmatprep.subr.bf16.mxu1 %v853_v1  ;;  %v856_v6 = vld [vmem:[%s1057_s1 + $0x20] ss:$0 sps:$4 sm:$0xff]   ;;  %v862_v11 = vld [vmem:[%s1058_s0 + $0x50] sm:$0xff]   ;;  %v863_v12 = vld [vmem:[%s1058_s0 + $0x18] sm:$0xff]  }
   0x5   :  { %808 = vmatprep.mubr.msk.bf16.mxu0 %vm170_vm0, %v857_v3  ;;  %824 = vmatprep.mubr.msk.bf16.mxu1 %vm170_vm0, %v858_v4  ;;  %v221_v7 = vsel %vm219_vm1, %v856_v6, 0  ;;  %v864_v13 = vld [vmem:[%s1058_s0 + $0x58] sm:$0xff]   ;;  %v865_v14 = vld [vmem:[%s1058_s0 + $0x20] sm:$0xff]   ;;  %v867_v16 = vld [vmem:[%s1058_s0 + $0x28] sm:$0xff]  }
   0x6   :  { %v866_v15 = vld [vmem:[%s1058_s0 + $0x60] sm:$0xff]   ;;  %v868_v17 = vld [vmem:[%s1058_s0 + $0x68] sm:$0xff]   ;;  %v869_v18 = vld [vmem:[%s1058_s0 + $0x30] sm:$0xff]  }
   0x7   :  { %801 = vmatpush3.bf16.msra.mxu0 %v853_v1  ;;  %846 = vmatpush3.bf16.msra.mxu1 %v853_v1  ;;  %v870_v19 = vld [vmem:[%s1058_s0 + $0x70] sm:$0xff]   ;;  %v871_v20 = vld [vmem:[%s1058_s0 + $0x38] sm:$0xff]   ;;  %v975_v22 = vld [vmem:[%s1059_s2] ss:$0 sm:$0xff] }
   0x8   :  { %802 = vmatprep.subr.bf16.mxu0 %v854_v2  ;;  %842 = vmatprep.subr.bf16.mxu1 %v854_v2  ;;  %v872_v21 = vld [vmem:[%s1058_s0 + $0x78] sm:$0xff]  }
   0xb   :  { %803 = vmatpush3.bf16.msra.mxu0 %v854_v2  ;;  %847 = vmatpush3.bf16.msra.mxu1 %v854_v2 }
   0xc   :  { %804 = vmatprep.subr.bf16.mxu0 %v855_v5  ;;  %843 = vmatprep.subr.bf16.mxu1 %v855_v5 }
   0xf   :  { %805 = vmatpush3.bf16.msra.mxu0 %v855_v5  ;;  %848 = vmatpush3.bf16.msra.mxu1 %v855_v5 }
  0x10   :  { %850 = vmatprep.subr.msk.bf16.mxu0 %vm219_vm1, %v856_v6  ;;  %851 = vmatprep.subr.msk.bf16.mxu1 %vm219_vm1, %v856_v6 }
  0x13   :  { %807 = vmatpush3.bf16.msra.mxu0 %v221_v7  ;;  %849 = vmatpush3.bf16.msra.mxu1 %v221_v7 }
  0x16   :  { %809 = vmatmul.mubr.msk.bf16.vlgmr.msra.gmra.mrb[0].mxu0 %vm170_vm0, %v859_v8  ;;  %825 = vmatmul.mubr.msk.bf16.vlgmr.msra.gmra.mrb[0].mxu1 %vm170_vm0, %v860_v9 }
  0x17   :  { %812 = vmatprep.mubr.msk.bf16.mxu0 %vm170_vm0, %v861_v10  ;;  %828 = vmatprep.mubr.msk.bf16.mxu1 %vm170_vm0, %v862_v11 }
  0x1e   :  { %813 = vmatmul.mubr.msk.bf16.gmra.mrb[4].mxu0 %vm170_vm0, %v863_v12  ;;  %829 = vmatmul.mubr.msk.bf16.gmra.mrb[4].mxu1 %vm170_vm0, %v864_v13 }
  0x1f   :  { %816 = vmatprep.mubr.msk.bf16.mxu0 %vm170_vm0, %v865_v14  ;;  %832 = vmatprep.mubr.msk.bf16.mxu1 %vm170_vm0, %v866_v15 }
  0x26   :  { %817 = vmatmul.mubr.msk.bf16.gmra.mrb[8].mxu0 %vm170_vm0, %v867_v16  ;;  %833 = vmatmul.mubr.msk.bf16.gmra.mrb[8].mxu1 %vm170_vm0, %v868_v17 }
  0x27   :  { %820 = vmatprep.mubr.msk.bf16.mxu0 %vm170_vm0, %v869_v18  ;;  %836 = vmatprep.mubr.msk.bf16.mxu1 %vm170_vm0, %v870_v19 }
  0x2e   :  { %821 = vmatmul.mubr.msk.bf16.gmra.mrb[12].mxu0 %vm170_vm0, %v871_v20  ;;  %837 = vmatmul.mubr.msk.bf16.gmra.mrb[12].mxu1 %vm170_vm0, %v872_v21 }
  0xe9   :  { %v810_v23 = vpop.f32.mrb[0].mxu0  ;;  %v826_v24 = vpop.f32.mrb[0].mxu1 }
  0xea   :  { %v266_v25 = vadd.f32 %v810_v23, %v975_v22  ;;  %v330_v26 = vadd.f32 %v826_v24, %v975_v22  ;;  %v257_v27 = vpop.f32.mrb[1].mxu0  ;;  %v321_v28 = vpop.f32.mrb[1].mxu1 }
  0xeb   :  { %v258_v29 = vadd.f32 %v975_v22, %v257_v27  ;;  %v322_v30 = vadd.f32 %v975_v22, %v321_v28  ;;  %v811_v31 = vpop.f32.mrb[2].mxu0  ;;  %v827_v32 = vpop.f32.mrb[2].mxu1 }
  0xec   :  { %v269_v33 = vadd.f32 %v811_v31, %v975_v22  ;;  %v333_v34 = vadd.f32 %v827_v32, %v975_v22  ;;  %v260_v35 = vpop.f32.mrb[3].mxu0  ;;  %v324_v36 = vpop.f32.mrb[3].mxu1  ;;  %v386_v39 = vmax.f32 %v266_v25, 0.0  ;;  %v402_v40 = vmax.f32 %v330_v26, 0.0 }
  0xed   :  { %v261_v37 = vadd.f32 %v975_v22, %v260_v35  ;;  %v325_v38 = vadd.f32 %v975_v22, %v324_v36  ;;  %v384_v43 = vmax.f32 %v258_v29, 0.0  ;;  %v400_v44 = vmax.f32 %v322_v30, 0.0 }
  0xee   :  { %v387_v41 = vmax.f32 %v269_v33, 0.0  ;;  %v403_v42 = vmax.f32 %v333_v34, 0.0 }
  0xef   :  { %v385_v45 = vmax.f32 %v261_v37, 0.0  ;;  %v401_v46 = vmax.f32 %v325_v38, 0.0 }
  0xf0   :  { %v690_v47 = vpack.c.bf16 %v387_v41, %v386_v39  ;;  %v730_v48 = vpack.c.bf16 %v403_v42, %v402_v40 }
  0xf1   :  { %v685_v49 = vpack.c.bf16 %v385_v45, %v384_v43  ;;  %v725_v50 = vpack.c.bf16 %v401_v46, %v400_v44  ;;  %v814_v51 = vpop.f32.mrb[4].mxu0  ;;  %v830_v52 = vpop.f32.mrb[4].mxu1 }
  0xf2   :  { %762 = vst [vmem:[%s1060_s3 + $0x8] sm:$0xff] %v690_v47   ;;  %770 = vst [vmem:[%s1060_s3 + $0x48] sm:$0xff] %v730_v48   ;;  %v282_v53 = vadd.f32 %v814_v51, %v975_v22  ;;  %v346_v54 = vadd.f32 %v830_v52, %v975_v22  ;;  %v273_v55 = vpop.f32.mrb[5].mxu0  ;;  %v337_v56 = vpop.f32.mrb[5].mxu1 }
  0xf3   :  { %686 = vst [vmem:[%s1060_s3] sm:$0xff] %v685_v49   ;;  %769 = vst [vmem:[%s1060_s3 + $0x40] sm:$0xff] %v725_v50   ;;  %v274_v57 = vadd.f32 %v975_v22, %v273_v55  ;;  %v338_v58 = vadd.f32 %v975_v22, %v337_v56  ;;  %v815_v59 = vpop.f32.mrb[6].mxu0  ;;  %v831_v60 = vpop.f32.mrb[6].mxu1 }
  0xf4   :  { %v285_v61 = vadd.f32 %v815_v59, %v975_v22  ;;  %v349_v62 = vadd.f32 %v831_v60, %v975_v22  ;;  %v276_v63 = vpop.f32.mrb[7].mxu0  ;;  %v340_v0 = vpop.f32.mrb[7].mxu1  ;;  %v390_v3 = vmax.f32 %v282_v53, 0.0  ;;  %v406_v4 = vmax.f32 %v346_v54, 0.0 }
  0xf5   :  { %v277_v1 = vadd.f32 %v975_v22, %v276_v63  ;;  %v341_v2 = vadd.f32 %v975_v22, %v340_v0  ;;  %v388_v7 = vmax.f32 %v274_v57, 0.0  ;;  %v404_v8 = vmax.f32 %v338_v58, 0.0 }
  0xf6   :  { %v391_v5 = vmax.f32 %v285_v61, 0.0  ;;  %v407_v6 = vmax.f32 %v349_v62, 0.0 }
  0xf7   :  { %v389_v9 = vmax.f32 %v277_v1, 0.0  ;;  %v405_v10 = vmax.f32 %v341_v2, 0.0 }
  0xf8   :  { %v700_v11 = vpack.c.bf16 %v391_v5, %v390_v3  ;;  %v740_v12 = vpack.c.bf16 %v407_v6, %v406_v4 }
  0xf9   :  { %v695_v13 = vpack.c.bf16 %v389_v9, %v388_v7  ;;  %v735_v14 = vpack.c.bf16 %v405_v10, %v404_v8  ;;  %v818_v15 = vpop.f32.mrb[8].mxu0  ;;  %v834_v16 = vpop.f32.mrb[8].mxu1 }
  0xfa   :  { %764 = vst [vmem:[%s1060_s3 + $0x18] sm:$0xff] %v700_v11   ;;  %772 = vst [vmem:[%s1060_s3 + $0x58] sm:$0xff] %v740_v12   ;;  %v298_v17 = vadd.f32 %v818_v15, %v975_v22  ;;  %v362_v18 = vadd.f32 %v834_v16, %v975_v22  ;;  %v289_v19 = vpop.f32.mrb[9].mxu0  ;;  %v353_v20 = vpop.f32.mrb[9].mxu1 }
  0xfb   :  { %763 = vst [vmem:[%s1060_s3 + $0x10] sm:$0xff] %v695_v13   ;;  %771 = vst [vmem:[%s1060_s3 + $0x50] sm:$0xff] %v735_v14   ;;  %v290_v21 = vadd.f32 %v975_v22, %v289_v19  ;;  %v354_v23 = vadd.f32 %v975_v22, %v353_v20  ;;  %v819_v24 = vpop.f32.mrb[10].mxu0  ;;  %v835_v25 = vpop.f32.mrb[10].mxu1 }
  0xfc   :  { %v301_v26 = vadd.f32 %v819_v24, %v975_v22  ;;  %v365_v27 = vadd.f32 %v835_v25, %v975_v22  ;;  %v292_v28 = vpop.f32.mrb[11].mxu0  ;;  %v356_v29 = vpop.f32.mrb[11].mxu1  ;;  %v394_v32 = vmax.f32 %v298_v17, 0.0  ;;  %v410_v33 = vmax.f32 %v362_v18, 0.0 }
  0xfd   :  { %v293_v30 = vadd.f32 %v975_v22, %v292_v28  ;;  %v357_v31 = vadd.f32 %v975_v22, %v356_v29  ;;  %v392_v36 = vmax.f32 %v290_v21, 0.0  ;;  %v408_v37 = vmax.f32 %v354_v23, 0.0 }
  0xfe   :  { %v395_v34 = vmax.f32 %v301_v26, 0.0  ;;  %v411_v35 = vmax.f32 %v365_v27, 0.0 }
  0xff   :  { %v393_v38 = vmax.f32 %v293_v30, 0.0  ;;  %v409_v39 = vmax.f32 %v357_v31, 0.0 }
 0x100   :  { %v710_v40 = vpack.c.bf16 %v395_v34, %v394_v32  ;;  %v750_v41 = vpack.c.bf16 %v411_v35, %v410_v33 }
 0x101   :  { %v705_v42 = vpack.c.bf16 %v393_v38, %v392_v36  ;;  %v745_v43 = vpack.c.bf16 %v409_v39, %v408_v37  ;;  %v822_v44 = vpop.f32.mrb[12].mxu0  ;;  %v838_v45 = vpop.f32.mrb[12].mxu1 }
 0x102   :  { %766 = vst [vmem:[%s1060_s3 + $0x28] sm:$0xff] %v710_v40   ;;  %774 = vst [vmem:[%s1060_s3 + $0x68] sm:$0xff] %v750_v41   ;;  %v314_v46 = vadd.f32 %v822_v44, %v975_v22  ;;  %v378_v47 = vadd.f32 %v838_v45, %v975_v22  ;;  %v305_v48 = vpop.f32.mrb[13].mxu0  ;;  %v369_v49 = vpop.f32.mrb[13].mxu1 }
 0x103   :  { %765 = vst [vmem:[%s1060_s3 + $0x20] sm:$0xff] %v705_v42   ;;  %773 = vst [vmem:[%s1060_s3 + $0x60] sm:$0xff] %v745_v43   ;;  %v306_v50 = vadd.f32 %v975_v22, %v305_v48  ;;  %v370_v51 = vadd.f32 %v975_v22, %v369_v49  ;;  %v823_v52 = vpop.f32.mrb[14].mxu0  ;;  %v839_v53 = vpop.f32.mrb[14].mxu1 }
 0x104   :  { %v317_v54 = vadd.f32 %v823_v52, %v975_v22  ;;  %v381_v55 = vadd.f32 %v839_v53, %v975_v22  ;;  %v308_v56 = vpop.f32.mrb[15].mxu0  ;;  %v372_v57 = vpop.f32.mrb[15].mxu1  ;;  %v398_v60 = vmax.f32 %v314_v46, 0.0  ;;  %v414_v61 = vmax.f32 %v378_v47, 0.0 }
 0x105   :  { %v309_v58 = vadd.f32 %v975_v22, %v308_v56  ;;  %v373_v59 = vadd.f32 %v975_v22, %v372_v57  ;;  %v396_v0 = vmax.f32 %v306_v50, 0.0  ;;  %v412_v1 = vmax.f32 %v370_v51, 0.0 }
 0x106   :  { %v399_v62 = vmax.f32 %v317_v54, 0.0  ;;  %v415_v63 = vmax.f32 %v381_v55, 0.0 }
 0x107   :  { %v397_v2 = vmax.f32 %v309_v58, 0.0  ;;  %v413_v3 = vmax.f32 %v373_v59, 0.0 }
 0x108   :  { %v720_v4 = vpack.c.bf16 %v399_v62, %v398_v60  ;;  %v760_v5 = vpack.c.bf16 %v415_v63, %v414_v61 }
 0x109   :  { %v715_v6 = vpack.c.bf16 %v397_v2, %v396_v0  ;;  %v755_v7 = vpack.c.bf16 %v413_v3, %v412_v1 }
 0x10a   :  { %768 = vst [vmem:[%s1060_s3 + $0x38] sm:$0xff] %v720_v4   ;;  %776 = vst [vmem:[%s1060_s3 + $0x78] sm:$0xff] %v760_v5  }
 0x10b   :  { %767 = vst [vmem:[%s1060_s3 + $0x30] sm:$0xff] %v715_v6   ;;  %775 = vst [vmem:[%s1060_s3 + $0x70] sm:$0xff] %v755_v7  }

// kernel: horizonnet_forward.33
= control target key start
LH: loop header
LB: loop body
LE: loop exit
PB: predicated region body
PF: predicated region fallthrough
CT: control target
= control target key end

     0   :  { %vm114_vm0 = vcmask 588800   ;;  %vm139_vm1 = vcmask 1043456   ;;  %s599_s1 = inlined_call_operand.vmem [shape: bf16[72,128], index: 1, kind: input, shape index: {}]   ;;  %s600_s0 = inlined_call_operand.vmem [shape: bf16[128,72], index: 0, kind: input, shape index: {}]   ;;  %s601_s2 = inlined_call_operand.vmem [shape: f32[1,128], index: 2, kind: input, shape index: {}]   ;;  %s602_s3 = inlined_call_operand.vmem [shape: bf16[128,128], index: 3, kind: output, shape index: {}]  }
   0x1   :  { %v492_v0 = vld [vmem:[%s599_s1] sm:$0xff]   ;;  %v493_v1 = vld [vmem:[%s599_s1 + $0x8] sm:$0xff]   ;;  %v494_v2 = vld [vmem:[%s599_s1 + $0x10] sm:$0xff]  }
   0x2   :  { %454 = vmatprep.subr.bf16.mxu0 %v492_v0  ;;  %480 = vmatprep.subr.bf16.mxu1 %v492_v0  ;;  %v497_v3 = vld [vmem:[%s600_s0] sm:$0xff]   ;;  %v495_v5 = vld [vmem:[%s599_s1 + $0x18] sm:$0xff]   ;;  %v499_v8 = vld [vmem:[%s600_s0 + $0x8] sm:$0xff]  }
   0x3   :  { %455 = vmatpush3.bf16.msra.mxu0 %v492_v0  ;;  %485 = vmatpush3.bf16.msra.mxu1 %v492_v0  ;;  %v498_v4 = vld [vmem:[%s600_s0 + $0x20] sm:$0xff]   ;;  %v500_v9 = vld [vmem:[%s600_s0 + $0x28] sm:$0xff]   ;;  %v501_v10 = vld [vmem:[%s600_s0 + $0x10] sm:$0xff]  }
   0x4   :  { %456 = vmatprep.subr.bf16.mxu0 %v493_v1  ;;  %481 = vmatprep.subr.bf16.mxu1 %v493_v1  ;;  %v496_v6 = vld [vmem:[%s599_s1 + $0x20] ss:$0 sps:$4 sm:$0xff]   ;;  %v502_v11 = vld [vmem:[%s600_s0 + $0x30] sm:$0xff]   ;;  %v503_v12 = vld [vmem:[%s600_s0 + $0x18] sm:$0xff]  }
   0x5   :  { %464 = vmatprep.mubr.msk.bf16.mxu0 %vm114_vm0, %v497_v3  ;;  %472 = vmatprep.mubr.msk.bf16.mxu1 %vm114_vm0, %v498_v4  ;;  %v141_v7 = vsel %vm139_vm1, %v496_v6, 0  ;;  %v504_v13 = vld [vmem:[%s600_s0 + $0x38] sm:$0xff]   ;;  %v340_v14 = vld [vmem:[%s601_s2] ss:$0 sm:$0xff] }
   0x7   :  { %457 = vmatpush3.bf16.msra.mxu0 %v493_v1  ;;  %486 = vmatpush3.bf16.msra.mxu1 %v493_v1 }
   0x8   :  { %458 = vmatprep.subr.bf16.mxu0 %v494_v2  ;;  %482 = vmatprep.subr.bf16.mxu1 %v494_v2 }
   0xb   :  { %459 = vmatpush3.bf16.msra.mxu0 %v494_v2  ;;  %487 = vmatpush3.bf16.msra.mxu1 %v494_v2 }
   0xc   :  { %460 = vmatprep.subr.bf16.mxu0 %v495_v5  ;;  %483 = vmatprep.subr.bf16.mxu1 %v495_v5 }
   0xf   :  { %461 = vmatpush3.bf16.msra.mxu0 %v495_v5  ;;  %488 = vmatpush3.bf16.msra.mxu1 %v495_v5 }
  0x10   :  { %490 = vmatprep.subr.msk.bf16.mxu0 %vm139_vm1, %v496_v6  ;;  %491 = vmatprep.subr.msk.bf16.mxu1 %vm139_vm1, %v496_v6 }
  0x13   :  { %463 = vmatpush3.bf16.msra.mxu0 %v141_v7  ;;  %489 = vmatpush3.bf16.msra.mxu1 %v141_v7 }
  0x16   :  { %465 = vmatmul.mubr.msk.bf16.vlgmr.msra.gmra.mrb[0].mxu0 %vm114_vm0, %v499_v8  ;;  %473 = vmatmul.mubr.msk.bf16.vlgmr.msra.gmra.mrb[0].mxu1 %vm114_vm0, %v500_v9 }
  0x17   :  { %468 = vmatprep.mubr.msk.bf16.mxu0 %vm114_vm0, %v501_v10  ;;  %476 = vmatprep.mubr.msk.bf16.mxu1 %vm114_vm0, %v502_v11 }
  0x1e   :  { %469 = vmatmul.mubr.msk.bf16.gmra.mrb[4].mxu0 %vm114_vm0, %v503_v12  ;;  %477 = vmatmul.mubr.msk.bf16.gmra.mrb[4].mxu1 %vm114_vm0, %v504_v13 }
  0xe9   :  { %v466_v15 = vpop.f32.mrb[0].mxu0  ;;  %v474_v16 = vpop.f32.mrb[0].mxu1 }
  0xea   :  { %v186_v17 = vadd.f32 %v466_v15, %v340_v14  ;;  %v218_v18 = vadd.f32 %v474_v16, %v340_v14  ;;  %v177_v19 = vpop.f32.mrb[1].mxu0  ;;  %v209_v20 = vpop.f32.mrb[1].mxu1 }
  0xeb   :  { %v178_v21 = vadd.f32 %v340_v14, %v177_v19  ;;  %v210_v22 = vadd.f32 %v340_v14, %v209_v20  ;;  %v467_v23 = vpop.f32.mrb[2].mxu0  ;;  %v475_v24 = vpop.f32.mrb[2].mxu1 }
  0xec   :  { %v189_v25 = vadd.f32 %v467_v23, %v340_v14  ;;  %v221_v26 = vadd.f32 %v475_v24, %v340_v14  ;;  %v180_v27 = vpop.f32.mrb[3].mxu0  ;;  %v212_v28 = vpop.f32.mrb[3].mxu1  ;;  %v242_v31 = vmax.f32 %v186_v17, 0.0  ;;  %v250_v32 = vmax.f32 %v218_v18, 0.0 }
  0xed   :  { %v181_v29 = vadd.f32 %v340_v14, %v180_v27  ;;  %v213_v30 = vadd.f32 %v340_v14, %v212_v28  ;;  %v240_v35 = vmax.f32 %v178_v21, 0.0  ;;  %v248_v36 = vmax.f32 %v210_v22, 0.0 }
  0xee   :  { %v243_v33 = vmax.f32 %v189_v25, 0.0  ;;  %v251_v34 = vmax.f32 %v221_v26, 0.0 }
  0xef   :  { %v241_v37 = vmax.f32 %v181_v29, 0.0  ;;  %v249_v38 = vmax.f32 %v213_v30, 0.0 }
  0xf0   :  { %v402_v39 = vpack.c.bf16 %v243_v33, %v242_v31  ;;  %v422_v40 = vpack.c.bf16 %v251_v34, %v250_v32 }
  0xf1   :  { %v397_v41 = vpack.c.bf16 %v241_v37, %v240_v35  ;;  %v417_v42 = vpack.c.bf16 %v249_v38, %v248_v36  ;;  %v470_v43 = vpop.f32.mrb[4].mxu0  ;;  %v478_v44 = vpop.f32.mrb[4].mxu1 }
  0xf2   :  { %434 = vst [vmem:[%s602_s3 + $0x8] sm:$0xff] %v402_v39   ;;  %438 = vst [vmem:[%s602_s3 + $0x28] sm:$0xff] %v422_v40   ;;  %v202_v45 = vadd.f32 %v470_v43, %v340_v14  ;;  %v234_v46 = vadd.f32 %v478_v44, %v340_v14  ;;  %v193_v47 = vpop.f32.mrb[5].mxu0  ;;  %v225_v48 = vpop.f32.mrb[5].mxu1 }
  0xf3   :  { %398 = vst [vmem:[%s602_s3] sm:$0xff] %v397_v41   ;;  %437 = vst [vmem:[%s602_s3 + $0x20] sm:$0xff] %v417_v42   ;;  %v194_v49 = vadd.f32 %v340_v14, %v193_v47  ;;  %v226_v50 = vadd.f32 %v340_v14, %v225_v48  ;;  %v471_v51 = vpop.f32.mrb[6].mxu0  ;;  %v479_v52 = vpop.f32.mrb[6].mxu1 }
  0xf4   :  { %v205_v53 = vadd.f32 %v471_v51, %v340_v14  ;;  %v237_v54 = vadd.f32 %v479_v52, %v340_v14  ;;  %v196_v55 = vpop.f32.mrb[7].mxu0  ;;  %v228_v56 = vpop.f32.mrb[7].mxu1  ;;  %v246_v59 = vmax.f32 %v202_v45, 0.0  ;;  %v254_v60 = vmax.f32 %v234_v46, 0.0 }
  0xf5   :  { %v197_v57 = vadd.f32 %v340_v14, %v196_v55  ;;  %v229_v58 = vadd.f32 %v340_v14, %v228_v56  ;;  %v244_v63 = vmax.f32 %v194_v49, 0.0  ;;  %v252_v0 = vmax.f32 %v226_v50, 0.0 }
  0xf6   :  { %v247_v61 = vmax.f32 %v205_v53, 0.0  ;;  %v255_v62 = vmax.f32 %v237_v54, 0.0 }
  0xf7   :  { %v245_v1 = vmax.f32 %v197_v57, 0.0  ;;  %v253_v2 = vmax.f32 %v229_v58, 0.0 }
  0xf8   :  { %v412_v3 = vpack.c.bf16 %v247_v61, %v246_v59  ;;  %v432_v4 = vpack.c.bf16 %v255_v62, %v254_v60 }
  0xf9   :  { %v407_v5 = vpack.c.bf16 %v245_v1, %v244_v63  ;;  %v427_v6 = vpack.c.bf16 %v253_v2, %v252_v0 }
  0xfa   :  { %436 = vst [vmem:[%s602_s3 + $0x18] sm:$0xff] %v412_v3   ;;  %440 = vst [vmem:[%s602_s3 + $0x38] sm:$0xff] %v432_v4  }
  0xfb   :  { %435 = vst [vmem:[%s602_s3 + $0x10] sm:$0xff] %v407_v5   ;;  %439 = vst [vmem:[%s602_s3 + $0x30] sm:$0xff] %v427_v6  }

// kernel: horizonnet_forward.34
= control target key start
LH: loop header
LB: loop body
LE: loop exit
PB: predicated region body
PF: predicated region fallthrough
CT: control target
= control target key end

     0   :  { %vm70_vm0 = vcmask 293888   ;;  %vm83_vm1 = vcmask 1041408   ;;  %s351_s1 = inlined_call_operand.vmem [shape: bf16[36,128], index: 1, kind: input, shape index: {}]   ;;  %s352_s0 = inlined_call_operand.vmem [shape: bf16[64,36], index: 0, kind: input, shape index: {}]   ;;  %s353_s2 = inlined_call_operand.vmem [shape: f32[1,128], index: 2, kind: input, shape index: {}]   ;;  %s354_s3 = inlined_call_operand.vmem [shape: bf16[64,128], index: 3, kind: output, shape index: {}]  }
   0x1   :  { %v284_v0 = vld [vmem:[%s351_s1] sm:$0xff]   ;;  %v285_v1 = vld [vmem:[%s351_s1 + $0x8] sm:$0xff]   ;;  %v286_v2 = vld [vmem:[%s351_s1 + $0x10] ss:$0 sps:$4 sm:$0x33]  }
   0x2   :  { %262 = vmatprep.subr.bf16.mxu0 %v284_v0  ;;  %276 = vmatprep.subr.bf16.mxu1 %v284_v0  ;;  %v287_v3 = vld [vmem:[%s352_s0] sm:$0xff]   ;;  %v288_v4 = vld [vmem:[%s352_s0 + $0x10] sm:$0xff]   ;;  %v85_v5 = vsel %vm83_vm1, %v286_v2, 0  ;;  %v289_v6 = vld [vmem:[%s352_s0 + $0x8] sm:$0xff]  }
   0x3   :  { %263 = vmatpush3.bf16.msra.mxu0 %v284_v0  ;;  %279 = vmatpush3.bf16.msra.mxu1 %v284_v0  ;;  %v290_v7 = vld [vmem:[%s352_s0 + $0x18] sm:$0xff]   ;;  %v204_v8 = vld [vmem:[%s353_s2] ss:$0 sm:$0xff] }
   0x4   :  { %264 = vmatprep.subr.bf16.mxu0 %v285_v1  ;;  %277 = vmatprep.subr.bf16.mxu1 %v285_v1 }
   0x5   :  { %268 = vmatprep.mubr.msk.bf16.mxu0 %vm70_vm0, %v287_v3  ;;  %272 = vmatprep.mubr.msk.bf16.mxu1 %vm70_vm0, %v288_v4 }
   0x7   :  { %265 = vmatpush3.bf16.msra.mxu0 %v285_v1  ;;  %280 = vmatpush3.bf16.msra.mxu1 %v285_v1 }
   0x8   :  { %282 = vmatprep.subr.msk.bf16.mxu0 %vm83_vm1, %v286_v2  ;;  %283 = vmatprep.subr.msk.bf16.mxu1 %vm83_vm1, %v286_v2 }
   0xb   :  { %267 = vmatpush3.bf16.msra.mxu0 %v85_v5  ;;  %281 = vmatpush3.bf16.msra.mxu1 %v85_v5 }
   0xe   :  { %269 = vmatmul.mubr.msk.bf16.vlgmr.msra.gmra.mrb[0].mxu0 %vm70_vm0, %v289_v6  ;;  %273 = vmatmul.mubr.msk.bf16.vlgmr.msra.gmra.mrb[0].mxu1 %vm70_vm0, %v290_v7 }
  0xe1   :  { %v270_v9 = vpop.f32.mrb[0].mxu0  ;;  %v274_v10 = vpop.f32.mrb[0].mxu1 }
  0xe2   :  { %v130_v11 = vadd.f32 %v270_v9, %v204_v8  ;;  %v146_v12 = vadd.f32 %v274_v10, %v204_v8  ;;  %v121_v13 = vpop.f32.mrb[1].mxu0  ;;  %v137_v14 = vpop.f32.mrb[1].mxu1 }
  0xe3   :  { %v122_v15 = vadd.f32 %v204_v8, %v121_v13  ;;  %v138_v16 = vadd.f32 %v204_v8, %v137_v14  ;;  %v271_v17 = vpop.f32.mrb[2].mxu0  ;;  %v275_v18 = vpop.f32.mrb[2].mxu1 }
  0xe4   :  { %v133_v19 = vadd.f32 %v271_v17, %v204_v8  ;;  %v149_v20 = vadd.f32 %v275_v18, %v204_v8  ;;  %v124_v21 = vpop.f32.mrb[3].mxu0  ;;  %v140_v22 = vpop.f32.mrb[3].mxu1  ;;  %v154_v25 = vmax.f32 %v130_v11, 0.0  ;;  %v158_v26 = vmax.f32 %v146_v12, 0.0 }
  0xe5   :  { %v125_v23 = vadd.f32 %v204_v8, %v124_v21  ;;  %v141_v24 = vadd.f32 %v204_v8, %v140_v22  ;;  %v152_v29 = vmax.f32 %v122_v15, 0.0  ;;  %v156_v30 = vmax.f32 %v138_v16, 0.0 }
  0xe6   :  { %v155_v27 = vmax.f32 %v133_v19, 0.0  ;;  %v159_v28 = vmax.f32 %v149_v20, 0.0 }
  0xe7   :  { %v153_v31 = vmax.f32 %v125_v23, 0.0  ;;  %v157_v32 = vmax.f32 %v141_v24, 0.0 }
  0xe8   :  { %v240_v33 = vpack.c.bf16 %v155_v27, %v154_v25  ;;  %v250_v34 = vpack.c.bf16 %v159_v28, %v158_v26 }
  0xe9   :  { %v235_v35 = vpack.c.bf16 %v153_v31, %v152_v29  ;;  %v245_v36 = vpack.c.bf16 %v157_v32, %v156_v30 }
  0xea   :  { %252 = vst [vmem:[%s354_s3 + $0x8] sm:$0xff] %v240_v33   ;;  %254 = vst [vmem:[%s354_s3 + $0x18] sm:$0xff] %v250_v34  }
  0xeb   :  { %236 = vst [vmem:[%s354_s3] sm:$0xff] %v235_v35   ;;  %253 = vst [vmem:[%s354_s3 + $0x10] sm:$0xff] %v245_v36  }

// kernel: horizonnet_forward.28
= control target key start
LH: loop header
LB: loop body
LE: loop exit
PB: predicated region body
PF: predicated region fallthrough
CT: control target
= control target key end

     0   :  { %v969_v0 = vmov 0   ;;  %vm270_vm0 = vcmask 130048   ;;  %s1214_s1 = inlined_call_operand.vmem [shape: bf16[144,128], index: 1, kind: input, shape index: {}]   ;;  %s1215_s0 = inlined_call_operand.vmem [shape: bf16[256,144], index: 0, kind: input, shape index: {}]   ;;  %s1216_s2 = inlined_call_operand.vmem [shape: f32[1,128], index: 2, kind: input, shape index: {}]   ;;  %s1217_s3 = inlined_call_operand.vmem [shape: bf16[256,128], index: 3, kind: output, shape index: {}]  }
   0x1   :  { %319 = vmatprep.subr.bf16.mxu0 %v969_v0  ;;  %893 = vmatprep.subr.bf16.mxu1 %v969_v0  ;;  %v912_v1 = vld [vmem:[%s1214_s1] sm:$0xff]   ;;  %v913_v2 = vld [vmem:[%s1214_s1 + $0x8] sm:$0xff]   ;;  %v914_v3 = vld [vmem:[%s1214_s1 + $0x10] sm:$0xff]  }
   0x2   :  { %320 = vmatpush1.bf16.msra.mxu0 %v912_v1  ;;  %902 = vmatpush1.bf16.msra.mxu1 %v912_v1  ;;  %v915_v4 = vld [vmem:[%s1214_s1 + $0x18] sm:$0xff]   ;;  %v923_v5 = vld [vmem:[%s1215_s0 + $0x4] ss:$8 sps:$4 sm:$0xff]   ;;  %v918_v9 = vld [vmem:[%s1214_s1 + $0x30] sm:$0xff]  }
   0x3   :  { %321 = vmatprep.subr.bf16.mxu0 %v969_v0  ;;  %894 = vmatprep.subr.bf16.mxu1 %v969_v0  ;;  %v926_v6 = vld [vmem:[%s1215_s0 + $0x84] ss:$8 sps:$4 sm:$0xff]   ;;  %v919_v10 = vld [vmem:[%s1214_s1 + $0x38] sm:$0xff]   ;;  %v921_v12 = vld [vmem:[%s1215_s0] ss:$8 sps:$4 sm:$0xff]  }
   0x4   :  { %718 = vmatprep.mubr.msk.bf16.mxu0 %vm270_vm0, %v923_v5  ;;  %726 = vmatprep.mubr.msk.bf16.mxu1 %vm270_vm0, %v926_v6  ;;  %v916_v7 = vld [vmem:[%s1214_s1 + $0x20] sm:$0xff]   ;;  %v917_v8 = vld [vmem:[%s1214_s1 + $0x28] sm:$0xff]   ;;  %v927_v14 = vld [vmem:[%s1215_s0 + $0x14] ss:$8 sps:$4 sm:$0xff]  }
   0x5   :  { %v920_v11 = vld [vmem:[%s1214_s1 + $0x40] sm:$0xff]   ;;  %v929_v15 = vld [vmem:[%s1215_s0 + $0x94] ss:$8 sps:$4 sm:$0xff]   ;;  %v931_v16 = vld [vmem:[%s1215_s0 + $0x10] ss:$8 sps:$4 sm:$0xff]  }
   0x6   :  { %322 = vmatpush1.bf16.msra.mxu0 %v913_v2  ;;  %903 = vmatpush1.bf16.msra.mxu1 %v913_v2  ;;  %v924_v13 = vld [vmem:[%s1215_s0 + $0x80] ss:$8 sps:$4 sm:$0xff]   ;;  %v932_v17 = vld [vmem:[%s1215_s0 + $0x90] ss:$8 sps:$4 sm:$0xff]   ;;  %v933_v18 = vld [vmem:[%s1215_s0 + $0x24] ss:$8 sps:$4 sm:$0xff]  }
   0x7   :  { %323 = vmatprep.subr.bf16.mxu0 %v969_v0  ;;  %895 = vmatprep.subr.bf16.mxu1 %v969_v0  ;;  %v935_v19 = vld [vmem:[%s1215_s0 + $0xa4] ss:$8 sps:$4 sm:$0xff]   ;;  %v937_v20 = vld [vmem:[%s1215_s0 + $0x20] ss:$8 sps:$4 sm:$0xff]   ;;  %v939_v22 = vld [vmem:[%s1215_s0 + $0x34] ss:$8 sps:$4 sm:$0xff]  }
   0x8   :  { %v938_v21 = vld [vmem:[%s1215_s0 + $0xa0] ss:$8 sps:$4 sm:$0xff]   ;;  %v941_v23 = vld [vmem:[%s1215_s0 + $0xb4] ss:$8 sps:$4 sm:$0xff]   ;;  %v943_v24 = vld [vmem:[%s1215_s0 + $0x30] ss:$8 sps:$4 sm:$0xff]  }
   0x9   :  { %v944_v25 = vld [vmem:[%s1215_s0 + $0xb0] ss:$8 sps:$4 sm:$0xff]   ;;  %v945_v26 = vld [vmem:[%s1215_s0 + $0x44] ss:$8 sps:$4 sm:$0xff]   ;;  %v949_v28 = vld [vmem:[%s1215_s0 + $0x40] ss:$8 sps:$4 sm:$0xff]  }
   0xa   :  { %324 = vmatpush1.bf16.msra.mxu0 %v914_v3  ;;  %904 = vmatpush1.bf16.msra.mxu1 %v914_v3  ;;  %v947_v27 = vld [vmem:[%s1215_s0 + $0xc4] ss:$8 sps:$4 sm:$0xff]   ;;  %v950_v29 = vld [vmem:[%s1215_s0 + $0xc0] ss:$8 sps:$4 sm:$0xff]   ;;  %v951_v30 = vld [vmem:[%s1215_s0 + $0x54] ss:$8 sps:$4 sm:$0xff]  }
   0xb   :  { %325 = vmatprep.subr.bf16.mxu0 %v969_v0  ;;  %896 = vmatprep.subr.bf16.mxu1 %v969_v0  ;;  %v953_v31 = vld [vmem:[%s1215_s0 + $0xd4] ss:$8 sps:$4 sm:$0xff]   ;;  %v955_v32 = vld [vmem:[%s1215_s0 + $0x50] ss:$8 sps:$4 sm:$0xff]   ;;  %v957_v34 = vld [vmem:[%s1215_s0 + $0x64] ss:$8 sps:$4 sm:$0xff]  }
   0xc   :  { %v956_v33 = vld [vmem:[%s1215_s0 + $0xd0] ss:$8 sps:$4 sm:$0xff]   ;;  %v959_v35 = vld [vmem:[%s1215_s0 + $0xe4] ss:$8 sps:$4 sm:$0xff]   ;;  %v961_v36 = vld [vmem:[%s1215_s0 + $0x60] ss:$8 sps:$4 sm:$0xff]  }
   0xd   :  { %v962_v37 = vld [vmem:[%s1215_s0 + $0xe0] ss:$8 sps:$4 sm:$0xff]   ;;  %v963_v38 = vld [vmem:[%s1215_s0 + $0x74] ss:$8 sps:$4 sm:$0xff]   ;;  %v967_v40 = vld [vmem:[%s1215_s0 + $0x70] ss:$8 sps:$4 sm:$0xff]  }
   0xe   :  { %326 = vmatpush1.bf16.msra.mxu0 %v915_v4  ;;  %905 = vmatpush1.bf16.msra.mxu1 %v915_v4  ;;  %v965_v39 = vld [vmem:[%s1215_s0 + $0xf4] ss:$8 sps:$4 sm:$0xff]   ;;  %v968_v41 = vld [vmem:[%s1215_s0 + $0xf0] ss:$8 sps:$4 sm:$0xff]   ;;  %v1132_v42 = vld [vmem:[%s1216_s2] ss:$0 sm:$0xff] }
   0xf   :  { %327 = vmatprep.subr.bf16.mxu0 %v969_v0  ;;  %897 = vmatprep.subr.bf16.mxu1 %v969_v0 }
  0x12   :  { %328 = vmatpush1.bf16.msra.mxu0 %v916_v7  ;;  %906 = vmatpush1.bf16.msra.mxu1 %v916_v7 }
  0x13   :  { %329 = vmatprep.subr.bf16.mxu0 %v969_v0  ;;  %898 = vmatprep.subr.bf16.mxu1 %v969_v0 }
  0x16   :  { %330 = vmatpush1.bf16.msra.mxu0 %v917_v8  ;;  %907 = vmatpush1.bf16.msra.mxu1 %v917_v8 }
  0x17   :  { %331 = vmatprep.subr.bf16.mxu0 %v969_v0  ;;  %899 = vmatprep.subr.bf16.mxu1 %v969_v0 }
  0x1a   :  { %332 = vmatpush1.bf16.msra.mxu0 %v918_v9  ;;  %908 = vmatpush1.bf16.msra.mxu1 %v918_v9 }
  0x1b   :  { %333 = vmatprep.subr.bf16.mxu0 %v969_v0  ;;  %900 = vmatprep.subr.bf16.mxu1 %v969_v0 }
  0x1e   :  { %334 = vmatpush1.bf16.msra.mxu0 %v919_v10  ;;  %909 = vmatpush1.bf16.msra.mxu1 %v919_v10 }
  0x1f   :  { %335 = vmatprep.subr.bf16.mxu0 %v969_v0  ;;  %901 = vmatprep.subr.bf16.mxu1 %v969_v0 }
  0x22   :  { %336 = vmatpush1.bf16.msra.mxu0 %v920_v11  ;;  %910 = vmatpush1.bf16.msra.mxu1 %v920_v11 }
  0x25   :  { %352 = vmatmul.mubr.bf16.vlgmr.msra.gmra.mrb[0].mxu0 %v921_v12  ;;  %416 = vmatmul.mubr.bf16.vlgmr.msra.gmra.mrb[0].mxu1 %v924_v13 }
  0x26   :  { %719 = vmatprep.mubr.msk.bf16.mxu0 %vm270_vm0, %v927_v14  ;;  %727 = vmatprep.mubr.msk.bf16.mxu1 %vm270_vm0, %v929_v15 }
  0x2d   :  { %360 = vmatmul.mubr.bf16.gmra.mrb[4].mxu0 %v931_v16  ;;  %424 = vmatmul.mubr.bf16.gmra.mrb[4].mxu1 %v932_v17 }
  0x2e   :  { %720 = vmatprep.mubr.msk.bf16.mxu0 %vm270_vm0, %v933_v18  ;;  %728 = vmatprep.mubr.msk.bf16.mxu1 %vm270_vm0, %v935_v19 }
  0x35   :  { %368 = vmatmul.mubr.bf16.gmra.mrb[8].mxu0 %v937_v20  ;;  %432 = vmatmul.mubr.bf16.gmra.mrb[8].mxu1 %v938_v21 }
  0x36   :  { %721 = vmatprep.mubr.msk.bf16.mxu0 %vm270_vm0, %v939_v22  ;;  %729 = vmatprep.mubr.msk.bf16.mxu1 %vm270_vm0, %v941_v23 }
  0x3d   :  { %376 = vmatmul.mubr.bf16.gmra.mrb[12].mxu0 %v943_v24  ;;  %440 = vmatmul.mubr.bf16.gmra.mrb[12].mxu1 %v944_v25 }
  0x3e   :  { %722 = vmatprep.mubr.msk.bf16.mxu0 %vm270_vm0, %v945_v26  ;;  %730 = vmatprep.mubr.msk.bf16.mxu1 %vm270_vm0, %v947_v27 }
  0x45   :  { %384 = vmatmul.mubr.bf16.gmra.mrb[16].mxu0 %v949_v28  ;;  %448 = vmatmul.mubr.bf16.gmra.mrb[16].mxu1 %v950_v29 }
  0x46   :  { %723 = vmatprep.mubr.msk.bf16.mxu0 %vm270_vm0, %v951_v30  ;;  %731 = vmatprep.mubr.msk.bf16.mxu1 %vm270_vm0, %v953_v31 }
  0x4d   :  { %392 = vmatmul.mubr.bf16.gmra.mrb[20].mxu0 %v955_v32  ;;  %456 = vmatmul.mubr.bf16.gmra.mrb[20].mxu1 %v956_v33 }
  0x4e   :  { %724 = vmatprep.mubr.msk.bf16.mxu0 %vm270_vm0, %v957_v34  ;;  %732 = vmatprep.mubr.msk.bf16.mxu1 %vm270_vm0, %v959_v35 }
  0x55   :  { %400 = vmatmul.mubr.bf16.gmra.mrb[24].mxu0 %v961_v36  ;;  %464 = vmatmul.mubr.bf16.gmra.mrb[24].mxu1 %v962_v37 }
  0x56   :  { %725 = vmatprep.mubr.msk.bf16.mxu0 %vm270_vm0, %v963_v38  ;;  %733 = vmatprep.mubr.msk.bf16.mxu1 %vm270_vm0, %v965_v39 }
  0x5d   :  { %408 = vmatmul.mubr.bf16.gmra.mrb[28].mxu0 %v967_v40  ;;  %472 = vmatmul.mubr.bf16.gmra.mrb[28].mxu1 %v968_v41 }
  0xf8   :  { %v353_v43 = vpop.f32.mrb[0].mxu0  ;;  %v417_v44 = vpop.f32.mrb[0].mxu1 }
  0xf9   :  { %v354_v45 = vadd.f32 %v1132_v42, %v353_v43  ;;  %v418_v46 = vadd.f32 %v1132_v42, %v417_v44  ;;  %v355_v47 = vpop.f32.mrb[1].mxu0  ;;  %v419_v48 = vpop.f32.mrb[1].mxu1 }
  0xfa   :  { %v356_v49 = vpop.f32.mrb[2].mxu0  ;;  %v420_v50 = vpop.f32.mrb[2].mxu1 }
  0xfb   :  { %v357_v51 = vadd.f32 %v1132_v42, %v356_v49  ;;  %v421_v52 = vadd.f32 %v1132_v42, %v420_v50  ;;  %v358_v53 = vpop.f32.mrb[3].mxu0  ;;  %v422_v54 = vpop.f32.mrb[3].mxu1  ;;  %v480_v55 = vmax.f32 %v354_v45, 0.0  ;;  %v496_v56 = vmax.f32 %v418_v46, 0.0 }
  0xfd   :  { %v481_v57 = vmax.f32 %v357_v51, 0.0  ;;  %v497_v58 = vmax.f32 %v421_v52, 0.0 }
  0xff   :  { %v801_v59 = vpack.c.bf16 %v481_v57, %v480_v55  ;;  %v841_v60 = vpack.c.bf16 %v497_v58, %v496_v56 }
 0x100   :  { %v361_v61 = vpop.f32.mrb[4].mxu0  ;;  %v425_v62 = vpop.f32.mrb[4].mxu1 }
 0x101   :  { %802 = vst [vmem:[%s1217_s3] sm:$0xff] %v801_v59   ;;  %885 = vst [vmem:[%s1217_s3 + $0x40] sm:$0xff] %v841_v60   ;;  %v362_v63 = vadd.f32 %v1132_v42, %v361_v61  ;;  %v426_v0 = vadd.f32 %v1132_v42, %v425_v62  ;;  %v363_v1 = vpop.f32.mrb[5].mxu0  ;;  %v427_v2 = vpop.f32.mrb[5].mxu1 }
 0x102   :  { %v364_v3 = vpop.f32.mrb[6].mxu0  ;;  %v428_v4 = vpop.f32.mrb[6].mxu1 }
 0x103   :  { %v365_v5 = vadd.f32 %v1132_v42, %v364_v3  ;;  %v429_v6 = vadd.f32 %v1132_v42, %v428_v4  ;;  %v366_v7 = vpop.f32.mrb[7].mxu0  ;;  %v430_v8 = vpop.f32.mrb[7].mxu1  ;;  %v482_v9 = vmax.f32 %v362_v63, 0.0  ;;  %v498_v10 = vmax.f32 %v426_v0, 0.0 }
 0x105   :  { %v483_v11 = vmax.f32 %v365_v5, 0.0  ;;  %v499_v12 = vmax.f32 %v429_v6, 0.0 }
 0x107   :  { %v806_v13 = vpack.c.bf16 %v483_v11, %v482_v9  ;;  %v846_v14 = vpack.c.bf16 %v499_v12, %v498_v10 }
 0x108   :  { %v369_v15 = vpop.f32.mrb[8].mxu0  ;;  %v433_v16 = vpop.f32.mrb[8].mxu1 }
 0x109   :  { %878 = vst [vmem:[%s1217_s3 + $0x8] sm:$0xff] %v806_v13   ;;  %886 = vst [vmem:[%s1217_s3 + $0x48] sm:$0xff] %v846_v14   ;;  %v370_v17 = vadd.f32 %v1132_v42, %v369_v15  ;;  %v434_v18 = vadd.f32 %v1132_v42, %v433_v16  ;;  %v371_v19 = vpop.f32.mrb[9].mxu0  ;;  %v435_v20 = vpop.f32.mrb[9].mxu1 }
 0x10a   :  { %v372_v21 = vpop.f32.mrb[10].mxu0  ;;  %v436_v22 = vpop.f32.mrb[10].mxu1 }
 0x10b   :  { %v373_v23 = vadd.f32 %v1132_v42, %v372_v21  ;;  %v437_v24 = vadd.f32 %v1132_v42, %v436_v22  ;;  %v374_v25 = vpop.f32.mrb[11].mxu0  ;;  %v438_v26 = vpop.f32.mrb[11].mxu1  ;;  %v484_v27 = vmax.f32 %v370_v17, 0.0  ;;  %v500_v28 = vmax.f32 %v434_v18, 0.0 }
 0x10d   :  { %v485_v29 = vmax.f32 %v373_v23, 0.0  ;;  %v501_v30 = vmax.f32 %v437_v24, 0.0 }
 0x10f   :  { %v811_v31 = vpack.c.bf16 %v485_v29, %v484_v27  ;;  %v851_v32 = vpack.c.bf16 %v501_v30, %v500_v28 }
 0x110   :  { %v377_v33 = vpop.f32.mrb[12].mxu0  ;;  %v441_v34 = vpop.f32.mrb[12].mxu1 }
 0x111   :  { %879 = vst [vmem:[%s1217_s3 + $0x10] sm:$0xff] %v811_v31   ;;  %887 = vst [vmem:[%s1217_s3 + $0x50] sm:$0xff] %v851_v32   ;;  %v378_v35 = vadd.f32 %v1132_v42, %v377_v33  ;;  %v442_v36 = vadd.f32 %v1132_v42, %v441_v34  ;;  %v379_v37 = vpop.f32.mrb[13].mxu0  ;;  %v443_v38 = vpop.f32.mrb[13].mxu1 }
 0x112   :  { %v380_v39 = vpop.f32.mrb[14].mxu0  ;;  %v444_v40 = vpop.f32.mrb[14].mxu1 }
 0x113   :  { %v381_v41 = vadd.f32 %v1132_v42, %v380_v39  ;;  %v445_v43 = vadd.f32 %v1132_v42, %v444_v40  ;;  %v382_v44 = vpop.f32.mrb[15].mxu0  ;;  %v446_v45 = vpop.f32.mrb[15].mxu1  ;;  %v486_v46 = vmax.f32 %v378_v35, 0.0  ;;  %v502_v47 = vmax.f32 %v442_v36, 0.0 }
 0x115   :  { %v487_v48 = vmax.f32 %v381_v41, 0.0  ;;  %v503_v49 = vmax.f32 %v445_v43, 0.0 }
 0x117   :  { %v816_v50 = vpack.c.bf16 %v487_v48, %v486_v46  ;;  %v856_v51 = vpack.c.bf16 %v503_v49, %v502_v47 }
 0x118   :  { %v385_v52 = vpop.f32.mrb[16].mxu0  ;;  %v449_v53 = vpop.f32.mrb[16].mxu1 }
 0x119   :  { %880 = vst [vmem:[%s1217_s3 + $0x18] sm:$0xff] %v816_v50   ;;  %888 = vst [vmem:[%s1217_s3 + $0x58] sm:$0xff] %v856_v51   ;;  %v386_v54 = vadd.f32 %v1132_v42, %v385_v52  ;;  %v450_v55 = vadd.f32 %v1132_v42, %v449_v53  ;;  %v387_v56 = vpop.f32.mrb[17].mxu0  ;;  %v451_v57 = vpop.f32.mrb[17].mxu1 }
 0x11a   :  { %v388_v58 = vpop.f32.mrb[18].mxu0  ;;  %v452_v59 = vpop.f32.mrb[18].mxu1 }
 0x11b   :  { %v389_v60 = vadd.f32 %v1132_v42, %v388_v58  ;;  %v453_v61 = vadd.f32 %v1132_v42, %v452_v59  ;;  %v390_v62 = vpop.f32.mrb[19].mxu0  ;;  %v454_v63 = vpop.f32.mrb[19].mxu1  ;;  %v488_v0 = vmax.f32 %v386_v54, 0.0  ;;  %v504_v1 = vmax.f32 %v450_v55, 0.0 }
 0x11d   :  { %v489_v2 = vmax.f32 %v389_v60, 0.0  ;;  %v505_v3 = vmax.f32 %v453_v61, 0.0 }
 0x11f   :  { %v821_v4 = vpack.c.bf16 %v489_v2, %v488_v0  ;;  %v861_v5 = vpack.c.bf16 %v505_v3, %v504_v1 }
 0x120   :  { %v393_v6 = vpop.f32.mrb[20].mxu0  ;;  %v457_v7 = vpop.f32.mrb[20].mxu1 }
 0x121   :  { %881 = vst [vmem:[%s1217_s3 + $0x20] sm:$0xff] %v821_v4   ;;  %889 = vst [vmem:[%s1217_s3 + $0x60] sm:$0xff] %v861_v5   ;;  %v394_v8 = vadd.f32 %v1132_v42, %v393_v6  ;;  %v458_v9 = vadd.f32 %v1132_v42, %v457_v7  ;;  %v395_v10 = vpop.f32.mrb[21].mxu0  ;;  %v459_v11 = vpop.f32.mrb[21].mxu1 }
 0x122   :  { %v396_v12 = vpop.f32.mrb[22].mxu0  ;;  %v460_v13 = vpop.f32.mrb[22].mxu1 }
 0x123   :  { %v397_v14 = vadd.f32 %v1132_v42, %v396_v12  ;;  %v461_v15 = vadd.f32 %v1132_v42, %v460_v13  ;;  %v398_v16 = vpop.f32.mrb[23].mxu0  ;;  %v462_v17 = vpop.f32.mrb[23].mxu1  ;;  %v490_v18 = vmax.f32 %v394_v8, 0.0  ;;  %v506_v19 = vmax.f32 %v458_v9, 0.0 }
 0x125   :  { %v491_v20 = vmax.f32 %v397_v14, 0.0  ;;  %v507_v21 = vmax.f32 %v461_v15, 0.0 }
 0x127   :  { %v826_v22 = vpack.c.bf16 %v491_v20, %v490_v18  ;;  %v866_v23 = vpack.c.bf16 %v507_v21, %v506_v19 }
 0x128   :  { %v401_v24 = vpop.f32.mrb[24].mxu0  ;;  %v465_v25 = vpop.f32.mrb[24].mxu1 }
 0x129   :  { %882 = vst [vmem:[%s1217_s3 + $0x28] sm:$0xff] %v826_v22   ;;  %890 = vst [vmem:[%s1217_s3 + $0x68] sm:$0xff] %v866_v23   ;;  %v402_v26 = vadd.f32 %v1132_v42, %v401_v24  ;;  %v466_v27 = vadd.f32 %v1132_v42, %v465_v25  ;;  %v403_v28 = vpop.f32.mrb[25].mxu0  ;;  %v467_v29 = vpop.f32.mrb[25].mxu1 }
 0x12a   :  { %v404_v30 = vpop.f32.mrb[26].mxu0  ;;  %v468_v31 = vpop.f32.mrb[26].mxu1 }
 0x12b   :  { %v405_v32 = vadd.f32 %v1132_v42, %v404_v30  ;;  %v469_v33 = vadd.f32 %v1132_v42, %v468_v31  ;;  %v406_v34 = vpop.f32.mrb[27].mxu0  ;;  %v470_v35 = vpop.f32.mrb[27].mxu1  ;;  %v492_v36 = vmax.f32 %v402_v26, 0.0  ;;  %v508_v37 = vmax.f32 %v466_v27, 0.0 }
 0x12d   :  { %v493_v38 = vmax.f32 %v405_v32, 0.0  ;;  %v509_v39 = vmax.f32 %v469_v33, 0.0 }
 0x12f   :  { %v831_v40 = vpack.c.bf16 %v493_v38, %v492_v36  ;;  %v871_v41 = vpack.c.bf16 %v509_v39, %v508_v37 }
 0x130   :  { %v409_v43 = vpop.f32.mrb[28].mxu0  ;;  %v473_v44 = vpop.f32.mrb[28].mxu1 }
 0x131   :  { %883 = vst [vmem:[%s1217_s3 + $0x30] sm:$0xff] %v831_v40   ;;  %891 = vst [vmem:[%s1217_s3 + $0x70] sm:$0xff] %v871_v41   ;;  %v410_v45 = vadd.f32 %v1132_v42, %v409_v43  ;;  %v474_v46 = vadd.f32 %v1132_v42, %v473_v44  ;;  %v411_v47 = vpop.f32.mrb[29].mxu0  ;;  %v475_v48 = vpop.f32.mrb[29].mxu1 }
 0x132   :  { %v412_v49 = vpop.f32.mrb[30].mxu0  ;;  %v476_v50 = vpop.f32.mrb[30].mxu1 }
 0x133   :  { %v413_v51 = vadd.f32 %v1132_v42, %v412_v49  ;;  %v477_v52 = vadd.f32 %v1132_v42, %v476_v50  ;;  %v414_v53 = vpop.f32.mrb[31].mxu0  ;;  %v478_v54 = vpop.f32.mrb[31].mxu1  ;;  %v494_v55 = vmax.f32 %v410_v45, 0.0  ;;  %v510_v56 = vmax.f32 %v474_v46, 0.0 }
 0x135   :  { %v495_v57 = vmax.f32 %v413_v51, 0.0  ;;  %v511_v58 = vmax.f32 %v477_v52, 0.0 }
 0x137   :  { %v836_v59 = vpack.c.bf16 %v495_v57, %v494_v55  ;;  %v876_v60 = vpack.c.bf16 %v511_v58, %v510_v56 }
 0x139   :  { %884 = vst [vmem:[%s1217_s3 + $0x38] sm:$0xff] %v836_v59   ;;  %892 = vst [vmem:[%s1217_s3 + $0x78] sm:$0xff] %v876_v60  }

// kernel: horizonnet_forward.35
= control target key start
LH: loop header
LB: loop body
LE: loop exit
PB: predicated region body
PF: predicated region fallthrough
CT: control target
= control target key end

     0   :  { %vm318_vm0 = vcmask 261120   ;;  %s1138_s1 = inlined_call_operand.vmem [shape: bf16[288,128], index: 1, kind: input, shape index: {}]   ;;  %s1139_s0 = inlined_call_operand.vmem [shape: bf16[128,288], index: 0, kind: input, shape index: {}]   ;;  %s1140_s2 = inlined_call_operand.vmem [shape: f32[1,128], index: 2, kind: input, shape index: {}]   ;;  %s1141_s3 = inlined_call_operand.vmem [shape: bf16[128,128], index: 3, kind: output, shape index: {}]  }
   0x1   :  { %v877_v0 = vld [vmem:[%s1138_s1 + $0x40] sm:$0xff]   ;;  %v879_v2 = vld [vmem:[%s1138_s1 + $0x48] sm:$0xff]   ;;  %v881_v4 = vld [vmem:[%s1138_s1 + $0x50] sm:$0xff]  }
   0x2   :  { %v878_v1 = vld [vmem:[%s1138_s1] sm:$0xff]   ;;  %767 = vmatprep.subr.bf16.mxu0 %v877_v0  ;;  %861 = vmatprep.subr.bf16.mxu1 %v877_v0  ;;  %v880_v3 = vld [vmem:[%s1138_s1 + $0x8] sm:$0xff]   ;;  %v882_v5 = vld [vmem:[%s1138_s1 + $0x10] sm:$0xff]  }
   0x3   :  { %768 = vmatpush3.bf16.msra.mxu0 %v878_v1  ;;  %869 = vmatpush3.bf16.msra.mxu1 %v878_v1  ;;  %v883_v6 = vld [vmem:[%s1138_s1 + $0x58] sm:$0xff]   ;;  %v885_v8 = vld [vmem:[%s1138_s1 + $0x60] sm:$0xff]   ;;  %v887_v10 = vld [vmem:[%s1138_s1 + $0x68] sm:$0xff]  }
   0x4   :  { %769 = vmatprep.subr.bf16.mxu0 %v879_v2  ;;  %862 = vmatprep.subr.bf16.mxu1 %v879_v2  ;;  %v884_v7 = vld [vmem:[%s1138_s1 + $0x18] sm:$0xff]   ;;  %v886_v9 = vld [vmem:[%s1138_s1 + $0x20] sm:$0xff]   ;;  %v888_v13 = vld [vmem:[%s1138_s1 + $0x28] sm:$0xff]  }
   0x5   :  { %v895_v11 = vld [vmem:[%s1139_s0 + $0x4] ss:$12 sps:$4 sm:$0xff]   ;;  %v898_v12 = vld [vmem:[%s1139_s0 + $0x94] ss:$12 sps:$4 sm:$0xff]   ;;  %v891_v16 = vld [vmem:[%s1138_s1 + $0x78] sm:$0xff]  }
   0x6   :  { %v889_v14 = vld [vmem:[%s1138_s1 + $0x70] sm:$0xff]   ;;  %375 = vmatprep.mubr.bf16.mxu0 %v895_v11  ;;  %423 = vmatprep.mubr.bf16.mxu1 %v898_v12  ;;  %v892_v17 = vld [vmem:[%s1138_s1 + $0x38] sm:$0xff]   ;;  %v893_v18 = vld [vmem:[%s1139_s0] ss:$12 sps:$4 sm:$0xff]  }
   0x7   :  { %770 = vmatpush3.bf16.msra.mxu0 %v880_v3  ;;  %870 = vmatpush3.bf16.msra.mxu1 %v880_v3  ;;  %v890_v15 = vld [vmem:[%s1138_s1 + $0x30] sm:$0xff]   ;;  %v899_v19 = vld [vmem:[%s1138_s1 + $0x80] sm:$0xff]   ;;  %v900_v21 = vld [vmem:[%s1139_s0 + $0x1c] ss:$12 sps:$4 sm:$0xff]  }
   0x8   :  { %771 = vmatprep.subr.bf16.mxu0 %v881_v4  ;;  %863 = vmatprep.subr.bf16.mxu1 %v881_v4  ;;  %v896_v20 = vld [vmem:[%s1139_s0 + $0x90] ss:$12 sps:$4 sm:$0xff]   ;;  %v902_v22 = vld [vmem:[%s1139_s0 + $0xac] ss:$12 sps:$4 sm:$0xff]   ;;  %v905_v25 = vld [vmem:[%s1139_s0 + $0xa8] ss:$12 sps:$4 sm:$0xff]  }
   0x9   :  { %v906_v23 = vld [vmem:[%s1138_s1 + $0x88] sm:$0xff]   ;;  %v904_v24 = vld [vmem:[%s1139_s0 + $0x18] ss:$12 sps:$4 sm:$0xff]   ;;  %v907_v26 = vld [vmem:[%s1139_s0 + $0x34] ss:$12 sps:$4 sm:$0xff]  }
   0xa   :  { %v909_v27 = vld [vmem:[%s1139_s0 + $0x8] ss:$12 sps:$4 sm:$0xff]   ;;  %v910_v28 = vld [vmem:[%s1139_s0 + $0x30] ss:$12 sps:$4 sm:$0xff]   ;;  %v911_v29 = vld [vmem:[%s1139_s0 + $0x20] ss:$12 sps:$4 sm:$0xff]  }
   0xb   :  { %772 = vmatpush3.bf16.msra.mxu0 %v882_v5  ;;  %871 = vmatpush3.bf16.msra.mxu1 %v882_v5  ;;  %v912_v30 = vld [vmem:[%s1139_s0 + $0x4c] ss:$12 sps:$4 sm:$0xff]   ;;  %v915_v32 = vld [vmem:[%s1139_s0 + $0x48] ss:$12 sps:$4 sm:$0xff]   ;;  %v916_v33 = vld [vmem:[%s1139_s0 + $0x50] ss:$12 sps:$4 sm:$0xff]  }
   0xc   :  { %773 = vmatprep.subr.bf16.mxu0 %v883_v6  ;;  %864 = vmatprep.subr.bf16.mxu1 %v883_v6  ;;  %v914_v31 = vld [vmem:[%s1139_s0 + $0x38] ss:$12 sps:$4 sm:$0xff]   ;;  %v919_v35 = vld [vmem:[%s1139_s0 + $0x68] ss:$12 sps:$4 sm:$0xff]   ;;  %v920_v36 = vld [vmem:[%s1139_s0 + $0x60] ss:$12 sps:$4 sm:$0xff]  }
   0xd   :  { %v917_v34 = vld [vmem:[%s1139_s0 + $0x64] ss:$12 sps:$4 sm:$0xff]   ;;  %v921_v37 = vld [vmem:[%s1139_s0 + $0x80] ss:$12 sps:$4 sm:$0xff]   ;;  %v922_v38 = vld [vmem:[%s1139_s0 + $0x7c] ss:$12 sps:$4 sm:$0xff]  }
   0xe   :  { %v924_v39 = vld [vmem:[%s1139_s0 + $0x98] ss:$12 sps:$4 sm:$0xff]   ;;  %v926_v41 = vld [vmem:[%s1139_s0 + $0xb0] ss:$12 sps:$4 sm:$0xff]   ;;  %v1092_v2 = vld [vmem:[%s1140_s2] ss:$0 sm:$0xff] }
   0xf   :  { %774 = vmatpush3.bf16.msra.mxu0 %v884_v7  ;;  %872 = vmatpush3.bf16.msra.mxu1 %v884_v7  ;;  %v925_v40 = vld [vmem:[%s1139_s0 + $0x78] ss:$12 sps:$4 sm:$0xff]  }
  0x10   :  { %775 = vmatprep.subr.bf16.mxu0 %v885_v8  ;;  %865 = vmatprep.subr.bf16.mxu1 %v885_v8 }
  0x13   :  { %776 = vmatpush3.bf16.msra.mxu0 %v886_v9  ;;  %873 = vmatpush3.bf16.msra.mxu1 %v886_v9 }
  0x14   :  { %777 = vmatprep.subr.bf16.mxu0 %v887_v10  ;;  %866 = vmatprep.subr.bf16.mxu1 %v887_v10 }
  0x17   :  { %778 = vmatpush3.bf16.msra.mxu0 %v888_v13  ;;  %874 = vmatpush3.bf16.msra.mxu1 %v888_v13 }
  0x18   :  { %779 = vmatprep.subr.bf16.mxu0 %v889_v14  ;;  %867 = vmatprep.subr.bf16.mxu1 %v889_v14 }
  0x1b   :  { %780 = vmatpush3.bf16.msra.mxu0 %v890_v15  ;;  %875 = vmatpush3.bf16.msra.mxu1 %v890_v15 }
  0x1c   :  { %781 = vmatprep.subr.bf16.mxu0 %v891_v16  ;;  %868 = vmatprep.subr.bf16.mxu1 %v891_v16 }
  0x1f   :  { %782 = vmatpush3.bf16.msra.mxu0 %v892_v17  ;;  %876 = vmatpush3.bf16.msra.mxu1 %v892_v17 }
  0x20   :  { %841 = vmatprep.subr.bf16.mxu1 %v899_v19 }
  0x22   :  { %376 = vmatmul.mubr.bf16.vlgmr.msra.gmra.mrb[0].mxu0 %v893_v18  ;;  %424 = vmatmul.mubr.bf16.vlgmr.msra.gmra.mrb[0].mxu1 %v896_v20 }
  0x23   :  { %842 = vmatpush3.bf16.msra.mxu1 %v899_v19  ;;  %383 = vmatprep.mubr.bf16.mxu0 %v900_v21 }
  0x24   :  { %431 = vmatprep.mubr.bf16.mxu1 %v902_v22  ;;  %843 = vmatprep.subr.bf16.mxu1 %v906_v23 }
  0x27   :  { %844 = vmatpush3.bf16.msra.mxu1 %v906_v23 }
  0x2a   :  { %384 = vmatmul.mubr.bf16.gmra.mrb[4].mxu0 %v904_v24  ;;  %432 = vmatmul.mubr.bf16.gmra.mrb[4].mxu1 %v905_v25 }
  0x2b   :  { %391 = vmatprep.mubr.bf16.mxu0 %v907_v26  ;;  %845 = vmatprep.mubr.msk.bf16.mxu1 %vm318_vm0, %v909_v27 }
  0x32   :  { %392 = vmatmul.mubr.bf16.gmra.mrb[8].mxu0 %v910_v28  ;;  %846 = vmatmul.mubr.msk.bf16.vlgmr.msra.gmra.mrb[8].mxu1 %vm318_vm0, %v911_v29 }
  0x33   :  { %399 = vmatprep.mubr.bf16.mxu0 %v912_v30  ;;  %849 = vmatprep.mubr.msk.bf16.mxu1 %vm318_vm0, %v914_v31 }
  0x3a   :  { %400 = vmatmul.mubr.bf16.gmra.mrb[12].mxu0 %v915_v32  ;;  %850 = vmatmul.mubr.msk.bf16.gmra.mrb[12].mxu1 %vm318_vm0, %v916_v33 }
  0x3b   :  { %407 = vmatprep.mubr.bf16.mxu0 %v917_v34  ;;  %853 = vmatprep.mubr.msk.bf16.mxu1 %vm318_vm0, %v919_v35 }
  0x42   :  { %408 = vmatmul.mubr.bf16.gmra.mrb[16].mxu0 %v920_v36  ;;  %854 = vmatmul.mubr.msk.bf16.gmra.mrb[16].mxu1 %vm318_vm0, %v921_v37 }
  0x43   :  { %415 = vmatprep.mubr.bf16.mxu0 %v922_v38  ;;  %857 = vmatprep.mubr.msk.bf16.mxu1 %vm318_vm0, %v924_v39 }
  0x4a   :  { %416 = vmatmul.mubr.bf16.gmra.mrb[20].mxu0 %v925_v40  ;;  %858 = vmatmul.mubr.msk.bf16.gmra.mrb[20].mxu1 %vm318_vm0, %v926_v41 }
  0xf5   :  { %v783_v42 = vpop.f32.mrb[0].mxu0  ;;  %v819_v43 = vpop.f32.mrb[0].mxu1 }
  0xf6   :  { %v784_v44 = vpop.f32.mrb[1].mxu0  ;;  %v820_v45 = vpop.f32.mrb[1].mxu1 }
  0xf7   :  { %v785_v46 = vadd.f32 %v784_v44, %v783_v42  ;;  %v786_v47 = vpop.f32.mrb[2].mxu0  ;;  %v1081_v48 = vadd.f32 %v820_v45, %v819_v43  ;;  %v822_v49 = vpop.f32.mrb[2].mxu1 }
  0xf8   :  { %v787_v50 = vpop.f32.mrb[3].mxu0  ;;  %v823_v51 = vpop.f32.mrb[3].mxu1 }
  0xf9   :  { %v788_v52 = vadd.f32 %v787_v50, %v786_v47  ;;  %v1083_v53 = vadd.f32 %v823_v51, %v822_v49  ;;  %v378_v6 = vadd.f32 %v785_v46, %v1092_v2 }
  0xfb   :  { %v381_v15 = vadd.f32 %v788_v52, %v1092_v2 }
  0xfd   :  { %v789_v54 = vpop.f32.mrb[4].mxu0  ;;  %v825_v55 = vpop.f32.mrb[4].mxu1 }
  0xfe   :  { %v790_v56 = vpop.f32.mrb[5].mxu0  ;;  %v826_v57 = vpop.f32.mrb[5].mxu1 }
  0xff   :  { %v791_v58 = vadd.f32 %v790_v56, %v789_v54  ;;  %v792_v59 = vpop.f32.mrb[6].mxu0  ;;  %v1085_v60 = vadd.f32 %v826_v57, %v825_v55  ;;  %v828_v61 = vpop.f32.mrb[6].mxu1 }
 0x100   :  { %v793_v62 = vpop.f32.mrb[7].mxu0  ;;  %v829_v63 = vpop.f32.mrb[7].mxu1 }
 0x101   :  { %v794_v0 = vadd.f32 %v793_v62, %v792_v59  ;;  %v1087_v1 = vadd.f32 %v829_v63, %v828_v61  ;;  %v386_v3 = vadd.f32 %v791_v58, %v1092_v2 }
 0x103   :  { %v389_v10 = vadd.f32 %v794_v0, %v1092_v2 }
 0x105   :  { %v795_v4 = vpop.f32.mrb[8].mxu0  ;;  %v847_v5 = vpop.f32.mrb[8].mxu1 }
 0x106   :  { %v483_v7 = vadd.f32 %v847_v5, %v386_v3  ;;  %v796_v8 = vpop.f32.mrb[9].mxu0  ;;  %v474_v9 = vpop.f32.mrb[9].mxu1  ;;  %v434_v5 = vadd.f32 %v1085_v60, %v1092_v2 }
 0x107   :  { %v797_v11 = vadd.f32 %v796_v8, %v795_v4  ;;  %v475_v12 = vadd.f32 %v474_v9, %v378_v6  ;;  %v798_v13 = vpop.f32.mrb[10].mxu0  ;;  %v848_v14 = vpop.f32.mrb[10].mxu1  ;;  %v426_v9 = vadd.f32 %v1081_v48, %v1092_v2 }
 0x108   :  { %v486_v16 = vadd.f32 %v848_v14, %v389_v10  ;;  %v799_v17 = vpop.f32.mrb[11].mxu0  ;;  %v477_v18 = vpop.f32.mrb[11].mxu1  ;;  %v539_v21 = vmax.f32 %v483_v7, 0.0 }
 0x109   :  { %v800_v19 = vadd.f32 %v799_v17, %v798_v13  ;;  %v478_v20 = vadd.f32 %v477_v18, %v381_v15  ;;  %v537_v23 = vmax.f32 %v475_v12, 0.0  ;;  %v394_v29 = vadd.f32 %v797_v11, %v1092_v2 }
 0x10a   :  { %v540_v22 = vmax.f32 %v486_v16, 0.0  ;;  %v437_v13 = vadd.f32 %v1087_v1, %v1092_v2 }
 0x10b   :  { %v538_v24 = vmax.f32 %v478_v20, 0.0  ;;  %v397_v36 = vadd.f32 %v800_v19, %v1092_v2 }
 0x10c   :  { %v728_v25 = vpack.c.bf16 %v540_v22, %v539_v21  ;;  %v429_v21 = vadd.f32 %v1083_v53, %v1092_v2 }
 0x10d   :  { %v723_v26 = vpack.c.bf16 %v538_v24, %v537_v23  ;;  %v801_v27 = vpop.f32.mrb[12].mxu0  ;;  %v851_v28 = vpop.f32.mrb[12].mxu1 }
 0x10e   :  { %760 = vst [vmem:[%s1141_s3 + $0x8] sm:$0xff] %v728_v25   ;;  %v802_v30 = vpop.f32.mrb[13].mxu0  ;;  %v490_v31 = vpop.f32.mrb[13].mxu1 }
 0x10f   :  { %724 = vst [vmem:[%s1141_s3] sm:$0xff] %v723_v26   ;;  %v803_v32 = vadd.f32 %v802_v30, %v801_v27  ;;  %v491_v33 = vadd.f32 %v490_v31, %v394_v29  ;;  %v804_v34 = vpop.f32.mrb[14].mxu0  ;;  %v852_v35 = vpop.f32.mrb[14].mxu1 }
 0x110   :  { %v805_v37 = vpop.f32.mrb[15].mxu0  ;;  %v493_v38 = vpop.f32.mrb[15].mxu1 }
 0x111   :  { %v402_v39 = vadd.f32 %v803_v32, %v1092_v2  ;;  %v806_v40 = vadd.f32 %v805_v37, %v804_v34  ;;  %v494_v41 = vadd.f32 %v493_v38, %v397_v36  ;;  %v541_v43 = vmax.f32 %v491_v33, 0.0 }
 0x113   :  { %v499_v42 = vadd.f32 %v851_v28, %v402_v39  ;;  %v405_v44 = vadd.f32 %v806_v40, %v1092_v2  ;;  %v542_v45 = vmax.f32 %v494_v41, 0.0 }
 0x115   :  { %v502_v46 = vadd.f32 %v852_v35, %v405_v44  ;;  %v733_v47 = vpack.c.bf16 %v542_v45, %v541_v43  ;;  %v807_v49 = vpop.f32.mrb[16].mxu0  ;;  %v855_v50 = vpop.f32.mrb[16].mxu1  ;;  %v543_v54 = vmax.f32 %v499_v42, 0.0 }
 0x116   :  { %v808_v51 = vpop.f32.mrb[17].mxu0  ;;  %v506_v52 = vpop.f32.mrb[17].mxu1 }
 0x117   :  { %v544_v55 = vmax.f32 %v502_v46, 0.0  ;;  %761 = vst [vmem:[%s1141_s3 + $0x10] sm:$0xff] %v733_v47   ;;  %v809_v56 = vadd.f32 %v808_v51, %v807_v49  ;;  %v810_v57 = vpop.f32.mrb[18].mxu0  ;;  %v856_v58 = vpop.f32.mrb[18].mxu1 }
 0x118   :  { %v811_v59 = vpop.f32.mrb[19].mxu0  ;;  %v509_v61 = vpop.f32.mrb[19].mxu1 }
 0x119   :  { %v738_v62 = vpack.c.bf16 %v544_v55, %v543_v54  ;;  %v410_v63 = vadd.f32 %v809_v56, %v1092_v2  ;;  %v812_v0 = vadd.f32 %v811_v59, %v810_v57 }
 0x11b   :  { %762 = vst [vmem:[%s1141_s3 + $0x18] sm:$0xff] %v738_v62   ;;  %v507_v3 = vadd.f32 %v506_v52, %v410_v63  ;;  %v413_v4 = vadd.f32 %v812_v0, %v1092_v2 }
 0x11d   :  { %v510_v6 = vadd.f32 %v509_v61, %v413_v4  ;;  %v813_v7 = vpop.f32.mrb[20].mxu0  ;;  %v859_v8 = vpop.f32.mrb[20].mxu1  ;;  %v545_v14 = vmax.f32 %v507_v3, 0.0 }
 0x11e   :  { %v531_v10 = vadd.f32 %v859_v8, %v434_v5  ;;  %v814_v11 = vpop.f32.mrb[21].mxu0  ;;  %v522_v12 = vpop.f32.mrb[21].mxu1 }
 0x11f   :  { %v546_v15 = vmax.f32 %v510_v6, 0.0  ;;  %v815_v16 = vadd.f32 %v814_v11, %v813_v7  ;;  %v523_v17 = vadd.f32 %v522_v12, %v426_v9  ;;  %v816_v18 = vpop.f32.mrb[22].mxu0  ;;  %v860_v19 = vpop.f32.mrb[22].mxu1 }
 0x120   :  { %v534_v20 = vadd.f32 %v860_v19, %v437_v13  ;;  %v817_v60 = vpop.f32.mrb[23].mxu0  ;;  %v525_v22 = vpop.f32.mrb[23].mxu1  ;;  %v551_v25 = vmax.f32 %v531_v10, 0.0 }
 0x121   :  { %v743_v23 = vpack.c.bf16 %v546_v15, %v545_v14  ;;  %v418_v48 = vadd.f32 %v815_v16, %v1092_v2  ;;  %v818_v24 = vadd.f32 %v817_v60, %v816_v18  ;;  %v526_v27 = vadd.f32 %v525_v22, %v429_v21 }
 0x122   :  { %v552_v26 = vmax.f32 %v534_v20, 0.0  ;;  %v549_v29 = vmax.f32 %v523_v17, 0.0 }
 0x123   :  { %763 = vst [vmem:[%s1141_s3 + $0x20] sm:$0xff] %v743_v23   ;;  %v515_v1 = vadd.f32 %v855_v50, %v418_v48  ;;  %v421_v28 = vadd.f32 %v818_v24, %v1092_v2  ;;  %v550_v31 = vmax.f32 %v526_v27, 0.0 }
 0x124   :  { %v758_v30 = vpack.c.bf16 %v552_v26, %v551_v25 }
 0x125   :  { %v518_v32 = vadd.f32 %v856_v58, %v421_v28  ;;  %v753_v53 = vpack.c.bf16 %v550_v31, %v549_v29  ;;  %v547_v33 = vmax.f32 %v515_v1, 0.0 }
 0x126   :  { %766 = vst [vmem:[%s1141_s3 + $0x38] sm:$0xff] %v758_v30  }
 0x127   :  { %v548_v34 = vmax.f32 %v518_v32, 0.0  ;;  %765 = vst [vmem:[%s1141_s3 + $0x30] sm:$0xff] %v753_v53  }
 0x129   :  { %v748_v35 = vpack.c.bf16 %v548_v34, %v547_v33 }
 0x12b   :  { %764 = vst [vmem:[%s1141_s3 + $0x28] sm:$0xff] %v748_v35  }

// kernel: horizonnet_forward.36
= control target key start
LH: loop header
LB: loop body
LE: loop exit
PB: predicated region body
PF: predicated region fallthrough
CT: control target
= control target key end

     0   :  { %v369_v0 = vmov 0   ;;  %vm138_vm0 = vcmask 130048   ;;  %s460_s1 = inlined_call_operand.vmem [shape: bf16[144,128], index: 1, kind: input, shape index: {}]   ;;  %s461_s0 = inlined_call_operand.vmem [shape: bf16[64,144], index: 0, kind: input, shape index: {}]   ;;  %s462_s2 = inlined_call_operand.vmem [shape: f32[1,128], index: 2, kind: input, shape index: {}]   ;;  %s463_s3 = inlined_call_operand.vmem [shape: bf16[64,128], index: 3, kind: output, shape index: {}]  }
   0x1   :  { %151 = vmatprep.subr.bf16.mxu0 %v369_v0  ;;  %329 = vmatprep.subr.bf16.mxu1 %v369_v0  ;;  %v348_v1 = vld [vmem:[%s460_s1] sm:$0xff]   ;;  %v349_v2 = vld [vmem:[%s460_s1 + $0x8] sm:$0xff]   ;;  %v350_v3 = vld [vmem:[%s460_s1 + $0x10] sm:$0xff]  }
   0x2   :  { %152 = vmatpush1.bf16.msra.mxu0 %v348_v1  ;;  %338 = vmatpush1.bf16.msra.mxu1 %v348_v1  ;;  %v351_v4 = vld [vmem:[%s460_s1 + $0x18] sm:$0xff]   ;;  %v359_v5 = vld [vmem:[%s461_s0 + $0x4] ss:$8 sps:$4 sm:$0xff]   ;;  %v354_v9 = vld [vmem:[%s460_s1 + $0x30] sm:$0xff]  }
   0x3   :  { %153 = vmatprep.subr.bf16.mxu0 %v369_v0  ;;  %330 = vmatprep.subr.bf16.mxu1 %v369_v0  ;;  %v362_v6 = vld [vmem:[%s461_s0 + $0x24] ss:$8 sps:$4 sm:$0xff]   ;;  %v355_v10 = vld [vmem:[%s460_s1 + $0x38] sm:$0xff]   ;;  %v357_v12 = vld [vmem:[%s461_s0] ss:$8 sps:$4 sm:$0xff]  }
   0x4   :  { %286 = vmatprep.mubr.msk.bf16.mxu0 %vm138_vm0, %v359_v5  ;;  %288 = vmatprep.mubr.msk.bf16.mxu1 %vm138_vm0, %v362_v6  ;;  %v352_v7 = vld [vmem:[%s460_s1 + $0x20] sm:$0xff]   ;;  %v353_v8 = vld [vmem:[%s460_s1 + $0x28] sm:$0xff]   ;;  %v363_v14 = vld [vmem:[%s461_s0 + $0x14] ss:$8 sps:$4 sm:$0xff]  }
   0x5   :  { %v356_v11 = vld [vmem:[%s460_s1 + $0x40] sm:$0xff]   ;;  %v365_v15 = vld [vmem:[%s461_s0 + $0x34] ss:$8 sps:$4 sm:$0xff]   ;;  %v367_v16 = vld [vmem:[%s461_s0 + $0x10] ss:$8 sps:$4 sm:$0xff]  }
   0x6   :  { %154 = vmatpush1.bf16.msra.mxu0 %v349_v2  ;;  %339 = vmatpush1.bf16.msra.mxu1 %v349_v2  ;;  %v360_v13 = vld [vmem:[%s461_s0 + $0x20] ss:$8 sps:$4 sm:$0xff]   ;;  %v368_v17 = vld [vmem:[%s461_s0 + $0x30] ss:$8 sps:$4 sm:$0xff]  }
   0x7   :  { %155 = vmatprep.subr.bf16.mxu0 %v369_v0  ;;  %331 = vmatprep.subr.bf16.mxu1 %v369_v0  ;;  %v268_v18 = vld [vmem:[%s462_s2] ss:$0 sm:$0xff] }
   0xa   :  { %156 = vmatpush1.bf16.msra.mxu0 %v350_v3  ;;  %340 = vmatpush1.bf16.msra.mxu1 %v350_v3 }
   0xb   :  { %157 = vmatprep.subr.bf16.mxu0 %v369_v0  ;;  %332 = vmatprep.subr.bf16.mxu1 %v369_v0 }
   0xe   :  { %158 = vmatpush1.bf16.msra.mxu0 %v351_v4  ;;  %341 = vmatpush1.bf16.msra.mxu1 %v351_v4 }
   0xf   :  { %159 = vmatprep.subr.bf16.mxu0 %v369_v0  ;;  %333 = vmatprep.subr.bf16.mxu1 %v369_v0 }
  0x12   :  { %160 = vmatpush1.bf16.msra.mxu0 %v352_v7  ;;  %342 = vmatpush1.bf16.msra.mxu1 %v352_v7 }
  0x13   :  { %161 = vmatprep.subr.bf16.mxu0 %v369_v0  ;;  %334 = vmatprep.subr.bf16.mxu1 %v369_v0 }
  0x16   :  { %162 = vmatpush1.bf16.msra.mxu0 %v353_v8  ;;  %343 = vmatpush1.bf16.msra.mxu1 %v353_v8 }
  0x17   :  { %163 = vmatprep.subr.bf16.mxu0 %v369_v0  ;;  %335 = vmatprep.subr.bf16.mxu1 %v369_v0 }
  0x1a   :  { %164 = vmatpush1.bf16.msra.mxu0 %v354_v9  ;;  %344 = vmatpush1.bf16.msra.mxu1 %v354_v9 }
  0x1b   :  { %165 = vmatprep.subr.bf16.mxu0 %v369_v0  ;;  %336 = vmatprep.subr.bf16.mxu1 %v369_v0 }
  0x1e   :  { %166 = vmatpush1.bf16.msra.mxu0 %v355_v10  ;;  %345 = vmatpush1.bf16.msra.mxu1 %v355_v10 }
  0x1f   :  { %167 = vmatprep.subr.bf16.mxu0 %v369_v0  ;;  %337 = vmatprep.subr.bf16.mxu1 %v369_v0 }
  0x22   :  { %168 = vmatpush1.bf16.msra.mxu0 %v356_v11  ;;  %346 = vmatpush1.bf16.msra.mxu1 %v356_v11 }
  0x25   :  { %184 = vmatmul.mubr.bf16.vlgmr.msra.gmra.mrb[0].mxu0 %v357_v12  ;;  %200 = vmatmul.mubr.bf16.vlgmr.msra.gmra.mrb[0].mxu1 %v360_v13 }
  0x26   :  { %287 = vmatprep.mubr.msk.bf16.mxu0 %vm138_vm0, %v363_v14  ;;  %289 = vmatprep.mubr.msk.bf16.mxu1 %vm138_vm0, %v365_v15 }
  0x2d   :  { %192 = vmatmul.mubr.bf16.gmra.mrb[4].mxu0 %v367_v16  ;;  %208 = vmatmul.mubr.bf16.gmra.mrb[4].mxu1 %v368_v17 }
  0xf8   :  { %v185_v19 = vpop.f32.mrb[0].mxu0  ;;  %v201_v20 = vpop.f32.mrb[0].mxu1 }
  0xf9   :  { %v186_v21 = vadd.f32 %v268_v18, %v185_v19  ;;  %v202_v22 = vadd.f32 %v268_v18, %v201_v20  ;;  %v187_v23 = vpop.f32.mrb[1].mxu0  ;;  %v203_v24 = vpop.f32.mrb[1].mxu1 }
  0xfa   :  { %v188_v25 = vpop.f32.mrb[2].mxu0  ;;  %v204_v26 = vpop.f32.mrb[2].mxu1 }
  0xfb   :  { %v189_v27 = vadd.f32 %v268_v18, %v188_v25  ;;  %v205_v28 = vadd.f32 %v268_v18, %v204_v26  ;;  %v190_v29 = vpop.f32.mrb[3].mxu0  ;;  %v206_v30 = vpop.f32.mrb[3].mxu1  ;;  %v216_v31 = vmax.f32 %v186_v21, 0.0  ;;  %v220_v32 = vmax.f32 %v202_v22, 0.0 }
  0xfd   :  { %v217_v33 = vmax.f32 %v189_v27, 0.0  ;;  %v221_v34 = vmax.f32 %v205_v28, 0.0 }
  0xff   :  { %v309_v35 = vpack.c.bf16 %v217_v33, %v216_v31  ;;  %v319_v36 = vpack.c.bf16 %v221_v34, %v220_v32 }
 0x100   :  { %v193_v37 = vpop.f32.mrb[4].mxu0  ;;  %v209_v38 = vpop.f32.mrb[4].mxu1 }
 0x101   :  { %310 = vst [vmem:[%s463_s3] sm:$0xff] %v309_v35   ;;  %327 = vst [vmem:[%s463_s3 + $0x10] sm:$0xff] %v319_v36   ;;  %v194_v39 = vadd.f32 %v268_v18, %v193_v37  ;;  %v210_v40 = vadd.f32 %v268_v18, %v209_v38  ;;  %v195_v41 = vpop.f32.mrb[5].mxu0  ;;  %v211_v42 = vpop.f32.mrb[5].mxu1 }
 0x102   :  { %v196_v43 = vpop.f32.mrb[6].mxu0  ;;  %v212_v44 = vpop.f32.mrb[6].mxu1 }
 0x103   :  { %v197_v45 = vadd.f32 %v268_v18, %v196_v43  ;;  %v213_v46 = vadd.f32 %v268_v18, %v212_v44  ;;  %v198_v47 = vpop.f32.mrb[7].mxu0  ;;  %v214_v48 = vpop.f32.mrb[7].mxu1  ;;  %v218_v49 = vmax.f32 %v194_v39, 0.0  ;;  %v222_v50 = vmax.f32 %v210_v40, 0.0 }
 0x105   :  { %v219_v51 = vmax.f32 %v197_v45, 0.0  ;;  %v223_v52 = vmax.f32 %v213_v46, 0.0 }
 0x107   :  { %v314_v53 = vpack.c.bf16 %v219_v51, %v218_v49  ;;  %v324_v54 = vpack.c.bf16 %v223_v52, %v222_v50 }
 0x109   :  { %326 = vst [vmem:[%s463_s3 + $0x8] sm:$0xff] %v314_v53   ;;  %328 = vst [vmem:[%s463_s3 + $0x18] sm:$0xff] %v324_v54  }

// kernel: horizonnet_forward.37
= control target key start
LH: loop header
LB: loop body
LE: loop exit
PB: predicated region body
PF: predicated region fallthrough
CT: control target
= control target key end

     0   :  { %v269_v0 = vmov 0   ;;  %vm116_vm0 = vcmask 130048   ;;  %s338_s1 = inlined_call_operand.vmem [shape: bf16[144,128], index: 1, kind: input, shape index: {}]   ;;  %s339_s0 = inlined_call_operand.vmem [shape: bf16[32,144], index: 0, kind: input, shape index: {}]   ;;  %s340_s2 = inlined_call_operand.vmem [shape: f32[1,128], index: 2, kind: input, shape index: {}]   ;;  %s341_s3 = inlined_call_operand.vmem [shape: bf16[32,128], index: 3, kind: output, shape index: {}]  }
   0x1   :  { %123 = vmatprep.subr.bf16.mxu0 %v269_v0  ;;  %235 = vmatprep.subr.bf16.mxu1 %v269_v0  ;;  %v254_v1 = vld [vmem:[%s338_s1] sm:$0xff]   ;;  %v255_v2 = vld [vmem:[%s338_s1 + $0x8] sm:$0xff]   ;;  %v256_v3 = vld [vmem:[%s338_s1 + $0x10] sm:$0xff]  }
   0x2   :  { %124 = vmatpush1.bf16.msra.mxu0 %v254_v1  ;;  %244 = vmatpush1.bf16.msra.mxu1 %v254_v1  ;;  %v257_v4 = vld [vmem:[%s338_s1 + $0x18] sm:$0xff]   ;;  %v265_v5 = vld [vmem:[%s339_s0 + $0x4] ss:$8 sps:$4 sm:$0xff]   ;;  %v260_v9 = vld [vmem:[%s338_s1 + $0x30] sm:$0xff]  }
   0x3   :  { %125 = vmatprep.subr.bf16.mxu0 %v269_v0  ;;  %236 = vmatprep.subr.bf16.mxu1 %v269_v0  ;;  %v268_v6 = vld [vmem:[%s339_s0 + $0x14] ss:$8 sps:$4 sm:$0xff]   ;;  %v258_v7 = vld [vmem:[%s338_s1 + $0x20] sm:$0xff]   ;;  %v259_v8 = vld [vmem:[%s338_s1 + $0x28] sm:$0xff]  }
   0x4   :  { %214 = vmatprep.mubr.msk.bf16.mxu0 %vm116_vm0, %v265_v5  ;;  %215 = vmatprep.mubr.msk.bf16.mxu1 %vm116_vm0, %v268_v6  ;;  %v261_v10 = vld [vmem:[%s338_s1 + $0x38] sm:$0xff]   ;;  %v262_v11 = vld [vmem:[%s338_s1 + $0x40] sm:$0xff]  }
   0x5   :  { %v263_v12 = vld [vmem:[%s339_s0] ss:$8 sps:$4 sm:$0xff]   ;;  %v266_v13 = vld [vmem:[%s339_s0 + $0x10] ss:$8 sps:$4 sm:$0xff]  }
   0x6   :  { %126 = vmatpush1.bf16.msra.mxu0 %v255_v2  ;;  %245 = vmatpush1.bf16.msra.mxu1 %v255_v2  ;;  %v200_v14 = vld [vmem:[%s340_s2] ss:$0 sm:$0xff] }
   0x7   :  { %127 = vmatprep.subr.bf16.mxu0 %v269_v0  ;;  %237 = vmatprep.subr.bf16.mxu1 %v269_v0 }
   0xa   :  { %128 = vmatpush1.bf16.msra.mxu0 %v256_v3  ;;  %246 = vmatpush1.bf16.msra.mxu1 %v256_v3 }
   0xb   :  { %129 = vmatprep.subr.bf16.mxu0 %v269_v0  ;;  %238 = vmatprep.subr.bf16.mxu1 %v269_v0 }
   0xe   :  { %130 = vmatpush1.bf16.msra.mxu0 %v257_v4  ;;  %247 = vmatpush1.bf16.msra.mxu1 %v257_v4 }
   0xf   :  { %131 = vmatprep.subr.bf16.mxu0 %v269_v0  ;;  %239 = vmatprep.subr.bf16.mxu1 %v269_v0 }
  0x12   :  { %132 = vmatpush1.bf16.msra.mxu0 %v258_v7  ;;  %248 = vmatpush1.bf16.msra.mxu1 %v258_v7 }
  0x13   :  { %133 = vmatprep.subr.bf16.mxu0 %v269_v0  ;;  %240 = vmatprep.subr.bf16.mxu1 %v269_v0 }
  0x16   :  { %134 = vmatpush1.bf16.msra.mxu0 %v259_v8  ;;  %249 = vmatpush1.bf16.msra.mxu1 %v259_v8 }
  0x17   :  { %135 = vmatprep.subr.bf16.mxu0 %v269_v0  ;;  %241 = vmatprep.subr.bf16.mxu1 %v269_v0 }
  0x1a   :  { %136 = vmatpush1.bf16.msra.mxu0 %v260_v9  ;;  %250 = vmatpush1.bf16.msra.mxu1 %v260_v9 }
  0x1b   :  { %137 = vmatprep.subr.bf16.mxu0 %v269_v0  ;;  %242 = vmatprep.subr.bf16.mxu1 %v269_v0 }
  0x1e   :  { %138 = vmatpush1.bf16.msra.mxu0 %v261_v10  ;;  %251 = vmatpush1.bf16.msra.mxu1 %v261_v10 }
  0x1f   :  { %139 = vmatprep.subr.bf16.mxu0 %v269_v0  ;;  %243 = vmatprep.subr.bf16.mxu1 %v269_v0 }
  0x22   :  { %140 = vmatpush1.bf16.msra.mxu0 %v262_v11  ;;  %252 = vmatpush1.bf16.msra.mxu1 %v262_v11 }
  0x25   :  { %156 = vmatmul.mubr.bf16.vlgmr.msra.gmra.mrb[0].mxu0 %v263_v12  ;;  %164 = vmatmul.mubr.bf16.vlgmr.msra.gmra.mrb[0].mxu1 %v266_v13 }
  0xf8   :  { %v157_v15 = vpop.f32.mrb[0].mxu0  ;;  %v165_v16 = vpop.f32.mrb[0].mxu1 }
  0xf9   :  { %v158_v17 = vadd.f32 %v200_v14, %v157_v15  ;;  %v166_v18 = vadd.f32 %v200_v14, %v165_v16  ;;  %v159_v19 = vpop.f32.mrb[1].mxu0  ;;  %v167_v20 = vpop.f32.mrb[1].mxu1 }
  0xfa   :  { %v160_v21 = vpop.f32.mrb[2].mxu0  ;;  %v168_v22 = vpop.f32.mrb[2].mxu1 }
  0xfb   :  { %v161_v23 = vadd.f32 %v200_v14, %v160_v21  ;;  %v169_v24 = vadd.f32 %v200_v14, %v168_v22  ;;  %v162_v25 = vpop.f32.mrb[3].mxu0  ;;  %v170_v26 = vpop.f32.mrb[3].mxu1  ;;  %v172_v27 = vmax.f32 %v158_v17, 0.0  ;;  %v174_v28 = vmax.f32 %v166_v18, 0.0 }
  0xfd   :  { %v173_v29 = vmax.f32 %v161_v23, 0.0  ;;  %v175_v30 = vmax.f32 %v169_v24, 0.0 }
  0xff   :  { %v227_v31 = vpack.c.bf16 %v173_v29, %v172_v27  ;;  %v232_v32 = vpack.c.bf16 %v175_v30, %v174_v28 }
 0x101   :  { %228 = vst [vmem:[%s341_s3] sm:$0xff] %v227_v31   ;;  %234 = vst [vmem:[%s341_s3 + $0x8] sm:$0xff] %v232_v32  }

// kernel: horizonnet_forward.38
= control target key start
LH: loop header
LB: loop body
LE: loop exit
PB: predicated region body
PF: predicated region fallthrough
CT: control target
= control target key end

     0   :  { %vm72_vm0 = vcmask 588800   ;;  %vm79_vm1 = vcmask 1043456   ;;  %s268_s1 = inlined_call_operand.vmem [shape: bf16[72,128], index: 1, kind: input, shape index: {}]   ;;  %s269_s0 = inlined_call_operand.vmem [shape: bf16[32,72], index: 0, kind: input, shape index: {}]   ;;  %s270_s2 = inlined_call_operand.vmem [shape: f32[1,128], index: 2, kind: input, shape index: {}]   ;;  %s271_s3 = inlined_call_operand.vmem [shape: bf16[32,128], index: 3, kind: output, shape index: {}]  }
   0x1   :  { %v211_v0 = vld [vmem:[%s268_s1] sm:$0xff]   ;;  %v212_v1 = vld [vmem:[%s268_s1 + $0x8] sm:$0xff]   ;;  %v213_v2 = vld [vmem:[%s268_s1 + $0x10] sm:$0xff]  }
   0x2   :  { %196 = vmatprep.subr.bf16.mxu0 %v211_v0  ;;  %v216_v3 = vld [vmem:[%s269_s0] sm:$0xff]   ;;  %v214_v4 = vld [vmem:[%s268_s1 + $0x18] sm:$0xff]   ;;  %v217_v7 = vld [vmem:[%s269_s0 + $0x8] sm:$0xff]  }
   0x3   :  { %197 = vmatpush3.bf16.msra.mxu0 %v211_v0  ;;  %206 = vmatprep.mubr.msk.bf16.mxu0 %vm72_vm0, %v216_v3  ;;  %v215_v5 = vld [vmem:[%s268_s1 + $0x20] ss:$0 sps:$4 sm:$0xff]  }
   0x4   :  { %198 = vmatprep.subr.bf16.mxu0 %v212_v1  ;;  %v81_v6 = vsel %vm79_vm1, %v215_v5, 0  ;;  %v160_v8 = vld [vmem:[%s270_s2] ss:$0 sm:$0xff] }
   0x7   :  { %199 = vmatpush3.bf16.msra.mxu0 %v212_v1 }
   0x8   :  { %200 = vmatprep.subr.bf16.mxu0 %v213_v2 }
   0xb   :  { %201 = vmatpush3.bf16.msra.mxu0 %v213_v2 }
   0xc   :  { %202 = vmatprep.subr.bf16.mxu0 %v214_v4 }
   0xf   :  { %203 = vmatpush3.bf16.msra.mxu0 %v214_v4 }
  0x10   :  { %210 = vmatprep.subr.msk.bf16.mxu0 %vm79_vm1, %v215_v5 }
  0x13   :  { %205 = vmatpush3.bf16.msra.mxu0 %v81_v6 }
  0x16   :  { %207 = vmatmul.mubr.msk.bf16.vlgmr.msra.gmra.mrb[0].mxu0 %vm72_vm0, %v217_v7 }
  0xe9   :  { %v208_v9 = vpop.f32.mrb[0].mxu0 }
  0xea   :  { %v126_v10 = vadd.f32 %v208_v9, %v160_v8  ;;  %v117_v11 = vpop.f32.mrb[1].mxu0 }
  0xeb   :  { %v118_v12 = vadd.f32 %v160_v8, %v117_v11  ;;  %v209_v13 = vpop.f32.mrb[2].mxu0 }
  0xec   :  { %v129_v14 = vadd.f32 %v209_v13, %v160_v8  ;;  %v120_v15 = vpop.f32.mrb[3].mxu0  ;;  %v134_v17 = vmax.f32 %v126_v10, 0.0 }
  0xed   :  { %v121_v16 = vadd.f32 %v160_v8, %v120_v15  ;;  %v132_v19 = vmax.f32 %v118_v12, 0.0 }
  0xee   :  { %v135_v18 = vmax.f32 %v129_v14, 0.0 }
  0xef   :  { %v133_v20 = vmax.f32 %v121_v16, 0.0 }
  0xf0   :  { %v186_v21 = vpack.c.bf16 %v135_v18, %v134_v17 }
  0xf1   :  { %v181_v22 = vpack.c.bf16 %v133_v20, %v132_v19 }
  0xf2   :  { %188 = vst [vmem:[%s271_s3 + $0x8] sm:$0xff] %v186_v21  }
  0xf3   :  { %182 = vst [vmem:[%s271_s3] sm:$0xff] %v181_v22  }

// kernel: horizonnet_forward.29
= control target key start
LH: loop header
LB: loop body
LE: loop exit
PB: predicated region body
PF: predicated region fallthrough
CT: control target
= control target key end

     0   :  { %vm242_vm0 = vcmask 261120   ;;  %s748_s1 = inlined_call_operand.vmem [shape: bf16[288,128], index: 1, kind: input, shape index: {}]   ;;  %s749_s0 = inlined_call_operand.vmem [shape: bf16[64,288], index: 0, kind: input, shape index: {}]   ;;  %s750_s2 = inlined_call_operand.vmem [shape: f32[1,128], index: 2, kind: input, shape index: {}]   ;;  %s751_s3 = inlined_call_operand.vmem [shape: bf16[64,128], index: 3, kind: output, shape index: {}]  }
   0x1   :  { %v585_v0 = vld [vmem:[%s748_s1 + $0x40] sm:$0xff]   ;;  %v587_v2 = vld [vmem:[%s748_s1 + $0x48] sm:$0xff]   ;;  %v589_v4 = vld [vmem:[%s748_s1 + $0x50] sm:$0xff]  }
   0x2   :  { %v586_v1 = vld [vmem:[%s748_s1] sm:$0xff]   ;;  %511 = vmatprep.subr.bf16.mxu0 %v585_v0  ;;  %569 = vmatprep.subr.bf16.mxu1 %v585_v0  ;;  %v588_v3 = vld [vmem:[%s748_s1 + $0x8] sm:$0xff]   ;;  %v590_v5 = vld [vmem:[%s748_s1 + $0x10] sm:$0xff]  }
   0x3   :  { %512 = vmatpush3.bf16.msra.mxu0 %v586_v1  ;;  %577 = vmatpush3.bf16.msra.mxu1 %v586_v1  ;;  %v591_v6 = vld [vmem:[%s748_s1 + $0x58] sm:$0xff]   ;;  %v593_v8 = vld [vmem:[%s748_s1 + $0x60] sm:$0xff]   ;;  %v595_v10 = vld [vmem:[%s748_s1 + $0x68] sm:$0xff]  }
   0x4   :  { %513 = vmatprep.subr.bf16.mxu0 %v587_v2  ;;  %570 = vmatprep.subr.bf16.mxu1 %v587_v2  ;;  %v592_v7 = vld [vmem:[%s748_s1 + $0x18] sm:$0xff]   ;;  %v594_v9 = vld [vmem:[%s748_s1 + $0x20] sm:$0xff]   ;;  %v596_v13 = vld [vmem:[%s748_s1 + $0x28] sm:$0xff]  }
   0x5   :  { %v603_v11 = vld [vmem:[%s749_s0 + $0x4] ss:$12 sps:$4 sm:$0xff]   ;;  %v606_v12 = vld [vmem:[%s749_s0 + $0x4c] ss:$12 sps:$4 sm:$0xff]   ;;  %v604_v20 = vld [vmem:[%s749_s0 + $0x48] ss:$12 sps:$4 sm:$0xff]  }
   0x6   :  { %v597_v14 = vld [vmem:[%s748_s1 + $0x70] sm:$0xff]   ;;  %287 = vmatprep.mubr.bf16.mxu0 %v603_v11  ;;  %311 = vmatprep.mubr.bf16.mxu1 %v606_v12  ;;  %v599_v16 = vld [vmem:[%s748_s1 + $0x78] sm:$0xff]   ;;  %v607_v18 = vld [vmem:[%s748_s1 + $0x80] sm:$0xff]  }
   0x7   :  { %514 = vmatpush3.bf16.msra.mxu0 %v588_v3  ;;  %578 = vmatpush3.bf16.msra.mxu1 %v588_v3  ;;  %v598_v15 = vld [vmem:[%s748_s1 + $0x30] sm:$0xff]   ;;  %v600_v17 = vld [vmem:[%s748_s1 + $0x38] sm:$0xff]   ;;  %v601_v19 = vld [vmem:[%s749_s0] ss:$12 sps:$4 sm:$0xff]  }
   0x8   :  { %515 = vmatprep.subr.bf16.mxu0 %v589_v4  ;;  %571 = vmatprep.subr.bf16.mxu1 %v589_v4  ;;  %v609_v21 = vld [vmem:[%s749_s0 + $0x1c] ss:$12 sps:$4 sm:$0xff]   ;;  %v612_v24 = vld [vmem:[%s749_s0 + $0x18] ss:$12 sps:$4 sm:$0xff]   ;;  %v613_v25 = vld [vmem:[%s749_s0 + $0x20] ss:$12 sps:$4 sm:$0xff]  }
   0x9   :  { %v608_v22 = vld [vmem:[%s748_s1 + $0x88] sm:$0xff]   ;;  %v614_v26 = vld [vmem:[%s749_s0 + $0x34] ss:$12 sps:$4 sm:$0xff]   ;;  %v616_v27 = vld [vmem:[%s749_s0 + $0x38] ss:$12 sps:$4 sm:$0xff]  }
   0xa   :  { %v611_v23 = vld [vmem:[%s749_s0 + $0x8] ss:$12 sps:$4 sm:$0xff]   ;;  %v617_v28 = vld [vmem:[%s749_s0 + $0x30] ss:$12 sps:$4 sm:$0xff]   ;;  %v437_v42 = vld [vmem:[%s750_s2] ss:$0 sm:$0xff] }
   0xb   :  { %516 = vmatpush3.bf16.msra.mxu0 %v590_v5  ;;  %579 = vmatpush3.bf16.msra.mxu1 %v590_v5  ;;  %v618_v29 = vld [vmem:[%s749_s0 + $0x50] ss:$12 sps:$4 sm:$0xff]  }
   0xc   :  { %517 = vmatprep.subr.bf16.mxu0 %v591_v6  ;;  %572 = vmatprep.subr.bf16.mxu1 %v591_v6 }
   0xf   :  { %518 = vmatpush3.bf16.msra.mxu0 %v592_v7  ;;  %580 = vmatpush3.bf16.msra.mxu1 %v592_v7 }
  0x10   :  { %519 = vmatprep.subr.bf16.mxu0 %v593_v8  ;;  %573 = vmatprep.subr.bf16.mxu1 %v593_v8 }
  0x13   :  { %520 = vmatpush3.bf16.msra.mxu0 %v594_v9  ;;  %581 = vmatpush3.bf16.msra.mxu1 %v594_v9 }
  0x14   :  { %521 = vmatprep.subr.bf16.mxu0 %v595_v10  ;;  %574 = vmatprep.subr.bf16.mxu1 %v595_v10 }
  0x17   :  { %522 = vmatpush3.bf16.msra.mxu0 %v596_v13  ;;  %582 = vmatpush3.bf16.msra.mxu1 %v596_v13 }
  0x18   :  { %523 = vmatprep.subr.bf16.mxu0 %v597_v14  ;;  %575 = vmatprep.subr.bf16.mxu1 %v597_v14 }
  0x1b   :  { %524 = vmatpush3.bf16.msra.mxu0 %v598_v15  ;;  %583 = vmatpush3.bf16.msra.mxu1 %v598_v15 }
  0x1c   :  { %525 = vmatprep.subr.bf16.mxu0 %v599_v16  ;;  %576 = vmatprep.subr.bf16.mxu1 %v599_v16 }
  0x1f   :  { %526 = vmatpush3.bf16.msra.mxu0 %v600_v17  ;;  %584 = vmatpush3.bf16.msra.mxu1 %v600_v17 }
  0x20   :  { %557 = vmatprep.subr.bf16.mxu1 %v607_v18 }
  0x22   :  { %288 = vmatmul.mubr.bf16.vlgmr.msra.gmra.mrb[0].mxu0 %v601_v19  ;;  %312 = vmatmul.mubr.bf16.vlgmr.msra.gmra.mrb[0].mxu1 %v604_v20 }
  0x23   :  { %558 = vmatpush3.bf16.msra.mxu1 %v607_v18  ;;  %295 = vmatprep.mubr.bf16.mxu0 %v609_v21 }
  0x24   :  { %559 = vmatprep.subr.bf16.mxu1 %v608_v22  ;;  %561 = vmatprep.mubr.msk.bf16.mxu1 %vm242_vm0, %v611_v23 }
  0x27   :  { %560 = vmatpush3.bf16.msra.mxu1 %v608_v22 }
  0x2a   :  { %296 = vmatmul.mubr.bf16.gmra.mrb[4].mxu0 %v612_v24  ;;  %562 = vmatmul.mubr.msk.bf16.vlgmr.msra.gmra.mrb[4].mxu1 %vm242_vm0, %v613_v25 }
  0x2b   :  { %303 = vmatprep.mubr.bf16.mxu0 %v614_v26  ;;  %565 = vmatprep.mubr.msk.bf16.mxu1 %vm242_vm0, %v616_v27 }
  0x32   :  { %304 = vmatmul.mubr.bf16.gmra.mrb[8].mxu0 %v617_v28  ;;  %566 = vmatmul.mubr.msk.bf16.gmra.mrb[8].mxu1 %vm242_vm0, %v618_v29 }
  0xf5   :  { %v527_v30 = vpop.f32.mrb[0].mxu0  ;;  %v545_v31 = vpop.f32.mrb[0].mxu1 }
  0xf6   :  { %v528_v32 = vpop.f32.mrb[1].mxu0  ;;  %v546_v33 = vpop.f32.mrb[1].mxu1 }
  0xf7   :  { %v529_v34 = vadd.f32 %v528_v32, %v527_v30  ;;  %v530_v35 = vpop.f32.mrb[2].mxu0  ;;  %v547_v36 = vadd.f32 %v546_v33, %v545_v31  ;;  %v548_v37 = vpop.f32.mrb[2].mxu1 }
  0xf8   :  { %v531_v38 = vpop.f32.mrb[3].mxu0  ;;  %v549_v39 = vpop.f32.mrb[3].mxu1 }
  0xf9   :  { %v532_v40 = vadd.f32 %v531_v38, %v530_v35  ;;  %v550_v41 = vadd.f32 %v549_v39, %v548_v37  ;;  %v290_v45 = vadd.f32 %v529_v34, %v437_v42  ;;  %v314_v62 = vadd.f32 %v547_v36, %v437_v42 }
  0xfb   :  { %v293_v52 = vadd.f32 %v532_v40, %v437_v42  ;;  %v317_v6 = vadd.f32 %v550_v41, %v437_v42 }
  0xfd   :  { %v533_v43 = vpop.f32.mrb[4].mxu0  ;;  %v563_v44 = vpop.f32.mrb[4].mxu1 }
  0xfe   :  { %v534_v46 = vpop.f32.mrb[5].mxu0  ;;  %v354_v47 = vpop.f32.mrb[5].mxu1 }
  0xff   :  { %v535_v48 = vadd.f32 %v534_v46, %v533_v43  ;;  %v355_v49 = vadd.f32 %v354_v47, %v290_v45  ;;  %v536_v50 = vpop.f32.mrb[6].mxu0  ;;  %v564_v51 = vpop.f32.mrb[6].mxu1 }
 0x100   :  { %v537_v53 = vpop.f32.mrb[7].mxu0  ;;  %v357_v54 = vpop.f32.mrb[7].mxu1 }
 0x101   :  { %v298_v55 = vadd.f32 %v535_v48, %v437_v42  ;;  %v538_v56 = vadd.f32 %v537_v53, %v536_v50  ;;  %v358_v57 = vadd.f32 %v357_v54, %v293_v52  ;;  %v385_v59 = vmax.f32 %v355_v49, 0.0 }
 0x103   :  { %v363_v58 = vadd.f32 %v563_v44, %v298_v55  ;;  %v301_v60 = vadd.f32 %v538_v56, %v437_v42  ;;  %v386_v61 = vmax.f32 %v358_v57, 0.0 }
 0x105   :  { %v366_v63 = vadd.f32 %v564_v51, %v301_v60  ;;  %v491_v0 = vpack.c.bf16 %v386_v61, %v385_v59  ;;  %v539_v1 = vpop.f32.mrb[8].mxu0  ;;  %v567_v2 = vpop.f32.mrb[8].mxu1  ;;  %v387_v7 = vmax.f32 %v363_v58, 0.0 }
 0x106   :  { %v379_v3 = vadd.f32 %v567_v2, %v314_v62  ;;  %v540_v4 = vpop.f32.mrb[9].mxu0  ;;  %v370_v5 = vpop.f32.mrb[9].mxu1 }
 0x107   :  { %v388_v8 = vmax.f32 %v366_v63, 0.0  ;;  %492 = vst [vmem:[%s751_s3] sm:$0xff] %v491_v0   ;;  %v541_v9 = vadd.f32 %v540_v4, %v539_v1  ;;  %v542_v10 = vpop.f32.mrb[10].mxu0  ;;  %v568_v11 = vpop.f32.mrb[10].mxu1 }
 0x108   :  { %v382_v12 = vadd.f32 %v568_v11, %v317_v6  ;;  %v543_v13 = vpop.f32.mrb[11].mxu0  ;;  %v373_v14 = vpop.f32.mrb[11].mxu1  ;;  %v391_v18 = vmax.f32 %v379_v3, 0.0 }
 0x109   :  { %v496_v15 = vpack.c.bf16 %v388_v8, %v387_v7  ;;  %v306_v16 = vadd.f32 %v541_v9, %v437_v42  ;;  %v544_v17 = vadd.f32 %v543_v13, %v542_v10 }
 0x10a   :  { %v392_v19 = vmax.f32 %v382_v12, 0.0 }
 0x10b   :  { %508 = vst [vmem:[%s751_s3 + $0x8] sm:$0xff] %v496_v15   ;;  %v371_v20 = vadd.f32 %v370_v5, %v306_v16  ;;  %v309_v21 = vadd.f32 %v544_v17, %v437_v42 }
 0x10c   :  { %v506_v22 = vpack.c.bf16 %v392_v19, %v391_v18 }
 0x10d   :  { %v374_v23 = vadd.f32 %v373_v14, %v309_v21  ;;  %v389_v24 = vmax.f32 %v371_v20, 0.0 }
 0x10e   :  { %510 = vst [vmem:[%s751_s3 + $0x18] sm:$0xff] %v506_v22  }
 0x10f   :  { %v390_v25 = vmax.f32 %v374_v23, 0.0 }
 0x111   :  { %v501_v26 = vpack.c.bf16 %v390_v25, %v389_v24 }
 0x113   :  { %509 = vst [vmem:[%s751_s3 + $0x10] sm:$0xff] %v501_v26  }

// kernel: horizonnet_forward.39
= control target key start
LH: loop header
LB: loop body
LE: loop exit
PB: predicated region body
PF: predicated region fallthrough
CT: control target
= control target key end

     0   :  { %vm372_vm0 = vcmask 523264   ;;  %s913_s1 = inlined_call_operand.vmem [shape: bf16[576,128], index: 1, kind: input, shape index: {}]   ;;  %s914_s0 = inlined_call_operand.vmem [shape: bf16[32,576], index: 0, kind: input, shape index: {}]   ;;  %s915_s2 = inlined_call_operand.vmem [shape: f32[1,128], index: 2, kind: input, shape index: {}]   ;;  %s916_s3 = inlined_call_operand.vmem [shape: bf16[32,128], index: 3, kind: output, shape index: {}]  }
   0x1   :  { %v696_v0 = vld [vmem:[%s913_s1 + $0x40] sm:$0xff]   ;;  %v700_v4 = vld [vmem:[%s913_s1 + $0x48] sm:$0xff]   ;;  %v704_v8 = vld [vmem:[%s913_s1 + $0x50] sm:$0xff]  }
   0x2   :  { %v697_v1 = vld [vmem:[%s913_s1] sm:$0xff]   ;;  %622 = vmatprep.subr.bf16.mxu0 %v696_v0  ;;  %v701_v5 = vld [vmem:[%s913_s1 + $0x8] sm:$0xff]   ;;  %v705_v9 = vld [vmem:[%s913_s1 + $0x10] sm:$0xff]  }
   0x3   :  { %v698_v2 = vld [vmem:[%s913_s1 + $0xc0] sm:$0xff]   ;;  %623 = vmatpush3.bf16.msra.mxu0 %v697_v1  ;;  %v702_v6 = vld [vmem:[%s913_s1 + $0xc8] sm:$0xff]   ;;  %v706_v10 = vld [vmem:[%s913_s1 + $0xd0] sm:$0xff]  }
   0x4   :  { %v699_v3 = vld [vmem:[%s913_s1 + $0x80] sm:$0xff]   ;;  %650 = vmatprep.subr.bf16.mxu1 %v698_v2  ;;  %624 = vmatprep.subr.bf16.mxu0 %v700_v4  ;;  %v703_v7 = vld [vmem:[%s913_s1 + $0x88] sm:$0xff]   ;;  %v707_v11 = vld [vmem:[%s913_s1 + $0x90] sm:$0xff]  }
   0x5   :  { %651 = vmatpush3.bf16.msra.mxu1 %v699_v3  ;;  %v708_v12 = vld [vmem:[%s913_s1 + $0x58] sm:$0xff]   ;;  %v712_v16 = vld [vmem:[%s913_s1 + $0x60] sm:$0xff]   ;;  %v716_v20 = vld [vmem:[%s913_s1 + $0x68] sm:$0xff]  }
   0x6   :  { %652 = vmatprep.subr.bf16.mxu1 %v702_v6  ;;  %v709_v13 = vld [vmem:[%s913_s1 + $0x18] sm:$0xff]   ;;  %v713_v17 = vld [vmem:[%s913_s1 + $0x20] sm:$0xff]   ;;  %v717_v21 = vld [vmem:[%s913_s1 + $0x28] sm:$0xff]  }
   0x7   :  { %625 = vmatpush3.bf16.msra.mxu0 %v701_v5  ;;  %v710_v14 = vld [vmem:[%s913_s1 + $0xd8] sm:$0xff]   ;;  %v714_v18 = vld [vmem:[%s913_s1 + $0xe0] sm:$0xff]   ;;  %v718_v22 = vld [vmem:[%s913_s1 + $0xe8] sm:$0xff]  }
   0x8   :  { %626 = vmatprep.subr.bf16.mxu0 %v704_v8  ;;  %v711_v15 = vld [vmem:[%s913_s1 + $0x98] sm:$0xff]   ;;  %v715_v19 = vld [vmem:[%s913_s1 + $0xa0] sm:$0xff]   ;;  %v719_v23 = vld [vmem:[%s913_s1 + $0xa8] sm:$0xff]  }
   0x9   :  { %653 = vmatpush3.bf16.msra.mxu1 %v703_v7  ;;  %v720_v24 = vld [vmem:[%s913_s1 + $0x70] sm:$0xff]   ;;  %v724_v28 = vld [vmem:[%s913_s1 + $0x78] sm:$0xff]   ;;  %v731_v34 = vld [vmem:[%s913_s1 + $0x100] sm:$0xff]  }
   0xa   :  { %654 = vmatprep.subr.bf16.mxu1 %v706_v10  ;;  %v721_v25 = vld [vmem:[%s913_s1 + $0x30] sm:$0xff]   ;;  %v725_v29 = vld [vmem:[%s913_s1 + $0x38] sm:$0xff]   ;;  %v734_v36 = vld [vmem:[%s914_s0 + $0xc] ss:$20 sps:$4 sm:$0xff]  }
   0xb   :  { %627 = vmatpush3.bf16.msra.mxu0 %v705_v9  ;;  %v722_v26 = vld [vmem:[%s913_s1 + $0xf0] sm:$0xff]   ;;  %v726_v30 = vld [vmem:[%s913_s1 + $0xf8] sm:$0xff]   ;;  %v735_v37 = vld [vmem:[%s913_s1 + $0x108] sm:$0xff]   ;;  %460 = vmatprep.mubr.bf16.mxu1 %v734_v36 }
   0xc   :  { %628 = vmatprep.subr.bf16.mxu0 %v708_v12  ;;  %v723_v27 = vld [vmem:[%s913_s1 + $0xb0] sm:$0xff]   ;;  %v729_v32 = vld [vmem:[%s914_s0 + $0x4] ss:$20 sps:$4 sm:$0xff]   ;;  %v732_v35 = vld [vmem:[%s914_s0 + $0x8] ss:$20 sps:$4 sm:$0xff]  }
   0xd   :  { %655 = vmatpush3.bf16.msra.mxu1 %v707_v11  ;;  %v727_v31 = vld [vmem:[%s914_s0] ss:$20 sps:$4 sm:$0xff]   ;;  %v730_v33 = vld [vmem:[%s913_s1 + $0xb8] sm:$0xff]   ;;  %411 = vmatprep.mubr.bf16.mxu0 %v729_v32  ;;  %v742_v42 = vld [vmem:[%s914_s0 + $0x30] ss:$20 sps:$4 sm:$0xff]  }
   0xe   :  { %656 = vmatprep.subr.bf16.mxu1 %v710_v14  ;;  %v736_v38 = vld [vmem:[%s914_s0 + $0x2c] ss:$20 sps:$4 sm:$0xff]   ;;  %v738_v39 = vld [vmem:[%s914_s0 + $0x28] ss:$20 sps:$4 sm:$0xff]   ;;  %v739_v40 = vld [vmem:[%s913_s1 + $0x110] sm:$0xff]  }
   0xf   :  { %629 = vmatpush3.bf16.msra.mxu0 %v709_v13  ;;  %v740_v41 = vld [vmem:[%s914_s0 + $0x34] ss:$20 sps:$4 sm:$0xff]   ;;  %v743_v43 = vld [vmem:[%s913_s1 + $0x118] sm:$0xff]   ;;  %v744_v44 = vld [vmem:[%s914_s0 + $0x10] ss:$20 sps:$4 sm:$0xff]  }
  0x10   :  { %630 = vmatprep.subr.bf16.mxu0 %v712_v16  ;;  %v745_v45 = vld [vmem:[%s914_s0 + $0x38] ss:$20 sps:$4 sm:$0xff]   ;;  %v554_v47 = vld [vmem:[%s915_s2] ss:$0 sm:$0xff] }
  0x11   :  { %657 = vmatpush3.bf16.msra.mxu1 %v711_v15 }
  0x12   :  { %658 = vmatprep.subr.bf16.mxu1 %v714_v18 }
  0x13   :  { %631 = vmatpush3.bf16.msra.mxu0 %v713_v17 }
  0x14   :  { %632 = vmatprep.subr.bf16.mxu0 %v716_v20 }
  0x15   :  { %659 = vmatpush3.bf16.msra.mxu1 %v715_v19 }
  0x16   :  { %660 = vmatprep.subr.bf16.mxu1 %v718_v22 }
  0x17   :  { %633 = vmatpush3.bf16.msra.mxu0 %v717_v21 }
  0x18   :  { %634 = vmatprep.subr.bf16.mxu0 %v720_v24 }
  0x19   :  { %661 = vmatpush3.bf16.msra.mxu1 %v719_v23 }
  0x1a   :  { %662 = vmatprep.subr.bf16.mxu1 %v722_v26 }
  0x1b   :  { %635 = vmatpush3.bf16.msra.mxu0 %v721_v25 }
  0x1c   :  { %636 = vmatprep.subr.bf16.mxu0 %v724_v28 }
  0x1d   :  { %663 = vmatpush3.bf16.msra.mxu1 %v723_v27 }
  0x1e   :  { %664 = vmatprep.subr.bf16.mxu1 %v726_v30 }
  0x1f   :  { %637 = vmatpush3.bf16.msra.mxu0 %v725_v29 }
  0x20   :  { %684 = vmatprep.subr.bf16.mxu0 %v731_v34 }
  0x21   :  { %665 = vmatpush3.bf16.msra.mxu1 %v730_v33 }
  0x22   :  { %412 = vmatmul.mubr.bf16.vlgmr.msra.gmra.mrb[0].mxu0 %v727_v31 }
  0x23   :  { %685 = vmatpush3.bf16.msra.mxu0 %v731_v34  ;;  %419 = vmatprep.mubr.bf16.mxu0 %v736_v38 }
  0x24   :  { %461 = vmatmul.mubr.bf16.vlgmr.msra.gmra.mrb[0].mxu1 %v732_v35  ;;  %686 = vmatprep.subr.bf16.mxu0 %v735_v37 }
  0x25   :  { %468 = vmatprep.mubr.bf16.mxu1 %v740_v41 }
  0x27   :  { %687 = vmatpush3.bf16.msra.mxu0 %v735_v37 }
  0x28   :  { %688 = vmatprep.subr.bf16.mxu0 %v739_v40 }
  0x2a   :  { %420 = vmatmul.mubr.bf16.gmra.mrb[4].mxu0 %v738_v39 }
  0x2b   :  { %692 = vmatprep.mubr.msk.bf16.mxu0 %vm372_vm0, %v744_v44  ;;  %689 = vmatpush3.bf16.msra.mxu0 %v739_v40 }
  0x2c   :  { %469 = vmatmul.mubr.bf16.gmra.mrb[4].mxu1 %v742_v42  ;;  %690 = vmatprep.subr.bf16.mxu0 %v743_v43 }
  0x2f   :  { %691 = vmatpush3.bf16.msra.mxu0 %v743_v43 }
  0x32   :  { %693 = vmatmul.mubr.msk.bf16.vlgmr.msra.gmra.mrb[8].mxu0 %vm372_vm0, %v745_v45 }
  0xf5   :  { %v638_v46 = vpop.f32.mrb[0].mxu0 }
  0xf6   :  { %v639_v48 = vpop.f32.mrb[1].mxu0 }
  0xf7   :  { %v640_v49 = vadd.f32 %v639_v48, %v638_v46  ;;  %v641_v50 = vpop.f32.mrb[2].mxu0  ;;  %v666_v51 = vpop.f32.mrb[0].mxu1 }
  0xf8   :  { %v642_v52 = vpop.f32.mrb[3].mxu0  ;;  %v667_v55 = vpop.f32.mrb[1].mxu1 }
  0xf9   :  { %v414_v53 = vadd.f32 %v640_v49, %v554_v47  ;;  %v643_v54 = vadd.f32 %v642_v52, %v641_v50  ;;  %v668_v56 = vadd.f32 %v667_v55, %v666_v51  ;;  %v669_v57 = vpop.f32.mrb[2].mxu1 }
  0xfa   :  { %v670_v59 = vpop.f32.mrb[3].mxu1 }
  0xfb   :  { %v417_v58 = vadd.f32 %v643_v54, %v554_v47  ;;  %v671_v60 = vadd.f32 %v670_v59, %v669_v57  ;;  %v463_v61 = vadd.f32 %v668_v56, %v414_v53 }
  0xfd   :  { %v644_v62 = vpop.f32.mrb[4].mxu0  ;;  %v466_v0 = vadd.f32 %v671_v60, %v417_v58 }
  0xfe   :  { %v645_v63 = vpop.f32.mrb[5].mxu0 }
  0xff   :  { %v646_v1 = vadd.f32 %v645_v63, %v644_v62  ;;  %v647_v2 = vpop.f32.mrb[6].mxu0  ;;  %v672_v3 = vpop.f32.mrb[4].mxu1 }
 0x100   :  { %v648_v4 = vpop.f32.mrb[7].mxu0  ;;  %v673_v7 = vpop.f32.mrb[5].mxu1 }
 0x101   :  { %v422_v5 = vadd.f32 %v646_v1, %v554_v47  ;;  %v649_v6 = vadd.f32 %v648_v4, %v647_v2  ;;  %v674_v8 = vadd.f32 %v673_v7, %v672_v3  ;;  %v675_v9 = vpop.f32.mrb[6].mxu1 }
 0x102   :  { %v676_v11 = vpop.f32.mrb[7].mxu1 }
 0x103   :  { %v425_v10 = vadd.f32 %v649_v6, %v554_v47  ;;  %v677_v12 = vadd.f32 %v676_v11, %v675_v9  ;;  %v471_v13 = vadd.f32 %v674_v8, %v422_v5 }
 0x105   :  { %v694_v14 = vpop.f32.mrb[8].mxu0  ;;  %v474_v15 = vadd.f32 %v677_v12, %v425_v10 }
 0x106   :  { %v520_v16 = vadd.f32 %v694_v14, %v471_v13  ;;  %v511_v17 = vpop.f32.mrb[9].mxu0 }
 0x107   :  { %v512_v18 = vadd.f32 %v511_v17, %v463_v61  ;;  %v695_v19 = vpop.f32.mrb[10].mxu0 }
 0x108   :  { %v523_v20 = vadd.f32 %v695_v19, %v474_v15  ;;  %v514_v21 = vpop.f32.mrb[11].mxu0  ;;  %v528_v23 = vmax.f32 %v520_v16, 0.0 }
 0x109   :  { %v515_v22 = vadd.f32 %v514_v21, %v466_v0  ;;  %v526_v25 = vmax.f32 %v512_v18, 0.0 }
 0x10a   :  { %v529_v24 = vmax.f32 %v523_v20, 0.0 }
 0x10b   :  { %v527_v26 = vmax.f32 %v515_v22, 0.0 }
 0x10c   :  { %v619_v27 = vpack.c.bf16 %v529_v24, %v528_v23 }
 0x10d   :  { %v614_v28 = vpack.c.bf16 %v527_v26, %v526_v25 }
 0x10e   :  { %621 = vst [vmem:[%s916_s3 + $0x8] sm:$0xff] %v619_v27  }
 0x10f   :  { %615 = vst [vmem:[%s916_s3] sm:$0xff] %v614_v28  }

// kernel: horizonnet_forward.40
= control target key start
LH: loop header
LB: loop body
LE: loop exit
PB: predicated region body
PF: predicated region fallthrough
CT: control target
= control target key end

     0   :  { %v376_v1 = vmov 0.0   ;;  %vm377_vm0 = vmmov 0   ;;  %vm185_vm1 = vcmask 261120   ;;  %s467_s1 = inlined_call_operand.vmem [shape: bf16[288,128], index: 1, kind: input, shape index: {}]   ;;  %s468_s0 = inlined_call_operand.vmem [shape: bf16[16,288], index: 0, kind: input, shape index: {}]   ;;  %s469_s2 = inlined_call_operand.vmem [shape: f32[1,128], index: 2, kind: input, shape index: {}]   ;;  %s470_s3 = inlined_call_operand.vmem [shape: bf16[16,128], index: 3, kind: output, shape index: {}]  }
   0x1   :  { %v354_v0 = vld [vmem:[%s467_s1 + $0x40] sm:$0xff]   ;;  %344 = vmatprep.subr.bf16.mxu1 %v376_v1  ;;  %348 = vmatprep.mubr.msk.bf16.mxu1 %vm377_vm0, %v376_v1  ;;  %v356_v3 = vld [vmem:[%s467_s1 + $0x48] sm:$0xff]   ;;  %v358_v5 = vld [vmem:[%s467_s1 + $0x50] sm:$0xff]  }
   0x2   :  { %v355_v2 = vld [vmem:[%s467_s1] sm:$0xff]   ;;  %319 = vmatprep.subr.bf16.mxu0 %v354_v0  ;;  %v357_v4 = vld [vmem:[%s467_s1 + $0x8] sm:$0xff]   ;;  %v359_v6 = vld [vmem:[%s467_s1 + $0x10] sm:$0xff]  }
   0x3   :  { %320 = vmatpush3.bf16.msra.mxu0 %v355_v2  ;;  %v360_v7 = vld [vmem:[%s467_s1 + $0x58] sm:$0xff]   ;;  %v362_v9 = vld [vmem:[%s467_s1 + $0x60] sm:$0xff]   ;;  %v364_v12 = vld [vmem:[%s467_s1 + $0x68] sm:$0xff]  }
   0x4   :  { %321 = vmatprep.subr.bf16.mxu0 %v356_v3  ;;  %v361_v8 = vld [vmem:[%s467_s1 + $0x18] sm:$0xff]   ;;  %v368_v10 = vld [vmem:[%s467_s1 + $0x80] sm:$0xff]   ;;  %v365_v13 = vld [vmem:[%s467_s1 + $0x28] sm:$0xff]  }
   0x5   :  { %v363_v11 = vld [vmem:[%s467_s1 + $0x20] sm:$0xff]   ;;  %345 = vmatpush3.bf16.msra.mxu1 %v368_v10  ;;  %v374_v15 = vld [vmem:[%s467_s1 + $0x88] sm:$0xff]   ;;  %v366_v16 = vld [vmem:[%s467_s1 + $0x70] sm:$0xff]  }
   0x6   :  { %346 = vmatprep.subr.bf16.mxu1 %v376_v1  ;;  %v373_v14 = vld [vmem:[%s468_s0 + $0x4] ss:$12 sps:$4 sm:$0xff]   ;;  %v375_v17 = vld [vmem:[%s468_s0 + $0x8] ss:$12 sps:$4 sm:$0xff]   ;;  %v369_v19 = vld [vmem:[%s467_s1 + $0x78] sm:$0xff]  }
   0x7   :  { %322 = vmatpush3.bf16.msra.mxu0 %v357_v4  ;;  %221 = vmatprep.mubr.bf16.mxu0 %v373_v14  ;;  %v367_v18 = vld [vmem:[%s467_s1 + $0x30] sm:$0xff]   ;;  %v370_v20 = vld [vmem:[%s467_s1 + $0x38] sm:$0xff]   ;;  %v371_v21 = vld [vmem:[%s468_s0] ss:$12 sps:$4 sm:$0xff]  }
   0x8   :  { %323 = vmatprep.subr.bf16.mxu0 %v358_v5  ;;  %v287_v28 = vld [vmem:[%s469_s2] ss:$0 sm:$0xff] }
   0x9   :  { %347 = vmatpush3.bf16.msra.mxu1 %v374_v15 }
   0xb   :  { %324 = vmatpush3.bf16.msra.mxu0 %v359_v6 }
   0xc   :  { %325 = vmatprep.subr.bf16.mxu0 %v360_v7  ;;  %349 = vmatmul.mubr.msk.bf16.vlgmr.msra.gmra.mrb[0].mxu1 %vm185_vm1, %v375_v17 }
   0xf   :  { %326 = vmatpush3.bf16.msra.mxu0 %v361_v8 }
  0x10   :  { %327 = vmatprep.subr.bf16.mxu0 %v362_v9 }
  0x13   :  { %328 = vmatpush3.bf16.msra.mxu0 %v363_v11 }
  0x14   :  { %329 = vmatprep.subr.bf16.mxu0 %v364_v12 }
  0x17   :  { %330 = vmatpush3.bf16.msra.mxu0 %v365_v13 }
  0x18   :  { %331 = vmatprep.subr.bf16.mxu0 %v366_v16 }
  0x1b   :  { %332 = vmatpush3.bf16.msra.mxu0 %v367_v18 }
  0x1c   :  { %333 = vmatprep.subr.bf16.mxu0 %v369_v19 }
  0x1f   :  { %334 = vmatpush3.bf16.msra.mxu0 %v370_v20 }
  0x22   :  { %222 = vmatmul.mubr.bf16.vlgmr.msra.gmra.mrb[0].mxu0 %v371_v21 }
  0xdf   :  { %v264_v22 = vpop.f32.mrb[0].mxu1 }
  0xe0   :  { %v350_v23 = vpop.f32.mrb[1].mxu1 }
  0xe1   :  { %v267_v24 = vpop.f32.mrb[2].mxu1 }
  0xe2   :  { %v351_v25 = vpop.f32.mrb[3].mxu1 }
  0xf5   :  { %v335_v26 = vpop.f32.mrb[0].mxu0 }
  0xf6   :  { %v336_v27 = vpop.f32.mrb[1].mxu0 }
  0xf7   :  { %v337_v29 = vadd.f32 %v336_v27, %v335_v26  ;;  %v338_v30 = vpop.f32.mrb[2].mxu0 }
  0xf8   :  { %v339_v31 = vpop.f32.mrb[3].mxu0 }
  0xf9   :  { %v224_v32 = vadd.f32 %v337_v29, %v287_v28  ;;  %v340_v33 = vadd.f32 %v339_v31, %v338_v30 }
  0xfb   :  { %v265_v34 = vadd.f32 %v264_v22, %v224_v32  ;;  %v227_v35 = vadd.f32 %v340_v33, %v287_v28 }
  0xfd   :  { %v268_v36 = vadd.f32 %v267_v24, %v227_v35  ;;  %v271_v37 = vmax.f32 %v265_v34, 0.0 }
  0xff   :  { %v272_v38 = vmax.f32 %v268_v36, 0.0 }
 0x101   :  { %v317_v39 = vpack.c.bf16 %v272_v38, %v271_v37 }
 0x103   :  { %318 = vst [vmem:[%s470_s3] sm:$0xff] %v317_v39  }

// kernel: horizonnet_forward.42
= control target key start
LH: loop header
LB: loop body
LE: loop exit
PB: predicated region body
PF: predicated region fallthrough
CT: control target
= control target key end

     0   :  { %v201_v0 = vmov 0   ;;  %vm105_vm0 = vcmask 130048   ;;  %s261_s1 = inlined_call_operand.vmem [shape: bf16[144,128], index: 1, kind: input, shape index: {}]   ;;  %s262_s0 = inlined_call_operand.vmem [shape: bf16[16,144], index: 0, kind: input, shape index: {}]   ;;  %s263_s2 = inlined_call_operand.vmem [shape: f32[1,128], index: 2, kind: input, shape index: {}]   ;;  %s264_s3 = inlined_call_operand.vmem [shape: bf16[16,128], index: 3, kind: output, shape index: {}]  }
   0x1   :  { %109 = vmatprep.subr.bf16.mxu0 %v201_v0  ;;  %v189_v1 = vld [vmem:[%s261_s1] sm:$0xff]   ;;  %v190_v2 = vld [vmem:[%s261_s1 + $0x8] sm:$0xff]   ;;  %v191_v3 = vld [vmem:[%s261_s1 + $0x10] sm:$0xff]  }
   0x2   :  { %110 = vmatpush1.bf16.msra.mxu0 %v189_v1  ;;  %v192_v4 = vld [vmem:[%s261_s1 + $0x18] sm:$0xff]   ;;  %v200_v5 = vld [vmem:[%s262_s0 + $0x4] ss:$8 sps:$4 sm:$0xff]   ;;  %v195_v8 = vld [vmem:[%s261_s1 + $0x30] sm:$0xff]  }
   0x3   :  { %111 = vmatprep.subr.bf16.mxu0 %v201_v0  ;;  %178 = vmatprep.mubr.msk.bf16.mxu0 %vm105_vm0, %v200_v5  ;;  %v193_v6 = vld [vmem:[%s261_s1 + $0x20] sm:$0xff]   ;;  %v194_v7 = vld [vmem:[%s261_s1 + $0x28] sm:$0xff]   ;;  %v196_v9 = vld [vmem:[%s261_s1 + $0x38] sm:$0xff]  }
   0x4   :  { %v197_v10 = vld [vmem:[%s261_s1 + $0x40] sm:$0xff]  }
   0x5   :  { %v198_v11 = vld [vmem:[%s262_s0] ss:$8 sps:$4 sm:$0xff]  }
   0x6   :  { %112 = vmatpush1.bf16.msra.mxu0 %v190_v2  ;;  %v166_v12 = vld [vmem:[%s263_s2] ss:$0 sm:$0xff] }
   0x7   :  { %113 = vmatprep.subr.bf16.mxu0 %v201_v0 }
   0xa   :  { %114 = vmatpush1.bf16.msra.mxu0 %v191_v3 }
   0xb   :  { %115 = vmatprep.subr.bf16.mxu0 %v201_v0 }
   0xe   :  { %116 = vmatpush1.bf16.msra.mxu0 %v192_v4 }
   0xf   :  { %117 = vmatprep.subr.bf16.mxu0 %v201_v0 }
  0x12   :  { %118 = vmatpush1.bf16.msra.mxu0 %v193_v6 }
  0x13   :  { %119 = vmatprep.subr.bf16.mxu0 %v201_v0 }
  0x16   :  { %120 = vmatpush1.bf16.msra.mxu0 %v194_v7 }
  0x17   :  { %121 = vmatprep.subr.bf16.mxu0 %v201_v0 }
  0x1a   :  { %122 = vmatpush1.bf16.msra.mxu0 %v195_v8 }
  0x1b   :  { %123 = vmatprep.subr.bf16.mxu0 %v201_v0 }
  0x1e   :  { %124 = vmatpush1.bf16.msra.mxu0 %v196_v9 }
  0x1f   :  { %125 = vmatprep.subr.bf16.mxu0 %v201_v0 }
  0x22   :  { %126 = vmatpush1.bf16.msra.mxu0 %v197_v10 }
  0x25   :  { %142 = vmatmul.mubr.bf16.vlgmr.msra.gmra.mrb[0].mxu0 %v198_v11 }
  0xf8   :  { %v143_v13 = vpop.f32.mrb[0].mxu0 }
  0xf9   :  { %v144_v14 = vadd.f32 %v166_v12, %v143_v13  ;;  %v145_v15 = vpop.f32.mrb[1].mxu0 }
  0xfa   :  { %v146_v16 = vpop.f32.mrb[2].mxu0 }
  0xfb   :  { %v147_v17 = vadd.f32 %v166_v12, %v146_v16  ;;  %v148_v18 = vpop.f32.mrb[3].mxu0  ;;  %v150_v19 = vmax.f32 %v144_v14, 0.0 }
  0xfd   :  { %v151_v20 = vmax.f32 %v147_v17, 0.0 }
  0xff   :  { %v186_v21 = vpack.c.bf16 %v151_v20, %v150_v19 }
 0x101   :  { %187 = vst [vmem:[%s264_s3] sm:$0xff] %v186_v21  }

// kernel: horizonnet_forward.30
= control target key start
LH: loop header
LB: loop body
LE: loop exit
PB: predicated region body
PF: predicated region fallthrough
CT: control target
= control target key end

     0   :  { %v642_v33 = vmov 0.0   ;;  %vm643_vm0 = vmmov 0   ;;  %vm341_vm1 = vcmask 523264   ;;  %s793_s1 = inlined_call_operand.vmem [shape: bf16[576,128], index: 1, kind: input, shape index: {}]   ;;  %s794_s0 = inlined_call_operand.vmem [shape: bf16[16,576], index: 0, kind: input, shape index: {}]   ;;  %s795_s2 = inlined_call_operand.vmem [shape: f32[1,128], index: 2, kind: input, shape index: {}]   ;;  %s796_s3 = inlined_call_operand.vmem [shape: bf16[16,128], index: 3, kind: output, shape index: {}]  }
   0x1   :  { %v599_v0 = vld [vmem:[%s793_s1 + $0x40] sm:$0xff]   ;;  %v603_v4 = vld [vmem:[%s793_s1 + $0x48] sm:$0xff]   ;;  %v607_v8 = vld [vmem:[%s793_s1 + $0x50] sm:$0xff]  }
   0x2   :  { %v600_v1 = vld [vmem:[%s793_s1] sm:$0xff]   ;;  %536 = vmatprep.subr.bf16.mxu0 %v599_v0  ;;  %v604_v5 = vld [vmem:[%s793_s1 + $0x8] sm:$0xff]   ;;  %v608_v9 = vld [vmem:[%s793_s1 + $0x10] sm:$0xff]  }
   0x3   :  { %v601_v2 = vld [vmem:[%s793_s1 + $0xc0] sm:$0xff]   ;;  %537 = vmatpush3.bf16.msra.mxu0 %v600_v1  ;;  %v605_v6 = vld [vmem:[%s793_s1 + $0xc8] sm:$0xff]   ;;  %v609_v10 = vld [vmem:[%s793_s1 + $0xd0] sm:$0xff]  }
   0x4   :  { %v602_v3 = vld [vmem:[%s793_s1 + $0x80] sm:$0xff]   ;;  %558 = vmatprep.subr.bf16.mxu1 %v601_v2  ;;  %538 = vmatprep.subr.bf16.mxu0 %v603_v4  ;;  %v606_v7 = vld [vmem:[%s793_s1 + $0x88] sm:$0xff]   ;;  %v610_v11 = vld [vmem:[%s793_s1 + $0x90] sm:$0xff]  }
   0x5   :  { %559 = vmatpush3.bf16.msra.mxu1 %v602_v3  ;;  %v611_v12 = vld [vmem:[%s793_s1 + $0x58] sm:$0xff]   ;;  %v615_v16 = vld [vmem:[%s793_s1 + $0x60] sm:$0xff]   ;;  %v619_v20 = vld [vmem:[%s793_s1 + $0x68] sm:$0xff]  }
   0x6   :  { %560 = vmatprep.subr.bf16.mxu1 %v605_v6  ;;  %v612_v13 = vld [vmem:[%s793_s1 + $0x18] sm:$0xff]   ;;  %v616_v17 = vld [vmem:[%s793_s1 + $0x20] sm:$0xff]   ;;  %v620_v21 = vld [vmem:[%s793_s1 + $0x28] sm:$0xff]  }
   0x7   :  { %539 = vmatpush3.bf16.msra.mxu0 %v604_v5  ;;  %v613_v14 = vld [vmem:[%s793_s1 + $0xd8] sm:$0xff]   ;;  %v617_v18 = vld [vmem:[%s793_s1 + $0xe0] sm:$0xff]   ;;  %v621_v22 = vld [vmem:[%s793_s1 + $0xe8] sm:$0xff]  }
   0x8   :  { %540 = vmatprep.subr.bf16.mxu0 %v607_v8  ;;  %v614_v15 = vld [vmem:[%s793_s1 + $0x98] sm:$0xff]   ;;  %v618_v19 = vld [vmem:[%s793_s1 + $0xa0] sm:$0xff]   ;;  %v622_v23 = vld [vmem:[%s793_s1 + $0xa8] sm:$0xff]  }
   0x9   :  { %561 = vmatpush3.bf16.msra.mxu1 %v606_v7  ;;  %v623_v24 = vld [vmem:[%s793_s1 + $0x70] sm:$0xff]   ;;  %v627_v28 = vld [vmem:[%s793_s1 + $0x78] sm:$0xff]   ;;  %v636_v36 = vld [vmem:[%s794_s0 + $0xc] ss:$20 sps:$4 sm:$0xff]  }
   0xa   :  { %562 = vmatprep.subr.bf16.mxu1 %v609_v10  ;;  %v624_v25 = vld [vmem:[%s793_s1 + $0x30] sm:$0xff]   ;;  %v628_v29 = vld [vmem:[%s793_s1 + $0x38] sm:$0xff]   ;;  %v637_v37 = vld [vmem:[%s793_s1 + $0x100] sm:$0xff]   ;;  %418 = vmatprep.mubr.bf16.mxu1 %v636_v36 }
   0xb   :  { %541 = vmatpush3.bf16.msra.mxu0 %v608_v9  ;;  %v625_v26 = vld [vmem:[%s793_s1 + $0xf0] sm:$0xff]   ;;  %v629_v30 = vld [vmem:[%s793_s1 + $0xf8] sm:$0xff]   ;;  %v638_v38 = vld [vmem:[%s793_s1 + $0x108] sm:$0xff]  }
   0xc   :  { %542 = vmatprep.subr.bf16.mxu0 %v611_v12  ;;  %v626_v27 = vld [vmem:[%s793_s1 + $0xb0] sm:$0xff]   ;;  %v632_v32 = vld [vmem:[%s794_s0 + $0x4] ss:$20 sps:$4 sm:$0xff]   ;;  %v634_v35 = vld [vmem:[%s794_s0 + $0x8] ss:$20 sps:$4 sm:$0xff]  }
   0xd   :  { %563 = vmatpush3.bf16.msra.mxu1 %v610_v11  ;;  %v630_v31 = vld [vmem:[%s794_s0] ss:$20 sps:$4 sm:$0xff]   ;;  %v633_v34 = vld [vmem:[%s793_s1 + $0xb8] sm:$0xff]   ;;  %377 = vmatprep.mubr.bf16.mxu0 %v632_v32  ;;  %v641_v41 = vld [vmem:[%s794_s0 + $0x10] ss:$20 sps:$4 sm:$0xff]  }
   0xe   :  { %564 = vmatprep.subr.bf16.mxu1 %v613_v14  ;;  %v639_v39 = vld [vmem:[%s793_s1 + $0x110] sm:$0xff]   ;;  %v640_v40 = vld [vmem:[%s793_s1 + $0x118] sm:$0xff]   ;;  %v484_v43 = vld [vmem:[%s795_s2] ss:$0 sm:$0xff] }
   0xf   :  { %543 = vmatpush3.bf16.msra.mxu0 %v612_v13 }
  0x10   :  { %544 = vmatprep.subr.bf16.mxu0 %v615_v16 }
  0x11   :  { %565 = vmatpush3.bf16.msra.mxu1 %v614_v15 }
  0x12   :  { %566 = vmatprep.subr.bf16.mxu1 %v617_v18 }
  0x13   :  { %545 = vmatpush3.bf16.msra.mxu0 %v616_v17 }
  0x14   :  { %546 = vmatprep.subr.bf16.mxu0 %v619_v20 }
  0x15   :  { %567 = vmatpush3.bf16.msra.mxu1 %v618_v19 }
  0x16   :  { %568 = vmatprep.subr.bf16.mxu1 %v621_v22 }
  0x17   :  { %547 = vmatpush3.bf16.msra.mxu0 %v620_v21 }
  0x18   :  { %548 = vmatprep.subr.bf16.mxu0 %v623_v24 }
  0x19   :  { %569 = vmatpush3.bf16.msra.mxu1 %v622_v23 }
  0x1a   :  { %570 = vmatprep.subr.bf16.mxu1 %v625_v26 }
  0x1b   :  { %549 = vmatpush3.bf16.msra.mxu0 %v624_v25 }
  0x1c   :  { %550 = vmatprep.subr.bf16.mxu0 %v627_v28 }
  0x1d   :  { %571 = vmatpush3.bf16.msra.mxu1 %v626_v27 }
  0x1e   :  { %572 = vmatprep.subr.bf16.mxu1 %v629_v30 }
  0x1f   :  { %551 = vmatpush3.bf16.msra.mxu0 %v628_v29 }
  0x20   :  { %585 = vmatprep.subr.bf16.mxu0 %v642_v33 }
  0x21   :  { %573 = vmatpush3.bf16.msra.mxu1 %v633_v34 }
  0x22   :  { %378 = vmatmul.mubr.bf16.vlgmr.msra.gmra.mrb[0].mxu0 %v630_v31 }
  0x23   :  { %593 = vmatprep.mubr.msk.bf16.mxu0 %vm643_vm0, %v642_v33  ;;  %586 = vmatpush3.bf16.msra.mxu0 %v637_v37 }
  0x24   :  { %419 = vmatmul.mubr.bf16.vlgmr.msra.gmra.mrb[0].mxu1 %v634_v35  ;;  %587 = vmatprep.subr.bf16.mxu0 %v642_v33 }
  0x27   :  { %588 = vmatpush3.bf16.msra.mxu0 %v638_v38 }
  0x28   :  { %589 = vmatprep.subr.bf16.mxu0 %v642_v33 }
  0x2b   :  { %590 = vmatpush3.bf16.msra.mxu0 %v639_v39 }
  0x2c   :  { %591 = vmatprep.subr.bf16.mxu0 %v642_v33 }
  0x2f   :  { %592 = vmatpush3.bf16.msra.mxu0 %v640_v40 }
  0x32   :  { %594 = vmatmul.mubr.msk.bf16.vlgmr.msra.gmra.mrb[4].mxu0 %vm341_vm1, %v641_v41 }
  0xf5   :  { %v552_v42 = vpop.f32.mrb[0].mxu0 }
  0xf6   :  { %v553_v44 = vpop.f32.mrb[1].mxu0 }
  0xf7   :  { %v554_v45 = vadd.f32 %v553_v44, %v552_v42  ;;  %v555_v46 = vpop.f32.mrb[2].mxu0  ;;  %v574_v47 = vpop.f32.mrb[0].mxu1 }
  0xf8   :  { %v556_v48 = vpop.f32.mrb[3].mxu0  ;;  %v575_v51 = vpop.f32.mrb[1].mxu1 }
  0xf9   :  { %v380_v49 = vadd.f32 %v554_v45, %v484_v43  ;;  %v557_v50 = vadd.f32 %v556_v48, %v555_v46  ;;  %v576_v52 = vadd.f32 %v575_v51, %v574_v47  ;;  %v577_v53 = vpop.f32.mrb[2].mxu1 }
  0xfa   :  { %v578_v55 = vpop.f32.mrb[3].mxu1 }
  0xfb   :  { %v383_v54 = vadd.f32 %v557_v50, %v484_v43  ;;  %v579_v56 = vadd.f32 %v578_v55, %v577_v53  ;;  %v421_v57 = vadd.f32 %v576_v52, %v380_v49 }
  0xfd   :  { %v424_v58 = vadd.f32 %v579_v56, %v383_v54 }
 0x105   :  { %v461_v59 = vpop.f32.mrb[4].mxu0 }
 0x106   :  { %v462_v60 = vadd.f32 %v461_v59, %v421_v57  ;;  %v595_v61 = vpop.f32.mrb[5].mxu0 }
 0x107   :  { %v464_v62 = vpop.f32.mrb[6].mxu0 }
 0x108   :  { %v465_v63 = vadd.f32 %v464_v62, %v424_v58  ;;  %v596_v0 = vpop.f32.mrb[7].mxu0  ;;  %v468_v1 = vmax.f32 %v462_v60, 0.0 }
 0x10a   :  { %v469_v2 = vmax.f32 %v465_v63, 0.0 }
 0x10c   :  { %v534_v3 = vpack.c.bf16 %v469_v2, %v468_v1 }
 0x10e   :  { %535 = vst [vmem:[%s796_s3] sm:$0xff] %v534_v3  }

// kernel: horizonnet_forward.43
= control target key start
LH: loop header
LB: loop body
LE: loop exit
PB: predicated region body
PF: predicated region fallthrough
CT: control target
= control target key end

     0   :  { %vm1125_vm0 = vmmov 0   ;;  %s1383_s1 = inlined_call_operand.vmem [shape: bf16[1152,128], index: 1, kind: input, shape index: {}]   ;;  %s1384_s0 = inlined_call_operand.vmem [shape: bf16[8,1152], index: 0, kind: input, shape index: {}]   ;;  %s1385_s2 = inlined_call_operand.vmem [shape: f32[1,128], index: 2, kind: input, shape index: {}]   ;;  %s1386_s3 = inlined_call_operand.vmem [shape: bf16[8,128], index: 3, kind: output, shape index: {}]  }
   0x1   :  { %v1043_v0 = vld [vmem:[%s1383_s1 + $0x40] sm:$0xff]   ;;  %v1047_v4 = vld [vmem:[%s1383_s1 + $0x48] sm:$0xff]   ;;  %v1051_v8 = vld [vmem:[%s1383_s1 + $0x50] sm:$0xff]  }
   0x2   :  { %v1044_v1 = vld [vmem:[%s1383_s1] sm:$0xff]   ;;  %924 = vmatprep.subr.bf16.mxu0 %v1043_v0  ;;  %v1048_v5 = vld [vmem:[%s1383_s1 + $0x8] sm:$0xff]   ;;  %v1052_v9 = vld [vmem:[%s1383_s1 + $0x10] sm:$0xff]  }
   0x3   :  { %v1045_v2 = vld [vmem:[%s1383_s1 + $0xc0] sm:$0xff]   ;;  %925 = vmatpush3.bf16.msra.mxu0 %v1044_v1  ;;  %v1049_v6 = vld [vmem:[%s1383_s1 + $0xc8] sm:$0xff]   ;;  %v1053_v10 = vld [vmem:[%s1383_s1 + $0xd0] sm:$0xff]  }
   0x4   :  { %v1046_v3 = vld [vmem:[%s1383_s1 + $0x80] sm:$0xff]   ;;  %946 = vmatprep.subr.bf16.mxu1 %v1045_v2  ;;  %926 = vmatprep.subr.bf16.mxu0 %v1047_v4  ;;  %v1050_v7 = vld [vmem:[%s1383_s1 + $0x88] sm:$0xff]   ;;  %v1054_v11 = vld [vmem:[%s1383_s1 + $0x90] sm:$0xff]  }
   0x5   :  { %947 = vmatpush3.bf16.msra.mxu1 %v1046_v3  ;;  %v1055_v12 = vld [vmem:[%s1383_s1 + $0x58] sm:$0xff]   ;;  %v1059_v16 = vld [vmem:[%s1383_s1 + $0x60] sm:$0xff]   ;;  %v1063_v20 = vld [vmem:[%s1383_s1 + $0x68] sm:$0xff]  }
   0x6   :  { %948 = vmatprep.subr.bf16.mxu1 %v1049_v6  ;;  %v1056_v13 = vld [vmem:[%s1383_s1 + $0x18] sm:$0xff]   ;;  %v1060_v17 = vld [vmem:[%s1383_s1 + $0x20] sm:$0xff]   ;;  %v1064_v21 = vld [vmem:[%s1383_s1 + $0x28] sm:$0xff]  }
   0x7   :  { %927 = vmatpush3.bf16.msra.mxu0 %v1048_v5  ;;  %v1057_v14 = vld [vmem:[%s1383_s1 + $0xd8] sm:$0xff]   ;;  %v1061_v18 = vld [vmem:[%s1383_s1 + $0xe0] sm:$0xff]   ;;  %v1065_v22 = vld [vmem:[%s1383_s1 + $0xe8] sm:$0xff]  }
   0x8   :  { %928 = vmatprep.subr.bf16.mxu0 %v1051_v8  ;;  %v1058_v15 = vld [vmem:[%s1383_s1 + $0x98] sm:$0xff]   ;;  %v1062_v19 = vld [vmem:[%s1383_s1 + $0xa0] sm:$0xff]   ;;  %v1066_v23 = vld [vmem:[%s1383_s1 + $0xa8] sm:$0xff]  }
   0x9   :  { %949 = vmatpush3.bf16.msra.mxu1 %v1050_v7  ;;  %v1067_v24 = vld [vmem:[%s1383_s1 + $0x70] sm:$0xff]   ;;  %v1071_v28 = vld [vmem:[%s1383_s1 + $0x78] sm:$0xff]   ;;  %v15_v31 = vld [vmem:[%s1384_s0] sm:$0xff] }
   0xa   :  { %950 = vmatprep.subr.bf16.mxu1 %v1053_v10  ;;  %v1068_v25 = vld [vmem:[%s1383_s1 + $0x30] sm:$0xff]   ;;  %v1072_v29 = vld [vmem:[%s1383_s1 + $0x38] sm:$0xff]   ;;  %v843_v32 = vcombine.low %v15_v31, %v15_v31  ;;  %v844_v33 = vcombine.high %v15_v31, %v15_v31  ;;  %v1077_v35 = vld [vmem:[%s1383_s1 + $0x140] sm:$0xff]  }
   0xb   :  { %929 = vmatpush3.bf16.msra.mxu0 %v1052_v9  ;;  %v1069_v26 = vld [vmem:[%s1383_s1 + $0xf0] sm:$0xff]   ;;  %v1073_v30 = vld [vmem:[%s1383_s1 + $0xf8] sm:$0xff]   ;;  %v16_v36 = vld [vmem:[%s1384_s0 + $0x8] sm:$0xff]  ;;  %v1124_v9 = vmov 0.0  }
   0xc   :  { %930 = vmatprep.subr.bf16.mxu0 %v1055_v12  ;;  %v1070_v27 = vld [vmem:[%s1383_s1 + $0xb0] sm:$0xff]   ;;  %v1076_v34 = vld [vmem:[%s1383_s1 + $0xb8] sm:$0xff]   ;;  %667 = vmatprep.mubr.bf16.mxu0 %v844_v33  ;;  %v845_v37 = vcombine.low %v16_v36, %v16_v36  ;;  %v846_v38 = vcombine.high %v16_v36, %v16_v36  ;;  %v1080_v39 = vld [vmem:[%s1383_s1 + $0x100] sm:$0xff]  }
   0xd   :  { %951 = vmatpush3.bf16.msra.mxu1 %v1054_v11  ;;  %v1081_v40 = vld [vmem:[%s1383_s1 + $0x1c0] sm:$0xff]   ;;  %v1083_v42 = vld [vmem:[%s1383_s1 + $0x148] sm:$0xff]   ;;  %v1087_v46 = vld [vmem:[%s1383_s1 + $0x150] sm:$0xff]  }
   0xe   :  { %952 = vmatprep.subr.bf16.mxu1 %v1057_v14  ;;  %707 = vmatprep.mubr.bf16.mxu1 %v846_v38  ;;  %v1082_v41 = vld [vmem:[%s1383_s1 + $0x180] sm:$0xff]   ;;  %v1084_v43 = vld [vmem:[%s1383_s1 + $0x108] sm:$0xff]   ;;  %v1088_v47 = vld [vmem:[%s1383_s1 + $0x110] sm:$0xff]  }
   0xf   :  { %931 = vmatpush3.bf16.msra.mxu0 %v1056_v13  ;;  %v1085_v44 = vld [vmem:[%s1383_s1 + $0x1c8] sm:$0xff]   ;;  %v1089_v48 = vld [vmem:[%s1383_s1 + $0x1d0] sm:$0xff]   ;;  %v1091_v50 = vld [vmem:[%s1383_s1 + $0x158] sm:$0xff]  }
  0x10   :  { %932 = vmatprep.subr.bf16.mxu0 %v1059_v16  ;;  %v1086_v45 = vld [vmem:[%s1383_s1 + $0x188] sm:$0xff]   ;;  %v1090_v49 = vld [vmem:[%s1383_s1 + $0x190] sm:$0xff]   ;;  %v1092_v51 = vld [vmem:[%s1383_s1 + $0x118] sm:$0xff]  }
  0x11   :  { %953 = vmatpush3.bf16.msra.mxu1 %v1058_v15  ;;  %v1093_v52 = vld [vmem:[%s1383_s1 + $0x1d8] sm:$0xff]   ;;  %v1095_v54 = vld [vmem:[%s1383_s1 + $0x160] sm:$0xff]   ;;  %v1099_v58 = vld [vmem:[%s1383_s1 + $0x168] sm:$0xff]  }
  0x12   :  { %954 = vmatprep.subr.bf16.mxu1 %v1061_v18  ;;  %v1094_v53 = vld [vmem:[%s1383_s1 + $0x198] sm:$0xff]   ;;  %v1096_v55 = vld [vmem:[%s1383_s1 + $0x120] sm:$0xff]   ;;  %v1100_v59 = vld [vmem:[%s1383_s1 + $0x128] sm:$0xff]  }
  0x13   :  { %933 = vmatpush3.bf16.msra.mxu0 %v1060_v17  ;;  %v1097_v56 = vld [vmem:[%s1383_s1 + $0x1e0] sm:$0xff]   ;;  %v1101_v60 = vld [vmem:[%s1383_s1 + $0x1e8] sm:$0xff]   ;;  %v1103_v62 = vld [vmem:[%s1383_s1 + $0x170] sm:$0xff]  }
  0x14   :  { %934 = vmatprep.subr.bf16.mxu0 %v1063_v20  ;;  %v1098_v57 = vld [vmem:[%s1383_s1 + $0x1a0] sm:$0xff]   ;;  %v1102_v61 = vld [vmem:[%s1383_s1 + $0x1a8] sm:$0xff]   ;;  %v1104_v63 = vld [vmem:[%s1383_s1 + $0x130] sm:$0xff]  }
  0x15   :  { %955 = vmatpush3.bf16.msra.mxu1 %v1062_v19  ;;  %v1105_v0 = vld [vmem:[%s1383_s1 + $0x1f0] sm:$0xff]   ;;  %v1107_v2 = vld [vmem:[%s1383_s1 + $0x178] sm:$0xff]   ;;  %v1115_v13 = vld [vmem:[%s1383_s1 + $0x200] sm:$0xff]  }
  0x16   :  { %956 = vmatprep.subr.bf16.mxu1 %v1065_v22  ;;  %v1106_v1 = vld [vmem:[%s1383_s1 + $0x1b0] sm:$0xff]   ;;  %v1108_v3 = vld [vmem:[%s1383_s1 + $0x138] sm:$0xff]   ;;  %v1116_v14 = vld [vmem:[%s1383_s1 + $0x208] sm:$0xff]  }
  0x17   :  { %935 = vmatpush3.bf16.msra.mxu0 %v1064_v21  ;;  %v1109_v4 = vld [vmem:[%s1383_s1 + $0x1f8] sm:$0xff]   ;;  %v17_v5 = vld [vmem:[%s1384_s0 + $0x10] sm:$0xff]  ;;  %v1119_v17 = vld [vmem:[%s1383_s1 + $0x220] sm:$0xff]  }
  0x18   :  { %936 = vmatprep.subr.bf16.mxu0 %v1067_v24  ;;  %v847_v6 = vcombine.low %v17_v5, %v17_v5  ;;  %v848_v7 = vcombine.high %v17_v5, %v17_v5  ;;  %v1112_v8 = vld [vmem:[%s1383_s1 + $0x1b8] sm:$0xff]   ;;  %v1117_v15 = vld [vmem:[%s1383_s1 + $0x210] sm:$0xff]   ;;  %v1120_v18 = vld [vmem:[%s1383_s1 + $0x228] sm:$0xff]  }
  0x19   :  { %957 = vmatpush3.bf16.msra.mxu1 %v1066_v23  ;;  %v18_v10 = vld [vmem:[%s1384_s0 + $0x18] sm:$0xff]  ;;  %v1121_v19 = vld [vmem:[%s1383_s1 + $0x230] sm:$0xff]   ;;  %v1123_v21 = vld [vmem:[%s1384_s0 + $0x20] ss:$0 sps:$4 sm:$0xff]  }
  0x1a   :  { %958 = vmatprep.subr.bf16.mxu1 %v1069_v26  ;;  %v849_v11 = vcombine.low %v18_v10, %v18_v10  ;;  %v850_v12 = vcombine.high %v18_v10, %v18_v10  ;;  %v1118_v16 = vld [vmem:[%s1383_s1 + $0x218] sm:$0xff]   ;;  %v842_v23 = vld [vmem:[%s1385_s2] ss:$0 sm:$0xff] }
  0x1b   :  { %937 = vmatpush3.bf16.msra.mxu0 %v1068_v25  ;;  %v1122_v20 = vld [vmem:[%s1383_s1 + $0x238] sm:$0xff]  }
  0x1c   :  { %938 = vmatprep.subr.bf16.mxu0 %v1071_v28 }
  0x1d   :  { %959 = vmatpush3.bf16.msra.mxu1 %v1070_v27 }
  0x1e   :  { %960 = vmatprep.subr.bf16.mxu1 %v1073_v30 }
  0x1f   :  { %939 = vmatpush3.bf16.msra.mxu0 %v1072_v29 }
  0x20   :  { %968 = vmatprep.subr.bf16.mxu0 %v1077_v35 }
  0x21   :  { %961 = vmatpush3.bf16.msra.mxu1 %v1076_v34 }
  0x22   :  { %668 = vmatmul.mubr.bf16.vlgmr.msra.gmra.mrb[0].mxu0 %v843_v32  ;;  %990 = vmatprep.subr.bf16.mxu1 %v1081_v40 }
  0x23   :  { %969 = vmatpush3.bf16.msra.mxu0 %v1080_v39  ;;  %747 = vmatprep.mubr.bf16.mxu0 %v848_v7 }
  0x24   :  { %708 = vmatmul.mubr.bf16.vlgmr.msra.gmra.mrb[0].mxu1 %v845_v37  ;;  %970 = vmatprep.subr.bf16.mxu0 %v1083_v42 }
  0x25   :  { %991 = vmatpush3.bf16.msra.mxu1 %v1082_v41  ;;  %787 = vmatprep.mubr.bf16.mxu1 %v850_v12 }
  0x26   :  { %992 = vmatprep.subr.bf16.mxu1 %v1085_v44 }
  0x27   :  { %971 = vmatpush3.bf16.msra.mxu0 %v1084_v43 }
  0x28   :  { %972 = vmatprep.subr.bf16.mxu0 %v1087_v46 }
  0x29   :  { %993 = vmatpush3.bf16.msra.mxu1 %v1086_v45 }
  0x2a   :  { %994 = vmatprep.subr.bf16.mxu1 %v1089_v48 }
  0x2b   :  { %973 = vmatpush3.bf16.msra.mxu0 %v1088_v47 }
  0x2c   :  { %974 = vmatprep.subr.bf16.mxu0 %v1091_v50 }
  0x2d   :  { %995 = vmatpush3.bf16.msra.mxu1 %v1090_v49 }
  0x2e   :  { %996 = vmatprep.subr.bf16.mxu1 %v1093_v52 }
  0x2f   :  { %975 = vmatpush3.bf16.msra.mxu0 %v1092_v51 }
  0x30   :  { %976 = vmatprep.subr.bf16.mxu0 %v1095_v54 }
  0x31   :  { %997 = vmatpush3.bf16.msra.mxu1 %v1094_v53 }
  0x32   :  { %998 = vmatprep.subr.bf16.mxu1 %v1097_v56 }
  0x33   :  { %977 = vmatpush3.bf16.msra.mxu0 %v1096_v55 }
  0x34   :  { %978 = vmatprep.subr.bf16.mxu0 %v1099_v58 }
  0x35   :  { %999 = vmatpush3.bf16.msra.mxu1 %v1098_v57 }
  0x36   :  { %1000 = vmatprep.subr.bf16.mxu1 %v1101_v60 }
  0x37   :  { %979 = vmatpush3.bf16.msra.mxu0 %v1100_v59 }
  0x38   :  { %980 = vmatprep.subr.bf16.mxu0 %v1103_v62 }
  0x39   :  { %1001 = vmatpush3.bf16.msra.mxu1 %v1102_v61 }
  0x3a   :  { %1002 = vmatprep.subr.bf16.mxu1 %v1105_v0 }
  0x3b   :  { %981 = vmatpush3.bf16.msra.mxu0 %v1104_v63 }
  0x3c   :  { %982 = vmatprep.subr.bf16.mxu0 %v1107_v2 }
  0x3d   :  { %1003 = vmatpush3.bf16.msra.mxu1 %v1106_v1 }
  0x3e   :  { %1004 = vmatprep.subr.bf16.mxu1 %v1109_v4 }
  0x3f   :  { %983 = vmatpush3.bf16.msra.mxu0 %v1108_v3 }
  0x40   :  { %1021 = vmatprep.subr.bf16.mxu0 %v1124_v9 }
  0x41   :  { %1005 = vmatpush3.bf16.msra.mxu1 %v1112_v8 }
  0x42   :  { %748 = vmatmul.mubr.bf16.vlgmr.msra.gmra.mrb[4].mxu0 %v847_v6 }
  0x43   :  { %1022 = vmatpush3.bf16.msra.mxu0 %v1115_v13  ;;  %1037 = vmatprep.mubr.msk.bf16.mxu0 %vm1125_vm0, %v1124_v9 }
  0x44   :  { %788 = vmatmul.mubr.bf16.vlgmr.msra.gmra.mrb[4].mxu1 %v849_v11  ;;  %1023 = vmatprep.subr.bf16.mxu0 %v1124_v9 }
  0x47   :  { %1024 = vmatpush3.bf16.msra.mxu0 %v1116_v14 }
  0x48   :  { %1025 = vmatprep.subr.bf16.mxu0 %v1124_v9 }
  0x4b   :  { %1026 = vmatpush3.bf16.msra.mxu0 %v1117_v15 }
  0x4c   :  { %1027 = vmatprep.subr.bf16.mxu0 %v1124_v9 }
  0x4f   :  { %1028 = vmatpush3.bf16.msra.mxu0 %v1118_v16 }
  0x50   :  { %1029 = vmatprep.subr.bf16.mxu0 %v1124_v9 }
  0x53   :  { %1030 = vmatpush3.bf16.msra.mxu0 %v1119_v17 }
  0x54   :  { %1031 = vmatprep.subr.bf16.mxu0 %v1124_v9 }
  0x57   :  { %1032 = vmatpush3.bf16.msra.mxu0 %v1120_v18 }
  0x58   :  { %1033 = vmatprep.subr.bf16.mxu0 %v1124_v9 }
  0x5b   :  { %1034 = vmatpush3.bf16.msra.mxu0 %v1121_v19 }
  0x5c   :  { %1035 = vmatprep.subr.bf16.mxu0 %v1124_v9 }
  0x5f   :  { %1036 = vmatpush3.bf16.msra.mxu0 %v1122_v20 }
  0x62   :  { %1038 = vmatmul.mubr.bf16.vlgmr.msra.gmra.mrb[8].mxu0 %v1123_v21 }
  0xf5   :  { %v940_v22 = vpop.f32.mrb[0].mxu0 }
  0xf6   :  { %v941_v24 = vpop.f32.mrb[1].mxu0 }
  0xf7   :  { %v942_v25 = vadd.f32 %v941_v24, %v940_v22  ;;  %v943_v26 = vpop.f32.mrb[2].mxu0  ;;  %v962_v27 = vpop.f32.mrb[0].mxu1 }
  0xf8   :  { %v944_v28 = vpop.f32.mrb[3].mxu0  ;;  %v963_v29 = vpop.f32.mrb[1].mxu1 }
  0xf9   :  { %v670_v30 = vadd.f32 %v942_v25, %v842_v23  ;;  %v964_v31 = vadd.f32 %v963_v29, %v962_v27  ;;  %v965_v32 = vpop.f32.mrb[2].mxu1 }
  0xfa   :  { %v966_v33 = vpop.f32.mrb[3].mxu1 }
  0xfb   :  { %v710_v34 = vadd.f32 %v964_v31, %v670_v30 }
 0x115   :  { %v984_v35 = vpop.f32.mrb[4].mxu0 }
 0x116   :  { %v985_v36 = vpop.f32.mrb[5].mxu0 }
 0x117   :  { %v986_v37 = vadd.f32 %v985_v36, %v984_v35  ;;  %v987_v38 = vpop.f32.mrb[6].mxu0  ;;  %v1006_v39 = vpop.f32.mrb[4].mxu1 }
 0x118   :  { %v988_v40 = vpop.f32.mrb[7].mxu0  ;;  %v1007_v41 = vpop.f32.mrb[5].mxu1 }
 0x119   :  { %v750_v42 = vadd.f32 %v986_v37, %v710_v34  ;;  %v1008_v43 = vadd.f32 %v1007_v41, %v1006_v39  ;;  %v1009_v44 = vpop.f32.mrb[6].mxu1 }
 0x11a   :  { %v1010_v45 = vpop.f32.mrb[7].mxu1 }
 0x11b   :  { %v790_v46 = vadd.f32 %v1008_v43, %v750_v42 }
 0x135   :  { %v829_v47 = vpop.f32.mrb[8].mxu0 }
 0x136   :  { %v830_v48 = vadd.f32 %v829_v47, %v790_v46  ;;  %v1039_v49 = vpop.f32.mrb[9].mxu0 }
 0x137   :  { %v832_v50 = vpop.f32.mrb[10].mxu0 }
 0x138   :  { %v835_v51 = vmax.f32 %v830_v48, 0.0  ;;  %v1040_v52 = vpop.f32.mrb[11].mxu0 }
 0x13a   :  { %v836_v53 = vpack.c.bf16 %v835_v51, %v835_v51 }
 0x13c   :  { %837 = vst [vmem:[%s1386_s3] sm:$0xf] %v836_v53 }

// kernel: horizonnet_forward.44
= control target key start
LH: loop header
LB: loop body
LE: loop exit
PB: predicated region body
PF: predicated region fallthrough
CT: control target
= control target key end

     0   :  { %v608_v35 = vmov 0.0   ;;  %vm609_vm0 = vmmov 0   ;;  %vm330_vm1 = vcmask 523264   ;;  %s753_s1 = inlined_call_operand.vmem [shape: bf16[576,128], index: 1, kind: input, shape index: {}]   ;;  %s754_s0 = inlined_call_operand.vmem [shape: bf16[8,576], index: 0, kind: input, shape index: {}]   ;;  %s755_s2 = inlined_call_operand.vmem [shape: f32[1,128], index: 2, kind: input, shape index: {}]   ;;  %s756_s3 = inlined_call_operand.vmem [shape: bf16[8,128], index: 3, kind: output, shape index: {}]  }
   0x1   :  { %v567_v0 = vld [vmem:[%s753_s1 + $0x40] sm:$0xff]   ;;  %v571_v4 = vld [vmem:[%s753_s1 + $0x48] sm:$0xff]   ;;  %v575_v8 = vld [vmem:[%s753_s1 + $0x50] sm:$0xff]  }
   0x2   :  { %v568_v1 = vld [vmem:[%s753_s1] sm:$0xff]   ;;  %504 = vmatprep.subr.bf16.mxu0 %v567_v0  ;;  %v572_v5 = vld [vmem:[%s753_s1 + $0x8] sm:$0xff]   ;;  %v576_v9 = vld [vmem:[%s753_s1 + $0x10] sm:$0xff]  }
   0x3   :  { %v569_v2 = vld [vmem:[%s753_s1 + $0xc0] sm:$0xff]   ;;  %505 = vmatpush3.bf16.msra.mxu0 %v568_v1  ;;  %v573_v6 = vld [vmem:[%s753_s1 + $0xc8] sm:$0xff]   ;;  %v577_v10 = vld [vmem:[%s753_s1 + $0xd0] sm:$0xff]  }
   0x4   :  { %v570_v3 = vld [vmem:[%s753_s1 + $0x80] sm:$0xff]   ;;  %526 = vmatprep.subr.bf16.mxu1 %v569_v2  ;;  %506 = vmatprep.subr.bf16.mxu0 %v571_v4  ;;  %v574_v7 = vld [vmem:[%s753_s1 + $0x88] sm:$0xff]   ;;  %v578_v11 = vld [vmem:[%s753_s1 + $0x90] sm:$0xff]  }
   0x5   :  { %527 = vmatpush3.bf16.msra.mxu1 %v570_v3  ;;  %v579_v12 = vld [vmem:[%s753_s1 + $0x58] sm:$0xff]   ;;  %v583_v16 = vld [vmem:[%s753_s1 + $0x60] sm:$0xff]   ;;  %v587_v20 = vld [vmem:[%s753_s1 + $0x68] sm:$0xff]  }
   0x6   :  { %528 = vmatprep.subr.bf16.mxu1 %v573_v6  ;;  %v580_v13 = vld [vmem:[%s753_s1 + $0x18] sm:$0xff]   ;;  %v584_v17 = vld [vmem:[%s753_s1 + $0x20] sm:$0xff]   ;;  %v588_v21 = vld [vmem:[%s753_s1 + $0x28] sm:$0xff]  }
   0x7   :  { %507 = vmatpush3.bf16.msra.mxu0 %v572_v5  ;;  %v581_v14 = vld [vmem:[%s753_s1 + $0xd8] sm:$0xff]   ;;  %v585_v18 = vld [vmem:[%s753_s1 + $0xe0] sm:$0xff]   ;;  %v589_v22 = vld [vmem:[%s753_s1 + $0xe8] sm:$0xff]  }
   0x8   :  { %508 = vmatprep.subr.bf16.mxu0 %v575_v8  ;;  %v582_v15 = vld [vmem:[%s753_s1 + $0x98] sm:$0xff]   ;;  %v586_v19 = vld [vmem:[%s753_s1 + $0xa0] sm:$0xff]   ;;  %v590_v23 = vld [vmem:[%s753_s1 + $0xa8] sm:$0xff]  }
   0x9   :  { %529 = vmatpush3.bf16.msra.mxu1 %v574_v7  ;;  %v591_v24 = vld [vmem:[%s753_s1 + $0x70] sm:$0xff]   ;;  %v595_v28 = vld [vmem:[%s753_s1 + $0x78] sm:$0xff]   ;;  %v15_v31 = vld [vmem:[%s754_s0] sm:$0xff] }
   0xa   :  { %530 = vmatprep.subr.bf16.mxu1 %v577_v10  ;;  %v592_v25 = vld [vmem:[%s753_s1 + $0x30] sm:$0xff]   ;;  %v596_v29 = vld [vmem:[%s753_s1 + $0x38] sm:$0xff]   ;;  %v462_v32 = vcombine.low %v15_v31, %v15_v31  ;;  %v463_v33 = vcombine.high %v15_v31, %v15_v31  ;;  %v16_v36 = vld [vmem:[%s754_s0 + $0x8] sm:$0xff] }
   0xb   :  { %509 = vmatpush3.bf16.msra.mxu0 %v576_v9  ;;  %v593_v26 = vld [vmem:[%s753_s1 + $0xf0] sm:$0xff]   ;;  %v597_v30 = vld [vmem:[%s753_s1 + $0xf8] sm:$0xff]   ;;  %v464_v37 = vcombine.low %v16_v36, %v16_v36  ;;  %v465_v38 = vcombine.high %v16_v36, %v16_v36  ;;  %v604_v39 = vld [vmem:[%s753_s1 + $0x100] sm:$0xff]  }
   0xc   :  { %510 = vmatprep.subr.bf16.mxu0 %v579_v12  ;;  %v594_v27 = vld [vmem:[%s753_s1 + $0xb0] sm:$0xff]   ;;  %v601_v34 = vld [vmem:[%s753_s1 + $0xb8] sm:$0xff]   ;;  %366 = vmatprep.mubr.bf16.mxu0 %v463_v33  ;;  %v605_v40 = vld [vmem:[%s753_s1 + $0x108] sm:$0xff]  }
   0xd   :  { %531 = vmatpush3.bf16.msra.mxu1 %v578_v11  ;;  %406 = vmatprep.mubr.bf16.mxu1 %v465_v38  ;;  %v606_v41 = vld [vmem:[%s753_s1 + $0x110] sm:$0xff]   ;;  %v607_v42 = vld [vmem:[%s753_s1 + $0x118] sm:$0xff]   ;;  %v461_v45 = vld [vmem:[%s755_s2] ss:$0 sm:$0xff] }
   0xe   :  { %532 = vmatprep.subr.bf16.mxu1 %v581_v14  ;;  %v600_v43 = vld [vmem:[%s754_s0 + $0x10] ss:$0 sps:$4 sm:$0xff]  }
   0xf   :  { %511 = vmatpush3.bf16.msra.mxu0 %v580_v13 }
  0x10   :  { %512 = vmatprep.subr.bf16.mxu0 %v583_v16 }
  0x11   :  { %533 = vmatpush3.bf16.msra.mxu1 %v582_v15 }
  0x12   :  { %534 = vmatprep.subr.bf16.mxu1 %v585_v18 }
  0x13   :  { %513 = vmatpush3.bf16.msra.mxu0 %v584_v17 }
  0x14   :  { %514 = vmatprep.subr.bf16.mxu0 %v587_v20 }
  0x15   :  { %535 = vmatpush3.bf16.msra.mxu1 %v586_v19 }
  0x16   :  { %536 = vmatprep.subr.bf16.mxu1 %v589_v22 }
  0x17   :  { %515 = vmatpush3.bf16.msra.mxu0 %v588_v21 }
  0x18   :  { %516 = vmatprep.subr.bf16.mxu0 %v591_v24 }
  0x19   :  { %537 = vmatpush3.bf16.msra.mxu1 %v590_v23 }
  0x1a   :  { %538 = vmatprep.subr.bf16.mxu1 %v593_v26 }
  0x1b   :  { %517 = vmatpush3.bf16.msra.mxu0 %v592_v25 }
  0x1c   :  { %518 = vmatprep.subr.bf16.mxu0 %v595_v28 }
  0x1d   :  { %539 = vmatpush3.bf16.msra.mxu1 %v594_v27 }
  0x1e   :  { %540 = vmatprep.subr.bf16.mxu1 %v597_v30 }
  0x1f   :  { %519 = vmatpush3.bf16.msra.mxu0 %v596_v29 }
  0x20   :  { %553 = vmatprep.subr.bf16.mxu0 %v608_v35 }
  0x21   :  { %541 = vmatpush3.bf16.msra.mxu1 %v601_v34 }
  0x22   :  { %367 = vmatmul.mubr.bf16.vlgmr.msra.gmra.mrb[0].mxu0 %v462_v32 }
  0x23   :  { %554 = vmatpush3.bf16.msra.mxu0 %v604_v39  ;;  %561 = vmatprep.mubr.msk.bf16.mxu0 %vm609_vm0, %v608_v35 }
  0x24   :  { %407 = vmatmul.mubr.bf16.vlgmr.msra.gmra.mrb[0].mxu1 %v464_v37  ;;  %555 = vmatprep.subr.bf16.mxu0 %v608_v35 }
  0x27   :  { %556 = vmatpush3.bf16.msra.mxu0 %v605_v40 }
  0x28   :  { %557 = vmatprep.subr.bf16.mxu0 %v608_v35 }
  0x2b   :  { %558 = vmatpush3.bf16.msra.mxu0 %v606_v41 }
  0x2c   :  { %559 = vmatprep.subr.bf16.mxu0 %v608_v35 }
  0x2f   :  { %560 = vmatpush3.bf16.msra.mxu0 %v607_v42 }
  0x32   :  { %562 = vmatmul.mubr.msk.bf16.vlgmr.msra.gmra.mrb[4].mxu0 %vm330_vm1, %v600_v43 }
  0xf5   :  { %v520_v44 = vpop.f32.mrb[0].mxu0 }
  0xf6   :  { %v521_v46 = vpop.f32.mrb[1].mxu0 }
  0xf7   :  { %v522_v47 = vadd.f32 %v521_v46, %v520_v44  ;;  %v523_v48 = vpop.f32.mrb[2].mxu0  ;;  %v542_v49 = vpop.f32.mrb[0].mxu1 }
  0xf8   :  { %v524_v50 = vpop.f32.mrb[3].mxu0  ;;  %v543_v51 = vpop.f32.mrb[1].mxu1 }
  0xf9   :  { %v369_v52 = vadd.f32 %v522_v47, %v461_v45  ;;  %v544_v53 = vadd.f32 %v543_v51, %v542_v49  ;;  %v545_v54 = vpop.f32.mrb[2].mxu1 }
  0xfa   :  { %v546_v55 = vpop.f32.mrb[3].mxu1 }
  0xfb   :  { %v409_v56 = vadd.f32 %v544_v53, %v369_v52 }
 0x105   :  { %v448_v57 = vpop.f32.mrb[4].mxu0 }
 0x106   :  { %v449_v58 = vadd.f32 %v448_v57, %v409_v56  ;;  %v563_v59 = vpop.f32.mrb[5].mxu0 }
 0x107   :  { %v451_v60 = vpop.f32.mrb[6].mxu0 }
 0x108   :  { %v454_v61 = vmax.f32 %v449_v58, 0.0  ;;  %v564_v62 = vpop.f32.mrb[7].mxu0 }
 0x10a   :  { %v455_v63 = vpack.c.bf16 %v454_v61, %v454_v61 }
 0x10c   :  { %456 = vst [vmem:[%s756_s3] sm:$0xf] %v455_v63 }

// kernel: horizonnet_forward.46
= control target key start
LH: loop header
LB: loop body
LE: loop exit
PB: predicated region body
PF: predicated region fallthrough
CT: control target
= control target key end

     0   :  { %v348_v1 = vmov 0.0   ;;  %vm349_vm0 = vmmov 0   ;;  %vm178_vm1 = vcmask 261120   ;;  %s436_s1 = inlined_call_operand.vmem [shape: bf16[288,128], index: 1, kind: input, shape index: {}]   ;;  %s437_s0 = inlined_call_operand.vmem [shape: bf16[8,288], index: 0, kind: input, shape index: {}]   ;;  %s438_s2 = inlined_call_operand.vmem [shape: f32[1,128], index: 2, kind: input, shape index: {}]   ;;  %s439_s3 = inlined_call_operand.vmem [shape: bf16[8,128], index: 3, kind: output, shape index: {}]  }
   0x1   :  { %v327_v0 = vld [vmem:[%s436_s1 + $0x40] sm:$0xff]   ;;  %317 = vmatprep.subr.bf16.mxu1 %v348_v1  ;;  %321 = vmatprep.mubr.msk.bf16.mxu1 %vm349_vm0, %v348_v1  ;;  %v329_v3 = vld [vmem:[%s436_s1 + $0x48] sm:$0xff]   ;;  %v331_v5 = vld [vmem:[%s436_s1 + $0x50] sm:$0xff]  }
   0x2   :  { %v328_v2 = vld [vmem:[%s436_s1] sm:$0xff]   ;;  %292 = vmatprep.subr.bf16.mxu0 %v327_v0  ;;  %v330_v4 = vld [vmem:[%s436_s1 + $0x8] sm:$0xff]   ;;  %v332_v6 = vld [vmem:[%s436_s1 + $0x10] sm:$0xff]  }
   0x3   :  { %293 = vmatpush3.bf16.msra.mxu0 %v328_v2  ;;  %v333_v7 = vld [vmem:[%s436_s1 + $0x58] sm:$0xff]   ;;  %v335_v9 = vld [vmem:[%s436_s1 + $0x60] sm:$0xff]   ;;  %v337_v12 = vld [vmem:[%s436_s1 + $0x68] sm:$0xff]  }
   0x4   :  { %294 = vmatprep.subr.bf16.mxu0 %v329_v3  ;;  %v334_v8 = vld [vmem:[%s436_s1 + $0x18] sm:$0xff]   ;;  %v341_v10 = vld [vmem:[%s436_s1 + $0x80] sm:$0xff]   ;;  %v347_v15 = vld [vmem:[%s436_s1 + $0x88] sm:$0xff]  }
   0x5   :  { %v336_v11 = vld [vmem:[%s436_s1 + $0x20] sm:$0xff]   ;;  %318 = vmatpush3.bf16.msra.mxu1 %v341_v10  ;;  %v338_v16 = vld [vmem:[%s436_s1 + $0x28] sm:$0xff]   ;;  %v339_v17 = vld [vmem:[%s436_s1 + $0x70] sm:$0xff]  }
   0x6   :  { %319 = vmatprep.subr.bf16.mxu1 %v348_v1  ;;  %v15_v13 = vld [vmem:[%s437_s0] sm:$0xff]  ;;  %v346_v18 = vld [vmem:[%s437_s0 + $0x8] ss:$0 sps:$4 sm:$0xff]   ;;  %v340_v19 = vld [vmem:[%s436_s1 + $0x30] sm:$0xff]  }
   0x7   :  { %295 = vmatpush3.bf16.msra.mxu0 %v330_v4  ;;  %v271_v14 = vcombine.high %v15_v13, %v15_v13  ;;  %v342_v20 = vld [vmem:[%s436_s1 + $0x78] sm:$0xff]   ;;  %v270_v22 = vcombine.low %v15_v13, %v15_v13  ;;  %v269_v29 = vld [vmem:[%s438_s2] ss:$0 sm:$0xff] }
   0x8   :  { %296 = vmatprep.subr.bf16.mxu0 %v331_v5  ;;  %v343_v21 = vld [vmem:[%s436_s1 + $0x38] sm:$0xff]  }
   0x9   :  { %214 = vmatprep.mubr.bf16.mxu0 %v271_v14  ;;  %320 = vmatpush3.bf16.msra.mxu1 %v347_v15 }
   0xb   :  { %297 = vmatpush3.bf16.msra.mxu0 %v332_v6 }
   0xc   :  { %298 = vmatprep.subr.bf16.mxu0 %v333_v7  ;;  %322 = vmatmul.mubr.msk.bf16.vlgmr.msra.gmra.mrb[0].mxu1 %vm178_vm1, %v346_v18 }
   0xf   :  { %299 = vmatpush3.bf16.msra.mxu0 %v334_v8 }
  0x10   :  { %300 = vmatprep.subr.bf16.mxu0 %v335_v9 }
  0x13   :  { %301 = vmatpush3.bf16.msra.mxu0 %v336_v11 }
  0x14   :  { %302 = vmatprep.subr.bf16.mxu0 %v337_v12 }
  0x17   :  { %303 = vmatpush3.bf16.msra.mxu0 %v338_v16 }
  0x18   :  { %304 = vmatprep.subr.bf16.mxu0 %v339_v17 }
  0x1b   :  { %305 = vmatpush3.bf16.msra.mxu0 %v340_v19 }
  0x1c   :  { %306 = vmatprep.subr.bf16.mxu0 %v342_v20 }
  0x1f   :  { %307 = vmatpush3.bf16.msra.mxu0 %v343_v21 }
  0x22   :  { %215 = vmatmul.mubr.bf16.vlgmr.msra.gmra.mrb[0].mxu0 %v270_v22 }
  0xdf   :  { %v256_v23 = vpop.f32.mrb[0].mxu1 }
  0xe0   :  { %v323_v24 = vpop.f32.mrb[1].mxu1 }
  0xe1   :  { %v259_v25 = vpop.f32.mrb[2].mxu1 }
  0xe2   :  { %v324_v26 = vpop.f32.mrb[3].mxu1 }
  0xf5   :  { %v308_v27 = vpop.f32.mrb[0].mxu0 }
  0xf6   :  { %v309_v28 = vpop.f32.mrb[1].mxu0 }
  0xf7   :  { %v310_v30 = vadd.f32 %v309_v28, %v308_v27  ;;  %v311_v31 = vpop.f32.mrb[2].mxu0 }
  0xf8   :  { %v312_v32 = vpop.f32.mrb[3].mxu0 }
  0xf9   :  { %v217_v33 = vadd.f32 %v310_v30, %v269_v29 }
  0xfb   :  { %v257_v34 = vadd.f32 %v256_v23, %v217_v33 }
  0xfd   :  { %v262_v35 = vmax.f32 %v257_v34, 0.0 }
  0xff   :  { %v263_v36 = vpack.c.bf16 %v262_v35, %v262_v35 }
 0x101   :  { %264 = vst [vmem:[%s439_s3] sm:$0xf] %v263_v36 }

// kernel: horizonnet_forward.47
= control target key start
LH: loop header
LB: loop body
LE: loop exit
PB: predicated region body
PF: predicated region fallthrough
CT: control target
= control target key end

     0   :  { %v616_v3 = vmov 0   ;;  %vm186_vm0 = vcmask 1046528   ;;  %vm173_vm1 = vcmask 244736   ;;  %v41_v41 = vlaneseq  ;;  %s1032_s1 = inlined_call_operand.vmem [shape: bf16[30,1024], index: 1, kind: input, shape index: {}]   ;;  %s1033_s0 = inlined_call_operand.vmem [shape: bf16[64,30], index: 0, kind: input, shape index: {}]   ;;  %s1034_s2 = inlined_call_operand.vmem [shape: f32[1,1024], index: 2, kind: input, shape index: {}]   ;;  %s1035_s3 = inlined_call_operand.vmem [shape: f32[64,1024], index: 3, kind: output, shape index: {}]  }
   0x1   :  { %v23_v0 = vld [vmem:[%s1032_s1] sm:$0xff]  ;;  %v24_v2 = vld [vmem:[%s1032_s1 + $0x8] sm:$0xff]  ;;  %243 = vmatprep.mubr.bf16.mxu0 %v616_v3  ;;  %316 = vmatprep.mubr.bf16.mxu1 %v616_v3  ;;  %v25_v17 = vld [vmem:[%s1032_s1 + $0x10] sm:$0xff] }
   0x2   :  { %v27_v1 = vld [vmem:[%s1032_s1 + $0x20] sm:$0xff]  ;;  %v28_v5 = vld [vmem:[%s1032_s1 + $0x28] sm:$0xff]  ;;  %v29_v18 = vld [vmem:[%s1032_s1 + $0x30] sm:$0xff]  ;;  %v737_v42 = vshrl.u32 %v41_v41, 7 }
   0x3   :  { %v576_v4 = vcombine.high %v23_v0, %v27_v1  ;;  %v575_v6 = vcombine.low %v23_v0, %v27_v1  ;;  %v31_v7 = vld [vmem:[%s1032_s1 + $0x40] sm:$0xff]  ;;  %v578_v9 = vcombine.high %v24_v2, %v28_v5  ;;  %v577_v10 = vcombine.low %v24_v2, %v28_v5  ;;  %v32_v12 = vld [vmem:[%s1032_s1 + $0x48] sm:$0xff]  ;;  %v26_v19 = vld [vmem:[%s1032_s1 + $0x18] sm:$0xff] }
   0x4   :  { %v35_v8 = vld [vmem:[%s1032_s1 + $0x60] sm:$0x77]  ;;  %v36_v13 = vld [vmem:[%s1032_s1 + $0x68] sm:$0x77]  ;;  %v30_v20 = vld [vmem:[%s1032_s1 + $0x38] sm:$0xff]  ;;  %v580_v22 = vcombine.high %v25_v17, %v29_v18  ;;  %v579_v29 = vcombine.low %v25_v17, %v29_v18  ;;  %v43_v43 = vsub.s32 0, %v737_v42 }
   0x5   :  { %v584_v11 = vcombine.high %v31_v7, %v35_v8  ;;  %v583_v14 = vcombine.low %v31_v7, %v35_v8  ;;  %211 = vmatprep.subr.bf16.mxu0 %v576_v4  ;;  %v586_v15 = vcombine.high %v32_v12, %v36_v13  ;;  %v585_v16 = vcombine.low %v32_v12, %v36_v13  ;;  %v612_v24 = vld [vmem:[%s1033_s0] sm:$0xff]   ;;  %v33_v26 = vld [vmem:[%s1032_s1 + $0x50] sm:$0xff]  ;;  %v34_v28 = vld [vmem:[%s1032_s1 + $0x58] sm:$0xff] }
   0x6   :  { %284 = vmatprep.subr.bf16.mxu1 %v578_v9  ;;  %212 = vmatpush1.bf16.msra.mxu0 %v575_v6  ;;  %v582_v25 = vcombine.high %v26_v19, %v30_v20  ;;  %v37_v27 = vld [vmem:[%s1032_s1 + $0x70] sm:$0x77]  ;;  %v38_v30 = vld [vmem:[%s1032_s1 + $0x78] sm:$0x77]  ;;  %v581_v31 = vcombine.low %v26_v19, %v30_v20  ;;  %v613_v38 = vld [vmem:[%s1033_s0 + $0x8] sm:$0xff]   ;;  %v51_v45 = vsub.s32 2, %v737_v42 }
   0x7   :  { %285 = vmatpush1.bf16.msra.mxu1 %v577_v10  ;;  %591 = vmatprep.subr.msk.bf16.mxu0 %vm186_vm0, %v584_v11  ;;  %v188_v21 = vsel %vm186_vm0, %v583_v14, 0  ;;  %v194_v23 = vsel %vm186_vm0, %v585_v16, 0  ;;  %v587_v32 = vcombine.low %v33_v26, %v37_v27  ;;  %v588_v33 = vcombine.high %v33_v26, %v37_v27  ;;  %v614_v39 = vld [vmem:[%s1033_s0 + $0x10] sm:$0xff]   ;;  %v615_v40 = vld [vmem:[%s1033_s0 + $0x18] sm:$0xff]   ;;  %v743_v44 = vld [vmem:[%s1034_s2] sm:$0xff] }
   0x8   :  { %596 = vmatprep.subr.msk.bf16.mxu1 %vm186_vm0, %v586_v15  ;;  %v589_v34 = vcombine.low %v34_v28, %v38_v30  ;;  %v590_v35 = vcombine.high %v34_v28, %v38_v30  ;;  %v47_v46 = vsub.s32 1, %v737_v42  ;;  %v55_v47 = vsub.s32 3, %v737_v42 }
   0x9   :  { %v200_v36 = vsel %vm186_vm0, %v587_v32, 0  ;;  %v749_v48 = vrot.slane %v743_v44, %v43_v43  ;;  %v752_v49 = vrot.slane %v743_v44, %v51_v45 }
   0xa   :  { %214 = vmatpush1.bf16.msra.mxu0 %v188_v21  ;;  %v206_v37 = vsel %vm186_vm0, %v589_v34, 0  ;;  %v755_v50 = vrot.slane %v743_v44, %v47_v46  ;;  %v758_v51 = vrot.slane %v743_v44, %v55_v47  ;;  %v67_v47 = vsub.s32 6, %v737_v42 }
   0xb   :  { %287 = vmatpush1.bf16.msra.mxu1 %v194_v23  ;;  %357 = vmatprep.subr.bf16.mxu0 %v580_v22 }
   0xc   :  { %430 = vmatprep.subr.bf16.mxu1 %v582_v25 }
   0xd   :  { %592 = vmatmul.mubr.msk.bf16.vlgmr.msra.gmra.mrb[0].mxu0 %vm173_vm1, %v612_v24 }
   0xe   :  { %597 = vmatmul.mubr.msk.bf16.vlgmr.msra.gmra.mrb[0].mxu1 %vm173_vm1, %v612_v24  ;;  %358 = vmatpush1.bf16.msra.mxu0 %v579_v29 }
   0xf   :  { %431 = vmatpush1.bf16.msra.mxu1 %v581_v31  ;;  %253 = vmatprep.mubr.bf16.mxu0 %v616_v3 }
  0x10   :  { %326 = vmatprep.mubr.bf16.mxu1 %v616_v3  ;;  %601 = vmatprep.subr.msk.bf16.mxu0 %vm186_vm0, %v588_v33 }
  0x11   :  { %606 = vmatprep.subr.msk.bf16.mxu1 %vm186_vm0, %v590_v35 }
  0x12   :  { %360 = vmatpush1.bf16.msra.mxu0 %v200_v36 }
  0x13   :  { %433 = vmatpush1.bf16.msra.mxu1 %v206_v37 }
  0x15   :  { %593 = vmatmul.mubr.msk.bf16.gmra.mrb[4].mxu0 %vm173_vm1, %v613_v38 }
  0x16   :  { %598 = vmatmul.mubr.msk.bf16.gmra.mrb[4].mxu1 %vm173_vm1, %v613_v38  ;;  %263 = vmatprep.mubr.bf16.mxu0 %v616_v3 }
  0x17   :  { %336 = vmatprep.mubr.bf16.mxu1 %v616_v3 }
  0x1d   :  { %594 = vmatmul.mubr.msk.bf16.gmra.mrb[8].mxu0 %vm173_vm1, %v614_v39 }
  0x1e   :  { %599 = vmatmul.mubr.msk.bf16.gmra.mrb[8].mxu1 %vm173_vm1, %v614_v39  ;;  %273 = vmatprep.mubr.bf16.mxu0 %v616_v3 }
  0x1f   :  { %346 = vmatprep.mubr.bf16.mxu1 %v616_v3 }
  0x25   :  { %595 = vmatmul.mubr.msk.bf16.gmra.mrb[12].mxu0 %vm173_vm1, %v615_v40 }
  0x26   :  { %600 = vmatmul.mubr.msk.bf16.gmra.mrb[12].mxu1 %vm173_vm1, %v615_v40  ;;  %389 = vmatprep.mubr.bf16.mxu0 %v616_v3 }
  0x27   :  { %462 = vmatprep.mubr.bf16.mxu1 %v616_v3 }
  0x2d   :  { %602 = vmatmul.mubr.msk.bf16.vlgmr.msra.gmra.mrb[16].mxu0 %vm173_vm1, %v612_v24 }
  0x2e   :  { %607 = vmatmul.mubr.msk.bf16.vlgmr.msra.gmra.mrb[16].mxu1 %vm173_vm1, %v612_v24  ;;  %399 = vmatprep.mubr.bf16.mxu0 %v616_v3 }
  0x2f   :  { %472 = vmatprep.mubr.bf16.mxu1 %v616_v3 }
  0x35   :  { %603 = vmatmul.mubr.msk.bf16.gmra.mrb[20].mxu0 %vm173_vm1, %v613_v38 }
  0x36   :  { %608 = vmatmul.mubr.msk.bf16.gmra.mrb[20].mxu1 %vm173_vm1, %v613_v38  ;;  %409 = vmatprep.mubr.bf16.mxu0 %v616_v3 }
  0x37   :  { %482 = vmatprep.mubr.bf16.mxu1 %v616_v3 }
  0x3d   :  { %604 = vmatmul.mubr.msk.bf16.gmra.mrb[24].mxu0 %vm173_vm1, %v614_v39 }
  0x3e   :  { %609 = vmatmul.mubr.msk.bf16.gmra.mrb[24].mxu1 %vm173_vm1, %v614_v39  ;;  %419 = vmatprep.mubr.bf16.mxu0 %v616_v3 }
  0x3f   :  { %492 = vmatprep.mubr.bf16.mxu1 %v616_v3 }
  0x45   :  { %605 = vmatmul.mubr.msk.bf16.gmra.mrb[28].mxu0 %vm173_vm1, %v615_v40 }
  0x46   :  { %610 = vmatmul.mubr.msk.bf16.gmra.mrb[28].mxu1 %vm173_vm1, %v615_v40  ;;  %v59_v40 = vsub.s32 4, %v737_v42 }
  0xe0   :  { %v245_v52 = vpop.f32.mrb[0].mxu0 }
  0xe1   :  { %v246_v53 = vadd.f32 %v245_v52, %v749_v48  ;;  %v318_v54 = vpop.f32.mrb[0].mxu1  ;;  %v247_v55 = vpop.f32.mrb[1].mxu0  ;;  %v63_v52 = vsub.s32 5, %v737_v42 }
  0xe2   :  { %v319_v56 = vadd.f32 %v318_v54, %v752_v49  ;;  %v248_v57 = vadd.f32 %v247_v55, %v755_v50  ;;  %v320_v58 = vpop.f32.mrb[1].mxu1  ;;  %v249_v59 = vpop.f32.mrb[2].mxu0 }
  0xe3   :  { %503 = vst [vmem:[%s1035_s3] sm:$0xff] %v246_v53  ;;  %v321_v60 = vadd.f32 %v320_v58, %v758_v51  ;;  %v250_v61 = vadd.f32 %v249_v59, %v749_v48  ;;  %v322_v62 = vpop.f32.mrb[2].mxu1  ;;  %v251_v63 = vpop.f32.mrb[3].mxu0 }
  0xe4   :  { %505 = vst [vmem:[%s1035_s3 + $0x10] sm:$0xff] %v319_v56  ;;  %504 = vst [vmem:[%s1035_s3 + $0x8] sm:$0xff] %v248_v57  ;;  %v323_v0 = vadd.f32 %v322_v62, %v752_v49  ;;  %v252_v1 = vadd.f32 %v251_v63, %v755_v50  ;;  %v324_v2 = vpop.f32.mrb[3].mxu1  ;;  %v71_v57 = vsub.s32 7, %v737_v42 }
  0xe5   :  { %506 = vst [vmem:[%s1035_s3 + $0x18] sm:$0xff] %v321_v60  ;;  %511 = vst [vmem:[%s1035_s3 + $0x40] sm:$0xff] %v250_v61  ;;  %v325_v3 = vadd.f32 %v324_v2, %v758_v51 }
  0xe6   :  { %513 = vst [vmem:[%s1035_s3 + $0x50] sm:$0xff] %v323_v0  ;;  %512 = vst [vmem:[%s1035_s3 + $0x48] sm:$0xff] %v252_v1 }
  0xe7   :  { %514 = vst [vmem:[%s1035_s3 + $0x58] sm:$0xff] %v325_v3 }
  0xe8   :  { %v255_v4 = vpop.f32.mrb[4].mxu0 }
  0xe9   :  { %v256_v5 = vadd.f32 %v255_v4, %v749_v48  ;;  %v328_v6 = vpop.f32.mrb[4].mxu1  ;;  %v257_v7 = vpop.f32.mrb[5].mxu0 }
  0xea   :  { %v329_v8 = vadd.f32 %v328_v6, %v752_v49  ;;  %v258_v9 = vadd.f32 %v257_v7, %v755_v50  ;;  %v330_v10 = vpop.f32.mrb[5].mxu1  ;;  %v259_v11 = vpop.f32.mrb[6].mxu0 }
  0xeb   :  { %519 = vst [vmem:[%s1035_s3 + $0x80] sm:$0xff] %v256_v5  ;;  %v331_v12 = vadd.f32 %v330_v10, %v758_v51  ;;  %v260_v13 = vadd.f32 %v259_v11, %v749_v48  ;;  %v332_v14 = vpop.f32.mrb[6].mxu1  ;;  %v261_v15 = vpop.f32.mrb[7].mxu0 }
  0xec   :  { %521 = vst [vmem:[%s1035_s3 + $0x90] sm:$0xff] %v329_v8  ;;  %520 = vst [vmem:[%s1035_s3 + $0x88] sm:$0xff] %v258_v9  ;;  %v333_v16 = vadd.f32 %v332_v14, %v752_v49  ;;  %v262_v17 = vadd.f32 %v261_v15, %v755_v50  ;;  %v334_v18 = vpop.f32.mrb[7].mxu1 }
  0xed   :  { %522 = vst [vmem:[%s1035_s3 + $0x98] sm:$0xff] %v331_v12  ;;  %527 = vst [vmem:[%s1035_s3 + $0xc0] sm:$0xff] %v260_v13  ;;  %v335_v19 = vadd.f32 %v334_v18, %v758_v51 }
  0xee   :  { %529 = vst [vmem:[%s1035_s3 + $0xd0] sm:$0xff] %v333_v16  ;;  %528 = vst [vmem:[%s1035_s3 + $0xc8] sm:$0xff] %v262_v17 }
  0xef   :  { %530 = vst [vmem:[%s1035_s3 + $0xd8] sm:$0xff] %v335_v19 }
  0xf0   :  { %v265_v20 = vpop.f32.mrb[8].mxu0 }
  0xf1   :  { %v266_v21 = vadd.f32 %v265_v20, %v749_v48  ;;  %v338_v22 = vpop.f32.mrb[8].mxu1  ;;  %v267_v23 = vpop.f32.mrb[9].mxu0 }
  0xf2   :  { %v339_v24 = vadd.f32 %v338_v22, %v752_v49  ;;  %v268_v25 = vadd.f32 %v267_v23, %v755_v50  ;;  %v340_v26 = vpop.f32.mrb[9].mxu1  ;;  %v269_v27 = vpop.f32.mrb[10].mxu0 }
  0xf3   :  { %535 = vst [vmem:[%s1035_s3 + $0x100] sm:$0xff] %v266_v21  ;;  %v341_v28 = vadd.f32 %v340_v26, %v758_v51  ;;  %v270_v29 = vadd.f32 %v269_v27, %v749_v48  ;;  %v342_v30 = vpop.f32.mrb[10].mxu1  ;;  %v271_v31 = vpop.f32.mrb[11].mxu0 }
  0xf4   :  { %537 = vst [vmem:[%s1035_s3 + $0x110] sm:$0xff] %v339_v24  ;;  %536 = vst [vmem:[%s1035_s3 + $0x108] sm:$0xff] %v268_v25  ;;  %v343_v32 = vadd.f32 %v342_v30, %v752_v49  ;;  %v272_v33 = vadd.f32 %v271_v31, %v755_v50  ;;  %v344_v34 = vpop.f32.mrb[11].mxu1 }
  0xf5   :  { %538 = vst [vmem:[%s1035_s3 + $0x118] sm:$0xff] %v341_v28  ;;  %543 = vst [vmem:[%s1035_s3 + $0x140] sm:$0xff] %v270_v29  ;;  %v345_v35 = vadd.f32 %v344_v34, %v758_v51 }
  0xf6   :  { %545 = vst [vmem:[%s1035_s3 + $0x150] sm:$0xff] %v343_v32  ;;  %544 = vst [vmem:[%s1035_s3 + $0x148] sm:$0xff] %v272_v33 }
  0xf7   :  { %546 = vst [vmem:[%s1035_s3 + $0x158] sm:$0xff] %v345_v35 }
  0xf8   :  { %v275_v36 = vpop.f32.mrb[12].mxu0 }
  0xf9   :  { %v276_v37 = vadd.f32 %v275_v36, %v749_v48  ;;  %v348_v38 = vpop.f32.mrb[12].mxu1  ;;  %v277_v39 = vpop.f32.mrb[13].mxu0 }
  0xfa   :  { %v349_v41 = vadd.f32 %v348_v38, %v752_v49  ;;  %v278_v43 = vadd.f32 %v277_v39, %v755_v50  ;;  %v350_v45 = vpop.f32.mrb[13].mxu1  ;;  %v279_v46 = vpop.f32.mrb[14].mxu0 }
  0xfb   :  { %551 = vst [vmem:[%s1035_s3 + $0x180] sm:$0xff] %v276_v37  ;;  %v351_v53 = vadd.f32 %v350_v45, %v758_v51  ;;  %v280_v54 = vadd.f32 %v279_v46, %v749_v48  ;;  %v352_v55 = vpop.f32.mrb[14].mxu1  ;;  %v281_v56 = vpop.f32.mrb[15].mxu0  ;;  %v884_v48 = vrot.slane %v743_v44, %v59_v40 }
  0xfc   :  { %553 = vst [vmem:[%s1035_s3 + $0x190] sm:$0xff] %v349_v41  ;;  %552 = vst [vmem:[%s1035_s3 + $0x188] sm:$0xff] %v278_v43  ;;  %v353_v58 = vadd.f32 %v352_v55, %v752_v49  ;;  %v282_v59 = vadd.f32 %v281_v56, %v755_v50  ;;  %v354_v60 = vpop.f32.mrb[15].mxu1  ;;  %v893_v49 = vrot.slane %v743_v44, %v67_v47 }
  0xfd   :  { %554 = vst [vmem:[%s1035_s3 + $0x198] sm:$0xff] %v351_v53  ;;  %559 = vst [vmem:[%s1035_s3 + $0x1c0] sm:$0xff] %v280_v54  ;;  %v355_v42 = vadd.f32 %v354_v60, %v758_v51  ;;  %v896_v50 = vrot.slane %v743_v44, %v63_v52  ;;  %v902_v51 = vrot.slane %v743_v44, %v71_v57 }
  0xfe   :  { %561 = vst [vmem:[%s1035_s3 + $0x1d0] sm:$0xff] %v353_v58  ;;  %560 = vst [vmem:[%s1035_s3 + $0x1c8] sm:$0xff] %v282_v59 }
  0xff   :  { %562 = vst [vmem:[%s1035_s3 + $0x1d8] sm:$0xff] %v355_v42 }
 0x100   :  { %v391_v61 = vpop.f32.mrb[16].mxu0 }
 0x101   :  { %v392_v62 = vadd.f32 %v391_v61, %v884_v48  ;;  %v464_v63 = vpop.f32.mrb[16].mxu1  ;;  %v393_v0 = vpop.f32.mrb[17].mxu0 }
 0x102   :  { %v465_v1 = vadd.f32 %v464_v63, %v893_v49  ;;  %v394_v2 = vadd.f32 %v393_v0, %v896_v50  ;;  %v466_v3 = vpop.f32.mrb[17].mxu1  ;;  %v395_v4 = vpop.f32.mrb[18].mxu0 }
 0x103   :  { %507 = vst [vmem:[%s1035_s3 + $0x20] sm:$0xff] %v392_v62  ;;  %v467_v5 = vadd.f32 %v466_v3, %v902_v51  ;;  %v396_v44 = vadd.f32 %v395_v4, %v884_v48  ;;  %v468_v6 = vpop.f32.mrb[18].mxu1  ;;  %v397_v7 = vpop.f32.mrb[19].mxu0 }
 0x104   :  { %509 = vst [vmem:[%s1035_s3 + $0x30] sm:$0xff] %v465_v1  ;;  %508 = vst [vmem:[%s1035_s3 + $0x28] sm:$0xff] %v394_v2  ;;  %v469_v8 = vadd.f32 %v468_v6, %v893_v49  ;;  %v398_v9 = vadd.f32 %v397_v7, %v896_v50  ;;  %v470_v10 = vpop.f32.mrb[19].mxu1 }
 0x105   :  { %510 = vst [vmem:[%s1035_s3 + $0x38] sm:$0xff] %v467_v5  ;;  %515 = vst [vmem:[%s1035_s3 + $0x60] sm:$0xff] %v396_v44  ;;  %v471_v11 = vadd.f32 %v470_v10, %v902_v51 }
 0x106   :  { %517 = vst [vmem:[%s1035_s3 + $0x70] sm:$0xff] %v469_v8  ;;  %516 = vst [vmem:[%s1035_s3 + $0x68] sm:$0xff] %v398_v9 }
 0x107   :  { %518 = vst [vmem:[%s1035_s3 + $0x78] sm:$0xff] %v471_v11 }
 0x108   :  { %v401_v12 = vpop.f32.mrb[20].mxu0 }
 0x109   :  { %v402_v13 = vadd.f32 %v401_v12, %v884_v48  ;;  %v474_v14 = vpop.f32.mrb[20].mxu1  ;;  %v403_v15 = vpop.f32.mrb[21].mxu0 }
 0x10a   :  { %v475_v16 = vadd.f32 %v474_v14, %v893_v49  ;;  %v404_v17 = vadd.f32 %v403_v15, %v896_v50  ;;  %v476_v18 = vpop.f32.mrb[21].mxu1  ;;  %v405_v19 = vpop.f32.mrb[22].mxu0 }
 0x10b   :  { %523 = vst [vmem:[%s1035_s3 + $0xa0] sm:$0xff] %v402_v13  ;;  %v477_v20 = vadd.f32 %v476_v18, %v902_v51  ;;  %v406_v21 = vadd.f32 %v405_v19, %v884_v48  ;;  %v478_v22 = vpop.f32.mrb[22].mxu1  ;;  %v407_v23 = vpop.f32.mrb[23].mxu0 }
 0x10c   :  { %525 = vst [vmem:[%s1035_s3 + $0xb0] sm:$0xff] %v475_v16  ;;  %524 = vst [vmem:[%s1035_s3 + $0xa8] sm:$0xff] %v404_v17  ;;  %v479_v24 = vadd.f32 %v478_v22, %v893_v49  ;;  %v408_v25 = vadd.f32 %v407_v23, %v896_v50  ;;  %v480_v26 = vpop.f32.mrb[23].mxu1 }
 0x10d   :  { %526 = vst [vmem:[%s1035_s3 + $0xb8] sm:$0xff] %v477_v20  ;;  %531 = vst [vmem:[%s1035_s3 + $0xe0] sm:$0xff] %v406_v21  ;;  %v481_v27 = vadd.f32 %v480_v26, %v902_v51 }
 0x10e   :  { %533 = vst [vmem:[%s1035_s3 + $0xf0] sm:$0xff] %v479_v24  ;;  %532 = vst [vmem:[%s1035_s3 + $0xe8] sm:$0xff] %v408_v25 }
 0x10f   :  { %534 = vst [vmem:[%s1035_s3 + $0xf8] sm:$0xff] %v481_v27 }
 0x110   :  { %v411_v28 = vpop.f32.mrb[24].mxu0 }
 0x111   :  { %v412_v29 = vadd.f32 %v411_v28, %v884_v48  ;;  %v484_v30 = vpop.f32.mrb[24].mxu1  ;;  %v413_v31 = vpop.f32.mrb[25].mxu0 }
 0x112   :  { %v485_v32 = vadd.f32 %v484_v30, %v893_v49  ;;  %v414_v33 = vadd.f32 %v413_v31, %v896_v50  ;;  %v486_v34 = vpop.f32.mrb[25].mxu1  ;;  %v415_v35 = vpop.f32.mrb[26].mxu0 }
 0x113   :  { %539 = vst [vmem:[%s1035_s3 + $0x120] sm:$0xff] %v412_v29  ;;  %v487_v36 = vadd.f32 %v486_v34, %v902_v51  ;;  %v416_v37 = vadd.f32 %v415_v35, %v884_v48  ;;  %v488_v38 = vpop.f32.mrb[26].mxu1  ;;  %v417_v39 = vpop.f32.mrb[27].mxu0 }
 0x114   :  { %541 = vst [vmem:[%s1035_s3 + $0x130] sm:$0xff] %v485_v32  ;;  %540 = vst [vmem:[%s1035_s3 + $0x128] sm:$0xff] %v414_v33  ;;  %v489_v40 = vadd.f32 %v488_v38, %v893_v49  ;;  %v418_v41 = vadd.f32 %v417_v39, %v896_v50  ;;  %v490_v43 = vpop.f32.mrb[27].mxu1 }
 0x115   :  { %542 = vst [vmem:[%s1035_s3 + $0x138] sm:$0xff] %v487_v36  ;;  %547 = vst [vmem:[%s1035_s3 + $0x160] sm:$0xff] %v416_v37  ;;  %v491_v45 = vadd.f32 %v490_v43, %v902_v51 }
 0x116   :  { %549 = vst [vmem:[%s1035_s3 + $0x170] sm:$0xff] %v489_v40  ;;  %548 = vst [vmem:[%s1035_s3 + $0x168] sm:$0xff] %v418_v41 }
 0x117   :  { %550 = vst [vmem:[%s1035_s3 + $0x178] sm:$0xff] %v491_v45 }
 0x118   :  { %v421_v46 = vpop.f32.mrb[28].mxu0 }
 0x119   :  { %v422_v47 = vadd.f32 %v421_v46, %v884_v48  ;;  %v494_v52 = vpop.f32.mrb[28].mxu1  ;;  %v423_v53 = vpop.f32.mrb[29].mxu0 }
 0x11a   :  { %v495_v54 = vadd.f32 %v494_v52, %v893_v49  ;;  %v424_v55 = vadd.f32 %v423_v53, %v896_v50  ;;  %v496_v56 = vpop.f32.mrb[29].mxu1  ;;  %v425_v57 = vpop.f32.mrb[30].mxu0 }
 0x11b   :  { %555 = vst [vmem:[%s1035_s3 + $0x1a0] sm:$0xff] %v422_v47  ;;  %v497_v58 = vadd.f32 %v496_v56, %v902_v51  ;;  %v426_v59 = vadd.f32 %v425_v57, %v884_v48  ;;  %v498_v60 = vpop.f32.mrb[30].mxu1  ;;  %v427_v42 = vpop.f32.mrb[31].mxu0 }
 0x11c   :  { %557 = vst [vmem:[%s1035_s3 + $0x1b0] sm:$0xff] %v495_v54  ;;  %556 = vst [vmem:[%s1035_s3 + $0x1a8] sm:$0xff] %v424_v55  ;;  %v499_v61 = vadd.f32 %v498_v60, %v893_v49  ;;  %v428_v62 = vadd.f32 %v427_v42, %v896_v50  ;;  %v500_v63 = vpop.f32.mrb[31].mxu1 }
 0x11d   :  { %558 = vst [vmem:[%s1035_s3 + $0x1b8] sm:$0xff] %v497_v58  ;;  %563 = vst [vmem:[%s1035_s3 + $0x1e0] sm:$0xff] %v426_v59  ;;  %v501_v48 = vadd.f32 %v500_v63, %v902_v51 }
 0x11e   :  { %565 = vst [vmem:[%s1035_s3 + $0x1f0] sm:$0xff] %v499_v61  ;;  %564 = vst [vmem:[%s1035_s3 + $0x1e8] sm:$0xff] %v428_v62 }
 0x11f   :  { %566 = vst [vmem:[%s1035_s3 + $0x1f8] sm:$0xff] %v501_v48 }

// kernel: horizonnet_forward.48
= control target key start
LH: loop header
LB: loop body
LE: loop exit
PB: predicated region body
PF: predicated region fallthrough
CT: control target
= control target key end

     0   :  { %v1374_v0 = vmov 0.0   ;;  %v1376_v1 = vmov 0.0   ;;  %v1378_v2 = vmov 0.0   ;;  %v1380_v3 = vmov 0.0   ;;  %s1382_s9 = smov 0   ;;  %s1831_s0 = inlined_call_operand.vmem [shape: f32[32,2,1024], index: 0, kind: input, shape index: {}]   ;;  %s1832_s1 = inlined_call_operand.vmem [shape: bf16[256,1024], index: 1, kind: input, shape index: {}]   ;;  %s1833_s2 = inlined_call_operand.vmem [shape: bf16[32,2,256], index: 2, kind: output, shape index: {}]  }
   0x1 LB: > { %v23_v4 = vld [vmem:[%s1832_s1] sm:$0xff]  ;;  %v24_v13 = vld [vmem:[%s1832_s1 + $0x8] sm:$0xff]  ;;  %v1421_v15 = vpack.c.bf16 %v1348_v2, %v1348_v2  ;;  %s1241_s23 = sshll.u32 %s1356_s9, 4  ;;  %s1239_s27 = sshll.u32 %s1356_s9, 1  ;;  %s1356_s9 = sphi %s1382_s9, %s16_s9   ;;  %v1352_v3 = vphi %v1380_v3, %v1039_v3   ;;  %v1348_v2 = vphi %v1378_v2, %v1063_v2   ;;  %v1344_v1 = vphi %v1376_v1, %v1800_v1   ;;  %v1340_v0 = vphi %v1374_v0, %v1061_v0  }
   0x2   : > { %v27_v5 = vld [vmem:[%s1832_s1 + $0x20] sm:$0xff]  ;;  %v28_v14 = vld [vmem:[%s1832_s1 + $0x28] sm:$0xff]  ;;  %s958_s26 = scalar_lea.vmem %s1831_s0, %s1241_s23  ;;  %s1066_s30 = scalar_lea.vmem %s1833_s2, %s1239_s27 }
   0x3   : > { %v31_v6 = vld [vmem:[%s1832_s1 + $0x40] sm:$0xff]  ;;  %v1102_v7 = vcombine.high %v23_v4, %v27_v5  ;;  %v1101_v8 = vcombine.low %v23_v4, %v27_v5  ;;  %v1104_v17 = vcombine.high %v24_v13, %v28_v14  ;;  %v1103_v18 = vcombine.low %v24_v13, %v28_v14  ;;  %v32_v19 = vld [vmem:[%s1832_s1 + $0x48] sm:$0xff]  ;;  %823 = vmatprep.mubr.bf16.mxu0 %v1421_v15  ;;  %s955_s3 = ssub.s32 31, %s1356_s9  ;;  %s16_s9 = sadd.s32 1, %s1356_s9  }
   0x4   : > { %v35_v9 = vld [vmem:[%s1832_s1 + $0x60] sm:$0xff]  ;;  %v36_v20 = vld [vmem:[%s1832_s1 + $0x68] sm:$0xff]  ;;  %864 = vmatprep.mubr.bf16.mxu1 %v1421_v15  ;;  %s1242_s4 = sshll.u32 %s955_s3, 4  ;;  %s1240_s8 = sshll.u32 %s955_s3, 1 }
   0x5   : > { %v1110_v10 = vcombine.high %v31_v6, %v35_v9  ;;  %v39_v11 = vld [vmem:[%s1832_s1 + $0x80] sm:$0xff]  ;;  %791 = vmatprep.subr.bf16.mxu0 %v1102_v7  ;;  %v1109_v16 = vcombine.low %v31_v6, %v35_v9  ;;  %v1112_v22 = vcombine.high %v32_v19, %v36_v20  ;;  %v40_v23 = vld [vmem:[%s1832_s1 + $0x88] sm:$0xff]  ;;  %832 = vmatprep.subr.bf16.mxu1 %v1104_v17  ;;  %s962_s7 = scalar_lea.vmem %s1831_s0, %s1242_s4  ;;  %s1070_s12 = scalar_lea.vmem %s1833_s2, %s1240_s8 }
   0x6   : > { %v43_v12 = vld [vmem:[%s1832_s1 + $0xa0] sm:$0xff]  ;;  %792 = vmatpush1.bf16.msra.mxu0 %v1101_v8  ;;  %v44_v24 = vld [vmem:[%s1832_s1 + $0xa8] sm:$0xff]  ;;  %833 = vmatpush1.bf16.msra.mxu1 %v1103_v18  ;;  %v1111_v27 = vcombine.low %v32_v19, %v36_v20  ;;  %p13_p0 = scmp.ge.s32.totalorder %s16_s9, 32  }
   0x7   : > { %793 = vmatprep.subr.bf16.mxu0 %v1110_v10  ;;  %v1118_v21 = vcombine.high %v39_v11, %v43_v12  ;;  %v47_v25 = vld [vmem:[%s1832_s1 + $0xc0] sm:$0xff]  ;;  %v1117_v28 = vcombine.low %v39_v11, %v43_v12  ;;  %834 = vmatprep.subr.bf16.mxu1 %v1112_v22  ;;  %v1120_v29 = vcombine.high %v40_v23, %v44_v24  ;;  %v48_v31 = vld [vmem:[%s1832_s1 + $0xc8] sm:$0xff] }
   0x8   : > { %v51_v26 = vld [vmem:[%s1832_s1 + $0xe0] sm:$0xff]  ;;  %v52_v32 = vld [vmem:[%s1832_s1 + $0xe8] sm:$0xff]  ;;  %v1119_v35 = vcombine.low %v40_v23, %v44_v24 }
   0x9   : > { %v1126_v30 = vcombine.high %v47_v25, %v51_v26  ;;  %v55_v33 = vld [vmem:[%s1832_s1 + $0x100] sm:$0xff]  ;;  %v1125_v36 = vcombine.low %v47_v25, %v51_v26  ;;  %v1128_v37 = vcombine.high %v48_v31, %v52_v32  ;;  %v56_v39 = vld [vmem:[%s1832_s1 + $0x108] sm:$0xff]  ;;  %v1127_v43 = vcombine.low %v48_v31, %v52_v32 }
   0xa   : > { %794 = vmatpush1.bf16.msra.mxu0 %v1109_v16  ;;  %v59_v34 = vld [vmem:[%s1832_s1 + $0x120] sm:$0xff]  ;;  %835 = vmatpush1.bf16.msra.mxu1 %v1111_v27  ;;  %v60_v40 = vld [vmem:[%s1832_s1 + $0x128] sm:$0xff] }
   0xb   : > { %795 = vmatprep.subr.bf16.mxu0 %v1118_v21  ;;  %836 = vmatprep.subr.bf16.mxu1 %v1120_v29  ;;  %v1134_v38 = vcombine.high %v55_v33, %v59_v34  ;;  %v63_v41 = vld [vmem:[%s1832_s1 + $0x140] sm:$0xff]  ;;  %v1133_v44 = vcombine.low %v55_v33, %v59_v34  ;;  %v1136_v45 = vcombine.high %v56_v39, %v60_v40  ;;  %v64_v47 = vld [vmem:[%s1832_s1 + $0x148] sm:$0xff] }
   0xc   : > { %v67_v42 = vld [vmem:[%s1832_s1 + $0x160] sm:$0xff]  ;;  %v68_v48 = vld [vmem:[%s1832_s1 + $0x168] sm:$0xff]  ;;  %v1135_v51 = vcombine.low %v56_v39, %v60_v40 }
   0xd   : > { %v1142_v46 = vcombine.high %v63_v41, %v67_v42  ;;  %v71_v49 = vld [vmem:[%s1832_s1 + $0x180] sm:$0xff]  ;;  %v1141_v52 = vcombine.low %v63_v41, %v67_v42  ;;  %v1144_v53 = vcombine.high %v64_v47, %v68_v48  ;;  %v72_v55 = vld [vmem:[%s1832_s1 + $0x188] sm:$0xff]  ;;  %v1143_v59 = vcombine.low %v64_v47, %v68_v48 }
   0xe   : > { %796 = vmatpush1.bf16.msra.mxu0 %v1117_v28  ;;  %837 = vmatpush1.bf16.msra.mxu1 %v1119_v35  ;;  %v75_v50 = vld [vmem:[%s1832_s1 + $0x1a0] sm:$0xff]  ;;  %v76_v56 = vld [vmem:[%s1832_s1 + $0x1a8] sm:$0xff] }
   0xf   : > { %797 = vmatprep.subr.bf16.mxu0 %v1126_v30  ;;  %838 = vmatprep.subr.bf16.mxu1 %v1128_v37  ;;  %v1150_v54 = vcombine.high %v71_v49, %v75_v50  ;;  %v79_v57 = vld [vmem:[%s1832_s1 + $0x1c0] sm:$0xff]  ;;  %v1149_v60 = vcombine.low %v71_v49, %v75_v50  ;;  %v1152_v61 = vcombine.high %v72_v55, %v76_v56  ;;  %v80_v63 = vld [vmem:[%s1832_s1 + $0x1c8] sm:$0xff] }
  0x10   : > { %v83_v58 = vld [vmem:[%s1832_s1 + $0x1e0] sm:$0xff]  ;;  %v84_v2 = vld [vmem:[%s1832_s1 + $0x1e8] sm:$0xff]  ;;  %v1151_v6 = vcombine.low %v72_v55, %v76_v56 }
  0x11   : > { %v1158_v62 = vcombine.high %v79_v57, %v83_v58  ;;  %v87_v4 = vld [vmem:[%s1832_s1 + $0x200] sm:$0xff]  ;;  %v1157_v7 = vcombine.low %v79_v57, %v83_v58  ;;  %v1160_v8 = vcombine.high %v80_v63, %v84_v2  ;;  %v88_v10 = vld [vmem:[%s1832_s1 + $0x208] sm:$0xff]  ;;  %v1159_v14 = vcombine.low %v80_v63, %v84_v2 }
  0x12   : > { %798 = vmatpush1.bf16.msra.mxu0 %v1125_v36  ;;  %839 = vmatpush1.bf16.msra.mxu1 %v1127_v43  ;;  %v91_v5 = vld [vmem:[%s1832_s1 + $0x220] sm:$0xff]  ;;  %v92_v11 = vld [vmem:[%s1832_s1 + $0x228] sm:$0xff] }
  0x13   : > { %799 = vmatprep.subr.bf16.mxu0 %v1134_v38  ;;  %840 = vmatprep.subr.bf16.mxu1 %v1136_v45  ;;  %v1166_v9 = vcombine.high %v87_v4, %v91_v5  ;;  %v95_v12 = vld [vmem:[%s1832_s1 + $0x240] sm:$0xff]  ;;  %v1165_v16 = vcombine.low %v87_v4, %v91_v5  ;;  %v1168_v17 = vcombine.high %v88_v10, %v92_v11  ;;  %v96_v19 = vld [vmem:[%s1832_s1 + $0x248] sm:$0xff] }
  0x14   : > { %v99_v13 = vld [vmem:[%s1832_s1 + $0x260] sm:$0xff]  ;;  %v100_v20 = vld [vmem:[%s1832_s1 + $0x268] sm:$0xff]  ;;  %v1167_v23 = vcombine.low %v88_v10, %v92_v11 }
  0x15   : > { %v1174_v18 = vcombine.high %v95_v12, %v99_v13  ;;  %v103_v21 = vld [vmem:[%s1832_s1 + $0x280] sm:$0xff]  ;;  %v1173_v24 = vcombine.low %v95_v12, %v99_v13  ;;  %v1176_v25 = vcombine.high %v96_v19, %v100_v20  ;;  %v104_v27 = vld [vmem:[%s1832_s1 + $0x288] sm:$0xff]  ;;  %v1175_v31 = vcombine.low %v96_v19, %v100_v20 }
  0x16   : > { %800 = vmatpush1.bf16.msra.mxu0 %v1133_v44  ;;  %841 = vmatpush1.bf16.msra.mxu1 %v1135_v51  ;;  %v107_v22 = vld [vmem:[%s1832_s1 + $0x2a0] sm:$0xff]  ;;  %v108_v28 = vld [vmem:[%s1832_s1 + $0x2a8] sm:$0xff]  ;;  %v1613_v19 = vpack.c.bf16 %v1352_v3, %v1352_v3  ;;  %v41_v3 = vld [vmem:[%s1832_s1 + $0x90] sm:$0xff] }
  0x17   : > { %801 = vmatprep.subr.bf16.mxu0 %v1142_v46  ;;  %842 = vmatprep.subr.bf16.mxu1 %v1144_v53  ;;  %v1182_v26 = vcombine.high %v103_v21, %v107_v22  ;;  %v111_v29 = vld [vmem:[%s1832_s1 + $0x2c0] sm:$0xff]  ;;  %v1181_v32 = vcombine.low %v103_v21, %v107_v22  ;;  %v1184_v33 = vcombine.high %v104_v27, %v108_v28  ;;  %v112_v35 = vld [vmem:[%s1832_s1 + $0x2c8] sm:$0xff] }
  0x18   : > { %v115_v30 = vld [vmem:[%s1832_s1 + $0x2e0] sm:$0xff]  ;;  %v116_v36 = vld [vmem:[%s1832_s1 + $0x2e8] sm:$0xff]  ;;  %v1183_v39 = vcombine.low %v104_v27, %v108_v28 }
  0x19   : > { %v1190_v34 = vcombine.high %v111_v29, %v115_v30  ;;  %v119_v37 = vld [vmem:[%s1832_s1 + $0x300] sm:$0xff]  ;;  %v1189_v40 = vcombine.low %v111_v29, %v115_v30  ;;  %v1192_v41 = vcombine.high %v112_v35, %v116_v36  ;;  %v120_v43 = vld [vmem:[%s1832_s1 + $0x308] sm:$0xff]  ;;  %v1191_v47 = vcombine.low %v112_v35, %v116_v36 }
  0x1a   : > { %802 = vmatpush1.bf16.msra.mxu0 %v1141_v52  ;;  %843 = vmatpush1.bf16.msra.mxu1 %v1143_v59  ;;  %v123_v38 = vld [vmem:[%s1832_s1 + $0x320] sm:$0xff]  ;;  %v124_v44 = vld [vmem:[%s1832_s1 + $0x328] sm:$0xff] }
  0x1b   : > { %803 = vmatprep.subr.bf16.mxu0 %v1150_v54  ;;  %844 = vmatprep.subr.bf16.mxu1 %v1152_v61  ;;  %v1198_v42 = vcombine.high %v119_v37, %v123_v38  ;;  %v127_v45 = vld [vmem:[%s1832_s1 + $0x340] sm:$0xff]  ;;  %v1197_v48 = vcombine.low %v119_v37, %v123_v38  ;;  %v1200_v49 = vcombine.high %v120_v43, %v124_v44  ;;  %v128_v51 = vld [vmem:[%s1832_s1 + $0x348] sm:$0xff] }
  0x1c   : > { %v131_v46 = vld [vmem:[%s1832_s1 + $0x360] sm:$0xff]  ;;  %v132_v52 = vld [vmem:[%s1832_s1 + $0x368] sm:$0xff]  ;;  %v1199_v55 = vcombine.low %v120_v43, %v124_v44 }
  0x1d   : > { %v1206_v50 = vcombine.high %v127_v45, %v131_v46  ;;  %v135_v53 = vld [vmem:[%s1832_s1 + $0x380] sm:$0xff]  ;;  %v1205_v56 = vcombine.low %v127_v45, %v131_v46  ;;  %v1208_v57 = vcombine.high %v128_v51, %v132_v52  ;;  %v136_v59 = vld [vmem:[%s1832_s1 + $0x388] sm:$0xff]  ;;  %v1207_v63 = vcombine.low %v128_v51, %v132_v52  ;;  %v58_v46 = vld [vmem:[%s1832_s1 + $0x118] sm:$0xff] }
  0x1e   : > { %804 = vmatpush1.bf16.msra.mxu0 %v1149_v60  ;;  %845 = vmatpush1.bf16.msra.mxu1 %v1151_v6  ;;  %v139_v54 = vld [vmem:[%s1832_s1 + $0x3a0] sm:$0xff]  ;;  %v140_v60 = vld [vmem:[%s1832_s1 + $0x3a8] sm:$0xff] }
  0x1f   : > { %805 = vmatprep.subr.bf16.mxu0 %v1158_v62  ;;  %846 = vmatprep.subr.bf16.mxu1 %v1160_v8  ;;  %v1214_v58 = vcombine.high %v135_v53, %v139_v54  ;;  %v143_v61 = vld [vmem:[%s1832_s1 + $0x3c0] sm:$0xff]  ;;  %v1213_v2 = vcombine.low %v135_v53, %v139_v54  ;;  %v1216_v4 = vcombine.high %v136_v59, %v140_v60  ;;  %v144_v6 = vld [vmem:[%s1832_s1 + $0x3c8] sm:$0xff]  ;;  %v25_v8 = vld [vmem:[%s1832_s1 + $0x10] sm:$0xff] }
  0x20   : > { %v147_v62 = vld [vmem:[%s1832_s1 + $0x3e0] sm:$0xff]  ;;  %v1215_v10 = vcombine.low %v136_v59, %v140_v60  ;;  %v66_v54 = vld [vmem:[%s1832_s1 + $0x158] sm:$0xff] }
  0x21   : > { %v1222_v5 = vcombine.high %v143_v61, %v147_v62  ;;  %v1221_v11 = vcombine.low %v143_v61, %v147_v62  ;;  %v74_v62 = vld [vmem:[%s1832_s1 + $0x198] sm:$0xff] }
  0x22   : > { %806 = vmatpush1.bf16.msra.mxu0 %v1157_v7  ;;  %847 = vmatpush1.bf16.msra.mxu1 %v1159_v14  ;;  %v148_v7 = vld [vmem:[%s1832_s1 + $0x3e8] sm:$0xff]  ;;  %v26_v14 = vld [vmem:[%s1832_s1 + $0x18] sm:$0xff] }
  0x23   : > { %807 = vmatprep.subr.bf16.mxu0 %v1166_v9  ;;  %848 = vmatprep.subr.bf16.mxu1 %v1168_v17  ;;  %v29_v9 = vld [vmem:[%s1832_s1 + $0x30] sm:$0xff]  ;;  %v1224_v12 = vcombine.high %v144_v6, %v148_v7  ;;  %v1223_v20 = vcombine.low %v144_v6, %v148_v7 }
  0x24   : > { %v1106_v13 = vcombine.high %v25_v8, %v29_v9  ;;  %v33_v17 = vld [vmem:[%s1832_s1 + $0x50] sm:$0xff]  ;;  %v1105_v21 = vcombine.low %v25_v8, %v29_v9  ;;  %v82_v9 = vld [vmem:[%s1832_s1 + $0x1d8] sm:$0xff] }
  0x26   : > { %808 = vmatpush1.bf16.msra.mxu0 %v1165_v16  ;;  %849 = vmatpush1.bf16.msra.mxu1 %v1167_v23  ;;  %v30_v16 = vld [vmem:[%s1832_s1 + $0x38] sm:$0xff] }
  0x27   : > { %809 = vmatprep.subr.bf16.mxu0 %v1174_v18  ;;  %850 = vmatprep.subr.bf16.mxu1 %v1176_v25  ;;  %v37_v18 = vld [vmem:[%s1832_s1 + $0x70] sm:$0xff]  ;;  %v1108_v22 = vcombine.high %v26_v14, %v30_v16  ;;  %v38_v25 = vld [vmem:[%s1832_s1 + $0x78] sm:$0xff]  ;;  %v1107_v27 = vcombine.low %v26_v14, %v30_v16 }
  0x28   : > { %v1114_v23 = vcombine.high %v33_v17, %v37_v18  ;;  %v1113_v28 = vcombine.low %v33_v17, %v37_v18  ;;  %v90_v18 = vld [vmem:[%s1832_s1 + $0x218] sm:$0xff] }
  0x2a   : > { %810 = vmatpush1.bf16.msra.mxu0 %v1173_v24  ;;  %851 = vmatpush1.bf16.msra.mxu1 %v1175_v31  ;;  %v34_v24 = vld [vmem:[%s1832_s1 + $0x58] sm:$0xff] }
  0x2b   : > { %811 = vmatprep.subr.bf16.mxu0 %v1182_v26  ;;  %852 = vmatprep.subr.bf16.mxu1 %v1184_v33  ;;  %v45_v26 = vld [vmem:[%s1832_s1 + $0xb0] sm:$0xff]  ;;  %v1116_v29 = vcombine.high %v34_v24, %v38_v25  ;;  %v42_v31 = vld [vmem:[%s1832_s1 + $0x98] sm:$0xff]  ;;  %v1115_v35 = vcombine.low %v34_v24, %v38_v25 }
  0x2c   : > { %v1122_v30 = vcombine.high %v41_v3, %v45_v26  ;;  %v49_v33 = vld [vmem:[%s1832_s1 + $0xd0] sm:$0xff]  ;;  %v1121_v36 = vcombine.low %v41_v3, %v45_v26  ;;  %v98_v26 = vld [vmem:[%s1832_s1 + $0x258] sm:$0xff] }
  0x2e   : > { %812 = vmatpush1.bf16.msra.mxu0 %v1181_v32  ;;  %853 = vmatpush1.bf16.msra.mxu1 %v1183_v39  ;;  %v46_v32 = vld [vmem:[%s1832_s1 + $0xb8] sm:$0xff] }
  0x2f   : > { %813 = vmatprep.subr.bf16.mxu0 %v1190_v34  ;;  %854 = vmatprep.subr.bf16.mxu1 %v1192_v41  ;;  %v53_v34 = vld [vmem:[%s1832_s1 + $0xf0] sm:$0xff]  ;;  %v1124_v37 = vcombine.high %v42_v31, %v46_v32  ;;  %v50_v39 = vld [vmem:[%s1832_s1 + $0xd8] sm:$0xff] }
  0x30   : > { %v1130_v38 = vcombine.high %v49_v33, %v53_v34  ;;  %v57_v41 = vld [vmem:[%s1832_s1 + $0x110] sm:$0xff]  ;;  %v1129_v43 = vcombine.low %v49_v33, %v53_v34  ;;  %v106_v34 = vld [vmem:[%s1832_s1 + $0x298] sm:$0xff] }
  0x32   : > { %814 = vmatpush1.bf16.msra.mxu0 %v1189_v40  ;;  %855 = vmatpush1.bf16.msra.mxu1 %v1191_v47  ;;  %v54_v40 = vld [vmem:[%s1832_s1 + $0xf8] sm:$0xff] }
  0x33   : > { %815 = vmatprep.subr.bf16.mxu0 %v1198_v42  ;;  %856 = vmatprep.subr.bf16.mxu1 %v1200_v49  ;;  %v1123_v42 = vcombine.low %v42_v31, %v46_v32  ;;  %v1132_v44 = vcombine.high %v50_v39, %v54_v40  ;;  %v62_v47 = vld [vmem:[%s1832_s1 + $0x138] sm:$0xff]  ;;  %v69_v49 = vld [vmem:[%s1832_s1 + $0x170] sm:$0xff] }
  0x34   : > { %v1140_v52 = vcombine.high %v58_v46, %v62_v47 }
  0x36   : > { %816 = vmatpush1.bf16.msra.mxu0 %v1197_v48  ;;  %857 = vmatpush1.bf16.msra.mxu1 %v1199_v55  ;;  %v65_v48 = vld [vmem:[%s1832_s1 + $0x150] sm:$0xff]  ;;  %v70_v55 = vld [vmem:[%s1832_s1 + $0x178] sm:$0xff] }
  0x37   : > { %817 = vmatprep.subr.bf16.mxu0 %v1206_v50  ;;  %858 = vmatprep.subr.bf16.mxu1 %v1208_v57  ;;  %v1131_v50 = vcombine.low %v50_v39, %v54_v40  ;;  %v1146_v53 = vcombine.high %v65_v48, %v69_v49  ;;  %v77_v57 = vld [vmem:[%s1832_s1 + $0x1b0] sm:$0xff]  ;;  %v1145_v59 = vcombine.low %v65_v48, %v69_v49  ;;  %v122_v49 = vld [vmem:[%s1832_s1 + $0x318] sm:$0xff] }
  0x38   : > { %v1148_v60 = vcombine.high %v66_v54, %v70_v55 }
  0x3a   : > { %818 = vmatpush1.bf16.msra.mxu0 %v1205_v56  ;;  %859 = vmatpush1.bf16.msra.mxu1 %v1207_v63  ;;  %v73_v56 = vld [vmem:[%s1832_s1 + $0x190] sm:$0xff]  ;;  %v78_v63 = vld [vmem:[%s1832_s1 + $0x1b8] sm:$0xff] }
  0x3b   : > { %819 = vmatprep.subr.bf16.mxu0 %v1214_v58  ;;  %860 = vmatprep.subr.bf16.mxu1 %v1216_v4  ;;  %v1139_v58 = vcombine.low %v58_v46, %v62_v47  ;;  %v1154_v61 = vcombine.high %v73_v56, %v77_v57  ;;  %v85_v4 = vld [vmem:[%s1832_s1 + $0x1f0] sm:$0xff]  ;;  %v1153_v6 = vcombine.low %v73_v56, %v77_v57  ;;  %v130_v57 = vld [vmem:[%s1832_s1 + $0x358] sm:$0xff] }
  0x3c   : > { %v1156_v7 = vcombine.high %v74_v62, %v78_v63 }
  0x3e   : > { %820 = vmatpush1.bf16.msra.mxu0 %v1213_v2  ;;  %861 = vmatpush1.bf16.msra.mxu1 %v1215_v10  ;;  %v81_v2 = vld [vmem:[%s1832_s1 + $0x1d0] sm:$0xff]  ;;  %v86_v10 = vld [vmem:[%s1832_s1 + $0x1f8] sm:$0xff] }
  0x3f   : > { %821 = vmatprep.subr.bf16.mxu0 %v1222_v5  ;;  %862 = vmatprep.subr.bf16.mxu1 %v1224_v12  ;;  %v1147_v5 = vcombine.low %v66_v54, %v70_v55  ;;  %v1162_v8 = vcombine.high %v81_v2, %v85_v4  ;;  %v93_v12 = vld [vmem:[%s1832_s1 + $0x230] sm:$0xff]  ;;  %v1161_v14 = vcombine.low %v81_v2, %v85_v4  ;;  %v138_v4 = vld [vmem:[%s1832_s1 + $0x398] sm:$0xff] }
  0x40   : > { %v1164_v16 = vcombine.high %v82_v9, %v86_v10 }
  0x42   : > { %822 = vmatpush1.bf16.msra.mxu0 %v1221_v11  ;;  %863 = vmatpush1.bf16.msra.mxu1 %v1223_v20  ;;  %v89_v11 = vld [vmem:[%s1832_s1 + $0x210] sm:$0xff]  ;;  %v94_v20 = vld [vmem:[%s1832_s1 + $0x238] sm:$0xff] }
  0x43   : > { %873 = vmatprep.subr.bf16.mxu0 %v1106_v13  ;;  %914 = vmatprep.subr.bf16.mxu1 %v1108_v22  ;;  %v1155_v13 = vcombine.low %v74_v62, %v78_v63  ;;  %v1170_v17 = vcombine.high %v89_v11, %v93_v12  ;;  %v101_v22 = vld [vmem:[%s1832_s1 + $0x270] sm:$0xff]  ;;  %v1169_v24 = vcombine.low %v89_v11, %v93_v12  ;;  %v146_v12 = vld [vmem:[%s1832_s1 + $0x3d8] sm:$0xff] }
  0x44   : > { %v1172_v25 = vcombine.high %v90_v18, %v94_v20 }
  0x45   : > { %824 = vmatmul.mubr.bf16.vlgmr.msra.gmra.mrb[0].mxu0 %v1613_v19  ;;  %865 = vmatmul.mubr.bf16.vlgmr.msra.gmra.mrb[0].mxu1 %v1613_v19 }
  0x46   : > { %874 = vmatpush1.bf16.msra.mxu0 %v1105_v21  ;;  %905 = vmatprep.mubr.bf16.mxu0 %v1421_v15  ;;  %v97_v21 = vld [vmem:[%s1832_s1 + $0x250] sm:$0xff] }
  0x47   : > { %875 = vmatprep.subr.bf16.mxu0 %v1114_v23  ;;  %915 = vmatpush1.bf16.msra.mxu1 %v1107_v27  ;;  %v1163_v23 = vcombine.low %v82_v9, %v86_v10  ;;  %v1178_v3 = vcombine.high %v97_v21, %v101_v22  ;;  %v102_v27 = vld [vmem:[%s1832_s1 + $0x278] sm:$0xff]  ;;  %v1177_v31 = vcombine.low %v97_v21, %v101_v22  ;;  %v969_v22 = vlaneseq }
  0x48   : > { %946 = vmatprep.mubr.bf16.mxu1 %v1421_v15  ;;  %916 = vmatprep.subr.bf16.mxu1 %v1116_v29  ;;  %v61_v15 = vld [vmem:[%s1832_s1 + $0x130] sm:$0xff]  ;;  %v1180_v32 = vcombine.high %v98_v26, %v102_v27 }
  0x49   : > { %v1138_v45 = vcombine.high %v57_v41, %v61_v15  ;;  %v1137_v51 = vcombine.low %v57_v41, %v61_v15  ;;  %v109_v29 = vld [vmem:[%s1832_s1 + $0x2b0] sm:$0xff]  ;;  %v114_v15 = vld [vmem:[%s1832_s1 + $0x2d8] sm:$0xff] }
  0x4a   : > { %876 = vmatpush1.bf16.msra.mxu0 %v1113_v28  ;;  %v105_v28 = vld [vmem:[%s1832_s1 + $0x290] sm:$0xff] }
  0x4b   : > { %877 = vmatprep.subr.bf16.mxu0 %v1122_v30  ;;  %917 = vmatpush1.bf16.msra.mxu1 %v1115_v35  ;;  %v1171_v30 = vcombine.low %v90_v18, %v94_v20  ;;  %v1186_v33 = vcombine.high %v105_v28, %v109_v29  ;;  %v110_v35 = vld [vmem:[%s1832_s1 + $0x2b8] sm:$0xff]  ;;  %v1185_v39 = vcombine.low %v105_v28, %v109_v29  ;;  %v1358_v20 = vmov 1983009808  }
  0x4c   : > { %918 = vmatprep.subr.bf16.mxu1 %v1124_v37  ;;  %v117_v37 = vld [vmem:[%s1832_s1 + $0x2f0] sm:$0xff]  ;;  %v1188_v40 = vcombine.high %v106_v34, %v110_v35  ;;  %v967_v21 = vunpack.c.l.s4 %v1358_v20 }
  0x4e   : > { %878 = vmatpush1.bf16.msra.mxu0 %v1121_v36  ;;  %v113_v36 = vld [vmem:[%s1832_s1 + $0x2d0] sm:$0xff] }
  0x4f   : > { %879 = vmatprep.subr.bf16.mxu0 %v1130_v38  ;;  %919 = vmatpush1.bf16.msra.mxu1 %v1123_v42  ;;  %v1179_v38 = vcombine.low %v98_v26, %v102_v27  ;;  %v1194_v41 = vcombine.high %v113_v36, %v117_v37  ;;  %v118_v42 = vld [vmem:[%s1832_s1 + $0x2f8] sm:$0xff]  ;;  %v1193_v46 = vcombine.low %v113_v36, %v117_v37 }
  0x50   : > { %920 = vmatprep.subr.bf16.mxu1 %v1132_v44  ;;  %v125_v44 = vld [vmem:[%s1832_s1 + $0x330] sm:$0xff]  ;;  %v1196_v47 = vcombine.high %v114_v15, %v118_v42 }
  0x52   : > { %880 = vmatpush1.bf16.msra.mxu0 %v1129_v43  ;;  %v121_v43 = vld [vmem:[%s1832_s1 + $0x310] sm:$0xff] }
  0x53   : > { %881 = vmatprep.subr.bf16.mxu0 %v1138_v45  ;;  %921 = vmatpush1.bf16.msra.mxu1 %v1131_v50  ;;  %v1187_v45 = vcombine.low %v106_v34, %v110_v35  ;;  %v1202_v48 = vcombine.high %v121_v43, %v125_v44  ;;  %v126_v50 = vld [vmem:[%s1832_s1 + $0x338] sm:$0xff]  ;;  %v1201_v54 = vcombine.low %v121_v43, %v125_v44 }
  0x54   : > { %922 = vmatprep.subr.bf16.mxu1 %v1140_v52  ;;  %v133_v52 = vld [vmem:[%s1832_s1 + $0x370] sm:$0xff]  ;;  %v1204_v55 = vcombine.high %v122_v49, %v126_v50 }
  0x56   : > { %882 = vmatpush1.bf16.msra.mxu0 %v1137_v51  ;;  %v129_v51 = vld [vmem:[%s1832_s1 + $0x350] sm:$0xff] }
  0x57   : > { %883 = vmatprep.subr.bf16.mxu0 %v1146_v53  ;;  %923 = vmatpush1.bf16.msra.mxu1 %v1139_v58  ;;  %v1195_v53 = vcombine.low %v114_v15, %v118_v42  ;;  %v1210_v56 = vcombine.high %v129_v51, %v133_v52  ;;  %v134_v58 = vld [vmem:[%s1832_s1 + $0x378] sm:$0xff]  ;;  %v1209_v62 = vcombine.low %v129_v51, %v133_v52 }
  0x58   : > { %924 = vmatprep.subr.bf16.mxu1 %v1148_v60  ;;  %v141_v60 = vld [vmem:[%s1832_s1 + $0x3b0] sm:$0xff]  ;;  %v1212_v63 = vcombine.high %v130_v57, %v134_v58 }
  0x5a   : > { %884 = vmatpush1.bf16.msra.mxu0 %v1145_v59  ;;  %v137_v59 = vld [vmem:[%s1832_s1 + $0x390] sm:$0xff] }
  0x5b   : > { %885 = vmatprep.subr.bf16.mxu0 %v1154_v61  ;;  %925 = vmatpush1.bf16.msra.mxu1 %v1147_v5  ;;  %v1203_v61 = vcombine.low %v122_v49, %v126_v50  ;;  %v1218_v2 = vcombine.high %v137_v59, %v141_v60  ;;  %v142_v5 = vld [vmem:[%s1832_s1 + $0x3b8] sm:$0xff]  ;;  %v1217_v9 = vcombine.low %v137_v59, %v141_v60 }
  0x5c   : > { %926 = vmatprep.subr.bf16.mxu1 %v1156_v7  ;;  %v149_v7 = vld [vmem:[%s1832_s1 + $0x3f0] sm:$0xff]  ;;  %v1220_v10 = vcombine.high %v138_v4, %v142_v5 }
  0x5e   : > { %886 = vmatpush1.bf16.msra.mxu0 %v1153_v6  ;;  %v145_v6 = vld [vmem:[%s1832_s1 + $0x3d0] sm:$0xff] }
  0x5f   : > { %887 = vmatprep.subr.bf16.mxu0 %v1162_v8  ;;  %927 = vmatpush1.bf16.msra.mxu1 %v1155_v13  ;;  %v1211_v8 = vcombine.low %v130_v57, %v134_v58  ;;  %v1226_v11 = vcombine.high %v145_v6, %v149_v7  ;;  %v150_v13 = vld [vmem:[%s1832_s1 + $0x3f8] sm:$0xff]  ;;  %v963_v58 = vld [vmem:[%s962_s7 + $0x8] sm:$0xff] }
  0x60   : > { %928 = vmatprep.subr.bf16.mxu1 %v1164_v16  ;;  %v1225_v16 = vcombine.low %v145_v6, %v149_v7  ;;  %v1227_v18 = vcombine.low %v146_v12, %v150_v13  ;;  %v991_v60 = vcombine.high %v963_v58, %v963_v58 }
  0x62   : > { %888 = vmatpush1.bf16.msra.mxu0 %v1161_v14  ;;  %v1219_v14 = vcombine.low %v138_v4, %v142_v5 }
  0x63   : > { %889 = vmatprep.subr.bf16.mxu0 %v1170_v17  ;;  %929 = vmatpush1.bf16.msra.mxu1 %v1163_v23  ;;  %v1228_v17 = vcombine.high %v146_v12, %v150_v13  ;;  %v968_v23 = vunpack.c.0.s8 %v967_v21 }
  0x64   : > { %930 = vmatprep.subr.bf16.mxu1 %v1172_v25 }
  0x66   : > { %890 = vmatpush1.bf16.msra.mxu0 %v1169_v24  ;;  %v970_v24 = vshrl.u32 %v969_v22, 7 }
  0x67   : > { %891 = vmatprep.subr.bf16.mxu0 %v1178_v3  ;;  %931 = vmatpush1.bf16.msra.mxu1 %v1171_v30  ;;  %v959_v3 = vld [vmem:[%s958_s26] sm:$0xff] }
  0x68   : > { %932 = vmatprep.subr.bf16.mxu1 %v1180_v32  ;;  %v971_v25 = vsub.s32 %v968_v23, %v970_v24  ;;  %v965_v27 = vcombine.high %v959_v3, %v959_v3 }
  0x6a   : > { %892 = vmatpush1.bf16.msra.mxu0 %v1177_v31  ;;  %v972_v26 = vrot.slane %v959_v3, %v971_v25  ;;  %v979_v29 = vrot.slane %v965_v27, %v971_v25  ;;  %v998_v59 = vrot.slane %v963_v58, %v971_v25 }
  0x6b   : > { %893 = vmatprep.subr.bf16.mxu0 %v1186_v33  ;;  %933 = vmatpush1.bf16.msra.mxu1 %v1179_v38 }
  0x6c   : > { %934 = vmatprep.subr.bf16.mxu1 %v1188_v40  ;;  %v980_v28 = vcombine.high %v972_v26, %v972_v26  ;;  %v981_v37 = vcombine.high %v979_v29, %v979_v29 }
  0x6e   : > { %894 = vmatpush1.bf16.msra.mxu0 %v1185_v39 }
  0x6f   : > { %895 = vmatprep.subr.bf16.mxu0 %v1194_v41  ;;  %935 = vmatpush1.bf16.msra.mxu1 %v1187_v45 }
  0x70   : > { %936 = vmatprep.subr.bf16.mxu1 %v1196_v47 }
  0x72   : > { %896 = vmatpush1.bf16.msra.mxu0 %v1193_v46 }
  0x73   : > { %897 = vmatprep.subr.bf16.mxu0 %v1202_v48  ;;  %937 = vmatpush1.bf16.msra.mxu1 %v1195_v53 }
  0x74   : > { %938 = vmatprep.subr.bf16.mxu1 %v1204_v55 }
  0x76   : > { %898 = vmatpush1.bf16.msra.mxu0 %v1201_v54 }
  0x77   : > { %899 = vmatprep.subr.bf16.mxu0 %v1210_v56  ;;  %939 = vmatpush1.bf16.msra.mxu1 %v1203_v61  ;;  %v1006_v61 = vcombine.high %v998_v59, %v998_v59 }
  0x78   : > { %940 = vmatprep.subr.bf16.mxu1 %v1212_v63 }
  0x7a   : > { %900 = vmatpush1.bf16.msra.mxu0 %v1209_v62  ;;  %v1005_v62 = vrot.slane %v991_v60, %v971_v25 }
  0x7b   : > { %901 = vmatprep.subr.bf16.mxu0 %v1218_v2  ;;  %941 = vmatpush1.bf16.msra.mxu1 %v1211_v8 }
  0x7c   : > { %942 = vmatprep.subr.bf16.mxu1 %v1220_v10  ;;  %v1007_v10 = vcombine.high %v1005_v62, %v1005_v62 }
  0x7e   : > { %902 = vmatpush1.bf16.msra.mxu0 %v1217_v9 }
  0x7f   : > { %903 = vmatprep.subr.bf16.mxu0 %v1226_v11  ;;  %943 = vmatpush1.bf16.msra.mxu1 %v1219_v14 }
  0x80   : > { %944 = vmatprep.subr.bf16.mxu1 %v1228_v17 }
  0x82   : > { %904 = vmatpush1.bf16.msra.mxu0 %v1225_v16 }
  0x83   : > { %945 = vmatpush1.bf16.msra.mxu1 %v1227_v18 }
  0x85   : > { %906 = vmatmul.mubr.bf16.vlgmr.msra.gmra.mrb[4].mxu0 %v1613_v19 }
  0x86   : > { %947 = vmatmul.mubr.bf16.vlgmr.msra.gmra.mrb[4].mxu1 %v1613_v19 }
 0x118   : > { %v825_v30 = vpop.f32.mrb[0].mxu0  ;;  %v866_v36 = vpop.f32.mrb[0].mxu1 }
 0x119   : > { %v986_v31 = vadd.f32 %v972_v26, %v825_v30  ;;  %v827_v32 = vpop.f32.mrb[1].mxu0  ;;  %v868_v39 = vpop.f32.mrb[1].mxu1  ;;  %v988_v43 = vadd.f32 %v979_v29, %v866_v36 }
 0x11a   : > { %v987_v19 = vadd.f32 %v980_v28, %v827_v32  ;;  %v829_v33 = vpop.f32.mrb[2].mxu0  ;;  %v870_v40 = vpop.f32.mrb[2].mxu1  ;;  %v989_v15 = vadd.f32 %v981_v37, %v868_v39 }
 0x11b   : > { %v1233_v34 = vmul.f32 -1.442695, %v986_v31  ;;  %v830_v35 = vpop.f32.mrb[3].mxu0  ;;  %v871_v41 = vpop.f32.mrb[3].mxu1 }
 0x11c   : > { %v1234_v38 = vmul.f32 -1.442695, %v987_v19  ;;  %v1235_v42 = vmul.f32 -1.442695, %v989_v15 }
 0x11d   : > { %1286 = vpow2.f32 %v1233_v34 }
 0x11e   : > { %1288 = vpow2.f32 %v1234_v38 }
 0x11f   : > { %1290 = vpow2.f32 %v1235_v42 }
 0x120   : > { %1292 = vtanh.f32 %v988_v43 }
 0x127   : > { %v1287_v44 = vpop.eup %1286 }
 0x128   : > { %v1289_v45 = vpop.eup %1288  ;;  %v1019_v46 = vadd.f32 1.0, %v1287_v44 }
 0x129   : > { %v1025_v47 = vadd.f32 1.0, %v1289_v45  ;;  %v1291_v48 = vpop.eup %1290 }
 0x12a   : > { %1294 = vrcp.f32 %v1019_v46  ;;  %v1293_v49 = vpop.eup %1292  ;;  %v1032_v51 = vadd.f32 1.0, %v1291_v48 }
 0x12b   : > { %1296 = vrcp.f32 %v1025_v47 }
 0x12c   : > { %1298 = vrcp.f32 %v1032_v51 }
 0x134   : > { %v1295_v50 = vpop.eup %1294 }
 0x135   : > { %v1297_v52 = vpop.eup %1296  ;;  %v1036_v53 = vmul.f32 %v1295_v50, %v1293_v49 }
 0x136   : > { %v1035_v54 = vmul.f32 %v1344_v1, %v1297_v52  ;;  %v1299_v55 = vpop.eup %1298 }
 0x138   : > { %v1800_v1 = vadd.f32 %v1036_v53, %v1035_v54  }
 0x13a   : > { %1300 = vtanh.f32 %v1800_v1 }
 0x144   : > { %v1301_v56 = vpop.eup %1300 }
 0x145   : > { %v1039_v3 = vmul.f32 %v1301_v56, %v1299_v55  }
 0x147   : > { %v1064_v57 = vpack.c.bf16 %v1039_v3, %v1039_v3 }
 0x149   : > { %1067 = vst [vmem:[%s1066_s30] sm:$0x1] %v1064_v57 }
 0x158   : > { %v907_v63 = vpop.f32.mrb[4].mxu0 }
 0x159   : > { %v1012_v2 = vadd.f32 %v998_v59, %v907_v63  ;;  %v909_v4 = vpop.f32.mrb[5].mxu0  ;;  %v948_v9 = vpop.f32.mrb[4].mxu1 }
 0x15a   : > { %v1013_v5 = vadd.f32 %v1006_v61, %v909_v4  ;;  %v911_v6 = vpop.f32.mrb[6].mxu0  ;;  %v950_v12 = vpop.f32.mrb[5].mxu1  ;;  %v1014_v18 = vadd.f32 %v1005_v62, %v948_v9 }
 0x15b   : > { %v1236_v7 = vmul.f32 -1.442695, %v1012_v2  ;;  %v912_v8 = vpop.f32.mrb[7].mxu0  ;;  %v952_v13 = vpop.f32.mrb[6].mxu1  ;;  %v1015_v16 = vadd.f32 %v1007_v10, %v950_v12 }
 0x15c   : > { %v1237_v11 = vmul.f32 -1.442695, %v1013_v5  ;;  %v953_v14 = vpop.f32.mrb[7].mxu1 }
 0x15d   : > { %1302 = vpow2.f32 %v1236_v7  ;;  %v1238_v17 = vmul.f32 -1.442695, %v1015_v16 }
 0x15e   : > { %1304 = vpow2.f32 %v1237_v11 }
 0x15f   : > { %1306 = vpow2.f32 %v1238_v17 }
 0x160   : > { %1308 = vtanh.f32 %v1014_v18 }
 0x167   : > { %v1303_v20 = vpop.eup %1302 }
 0x168   : > { %v1305_v21 = vpop.eup %1304  ;;  %v1043_v22 = vadd.f32 1.0, %v1303_v20 }
 0x169   : > { %v1049_v23 = vadd.f32 1.0, %v1305_v21  ;;  %v1307_v24 = vpop.eup %1306 }
 0x16a   : > { %1310 = vrcp.f32 %v1043_v22  ;;  %v1309_v25 = vpop.eup %1308  ;;  %v1056_v27 = vadd.f32 1.0, %v1307_v24 }
 0x16b   : > { %1312 = vrcp.f32 %v1049_v23 }
 0x16c   : > { %1314 = vrcp.f32 %v1056_v27 }
 0x174   : > { %v1311_v26 = vpop.eup %1310 }
 0x175   : > { %v1313_v28 = vpop.eup %1312  ;;  %v1060_v29 = vmul.f32 %v1311_v26, %v1309_v25 }
 0x176   : > { %v1059_v30 = vmul.f32 %v1340_v0, %v1313_v28  ;;  %v1315_v31 = vpop.eup %1314 }
 0x178   : > { %v1061_v0 = vadd.f32 %v1060_v29, %v1059_v30  }
 0x17a   : > { %1316 = vtanh.f32 %v1061_v0 }
 0x183   :  { %15 = sbr.rel (!%p13_p0) target bundleno = 1 (0x1), region = 39 }
 0x184   : > { %v1317_v32 = vpop.eup %1316 }
 0x185   : > { %v1063_v2 = vmul.f32 %v1317_v32, %v1315_v31  }
 0x187   : > { %v1068_v19 = vpack.c.bf16 %v1063_v2, %v1063_v2 }
 0x189   : > { %1071 = vst [vmem:[%s1070_s12 + $0x1] sm:$0x1] %v1068_v19 }

// kernel: horizonnet_forward.51
= control target key start
LH: loop header
LB: loop body
LE: loop exit
PB: predicated region body
PF: predicated region fallthrough
CT: control target
= control target key end

     0   :  { %s503_s1 = inlined_call_operand.vmem [shape: bf16[256,128], index: 1, kind: input, shape index: {}]   ;;  %s504_s0 = inlined_call_operand.vmem [shape: bf16[64,256], index: 0, kind: input, shape index: {}]   ;;  %s505_s2 = inlined_call_operand.vmem [shape: f32[1,128], index: 2, kind: input, shape index: {}]   ;;  %s506_s3 = inlined_call_operand.vmem [shape: f32[64,128], index: 3, kind: output, shape index: {}]  }
   0x1   :  { %v356_v0 = vld [vmem:[%s503_s1 + $0x40] sm:$0xff]   ;;  %v358_v2 = vld [vmem:[%s503_s1 + $0x48] sm:$0xff]   ;;  %v360_v4 = vld [vmem:[%s503_s1 + $0x50] sm:$0xff]  }
   0x2   :  { %v357_v1 = vld [vmem:[%s503_s1] sm:$0xff]   ;;  %300 = vmatprep.subr.bf16.mxu0 %v356_v0  ;;  %340 = vmatprep.subr.bf16.mxu1 %v356_v0  ;;  %v359_v3 = vld [vmem:[%s503_s1 + $0x8] sm:$0xff]   ;;  %v361_v5 = vld [vmem:[%s503_s1 + $0x10] sm:$0xff]  }
   0x3   :  { %301 = vmatpush3.bf16.msra.mxu0 %v357_v1  ;;  %348 = vmatpush3.bf16.msra.mxu1 %v357_v1  ;;  %v362_v6 = vld [vmem:[%s503_s1 + $0x58] sm:$0xff]   ;;  %v364_v8 = vld [vmem:[%s503_s1 + $0x60] sm:$0xff]   ;;  %v366_v10 = vld [vmem:[%s503_s1 + $0x68] sm:$0xff]  }
   0x4   :  { %302 = vmatprep.subr.bf16.mxu0 %v358_v2  ;;  %341 = vmatprep.subr.bf16.mxu1 %v358_v2  ;;  %v363_v7 = vld [vmem:[%s503_s1 + $0x18] sm:$0xff]   ;;  %v365_v9 = vld [vmem:[%s503_s1 + $0x20] sm:$0xff]   ;;  %v367_v13 = vld [vmem:[%s503_s1 + $0x28] sm:$0xff]  }
   0x5   :  { %v374_v11 = vld [vmem:[%s504_s0 + $0x4] ss:$8 sps:$4 sm:$0xff]   ;;  %v368_v14 = vld [vmem:[%s503_s1 + $0x70] sm:$0xff]   ;;  %v370_v16 = vld [vmem:[%s503_s1 + $0x78] sm:$0xff]  }
   0x6   :  { %v377_v12 = vld [vmem:[%s504_s0 + $0x24] ss:$8 sps:$4 sm:$0xff]   ;;  %230 = vmatprep.mubr.bf16.mxu0 %v374_v11  ;;  %v369_v15 = vld [vmem:[%s503_s1 + $0x30] sm:$0xff]   ;;  %v371_v17 = vld [vmem:[%s503_s1 + $0x38] sm:$0xff]  }
   0x7   :  { %303 = vmatpush3.bf16.msra.mxu0 %v359_v3  ;;  %349 = vmatpush3.bf16.msra.mxu1 %v359_v3  ;;  %v372_v18 = vld [vmem:[%s504_s0] ss:$8 sps:$4 sm:$0xff]   ;;  %v378_v20 = vld [vmem:[%s504_s0 + $0x14] ss:$8 sps:$4 sm:$0xff]   ;;  %v382_v22 = vld [vmem:[%s504_s0 + $0x10] ss:$8 sps:$4 sm:$0xff]  }
   0x8   :  { %304 = vmatprep.subr.bf16.mxu0 %v360_v4  ;;  %342 = vmatprep.subr.bf16.mxu1 %v360_v4  ;;  %v375_v19 = vld [vmem:[%s504_s0 + $0x20] ss:$8 sps:$4 sm:$0xff]   ;;  %v380_v21 = vld [vmem:[%s504_s0 + $0x34] ss:$8 sps:$4 sm:$0xff]   ;;  %v383_v23 = vld [vmem:[%s504_s0 + $0x30] ss:$8 sps:$4 sm:$0xff]  }
   0x9   :  { %246 = vmatprep.mubr.bf16.mxu1 %v377_v12  ;;  %v275_v26 = vld [vmem:[%s505_s2] ss:$0 sm:$0xff] }
   0xb   :  { %305 = vmatpush3.bf16.msra.mxu0 %v361_v5  ;;  %350 = vmatpush3.bf16.msra.mxu1 %v361_v5 }
   0xc   :  { %306 = vmatprep.subr.bf16.mxu0 %v362_v6  ;;  %343 = vmatprep.subr.bf16.mxu1 %v362_v6 }
   0xf   :  { %307 = vmatpush3.bf16.msra.mxu0 %v363_v7  ;;  %351 = vmatpush3.bf16.msra.mxu1 %v363_v7 }
  0x10   :  { %308 = vmatprep.subr.bf16.mxu0 %v364_v8  ;;  %344 = vmatprep.subr.bf16.mxu1 %v364_v8 }
  0x13   :  { %309 = vmatpush3.bf16.msra.mxu0 %v365_v9  ;;  %352 = vmatpush3.bf16.msra.mxu1 %v365_v9 }
  0x14   :  { %310 = vmatprep.subr.bf16.mxu0 %v366_v10  ;;  %345 = vmatprep.subr.bf16.mxu1 %v366_v10 }
  0x17   :  { %311 = vmatpush3.bf16.msra.mxu0 %v367_v13  ;;  %353 = vmatpush3.bf16.msra.mxu1 %v367_v13 }
  0x18   :  { %312 = vmatprep.subr.bf16.mxu0 %v368_v14  ;;  %346 = vmatprep.subr.bf16.mxu1 %v368_v14 }
  0x1b   :  { %313 = vmatpush3.bf16.msra.mxu0 %v369_v15  ;;  %354 = vmatpush3.bf16.msra.mxu1 %v369_v15 }
  0x1c   :  { %314 = vmatprep.subr.bf16.mxu0 %v370_v16  ;;  %347 = vmatprep.subr.bf16.mxu1 %v370_v16 }
  0x1f   :  { %315 = vmatpush3.bf16.msra.mxu0 %v371_v17  ;;  %355 = vmatpush3.bf16.msra.mxu1 %v371_v17 }
  0x22   :  { %231 = vmatmul.mubr.bf16.vlgmr.msra.gmra.mrb[0].mxu0 %v372_v18  ;;  %247 = vmatmul.mubr.bf16.vlgmr.msra.gmra.mrb[0].mxu1 %v375_v19 }
  0x23   :  { %238 = vmatprep.mubr.bf16.mxu0 %v378_v20  ;;  %254 = vmatprep.mubr.bf16.mxu1 %v380_v21 }
  0x2a   :  { %239 = vmatmul.mubr.bf16.gmra.mrb[4].mxu0 %v382_v22  ;;  %255 = vmatmul.mubr.bf16.gmra.mrb[4].mxu1 %v383_v23 }
  0xf5   :  { %v316_v24 = vpop.f32.mrb[0].mxu0  ;;  %v328_v25 = vpop.f32.mrb[0].mxu1 }
  0xf6   :  { %v317_v27 = vpop.f32.mrb[1].mxu0  ;;  %v329_v28 = vpop.f32.mrb[1].mxu1 }
  0xf7   :  { %v318_v29 = vadd.f32 %v317_v27, %v316_v24  ;;  %v330_v30 = vadd.f32 %v329_v28, %v328_v25  ;;  %v319_v31 = vpop.f32.mrb[2].mxu0  ;;  %v331_v32 = vpop.f32.mrb[2].mxu1 }
  0xf8   :  { %v320_v33 = vpop.f32.mrb[3].mxu0  ;;  %v332_v34 = vpop.f32.mrb[3].mxu1 }
  0xf9   :  { %v233_v35 = vadd.f32 %v318_v29, %v275_v26  ;;  %v249_v36 = vadd.f32 %v330_v30, %v275_v26  ;;  %v321_v37 = vadd.f32 %v320_v33, %v319_v31  ;;  %v333_v38 = vadd.f32 %v332_v34, %v331_v32 }
  0xfb   :  { %263 = vst [vmem:[%s506_s3] sm:$0xff] %v233_v35  ;;  %267 = vst [vmem:[%s506_s3 + $0x20] sm:$0xff] %v249_v36  ;;  %v236_v39 = vadd.f32 %v321_v37, %v275_v26  ;;  %v252_v40 = vadd.f32 %v333_v38, %v275_v26 }
  0xfd   :  { %264 = vst [vmem:[%s506_s3 + $0x8] sm:$0xff] %v236_v39  ;;  %268 = vst [vmem:[%s506_s3 + $0x28] sm:$0xff] %v252_v40  ;;  %v322_v41 = vpop.f32.mrb[4].mxu0  ;;  %v334_v42 = vpop.f32.mrb[4].mxu1 }
  0xfe   :  { %v323_v43 = vpop.f32.mrb[5].mxu0  ;;  %v335_v44 = vpop.f32.mrb[5].mxu1 }
  0xff   :  { %v324_v45 = vadd.f32 %v323_v43, %v322_v41  ;;  %v336_v46 = vadd.f32 %v335_v44, %v334_v42  ;;  %v325_v47 = vpop.f32.mrb[6].mxu0  ;;  %v337_v48 = vpop.f32.mrb[6].mxu1 }
 0x100   :  { %v326_v49 = vpop.f32.mrb[7].mxu0  ;;  %v338_v50 = vpop.f32.mrb[7].mxu1 }
 0x101   :  { %v241_v51 = vadd.f32 %v324_v45, %v275_v26  ;;  %v257_v52 = vadd.f32 %v336_v46, %v275_v26  ;;  %v327_v53 = vadd.f32 %v326_v49, %v325_v47  ;;  %v339_v54 = vadd.f32 %v338_v50, %v337_v48 }
 0x103   :  { %265 = vst [vmem:[%s506_s3 + $0x10] sm:$0xff] %v241_v51  ;;  %269 = vst [vmem:[%s506_s3 + $0x30] sm:$0xff] %v257_v52  ;;  %v244_v55 = vadd.f32 %v327_v53, %v275_v26  ;;  %v260_v56 = vadd.f32 %v339_v54, %v275_v26 }
 0x105   :  { %266 = vst [vmem:[%s506_s3 + $0x18] sm:$0xff] %v244_v55  ;;  %270 = vst [vmem:[%s506_s3 + $0x38] sm:$0xff] %v260_v56 }

// kernel: horizonnet_forward.49
= control target key start
LH: loop header
LB: loop body
LE: loop exit
PB: predicated region body
PF: predicated region fallthrough
CT: control target
= control target key end

     0   :  { %s2151_s1 = inlined_call_operand.vmem [shape: bf16[256,1024], index: 1, kind: input, shape index: {}]   ;;  %s2152_s0 = inlined_call_operand.vmem [shape: bf16[64,256], index: 0, kind: input, shape index: {}]   ;;  %s2153_s2 = inlined_call_operand.vmem [shape: f32[1,1024], index: 2, kind: input, shape index: {}]   ;;  %s2154_s3 = inlined_call_operand.vmem [shape: f32[64,1024], index: 3, kind: output, shape index: {}]  }
   0x1   :  { %v22_v0 = vld [vmem:[%s2151_s1] sm:$0xff]  ;;  %v23_v2 = vld [vmem:[%s2151_s1 + $0x8] sm:$0xff] }
   0x2   :  { %v26_v1 = vld [vmem:[%s2151_s1 + $0x20] sm:$0xff]  ;;  %v27_v4 = vld [vmem:[%s2151_s1 + $0x28] sm:$0xff] }
   0x3   :  { %v1241_v3 = vcombine.high %v22_v0, %v26_v1  ;;  %v1240_v5 = vcombine.low %v22_v0, %v26_v1  ;;  %v30_v6 = vld [vmem:[%s2151_s1 + $0x40] sm:$0xff]  ;;  %v1243_v8 = vcombine.high %v23_v2, %v27_v4  ;;  %v1242_v9 = vcombine.low %v23_v2, %v27_v4  ;;  %v31_v11 = vld [vmem:[%s2151_s1 + $0x48] sm:$0xff] }
   0x4   :  { %v34_v7 = vld [vmem:[%s2151_s1 + $0x60] sm:$0xff]  ;;  %v35_v12 = vld [vmem:[%s2151_s1 + $0x68] sm:$0xff] }
   0x5   :  { %v1249_v10 = vcombine.high %v30_v6, %v34_v7  ;;  %v38_v13 = vld [vmem:[%s2151_s1 + $0x80] sm:$0xff]  ;;  %872 = vmatprep.subr.bf16.mxu0 %v1241_v3  ;;  %v1251_v14 = vcombine.high %v31_v11, %v35_v12  ;;  %v39_v16 = vld [vmem:[%s2151_s1 + $0x88] sm:$0xff]  ;;  %945 = vmatprep.subr.bf16.mxu1 %v1243_v8  ;;  %v1248_v18 = vcombine.low %v30_v6, %v34_v7 }
   0x6   :  { %v42_v15 = vld [vmem:[%s2151_s1 + $0xa0] sm:$0xff]  ;;  %v43_v17 = vld [vmem:[%s2151_s1 + $0xa8] sm:$0xff]  ;;  %873 = vmatpush1.bf16.msra.mxu0 %v1240_v5  ;;  %946 = vmatpush1.bf16.msra.mxu1 %v1242_v9  ;;  %v1250_v19 = vcombine.low %v31_v11, %v35_v12 }
   0x7   :  { %874 = vmatprep.subr.bf16.mxu0 %v1249_v10  ;;  %v1257_v20 = vcombine.high %v38_v13, %v42_v15  ;;  %947 = vmatprep.subr.bf16.mxu1 %v1251_v14  ;;  %v1259_v21 = vcombine.high %v39_v16, %v43_v17  ;;  %v46_v22 = vld [vmem:[%s2151_s1 + $0xc0] sm:$0xff]  ;;  %v47_v24 = vld [vmem:[%s2151_s1 + $0xc8] sm:$0xff]  ;;  %v1256_v26 = vcombine.low %v38_v13, %v42_v15 }
   0x8   :  { %v50_v23 = vld [vmem:[%s2151_s1 + $0xe0] sm:$0xff]  ;;  %v51_v25 = vld [vmem:[%s2151_s1 + $0xe8] sm:$0xff]  ;;  %v1258_v27 = vcombine.low %v39_v16, %v43_v17 }
   0x9   :  { %v1265_v28 = vcombine.high %v46_v22, %v50_v23  ;;  %v1267_v29 = vcombine.high %v47_v24, %v51_v25  ;;  %v54_v30 = vld [vmem:[%s2151_s1 + $0x100] sm:$0xff]  ;;  %v55_v32 = vld [vmem:[%s2151_s1 + $0x108] sm:$0xff]  ;;  %v1264_v34 = vcombine.low %v46_v22, %v50_v23  ;;  %v1266_v35 = vcombine.low %v47_v24, %v51_v25 }
   0xa   :  { %875 = vmatpush1.bf16.msra.mxu0 %v1248_v18  ;;  %948 = vmatpush1.bf16.msra.mxu1 %v1250_v19  ;;  %v58_v31 = vld [vmem:[%s2151_s1 + $0x120] sm:$0xff]  ;;  %v59_v33 = vld [vmem:[%s2151_s1 + $0x128] sm:$0xff] }
   0xb   :  { %876 = vmatprep.subr.bf16.mxu0 %v1257_v20  ;;  %949 = vmatprep.subr.bf16.mxu1 %v1259_v21  ;;  %v1273_v36 = vcombine.high %v54_v30, %v58_v31  ;;  %v1275_v37 = vcombine.high %v55_v32, %v59_v33  ;;  %v62_v38 = vld [vmem:[%s2151_s1 + $0x140] sm:$0xff]  ;;  %v63_v40 = vld [vmem:[%s2151_s1 + $0x148] sm:$0xff]  ;;  %v1272_v42 = vcombine.low %v54_v30, %v58_v31 }
   0xc   :  { %v66_v39 = vld [vmem:[%s2151_s1 + $0x160] sm:$0xff]  ;;  %v67_v41 = vld [vmem:[%s2151_s1 + $0x168] sm:$0xff]  ;;  %v1274_v43 = vcombine.low %v55_v32, %v59_v33 }
   0xd   :  { %v1281_v44 = vcombine.high %v62_v38, %v66_v39  ;;  %v1283_v45 = vcombine.high %v63_v40, %v67_v41  ;;  %v70_v46 = vld [vmem:[%s2151_s1 + $0x180] sm:$0xff]  ;;  %v71_v48 = vld [vmem:[%s2151_s1 + $0x188] sm:$0xff]  ;;  %v1280_v50 = vcombine.low %v62_v38, %v66_v39  ;;  %v1282_v51 = vcombine.low %v63_v40, %v67_v41 }
   0xe   :  { %877 = vmatpush1.bf16.msra.mxu0 %v1256_v26  ;;  %950 = vmatpush1.bf16.msra.mxu1 %v1258_v27  ;;  %v74_v47 = vld [vmem:[%s2151_s1 + $0x1a0] sm:$0xff]  ;;  %v75_v49 = vld [vmem:[%s2151_s1 + $0x1a8] sm:$0xff] }
   0xf   :  { %878 = vmatprep.subr.bf16.mxu0 %v1265_v28  ;;  %951 = vmatprep.subr.bf16.mxu1 %v1267_v29  ;;  %v1289_v52 = vcombine.high %v70_v46, %v74_v47  ;;  %v1291_v53 = vcombine.high %v71_v48, %v75_v49  ;;  %v78_v54 = vld [vmem:[%s2151_s1 + $0x1c0] sm:$0xff]  ;;  %v79_v57 = vld [vmem:[%s2151_s1 + $0x1c8] sm:$0xff]  ;;  %v1288_v59 = vcombine.low %v70_v46, %v74_v47 }
  0x10   :  { %v82_v55 = vld [vmem:[%s2151_s1 + $0x1e0] sm:$0xff]  ;;  %v83_v58 = vld [vmem:[%s2151_s1 + $0x1e8] sm:$0xff]  ;;  %v1290_v60 = vcombine.low %v71_v48, %v75_v49 }
  0x11   :  { %v1493_v56 = vld [vmem:[%s2152_s0 + $0x4] ss:$8 sps:$4 sm:$0xff]   ;;  %v1297_v61 = vcombine.high %v78_v54, %v82_v55  ;;  %v1299_v62 = vcombine.high %v79_v57, %v83_v58  ;;  %v1296_v3 = vcombine.low %v78_v54, %v82_v55  ;;  %v1298_v4 = vcombine.low %v79_v57, %v83_v58 }
  0x12   :  { %879 = vmatpush1.bf16.msra.mxu0 %v1264_v34  ;;  %952 = vmatpush1.bf16.msra.mxu1 %v1266_v35  ;;  %v86_v63 = vld [vmem:[%s2151_s1 + $0x200] sm:$0xff]  ;;  %v87_v1 = vld [vmem:[%s2151_s1 + $0x208] sm:$0xff] }
  0x13   :  { %880 = vmatprep.subr.bf16.mxu0 %v1273_v36  ;;  %953 = vmatprep.subr.bf16.mxu1 %v1275_v37  ;;  %v90_v0 = vld [vmem:[%s2151_s1 + $0x220] sm:$0xff]  ;;  %v91_v2 = vld [vmem:[%s2151_s1 + $0x228] sm:$0xff] }
  0x14   :  { %904 = vmatprep.mubr.bf16.mxu0 %v1493_v56  ;;  %977 = vmatprep.mubr.bf16.mxu1 %v1493_v56  ;;  %v1305_v5 = vcombine.high %v86_v63, %v90_v0  ;;  %v1307_v6 = vcombine.high %v87_v1, %v91_v2  ;;  %v94_v7 = vld [vmem:[%s2151_s1 + $0x240] sm:$0xff]  ;;  %v95_v9 = vld [vmem:[%s2151_s1 + $0x248] sm:$0xff]  ;;  %v1304_v11 = vcombine.low %v86_v63, %v90_v0  ;;  %v24_v0 = vld [vmem:[%s2151_s1 + $0x10] sm:$0xff] }
  0x15   :  { %v98_v8 = vld [vmem:[%s2151_s1 + $0x260] sm:$0xff]  ;;  %v99_v10 = vld [vmem:[%s2151_s1 + $0x268] sm:$0xff]  ;;  %v1306_v12 = vcombine.low %v87_v1, %v91_v2  ;;  %v28_v1 = vld [vmem:[%s2151_s1 + $0x30] sm:$0xff] }
  0x16   :  { %881 = vmatpush1.bf16.msra.mxu0 %v1272_v42  ;;  %954 = vmatpush1.bf16.msra.mxu1 %v1274_v43  ;;  %v1313_v13 = vcombine.high %v94_v7, %v98_v8  ;;  %v1315_v14 = vcombine.high %v95_v9, %v99_v10  ;;  %v102_v15 = vld [vmem:[%s2151_s1 + $0x280] sm:$0xff]  ;;  %v103_v17 = vld [vmem:[%s2151_s1 + $0x288] sm:$0xff]  ;;  %v1312_v19 = vcombine.low %v94_v7, %v98_v8  ;;  %v25_v2 = vld [vmem:[%s2151_s1 + $0x18] sm:$0xff] }
  0x17   :  { %882 = vmatprep.subr.bf16.mxu0 %v1281_v44  ;;  %955 = vmatprep.subr.bf16.mxu1 %v1283_v45  ;;  %v106_v16 = vld [vmem:[%s2151_s1 + $0x2a0] sm:$0xff]  ;;  %v107_v18 = vld [vmem:[%s2151_s1 + $0x2a8] sm:$0xff]  ;;  %v1314_v20 = vcombine.low %v95_v9, %v99_v10  ;;  %v32_v8 = vld [vmem:[%s2151_s1 + $0x50] sm:$0xff] }
  0x18   :  { %v1321_v21 = vcombine.high %v102_v15, %v106_v16  ;;  %v1323_v22 = vcombine.high %v103_v17, %v107_v18  ;;  %v110_v23 = vld [vmem:[%s2151_s1 + $0x2c0] sm:$0xff]  ;;  %v111_v25 = vld [vmem:[%s2151_s1 + $0x2c8] sm:$0xff]  ;;  %v1320_v27 = vcombine.low %v102_v15, %v106_v16  ;;  %v1322_v28 = vcombine.low %v103_v17, %v107_v18  ;;  %v36_v9 = vld [vmem:[%s2151_s1 + $0x70] sm:$0xff] }
  0x19   :  { %v114_v24 = vld [vmem:[%s2151_s1 + $0x2e0] sm:$0xff]  ;;  %v115_v26 = vld [vmem:[%s2151_s1 + $0x2e8] sm:$0xff]  ;;  %v1253_v15 = vcombine.high %v32_v8, %v36_v9  ;;  %v40_v17 = vld [vmem:[%s2151_s1 + $0x90] sm:$0xff] }
  0x1a   :  { %883 = vmatpush1.bf16.msra.mxu0 %v1280_v50  ;;  %956 = vmatpush1.bf16.msra.mxu1 %v1282_v51  ;;  %v1329_v29 = vcombine.high %v110_v23, %v114_v24  ;;  %v1331_v30 = vcombine.high %v111_v25, %v115_v26  ;;  %v118_v31 = vld [vmem:[%s2151_s1 + $0x300] sm:$0xff]  ;;  %v119_v33 = vld [vmem:[%s2151_s1 + $0x308] sm:$0xff]  ;;  %v1328_v35 = vcombine.low %v110_v23, %v114_v24  ;;  %v44_v18 = vld [vmem:[%s2151_s1 + $0xb0] sm:$0xff] }
  0x1b   :  { %884 = vmatprep.subr.bf16.mxu0 %v1289_v52  ;;  %957 = vmatprep.subr.bf16.mxu1 %v1291_v53  ;;  %v122_v32 = vld [vmem:[%s2151_s1 + $0x320] sm:$0xff]  ;;  %v123_v34 = vld [vmem:[%s2151_s1 + $0x328] sm:$0xff]  ;;  %v1330_v36 = vcombine.low %v111_v25, %v115_v26  ;;  %v1261_v24 = vcombine.high %v40_v17, %v44_v18  ;;  %v48_v26 = vld [vmem:[%s2151_s1 + $0xd0] sm:$0xff] }
  0x1c   :  { %v1337_v37 = vcombine.high %v118_v31, %v122_v32  ;;  %v1339_v38 = vcombine.high %v119_v33, %v123_v34  ;;  %v126_v39 = vld [vmem:[%s2151_s1 + $0x340] sm:$0xff]  ;;  %v127_v41 = vld [vmem:[%s2151_s1 + $0x348] sm:$0xff]  ;;  %v1336_v43 = vcombine.low %v118_v31, %v122_v32  ;;  %v1338_v44 = vcombine.low %v119_v33, %v123_v34 }
  0x1d   :  { %v130_v40 = vld [vmem:[%s2151_s1 + $0x360] sm:$0xff]  ;;  %v131_v42 = vld [vmem:[%s2151_s1 + $0x368] sm:$0xff]  ;;  %v1260_v31 = vcombine.low %v40_v17, %v44_v18  ;;  %v96_v17 = vld [vmem:[%s2151_s1 + $0x250] sm:$0xff] }
  0x1e   :  { %885 = vmatpush1.bf16.msra.mxu0 %v1288_v59  ;;  %958 = vmatpush1.bf16.msra.mxu1 %v1290_v60  ;;  %v1345_v45 = vcombine.high %v126_v39, %v130_v40  ;;  %v1347_v46 = vcombine.high %v127_v41, %v131_v42  ;;  %v134_v47 = vld [vmem:[%s2151_s1 + $0x380] sm:$0xff]  ;;  %v135_v49 = vld [vmem:[%s2151_s1 + $0x388] sm:$0xff]  ;;  %v1344_v51 = vcombine.low %v126_v39, %v130_v40  ;;  %v61_v39 = vld [vmem:[%s2151_s1 + $0x138] sm:$0xff] }
  0x1f   :  { %886 = vmatprep.subr.bf16.mxu0 %v1297_v61  ;;  %959 = vmatprep.subr.bf16.mxu1 %v1299_v62  ;;  %v138_v48 = vld [vmem:[%s2151_s1 + $0x3a0] sm:$0xff]  ;;  %v139_v50 = vld [vmem:[%s2151_s1 + $0x3a8] sm:$0xff]  ;;  %v1346_v52 = vcombine.low %v127_v41, %v131_v42  ;;  %v100_v18 = vld [vmem:[%s2151_s1 + $0x270] sm:$0xff] }
  0x20   :  { %v1353_v53 = vcombine.high %v134_v47, %v138_v48  ;;  %v1355_v54 = vcombine.high %v135_v49, %v139_v50  ;;  %v142_v55 = vld [vmem:[%s2151_s1 + $0x3c0] sm:$0xff]  ;;  %v143_v58 = vld [vmem:[%s2151_s1 + $0x3c8] sm:$0xff]  ;;  %v1352_v60 = vcombine.low %v134_v47, %v138_v48  ;;  %v1354_v61 = vcombine.low %v135_v49, %v139_v50  ;;  %v69_v47 = vld [vmem:[%s2151_s1 + $0x178] sm:$0xff] }
  0x21   :  { %v146_v57 = vld [vmem:[%s2151_s1 + $0x3e0] sm:$0xff]  ;;  %v147_v59 = vld [vmem:[%s2151_s1 + $0x3e8] sm:$0xff] }
  0x22   :  { %887 = vmatpush1.bf16.msra.mxu0 %v1296_v3  ;;  %960 = vmatpush1.bf16.msra.mxu1 %v1298_v4  ;;  %v1361_v62 = vcombine.high %v142_v55, %v146_v57  ;;  %v1363_v63 = vcombine.high %v143_v58, %v147_v59  ;;  %v29_v3 = vld [vmem:[%s2151_s1 + $0x38] sm:$0xff]  ;;  %v1360_v4 = vcombine.low %v142_v55, %v146_v57  ;;  %v1620_v10 = vld [vmem:[%s2152_s0] ss:$8 sps:$4 sm:$0xff]  }
  0x23   :  { %888 = vmatprep.subr.bf16.mxu0 %v1305_v5  ;;  %961 = vmatprep.subr.bf16.mxu1 %v1307_v6  ;;  %v1362_v5 = vcombine.low %v143_v58, %v147_v59  ;;  %v1245_v6 = vcombine.high %v24_v0, %v28_v1  ;;  %v1247_v7 = vcombine.high %v25_v2, %v29_v3  ;;  %v1702_v48 = vld [vmem:[%s2152_s0 + $0x20] ss:$8 sps:$4 sm:$0xff]   ;;  %v1713_v55 = vld [vmem:[%s2152_s0 + $0x34] ss:$8 sps:$4 sm:$0xff]  }
  0x24   :  { %v73_v57 = vld [vmem:[%s2151_s1 + $0x198] sm:$0xff] }
  0x25   :  { %v77_v58 = vld [vmem:[%s2151_s1 + $0x1b8] sm:$0xff] }
  0x26   :  { %889 = vmatpush1.bf16.msra.mxu0 %v1304_v11  ;;  %962 = vmatpush1.bf16.msra.mxu1 %v1306_v12  ;;  %v33_v11 = vld [vmem:[%s2151_s1 + $0x58] sm:$0xff] }
  0x27   :  { %890 = vmatprep.subr.bf16.mxu0 %v1313_v13  ;;  %963 = vmatprep.subr.bf16.mxu1 %v1315_v14  ;;  %v37_v12 = vld [vmem:[%s2151_s1 + $0x78] sm:$0xff]  ;;  %v1244_v13 = vcombine.low %v24_v0, %v28_v1  ;;  %v1246_v14 = vcombine.low %v25_v2, %v29_v3  ;;  %v84_v0 = vld [vmem:[%s2151_s1 + $0x1f0] sm:$0xff] }
  0x28   :  { %v1255_v16 = vcombine.high %v33_v11, %v37_v12  ;;  %v1254_v23 = vcombine.low %v33_v11, %v37_v12  ;;  %v81_v1 = vld [vmem:[%s2151_s1 + $0x1d8] sm:$0xff] }
  0x29   :  { %v85_v2 = vld [vmem:[%s2151_s1 + $0x1f8] sm:$0xff] }
  0x2a   :  { %891 = vmatpush1.bf16.msra.mxu0 %v1312_v19  ;;  %964 = vmatpush1.bf16.msra.mxu1 %v1314_v20  ;;  %v1637_v19 = vld [vmem:[%s2152_s0 + $0x14] ss:$8 sps:$4 sm:$0xff]   ;;  %v1740_v3 = vld [vmem:[%s2152_s0 + $0x30] ss:$8 sps:$4 sm:$0xff]  }
  0x2b   :  { %892 = vmatprep.subr.bf16.mxu0 %v1321_v21  ;;  %965 = vmatprep.subr.bf16.mxu1 %v1323_v22  ;;  %v41_v20 = vld [vmem:[%s2151_s1 + $0x98] sm:$0xff]  ;;  %v1252_v22 = vcombine.low %v32_v8, %v36_v9  ;;  %v88_v8 = vld [vmem:[%s2151_s1 + $0x210] sm:$0xff] }
  0x2c   :  { %v45_v21 = vld [vmem:[%s2151_s1 + $0xb8] sm:$0xff]  ;;  %v92_v9 = vld [vmem:[%s2151_s1 + $0x230] sm:$0xff] }
  0x2d   :  { %v1263_v25 = vcombine.high %v41_v20, %v45_v21  ;;  %v1262_v32 = vcombine.low %v41_v20, %v45_v21  ;;  %v89_v11 = vld [vmem:[%s2151_s1 + $0x218] sm:$0xff] }
  0x2e   :  { %893 = vmatpush1.bf16.msra.mxu0 %v1320_v27  ;;  %966 = vmatpush1.bf16.msra.mxu1 %v1322_v28  ;;  %v52_v27 = vld [vmem:[%s2151_s1 + $0xf0] sm:$0xff]  ;;  %v49_v28 = vld [vmem:[%s2151_s1 + $0xd8] sm:$0xff] }
  0x2f   :  { %894 = vmatprep.subr.bf16.mxu0 %v1329_v29  ;;  %967 = vmatprep.subr.bf16.mxu1 %v1331_v30  ;;  %v53_v29 = vld [vmem:[%s2151_s1 + $0xf8] sm:$0xff]  ;;  %v1269_v33 = vcombine.high %v48_v26, %v52_v27  ;;  %v1268_v40 = vcombine.low %v48_v26, %v52_v27  ;;  %v104_v26 = vld [vmem:[%s2151_s1 + $0x290] sm:$0xff] }
  0x30   :  { %v1664_v30 = vld [vmem:[%s2152_s0 + $0x10] ss:$8 sps:$4 sm:$0xff]   ;;  %v1271_v34 = vcombine.high %v49_v28, %v53_v29  ;;  %v1270_v41 = vcombine.low %v49_v28, %v53_v29  ;;  %v1316_v29 = vcombine.low %v96_v17, %v100_v18 }
  0x31   :  { %v93_v12 = vld [vmem:[%s2151_s1 + $0x238] sm:$0xff]  ;;  %v108_v27 = vld [vmem:[%s2151_s1 + $0x2b0] sm:$0xff] }
  0x32   :  { %895 = vmatpush1.bf16.msra.mxu0 %v1328_v35  ;;  %968 = vmatpush1.bf16.msra.mxu1 %v1330_v36  ;;  %v56_v35 = vld [vmem:[%s2151_s1 + $0x110] sm:$0xff]  ;;  %v97_v20 = vld [vmem:[%s2151_s1 + $0x258] sm:$0xff] }
  0x33   :  { %896 = vmatprep.subr.bf16.mxu0 %v1337_v37  ;;  %969 = vmatprep.subr.bf16.mxu1 %v1339_v38  ;;  %v60_v36 = vld [vmem:[%s2151_s1 + $0x130] sm:$0xff]  ;;  %v1675_v37 = vld [vmem:[%s2152_s0 + $0x24] ss:$8 sps:$4 sm:$0xff]   ;;  %v57_v38 = vld [vmem:[%s2151_s1 + $0x118] sm:$0xff] }
  0x34   :  { %v1277_v42 = vcombine.high %v56_v35, %v60_v36  ;;  %v1276_v49 = vcombine.low %v56_v35, %v60_v36  ;;  %v1278_v50 = vcombine.low %v57_v38, %v61_v39  ;;  %v101_v21 = vld [vmem:[%s2151_s1 + $0x278] sm:$0xff]  ;;  %v116_v35 = vld [vmem:[%s2151_s1 + $0x2f0] sm:$0xff] }
  0x35   :  { %v109_v28 = vld [vmem:[%s2151_s1 + $0x2b8] sm:$0xff] }
  0x36   :  { %897 = vmatpush1.bf16.msra.mxu0 %v1336_v43  ;;  %970 = vmatpush1.bf16.msra.mxu1 %v1338_v44  ;;  %v1279_v43 = vcombine.high %v57_v38, %v61_v39  ;;  %v64_v44 = vld [vmem:[%s2151_s1 + $0x150] sm:$0xff]  ;;  %v113_v36 = vld [vmem:[%s2151_s1 + $0x2d8] sm:$0xff]  ;;  %v1324_v39 = vcombine.low %v104_v26, %v108_v27 }
  0x37   :  { %898 = vmatprep.subr.bf16.mxu0 %v1345_v45  ;;  %971 = vmatprep.subr.bf16.mxu1 %v1347_v46  ;;  %v68_v45 = vld [vmem:[%s2151_s1 + $0x170] sm:$0xff]  ;;  %v65_v46 = vld [vmem:[%s2151_s1 + $0x158] sm:$0xff] }
  0x38   :  { %v1284_v59 = vcombine.low %v64_v44, %v68_v45  ;;  %v117_v38 = vld [vmem:[%s2151_s1 + $0x2f8] sm:$0xff] }
  0x3a   :  { %899 = vmatpush1.bf16.msra.mxu0 %v1344_v51  ;;  %972 = vmatpush1.bf16.msra.mxu1 %v1346_v52  ;;  %v1285_v51 = vcombine.high %v64_v44, %v68_v45  ;;  %v1287_v52 = vcombine.high %v65_v46, %v69_v47  ;;  %v124_v44 = vld [vmem:[%s2151_s1 + $0x330] sm:$0xff]  ;;  %v121_v45 = vld [vmem:[%s2151_s1 + $0x318] sm:$0xff] }
  0x3b   :  { %900 = vmatprep.subr.bf16.mxu0 %v1353_v53  ;;  %973 = vmatprep.subr.bf16.mxu1 %v1355_v54  ;;  %v72_v53 = vld [vmem:[%s2151_s1 + $0x190] sm:$0xff] }
  0x3c   :  { %v76_v54 = vld [vmem:[%s2151_s1 + $0x1b0] sm:$0xff] }
  0x3e   :  { %901 = vmatpush1.bf16.msra.mxu0 %v1352_v60  ;;  %974 = vmatpush1.bf16.msra.mxu1 %v1354_v61  ;;  %v1286_v60 = vcombine.low %v65_v46, %v69_v47  ;;  %v1293_v61 = vcombine.high %v72_v53, %v76_v54  ;;  %v125_v46 = vld [vmem:[%s2151_s1 + $0x338] sm:$0xff] }
  0x3f   :  { %902 = vmatprep.subr.bf16.mxu0 %v1361_v62  ;;  %975 = vmatprep.subr.bf16.mxu1 %v1363_v63  ;;  %v1295_v62 = vcombine.high %v73_v57, %v77_v58  ;;  %v80_v63 = vld [vmem:[%s2151_s1 + $0x1d0] sm:$0xff] }
  0x42   :  { %903 = vmatpush1.bf16.msra.mxu0 %v1360_v4  ;;  %976 = vmatpush1.bf16.msra.mxu1 %v1362_v5  ;;  %v1292_v4 = vcombine.low %v72_v53, %v76_v54  ;;  %v1294_v5 = vcombine.low %v73_v57, %v77_v58  ;;  %v132_v53 = vld [vmem:[%s2151_s1 + $0x370] sm:$0xff]  ;;  %v129_v54 = vld [vmem:[%s2151_s1 + $0x358] sm:$0xff] }
  0x43   :  { %1018 = vmatprep.subr.bf16.mxu0 %v1245_v6  ;;  %1091 = vmatprep.subr.bf16.mxu1 %v1247_v7  ;;  %v1301_v6 = vcombine.high %v80_v63, %v84_v0  ;;  %v1303_v7 = vcombine.high %v81_v1, %v85_v2  ;;  %v133_v57 = vld [vmem:[%s2151_s1 + $0x378] sm:$0xff] }
  0x45   :  { %905 = vmatmul.mubr.bf16.vlgmr.msra.gmra.mrb[0].mxu0 %v1620_v10  ;;  %978 = vmatmul.mubr.bf16.vlgmr.msra.gmra.mrb[0].mxu1 %v1620_v10 }
  0x46   :  { %1019 = vmatpush1.bf16.msra.mxu0 %v1244_v13  ;;  %1092 = vmatpush1.bf16.msra.mxu1 %v1246_v14  ;;  %v1300_v13 = vcombine.low %v80_v63, %v84_v0  ;;  %v1302_v14 = vcombine.low %v81_v1, %v85_v2  ;;  %v140_v63 = vld [vmem:[%s2151_s1 + $0x3b0] sm:$0xff]  ;;  %v137_v0 = vld [vmem:[%s2151_s1 + $0x398] sm:$0xff] }
  0x47   :  { %1020 = vmatprep.subr.bf16.mxu0 %v1253_v15  ;;  %1093 = vmatprep.subr.bf16.mxu1 %v1255_v16  ;;  %v1309_v15 = vcombine.high %v88_v8, %v92_v9  ;;  %v1311_v16 = vcombine.high %v89_v11, %v93_v12  ;;  %v141_v1 = vld [vmem:[%s2151_s1 + $0x3b8] sm:$0xff] }
  0x48   :  { %914 = vmatprep.mubr.bf16.mxu0 %v1637_v19  ;;  %987 = vmatprep.mubr.bf16.mxu1 %v1637_v19 }
  0x4a   :  { %1021 = vmatpush1.bf16.msra.mxu0 %v1252_v22  ;;  %1094 = vmatpush1.bf16.msra.mxu1 %v1254_v23  ;;  %v1308_v22 = vcombine.low %v88_v8, %v92_v9  ;;  %v1310_v23 = vcombine.low %v89_v11, %v93_v12  ;;  %v148_v8 = vld [vmem:[%s2151_s1 + $0x3f0] sm:$0xff]  ;;  %v145_v9 = vld [vmem:[%s2151_s1 + $0x3d8] sm:$0xff] }
  0x4b   :  { %1022 = vmatprep.subr.bf16.mxu0 %v1261_v24  ;;  %1095 = vmatprep.subr.bf16.mxu1 %v1263_v25  ;;  %v1317_v24 = vcombine.high %v96_v17, %v100_v18  ;;  %v1319_v25 = vcombine.high %v97_v20, %v101_v21  ;;  %v149_v11 = vld [vmem:[%s2151_s1 + $0x3f8] sm:$0xff] }
  0x4c   :  { %v1366_v17 = vcombine.low %v145_v9, %v149_v11 }
  0x4d   :  { %915 = vmatmul.mubr.bf16.gmra.mrb[4].mxu0 %v1664_v30  ;;  %988 = vmatmul.mubr.bf16.gmra.mrb[4].mxu1 %v1664_v30 }
  0x4e   :  { %1023 = vmatpush1.bf16.msra.mxu0 %v1260_v31  ;;  %1096 = vmatpush1.bf16.msra.mxu1 %v1262_v32  ;;  %v1318_v31 = vcombine.low %v97_v20, %v101_v21  ;;  %v1325_v32 = vcombine.high %v104_v26, %v108_v27 }
  0x4f   :  { %1024 = vmatprep.subr.bf16.mxu0 %v1269_v33  ;;  %1097 = vmatprep.subr.bf16.mxu1 %v1271_v34  ;;  %v112_v34 = vld [vmem:[%s2151_s1 + $0x2d0] sm:$0xff] }
  0x50   :  { %924 = vmatprep.mubr.bf16.mxu0 %v1675_v37  ;;  %997 = vmatprep.mubr.bf16.mxu1 %v1675_v37  ;;  %v1332_v47 = vcombine.low %v112_v34, %v116_v35 }
  0x52   :  { %1025 = vmatpush1.bf16.msra.mxu0 %v1268_v40  ;;  %1098 = vmatpush1.bf16.msra.mxu1 %v1270_v41  ;;  %v1333_v41 = vcombine.high %v112_v34, %v116_v35 }
  0x53   :  { %1026 = vmatprep.subr.bf16.mxu0 %v1277_v42  ;;  %1099 = vmatprep.subr.bf16.mxu1 %v1279_v43  ;;  %v1335_v42 = vcombine.high %v113_v36, %v117_v38  ;;  %v120_v43 = vld [vmem:[%s2151_s1 + $0x310] sm:$0xff] }
  0x54   :  { %v1340_v58 = vcombine.low %v120_v43, %v124_v44 }
  0x55   :  { %925 = vmatmul.mubr.bf16.gmra.mrb[8].mxu0 %v1702_v48  ;;  %998 = vmatmul.mubr.bf16.gmra.mrb[8].mxu1 %v1702_v48 }
  0x56   :  { %1027 = vmatpush1.bf16.msra.mxu0 %v1276_v49  ;;  %1100 = vmatpush1.bf16.msra.mxu1 %v1278_v50  ;;  %v1334_v49 = vcombine.low %v113_v36, %v117_v38  ;;  %v1341_v50 = vcombine.high %v120_v43, %v124_v44 }
  0x57   :  { %1028 = vmatprep.subr.bf16.mxu0 %v1285_v51  ;;  %1101 = vmatprep.subr.bf16.mxu1 %v1287_v52  ;;  %v1343_v51 = vcombine.high %v121_v45, %v125_v46  ;;  %v128_v52 = vld [vmem:[%s2151_s1 + $0x350] sm:$0xff] }
  0x58   :  { %934 = vmatprep.mubr.bf16.mxu0 %v1713_v55  ;;  %1007 = vmatprep.mubr.bf16.mxu1 %v1713_v55  ;;  %v1348_v2 = vcombine.low %v128_v52, %v132_v53 }
  0x5a   :  { %1029 = vmatpush1.bf16.msra.mxu0 %v1284_v59  ;;  %1102 = vmatpush1.bf16.msra.mxu1 %v1286_v60  ;;  %v1342_v59 = vcombine.low %v121_v45, %v125_v46  ;;  %v1349_v60 = vcombine.high %v128_v52, %v132_v53 }
  0x5b   :  { %1030 = vmatprep.subr.bf16.mxu0 %v1293_v61  ;;  %1103 = vmatprep.subr.bf16.mxu1 %v1295_v62  ;;  %v1351_v61 = vcombine.high %v129_v54, %v133_v57  ;;  %v136_v62 = vld [vmem:[%s2151_s1 + $0x390] sm:$0xff] }
  0x5c   :  { %v1356_v12 = vcombine.low %v136_v62, %v140_v63 }
  0x5d   :  { %935 = vmatmul.mubr.bf16.gmra.mrb[12].mxu0 %v1740_v3  ;;  %1008 = vmatmul.mubr.bf16.gmra.mrb[12].mxu1 %v1740_v3 }
  0x5e   :  { %1031 = vmatpush1.bf16.msra.mxu0 %v1292_v4  ;;  %1104 = vmatpush1.bf16.msra.mxu1 %v1294_v5  ;;  %v1350_v4 = vcombine.low %v129_v54, %v133_v57  ;;  %v1357_v5 = vcombine.high %v136_v62, %v140_v63 }
  0x5f   :  { %1032 = vmatprep.subr.bf16.mxu0 %v1301_v6  ;;  %1105 = vmatprep.subr.bf16.mxu1 %v1303_v7  ;;  %v1359_v6 = vcombine.high %v137_v0, %v141_v1  ;;  %v144_v7 = vld [vmem:[%s2151_s1 + $0x3d0] sm:$0xff] }
  0x60   :  { %1050 = vmatprep.mubr.bf16.mxu0 %v1493_v56  ;;  %1123 = vmatprep.mubr.bf16.mxu1 %v1493_v56  ;;  %v105_v56 = vld [vmem:[%s2151_s1 + $0x298] sm:$0xff] }
  0x61   :  { %v1327_v33 = vcombine.high %v105_v56, %v109_v28  ;;  %v1326_v40 = vcombine.low %v105_v56, %v109_v28 }
  0x62   :  { %1033 = vmatpush1.bf16.msra.mxu0 %v1300_v13  ;;  %1106 = vmatpush1.bf16.msra.mxu1 %v1302_v14  ;;  %v1358_v13 = vcombine.low %v137_v0, %v141_v1  ;;  %v1365_v14 = vcombine.high %v144_v7, %v148_v8 }
  0x63   :  { %1034 = vmatprep.subr.bf16.mxu0 %v1309_v15  ;;  %1107 = vmatprep.subr.bf16.mxu1 %v1311_v16  ;;  %v1367_v15 = vcombine.high %v145_v9, %v149_v11  ;;  %v1364_v16 = vcombine.low %v144_v7, %v148_v8 }
  0x66   :  { %1035 = vmatpush1.bf16.msra.mxu0 %v1308_v22  ;;  %1108 = vmatpush1.bf16.msra.mxu1 %v1310_v23 }
  0x67   :  { %1036 = vmatprep.subr.bf16.mxu0 %v1317_v24  ;;  %1109 = vmatprep.subr.bf16.mxu1 %v1319_v25 }
  0x6a   :  { %1037 = vmatpush1.bf16.msra.mxu0 %v1316_v29  ;;  %1110 = vmatpush1.bf16.msra.mxu1 %v1318_v31 }
  0x6b   :  { %1038 = vmatprep.subr.bf16.mxu0 %v1325_v32  ;;  %1111 = vmatprep.subr.bf16.mxu1 %v1327_v33 }
  0x6e   :  { %1039 = vmatpush1.bf16.msra.mxu0 %v1324_v39  ;;  %1112 = vmatpush1.bf16.msra.mxu1 %v1326_v40 }
  0x6f   :  { %1040 = vmatprep.subr.bf16.mxu0 %v1333_v41  ;;  %1113 = vmatprep.subr.bf16.mxu1 %v1335_v42 }
  0x72   :  { %1041 = vmatpush1.bf16.msra.mxu0 %v1332_v47  ;;  %1114 = vmatpush1.bf16.msra.mxu1 %v1334_v49 }
  0x73   :  { %1042 = vmatprep.subr.bf16.mxu0 %v1341_v50  ;;  %1115 = vmatprep.subr.bf16.mxu1 %v1343_v51 }
  0x76   :  { %1043 = vmatpush1.bf16.msra.mxu0 %v1340_v58  ;;  %1116 = vmatpush1.bf16.msra.mxu1 %v1342_v59 }
  0x77   :  { %1044 = vmatprep.subr.bf16.mxu0 %v1349_v60  ;;  %1117 = vmatprep.subr.bf16.mxu1 %v1351_v61 }
  0x7a   :  { %1045 = vmatpush1.bf16.msra.mxu0 %v1348_v2  ;;  %1118 = vmatpush1.bf16.msra.mxu1 %v1350_v4 }
  0x7b   :  { %1046 = vmatprep.subr.bf16.mxu0 %v1357_v5  ;;  %1119 = vmatprep.subr.bf16.mxu1 %v1359_v6 }
  0x7e   :  { %1047 = vmatpush1.bf16.msra.mxu0 %v1356_v12  ;;  %1120 = vmatpush1.bf16.msra.mxu1 %v1358_v13 }
  0x7f   :  { %1048 = vmatprep.subr.bf16.mxu0 %v1365_v14  ;;  %1121 = vmatprep.subr.bf16.mxu1 %v1367_v15 }
  0x82   :  { %1049 = vmatpush1.bf16.msra.mxu0 %v1364_v16  ;;  %1122 = vmatpush1.bf16.msra.mxu1 %v1366_v17 }
  0x85   :  { %1051 = vmatmul.mubr.bf16.vlgmr.msra.gmra.mrb[16].mxu0 %v1620_v10  ;;  %1124 = vmatmul.mubr.bf16.vlgmr.msra.gmra.mrb[16].mxu1 %v1620_v10  ;;  %v152_v10 = vlaneseq }
  0x86   :  { %1060 = vmatprep.mubr.bf16.mxu0 %v1637_v19  ;;  %1133 = vmatprep.mubr.bf16.mxu1 %v1637_v19 }
  0x87   :  { %v1856_v19 = vshrl.u32 %v152_v10, 7 }
  0x89   :  { %v158_v18 = vsub.s32 1, %v1856_v19 }
  0x8d   :  { %1061 = vmatmul.mubr.bf16.gmra.mrb[20].mxu0 %v1664_v30  ;;  %1134 = vmatmul.mubr.bf16.gmra.mrb[20].mxu1 %v1664_v30  ;;  %v154_v30 = vsub.s32 0, %v1856_v19 }
  0x8e   :  { %1070 = vmatprep.mubr.bf16.mxu0 %v1675_v37  ;;  %1143 = vmatprep.mubr.bf16.mxu1 %v1675_v37  ;;  %v1862_v37 = vld [vmem:[%s2153_s2] sm:$0xff] }
  0x8f   :  { %v1868_v20 = vrot.slane %v1862_v37, %v154_v30  ;;  %v1874_v21 = vrot.slane %v1862_v37, %v158_v18 }
  0x95   :  { %1071 = vmatmul.mubr.bf16.gmra.mrb[24].mxu0 %v1702_v48  ;;  %1144 = vmatmul.mubr.bf16.gmra.mrb[24].mxu1 %v1702_v48  ;;  %v162_v48 = vsub.s32 2, %v1856_v19 }
  0x96   :  { %1080 = vmatprep.mubr.bf16.mxu0 %v1713_v55  ;;  %1153 = vmatprep.mubr.bf16.mxu1 %v1713_v55  ;;  %v166_v55 = vsub.s32 3, %v1856_v19 }
  0x98   :  { %v1877_v22 = vrot.slane %v1862_v37, %v166_v55 }
  0x9d   :  { %1081 = vmatmul.mubr.bf16.gmra.mrb[28].mxu0 %v1740_v3  ;;  %1154 = vmatmul.mubr.bf16.gmra.mrb[28].mxu1 %v1740_v3  ;;  %v1871_v3 = vrot.slane %v1862_v37, %v162_v48 }
 0x118   :  { %v906_v23 = vpop.f32.mrb[0].mxu0  ;;  %v979_v25 = vpop.f32.mrb[0].mxu1 }
 0x119   :  { %v907_v24 = vadd.f32 %v906_v23, %v1868_v20  ;;  %v908_v26 = vpop.f32.mrb[1].mxu0  ;;  %v980_v27 = vadd.f32 %v979_v25, %v1871_v3  ;;  %v981_v28 = vpop.f32.mrb[1].mxu1 }
 0x11a   :  { %v909_v56 = vadd.f32 %v908_v26, %v1874_v21  ;;  %v910_v29 = vpop.f32.mrb[2].mxu0  ;;  %v982_v31 = vadd.f32 %v981_v28, %v1877_v22  ;;  %v983_v33 = vpop.f32.mrb[2].mxu1 }
 0x11b   :  { %1164 = vst [vmem:[%s2154_s3] sm:$0xff] %v907_v24  ;;  %v911_v32 = vadd.f32 %v910_v29, %v1868_v20  ;;  %v912_v34 = vpop.f32.mrb[3].mxu0  ;;  %1166 = vst [vmem:[%s2154_s3 + $0x10] sm:$0xff] %v980_v27  ;;  %v984_v35 = vadd.f32 %v983_v33, %v1871_v3  ;;  %v985_v38 = vpop.f32.mrb[3].mxu1 }
 0x11c   :  { %1165 = vst [vmem:[%s2154_s3 + $0x8] sm:$0xff] %v909_v56  ;;  %v913_v36 = vadd.f32 %v912_v34, %v1874_v21  ;;  %1167 = vst [vmem:[%s2154_s3 + $0x18] sm:$0xff] %v982_v31  ;;  %v986_v39 = vadd.f32 %v985_v38, %v1877_v22  ;;  %v174_v56 = vsub.s32 5, %v1856_v19 }
 0x11d   :  { %1172 = vst [vmem:[%s2154_s3 + $0x40] sm:$0xff] %v911_v32  ;;  %1174 = vst [vmem:[%s2154_s3 + $0x50] sm:$0xff] %v984_v35 }
 0x11e   :  { %1173 = vst [vmem:[%s2154_s3 + $0x48] sm:$0xff] %v913_v36  ;;  %1175 = vst [vmem:[%s2154_s3 + $0x58] sm:$0xff] %v986_v39  ;;  %v2018_v31 = vrot.slane %v1862_v37, %v174_v56 }
 0x120   :  { %v916_v40 = vpop.f32.mrb[4].mxu0  ;;  %v989_v42 = vpop.f32.mrb[4].mxu1 }
 0x121   :  { %v917_v41 = vadd.f32 %v916_v40, %v1868_v20  ;;  %v918_v43 = vpop.f32.mrb[5].mxu0  ;;  %v990_v44 = vadd.f32 %v989_v42, %v1871_v3  ;;  %v991_v46 = vpop.f32.mrb[5].mxu1 }
 0x122   :  { %v919_v45 = vadd.f32 %v918_v43, %v1874_v21  ;;  %v920_v47 = vpop.f32.mrb[6].mxu0  ;;  %v992_v49 = vadd.f32 %v991_v46, %v1877_v22  ;;  %v993_v51 = vpop.f32.mrb[6].mxu1 }
 0x123   :  { %1180 = vst [vmem:[%s2154_s3 + $0x80] sm:$0xff] %v917_v41  ;;  %v921_v50 = vadd.f32 %v920_v47, %v1868_v20  ;;  %v922_v52 = vpop.f32.mrb[7].mxu0  ;;  %1182 = vst [vmem:[%s2154_s3 + $0x90] sm:$0xff] %v990_v44  ;;  %v994_v53 = vadd.f32 %v993_v51, %v1871_v3  ;;  %v995_v57 = vpop.f32.mrb[7].mxu1 }
 0x124   :  { %1181 = vst [vmem:[%s2154_s3 + $0x88] sm:$0xff] %v919_v45  ;;  %v923_v54 = vadd.f32 %v922_v52, %v1874_v21  ;;  %1183 = vst [vmem:[%s2154_s3 + $0x98] sm:$0xff] %v992_v49  ;;  %v996_v58 = vadd.f32 %v995_v57, %v1877_v22 }
 0x125   :  { %1188 = vst [vmem:[%s2154_s3 + $0xc0] sm:$0xff] %v921_v50  ;;  %1190 = vst [vmem:[%s2154_s3 + $0xd0] sm:$0xff] %v994_v53 }
 0x126   :  { %1189 = vst [vmem:[%s2154_s3 + $0xc8] sm:$0xff] %v923_v54  ;;  %1191 = vst [vmem:[%s2154_s3 + $0xd8] sm:$0xff] %v996_v58 }
 0x128   :  { %v926_v59 = vpop.f32.mrb[8].mxu0  ;;  %v999_v61 = vpop.f32.mrb[8].mxu1 }
 0x129   :  { %v927_v60 = vadd.f32 %v926_v59, %v1868_v20  ;;  %v928_v62 = vpop.f32.mrb[9].mxu0  ;;  %v1000_v63 = vadd.f32 %v999_v61, %v1871_v3  ;;  %v1001_v1 = vpop.f32.mrb[9].mxu1 }
 0x12a   :  { %v929_v0 = vadd.f32 %v928_v62, %v1874_v21  ;;  %v930_v2 = vpop.f32.mrb[10].mxu0  ;;  %v1002_v4 = vadd.f32 %v1001_v1, %v1877_v22  ;;  %v1003_v6 = vpop.f32.mrb[10].mxu1 }
 0x12b   :  { %1196 = vst [vmem:[%s2154_s3 + $0x100] sm:$0xff] %v927_v60  ;;  %v931_v5 = vadd.f32 %v930_v2, %v1868_v20  ;;  %v932_v7 = vpop.f32.mrb[11].mxu0  ;;  %1198 = vst [vmem:[%s2154_s3 + $0x110] sm:$0xff] %v1000_v63  ;;  %v1004_v8 = vadd.f32 %v1003_v6, %v1871_v3  ;;  %v1005_v11 = vpop.f32.mrb[11].mxu1 }
 0x12c   :  { %1197 = vst [vmem:[%s2154_s3 + $0x108] sm:$0xff] %v929_v0  ;;  %v933_v9 = vadd.f32 %v932_v7, %v1874_v21  ;;  %1199 = vst [vmem:[%s2154_s3 + $0x118] sm:$0xff] %v1002_v4  ;;  %v1006_v12 = vadd.f32 %v1005_v11, %v1877_v22 }
 0x12d   :  { %1204 = vst [vmem:[%s2154_s3 + $0x140] sm:$0xff] %v931_v5  ;;  %1206 = vst [vmem:[%s2154_s3 + $0x150] sm:$0xff] %v1004_v8 }
 0x12e   :  { %1205 = vst [vmem:[%s2154_s3 + $0x148] sm:$0xff] %v933_v9  ;;  %1207 = vst [vmem:[%s2154_s3 + $0x158] sm:$0xff] %v1006_v12 }
 0x130   :  { %v936_v13 = vpop.f32.mrb[12].mxu0  ;;  %v1009_v15 = vpop.f32.mrb[12].mxu1 }
 0x131   :  { %v937_v14 = vadd.f32 %v936_v13, %v1868_v20  ;;  %v938_v16 = vpop.f32.mrb[13].mxu0  ;;  %v1010_v17 = vadd.f32 %v1009_v15, %v1871_v3  ;;  %v1011_v30 = vpop.f32.mrb[13].mxu1 }
 0x132   :  { %v939_v10 = vadd.f32 %v938_v16, %v1874_v21  ;;  %v940_v48 = vpop.f32.mrb[14].mxu0  ;;  %v1012_v18 = vadd.f32 %v1011_v30, %v1877_v22  ;;  %v1013_v23 = vpop.f32.mrb[14].mxu1 }
 0x133   :  { %1212 = vst [vmem:[%s2154_s3 + $0x180] sm:$0xff] %v937_v14  ;;  %v941_v55 = vadd.f32 %v940_v48, %v1868_v20  ;;  %v942_v24 = vpop.f32.mrb[15].mxu0  ;;  %1214 = vst [vmem:[%s2154_s3 + $0x190] sm:$0xff] %v1010_v17  ;;  %v1014_v25 = vadd.f32 %v1013_v23, %v1871_v3  ;;  %v1015_v27 = vpop.f32.mrb[15].mxu1  ;;  %v170_v3 = vsub.s32 4, %v1856_v19 }
 0x134   :  { %1213 = vst [vmem:[%s2154_s3 + $0x188] sm:$0xff] %v939_v10  ;;  %v943_v26 = vadd.f32 %v942_v24, %v1874_v21  ;;  %1215 = vst [vmem:[%s2154_s3 + $0x198] sm:$0xff] %v1012_v18  ;;  %v1016_v20 = vadd.f32 %v1015_v27, %v1877_v22  ;;  %v178_v21 = vsub.s32 6, %v1856_v19  ;;  %v182_v22 = vsub.s32 7, %v1856_v19 }
 0x135   :  { %1220 = vst [vmem:[%s2154_s3 + $0x1c0] sm:$0xff] %v941_v55  ;;  %1222 = vst [vmem:[%s2154_s3 + $0x1d0] sm:$0xff] %v1014_v25  ;;  %v2012_v28 = vrot.slane %v1862_v37, %v170_v3 }
 0x136   :  { %1221 = vst [vmem:[%s2154_s3 + $0x1c8] sm:$0xff] %v943_v26  ;;  %1223 = vst [vmem:[%s2154_s3 + $0x1d8] sm:$0xff] %v1016_v20  ;;  %v2015_v29 = vrot.slane %v1862_v37, %v178_v21  ;;  %v2021_v32 = vrot.slane %v1862_v37, %v182_v22 }
 0x158   :  { %v1052_v33 = vpop.f32.mrb[16].mxu0  ;;  %v1125_v35 = vpop.f32.mrb[16].mxu1 }
 0x159   :  { %v1053_v34 = vadd.f32 %v1052_v33, %v2012_v28  ;;  %v1054_v36 = vpop.f32.mrb[17].mxu0  ;;  %v1126_v38 = vadd.f32 %v1125_v35, %v2015_v29  ;;  %v1127_v39 = vpop.f32.mrb[17].mxu1 }
 0x15a   :  { %v1055_v19 = vadd.f32 %v1054_v36, %v2018_v31  ;;  %v1056_v40 = vpop.f32.mrb[18].mxu0  ;;  %v1128_v41 = vadd.f32 %v1127_v39, %v2021_v32  ;;  %v1129_v42 = vpop.f32.mrb[18].mxu1 }
 0x15b   :  { %1168 = vst [vmem:[%s2154_s3 + $0x20] sm:$0xff] %v1053_v34  ;;  %v1057_v37 = vadd.f32 %v1056_v40, %v2012_v28  ;;  %v1058_v43 = vpop.f32.mrb[19].mxu0  ;;  %1170 = vst [vmem:[%s2154_s3 + $0x30] sm:$0xff] %v1126_v38  ;;  %v1130_v44 = vadd.f32 %v1129_v42, %v2015_v29  ;;  %v1131_v46 = vpop.f32.mrb[19].mxu1 }
 0x15c   :  { %1169 = vst [vmem:[%s2154_s3 + $0x28] sm:$0xff] %v1055_v19  ;;  %v1059_v45 = vadd.f32 %v1058_v43, %v2018_v31  ;;  %1171 = vst [vmem:[%s2154_s3 + $0x38] sm:$0xff] %v1128_v41  ;;  %v1132_v47 = vadd.f32 %v1131_v46, %v2021_v32 }
 0x15d   :  { %1176 = vst [vmem:[%s2154_s3 + $0x60] sm:$0xff] %v1057_v37  ;;  %1178 = vst [vmem:[%s2154_s3 + $0x70] sm:$0xff] %v1130_v44 }
 0x15e   :  { %1177 = vst [vmem:[%s2154_s3 + $0x68] sm:$0xff] %v1059_v45  ;;  %1179 = vst [vmem:[%s2154_s3 + $0x78] sm:$0xff] %v1132_v47 }
 0x160   :  { %v1062_v49 = vpop.f32.mrb[20].mxu0  ;;  %v1135_v51 = vpop.f32.mrb[20].mxu1 }
 0x161   :  { %v1063_v50 = vadd.f32 %v1062_v49, %v2012_v28  ;;  %v1064_v52 = vpop.f32.mrb[21].mxu0  ;;  %v1136_v53 = vadd.f32 %v1135_v51, %v2015_v29  ;;  %v1137_v57 = vpop.f32.mrb[21].mxu1 }
 0x162   :  { %v1065_v54 = vadd.f32 %v1064_v52, %v2018_v31  ;;  %v1066_v58 = vpop.f32.mrb[22].mxu0  ;;  %v1138_v59 = vadd.f32 %v1137_v57, %v2021_v32  ;;  %v1139_v61 = vpop.f32.mrb[22].mxu1 }
 0x163   :  { %1184 = vst [vmem:[%s2154_s3 + $0xa0] sm:$0xff] %v1063_v50  ;;  %v1067_v60 = vadd.f32 %v1066_v58, %v2012_v28  ;;  %v1068_v62 = vpop.f32.mrb[23].mxu0  ;;  %1186 = vst [vmem:[%s2154_s3 + $0xb0] sm:$0xff] %v1136_v53  ;;  %v1140_v63 = vadd.f32 %v1139_v61, %v2015_v29  ;;  %v1141_v1 = vpop.f32.mrb[23].mxu1 }
 0x164   :  { %1185 = vst [vmem:[%s2154_s3 + $0xa8] sm:$0xff] %v1065_v54  ;;  %v1069_v0 = vadd.f32 %v1068_v62, %v2018_v31  ;;  %1187 = vst [vmem:[%s2154_s3 + $0xb8] sm:$0xff] %v1138_v59  ;;  %v1142_v2 = vadd.f32 %v1141_v1, %v2021_v32 }
 0x165   :  { %1192 = vst [vmem:[%s2154_s3 + $0xe0] sm:$0xff] %v1067_v60  ;;  %1194 = vst [vmem:[%s2154_s3 + $0xf0] sm:$0xff] %v1140_v63 }
 0x166   :  { %1193 = vst [vmem:[%s2154_s3 + $0xe8] sm:$0xff] %v1069_v0  ;;  %1195 = vst [vmem:[%s2154_s3 + $0xf8] sm:$0xff] %v1142_v2 }
 0x168   :  { %v1072_v4 = vpop.f32.mrb[24].mxu0  ;;  %v1145_v6 = vpop.f32.mrb[24].mxu1 }
 0x169   :  { %v1073_v5 = vadd.f32 %v1072_v4, %v2012_v28  ;;  %v1074_v7 = vpop.f32.mrb[25].mxu0  ;;  %v1146_v8 = vadd.f32 %v1145_v6, %v2015_v29  ;;  %v1147_v11 = vpop.f32.mrb[25].mxu1 }
 0x16a   :  { %v1075_v9 = vadd.f32 %v1074_v7, %v2018_v31  ;;  %v1076_v12 = vpop.f32.mrb[26].mxu0  ;;  %v1148_v13 = vadd.f32 %v1147_v11, %v2021_v32  ;;  %v1149_v15 = vpop.f32.mrb[26].mxu1 }
 0x16b   :  { %1200 = vst [vmem:[%s2154_s3 + $0x120] sm:$0xff] %v1073_v5  ;;  %v1077_v14 = vadd.f32 %v1076_v12, %v2012_v28  ;;  %v1078_v16 = vpop.f32.mrb[27].mxu0  ;;  %1202 = vst [vmem:[%s2154_s3 + $0x130] sm:$0xff] %v1146_v8  ;;  %v1150_v17 = vadd.f32 %v1149_v15, %v2015_v29  ;;  %v1151_v30 = vpop.f32.mrb[27].mxu1 }
 0x16c   :  { %1201 = vst [vmem:[%s2154_s3 + $0x128] sm:$0xff] %v1075_v9  ;;  %v1079_v10 = vadd.f32 %v1078_v16, %v2018_v31  ;;  %1203 = vst [vmem:[%s2154_s3 + $0x138] sm:$0xff] %v1148_v13  ;;  %v1152_v48 = vadd.f32 %v1151_v30, %v2021_v32 }
 0x16d   :  { %1208 = vst [vmem:[%s2154_s3 + $0x160] sm:$0xff] %v1077_v14  ;;  %1210 = vst [vmem:[%s2154_s3 + $0x170] sm:$0xff] %v1150_v17 }
 0x16e   :  { %1209 = vst [vmem:[%s2154_s3 + $0x168] sm:$0xff] %v1079_v10  ;;  %1211 = vst [vmem:[%s2154_s3 + $0x178] sm:$0xff] %v1152_v48 }
 0x170   :  { %v1082_v18 = vpop.f32.mrb[28].mxu0  ;;  %v1155_v23 = vpop.f32.mrb[28].mxu1 }
 0x171   :  { %v1083_v55 = vadd.f32 %v1082_v18, %v2012_v28  ;;  %v1084_v24 = vpop.f32.mrb[29].mxu0  ;;  %v1156_v25 = vadd.f32 %v1155_v23, %v2015_v29  ;;  %v1157_v27 = vpop.f32.mrb[29].mxu1 }
 0x172   :  { %v1085_v26 = vadd.f32 %v1084_v24, %v2018_v31  ;;  %v1086_v20 = vpop.f32.mrb[30].mxu0  ;;  %v1158_v3 = vadd.f32 %v1157_v27, %v2021_v32  ;;  %v1159_v56 = vpop.f32.mrb[30].mxu1 }
 0x173   :  { %1216 = vst [vmem:[%s2154_s3 + $0x1a0] sm:$0xff] %v1083_v55  ;;  %v1087_v21 = vadd.f32 %v1086_v20, %v2012_v28  ;;  %v1088_v22 = vpop.f32.mrb[31].mxu0  ;;  %1218 = vst [vmem:[%s2154_s3 + $0x1b0] sm:$0xff] %v1156_v25  ;;  %v1160_v33 = vadd.f32 %v1159_v56, %v2015_v29  ;;  %v1161_v35 = vpop.f32.mrb[31].mxu1 }
 0x174   :  { %1217 = vst [vmem:[%s2154_s3 + $0x1a8] sm:$0xff] %v1085_v26  ;;  %v1089_v34 = vadd.f32 %v1088_v22, %v2018_v31  ;;  %1219 = vst [vmem:[%s2154_s3 + $0x1b8] sm:$0xff] %v1158_v3  ;;  %v1162_v28 = vadd.f32 %v1161_v35, %v2021_v32 }
 0x175   :  { %1224 = vst [vmem:[%s2154_s3 + $0x1e0] sm:$0xff] %v1087_v21  ;;  %1226 = vst [vmem:[%s2154_s3 + $0x1f0] sm:$0xff] %v1160_v33 }
 0x176   :  { %1225 = vst [vmem:[%s2154_s3 + $0x1e8] sm:$0xff] %v1089_v34  ;;  %1227 = vst [vmem:[%s2154_s3 + $0x1f8] sm:$0xff] %v1162_v28 }

</bundles_post_ra>
